<compile_context>
chip_gen: v5e
topology: v5e:2x2
jax: 0.10.0
libtpu: 0.0.40
codegen_flags: <defaults>
</compile_context>

<pallas_src>
import math
import jax
import jax.numpy as jnp
from jax.experimental import pallas as pl
from jax.experimental.pallas import tpu as pltpu


# --------------------------------------------------------------------------
# helpers
# --------------------------------------------------------------------------
def _vmem_spec():
    return pl.BlockSpec(memory_space=pltpu.MemorySpace.VMEM)


def _layer_norm(x, g, b, eps=1e-5):
    mu = jnp.mean(x, axis=-1, keepdims=True)
    var = jnp.mean(jnp.square(x - mu), axis=-1, keepdims=True)
    return (x - mu) * jax.lax.rsqrt(var + eps) * g + b


def _leaky_relu(x):
    return jnp.where(x >= 0.0, x, 0.01 * x)


def _softmax_last(x):
    # exact reciprocal (divide): keeps sum(softmax) == 1 to f32 precision
    m = jnp.max(x, axis=-1, keepdims=True)
    e = jnp.exp(x - m)
    return e / jnp.sum(e, axis=-1, keepdims=True)


# --------------------------------------------------------------------------
# single fused kernel: embed + PE + 3x(2-layer encoder) + batch mean + heads
# --------------------------------------------------------------------------
def _make_fused_kernel(cfg, B, L, layout):
    E, F = cfg['E'], cfg['dim_ff']
    NH, NL = cfg['nhead'], cfg['num_layers']
    dh = E // NH
    scale = 1.0 / math.sqrt(dh)
    T = cfg['num_acc_sections']
    H = cfg['acc_hidden']
    MIX = cfg['mix_out']
    max_vel = float(cfg['max_vel'])
    max_acc = float(cfg['max_acc'])
    inv_b = 1.0 / B
    OUT_W = 128
    assert MIX + 1 + T <= OUT_W

    def kernel(xs_ref, ipw_ref, ipb_ref, pe_ref,
               wqkv_ref, wo_ref, w1_ref, w2_ref, vec_ref,
               hmat_ref, hvec_ref, o_ref):
        ipw = ipw_ref[...]                                # (2, E)
        ipb = ipb_ref[...]                                # (1, E)
        pe = pe_ref[...]                                  # (B, E)

        # ---------------- encoders: 3 branches x B batches x NL layers ------
        means = []
        for br in range(3):
            mean_acc = jnp.zeros((L, E), jnp.float32)
            for b in range(B):
                x = xs_ref[br, b]                          # (L, 2)
                # input embedding (K=2 contraction kept on the VPU) + PE.
                # quirk: the PE row is indexed by the *batch* index and is
                # broadcast over the sequence.
                h = (x[:, 0:1] * ipw[0:1, :] + x[:, 1:2] * ipw[1:2, :]
                     + ipb + pe[b:b + 1, :])               # (L, E)
                for l in range(NL):
                    wqkv = wqkv_ref[br, l]                 # (E, 3E)
                    wo = wo_ref[br, l]                     # (E, E)
                    w1 = w1_ref[br, l]                     # (E, F)
                    w2 = w2_ref[br, l]                     # (F, E)
                    vec = vec_ref[br, l]                   # (8, 128)
                    bqkv = vec[0:1, 0:3 * E]
                    bo = vec[1:2, 0:E]
                    g1 = vec[2:3, 0:E]
                    n1 = vec[3:4, 0:E]
                    b1 = vec[4:5, 0:F]
                    b2 = vec[5:6, 0:E]
                    g2 = vec[6:7, 0:E]
                    n2 = vec[7:8, 0:E]

                    # --- self-attention: one fused (L,E)x(E,3E) QKV matmul
                    qkv = jnp.dot(h, wqkv,
                                  preferred_element_type=jnp.float32) + bqkv
                    ctx_parts = []
                    for hd in range(NH):
                        q = qkv[:, hd * dh:(hd + 1) * dh] * scale
                        k = qkv[:, E + hd * dh:E + (hd + 1) * dh]
                        v = qkv[:, 2 * E + hd * dh:2 * E + (hd + 1) * dh]
                        s = jnp.einsum('qd,kd->qk', q, k,
                                       preferred_element_type=jnp.float32)
                        p = _softmax_last(s)
                        ctx_parts.append(
                            jnp.dot(p, v, preferred_element_type=jnp.float32))
                    ctx = jnp.concatenate(ctx_parts, axis=1)       # (L, E)
                    attn = jnp.dot(ctx, wo,
                                   preferred_element_type=jnp.float32) + bo

                    # post-norm encoder layer (torch default norm_first=False)
                    x1 = _layer_norm(h + attn, g1, n1)
                    ff = jnp.dot(
                        jnp.maximum(
                            jnp.dot(x1, w1,
                                    preferred_element_type=jnp.float32) + b1,
                            0.0),
                        w2, preferred_element_type=jnp.float32) + b2
                    h = _layer_norm(x1 + ff, g2, n2)
                # quirk: torch .mean(dim=0) reduces over the batch dim
                mean_acc = mean_acc + h * inv_b
            means.append(mean_acc)

        hist_h = means[0]                                  # (L, E)
        enc = jnp.concatenate(means, axis=1)               # (L, 3E)
        hvec = hvec_ref[...]                               # tiny; keep resident

        # ---------------- mixing-ratio head ---------------------------------
        y = enc
        n_mix = len(layout['mix_w'])
        for i, (off, din, dout) in enumerate(layout['mix_w']):
            boff, bw = layout['mix_b'][i]
            y = (jnp.dot(y, hmat_ref[off:off + din, 0:dout],
                         preferred_element_type=jnp.float32)
                 + hvec[boff:boff + 1, 0:bw])
            if i < n_mix - 1:
                y = _leaky_relu(y)
        mix = _softmax_last(y)                             # (L, MIX)

        # ---------------- initial-velocity head -----------------------------
        y = hist_h
        for i, (off, din, dout) in enumerate(layout['vel_w']):
            boff, bw = layout['vel_b'][i]
            y = _leaky_relu(
                jnp.dot(y, hmat_ref[off:off + din, 0:dout],
                        preferred_element_type=jnp.float32)
                + hvec[boff:boff + 1, 0:bw])
        woff, wlen = layout['vel_w_last']
        boff, bw = layout['vel_b'][-1]
        y = (jnp.sum(y * hvec[woff:woff + 1, 0:wlen], axis=-1, keepdims=True)
             + hvec[boff:boff + 1, 0:bw])
        vel = jax.nn.sigmoid(y) * max_vel                  # (L, 1)

        # ---------------- acceleration decoder: dyn embed + T-step LSTM -----
        doff, ddin, ddout = layout['dyn_w']
        dboff, dbw = layout['dyn_b']
        dec = jnp.maximum(
            jnp.dot(enc, hmat_ref[doff:doff + ddin, 0:ddout],
                    preferred_element_type=jnp.float32)
            + hvec[dboff:dboff + 1, 0:dbw], 0.0)           # (L, acc_in)
        ioff, idin, idout = layout['lstm_wih']
        hoff, hdin, hdout = layout['lstm_whh']
        lboff, lbw = layout['lstm_b']
        # input is the same every time step -> hoist x-gates out of the loop
        xg = (jnp.dot(dec, hmat_ref[ioff:ioff + idin, 0:idout],
                      preferred_element_type=jnp.float32)
              + hvec[lboff:lboff + 1, 0:lbw])              # (L, 4H)
        whh = hmat_ref[hoff:hoff + hdin, 0:hdout]          # (H, 4H)
        awoff, awlen = layout['acc_w']
        aboff, abw = layout['acc_b']
        acc_w_row = hvec[awoff:awoff + 1, 0:awlen]         # (1, H)
        acc_bias = hvec[aboff:aboff + 1, 0:abw]            # (1, 1)

        h_t = jnp.zeros((L, H), jnp.float32)
        c_t = jnp.zeros((L, H), jnp.float32)
        acc_cols = []
        for _ in range(T):                                 # static unroll (T=8)
            gates = xg + jnp.dot(h_t, whh, preferred_element_type=jnp.float32)
            i_g = jax.nn.sigmoid(gates[:, 0:H])
            f_g = jax.nn.sigmoid(gates[:, H:2 * H])
            g_g = jnp.tanh(gates[:, 2 * H:3 * H])
            o_g = jax.nn.sigmoid(gates[:, 3 * H:4 * H])
            c_t = f_g * c_t + i_g * g_g
            h_t = o_g * jnp.tanh(c_t)
            # acc output projection folded into the time loop (lane reduce)
            acc_cols.append(
                jnp.sum(jnp.maximum(h_t, 0.0) * acc_w_row,
                        axis=-1, keepdims=True) + acc_bias)        # (L, 1)
        acc = jnp.tanh(jnp.concatenate(acc_cols, axis=1)) * max_acc  # (L, T)

        # ---------------- lane-dense (L, 128) output slab -------------------
        o_ref[...] = jnp.zeros_like(o_ref)
        o_ref[:, 0:MIX] = mix
        o_ref[:, MIX:MIX + 1] = vel
        o_ref[:, MIX + 1:MIX + 1 + T] = acc

    return kernel


# --------------------------------------------------------------------------
# weight packing (pure JAX, one-time)
# --------------------------------------------------------------------------
def pack_encoder_weights(branches, cfg):
    WIDTH = 128

    def row(v):
        return jnp.pad(v, ((0, 0), (0, WIDTH - v.shape[1])))

    wqkv_b, wo_b, w1_b, w2_b, vec_b = [], [], [], [], []
    for layers in branches:
        wqkv_l, wo_l, w1_l, w2_l, vec_l = [], [], [], [], []
        for lw in layers:
            wqkv_l.append(jnp.concatenate([lw['wq'], lw['wk'], lw['wv']],
                                          axis=1))               # (E, 3E)
            wo_l.append(lw['wo'])                                 # (E, E)
            w1_l.append(lw['w1'])                                 # (E, F)
            w2_l.append(lw['w2'])                                 # (F, E)
            bqkv = jnp.concatenate([lw['bq'], lw['bk'], lw['bv']], axis=1)
            vec_l.append(jnp.concatenate(
                [row(bqkv), row(lw['bo']), row(lw['ln1_g']), row(lw['ln1_b']),
                 row(lw['b1']), row(lw['b2']), row(lw['ln2_g']),
                 row(lw['ln2_b'])], axis=0))                      # (8, 128)
        wqkv_b.append(jnp.stack(wqkv_l))   # (NL, E, 3E)
        wo_b.append(jnp.stack(wo_l))       # (NL, E, E)
        w1_b.append(jnp.stack(w1_l))       # (NL, E, F)
        w2_b.append(jnp.stack(w2_l))       # (NL, F, E)
        vec_b.append(jnp.stack(vec_l))     # (NL, 8, 128)
    return (jnp.stack(wqkv_b), jnp.stack(wo_b), jnp.stack(w1_b),
            jnp.stack(w2_b), jnp.stack(vec_b))


def pack_head_weights(w):
    """Consolidate all head weights into two slabs: hmat (matrices, rows
    8-aligned, 128 lanes zero-padded) and hvec (1-row vectors), plus a layout
    dict of compile-time (row_offset, dims) tuples."""
    WIDTH = 128
    mats, vec_rows = [], []
    mat_rows = 0

    def add_mat(arr):
        nonlocal mat_rows
        din, dout = arr.shape
        assert dout <= WIDTH
        off = mat_rows
        pad_r = (-din) % 8
        mats.append(jnp.pad(arr, ((0, pad_r), (0, WIDTH - dout))))
        mat_rows += din + pad_r
        return (off, din, dout)

    def add_vec(arr):
        assert arr.shape[0] == 1 and arr.shape[1] <= WIDTH
        off = len(vec_rows)
        vec_rows.append(jnp.pad(arr, ((0, 0), (0, WIDTH - arr.shape[1]))))
        return (off, arr.shape[1])

    layout = {'mix_w': [], 'mix_b': [], 'vel_w': [], 'vel_b': []}
    for (wi, bi) in w['mix']:
        layout['mix_w'].append(add_mat(wi))
        layout['mix_b'].append(add_vec(bi))
    n_vel = len(w['vel'])
    for j, (wi, bi) in enumerate(w['vel']):
        if j < n_vel - 1:
            layout['vel_w'].append(add_mat(wi))
        else:
            layout['vel_w_last'] = add_vec(wi.T)       # (1, H) -> lane reduce
        layout['vel_b'].append(add_vec(bi))
    layout['dyn_w'] = add_mat(w['dyn_w'])
    layout['dyn_b'] = add_vec(w['dyn_b'])
    layout['lstm_wih'] = add_mat(w['lstm_wih'])
    layout['lstm_whh'] = add_mat(w['lstm_whh'])
    layout['lstm_b'] = add_vec(w['lstm_bias'])
    layout['acc_w'] = add_vec(w['acc_w'].T)            # (1, H) -> lane reduce
    layout['acc_b'] = add_vec(w['acc_b'])

    hmat = jnp.concatenate(mats, axis=0)
    pad_r = (-hmat.shape[0]) % 8
    if pad_r:
        hmat = jnp.pad(hmat, ((0, pad_r), (0, 0)))
    hvec = jnp.concatenate(vec_rows, axis=0)
    pad_v = (-hvec.shape[0]) % 8
    if pad_v:
        hvec = jnp.pad(hvec, ((0, pad_v), (0, 0)))
    return hmat, hvec, layout


# --------------------------------------------------------------------------
# parameter init (deterministic, synthetic) + positional encoding
# --------------------------------------------------------------------------
def init_weights(key, cfg):
    E, F = cfg['E'], cfg['dim_ff']
    keys = iter(jax.random.split(key, 256))

    def dense(shape, scale=None):
        s = scale if scale is not None else 1.0 / math.sqrt(shape[0])
        return jax.random.normal(next(keys), shape, jnp.float32) * s

    def enc_layer():
        return dict(
            wq=dense((E, E)), wk=dense((E, E)), wv=dense((E, E)),
            bq=dense((1, E), 0.02), bk=dense((1, E), 0.02), bv=dense((1, E), 0.02),
            wo=dense((E, E)), bo=dense((1, E), 0.02),
            ln1_g=jnp.ones((1, E), jnp.float32), ln1_b=jnp.zeros((1, E), jnp.float32),
            w1=dense((E, F)), b1=dense((1, F), 0.02),
            w2=dense((F, E)), b2=dense((1, E), 0.02),
            ln2_g=jnp.ones((1, E), jnp.float32), ln2_b=jnp.zeros((1, E), jnp.float32),
        )

    w = {}
    w['ip_w'] = dense((2, E))
    w['ip_b'] = dense((1, E), 0.1)
    w['enc_hist'] = [enc_layer() for _ in range(cfg['num_layers'])]
    w['enc_left'] = [enc_layer() for _ in range(cfg['num_layers'])]
    w['enc_right'] = [enc_layer() for _ in range(cfg['num_layers'])]

    sizes = [3 * E] + cfg['mix_hidden'] + [cfg['mix_out']]
    w['mix'] = [(dense((sizes[i], sizes[i + 1])), dense((1, sizes[i + 1]), 0.02))
                for i in range(len(sizes) - 1)]
    sizes = [E] + cfg['vel_hidden'] + [1]
    w['vel'] = [(dense((sizes[i], sizes[i + 1])), dense((1, sizes[i + 1]), 0.02))
                for i in range(len(sizes) - 1)]

    w['dyn_w'] = dense((3 * E, cfg['acc_in']))
    w['dyn_b'] = dense((1, cfg['acc_in']), 0.02)
    H = cfg['acc_hidden']
    w['lstm_wih'] = dense((cfg['acc_in'], 4 * H))
    w['lstm_whh'] = dense((H, 4 * H))
    w['lstm_bias'] = dense((1, 4 * H), 0.02)   # b_ih + b_hh combined
    w['acc_w'] = dense((H, 1))
    w['acc_b'] = dense((1, 1), 0.02)
    return w


def positional_encoding(seq_len, emb_dim):
    # identical math to _add_positional_encoding (dim 0 treated as "sequence")
    position = jnp.arange(seq_len, dtype=jnp.float32)[:, None]
    div_term = jnp.exp(jnp.arange(0, emb_dim, 2, dtype=jnp.float32)
                       * (-math.log(10000.0) / emb_dim))
    pe = jnp.zeros((seq_len, emb_dim), jnp.float32)
    pe = pe.at[:, 0::2].set(jnp.sin(position * div_term))
    pe = pe.at[:, 1::2].set(jnp.cos(position * div_term))
    return pe


# --------------------------------------------------------------------------
# full forward pass: exactly 1 pallas_call
# --------------------------------------------------------------------------
def mixnet_forward(weights, packed_enc, head_pack, hist, left_bound,
                   right_bound, cfg):
    B, L, _ = hist.shape
    E = cfg['E']
    hmat, hvec, layout = head_pack

    xs = jnp.stack([hist, left_bound, right_bound], axis=0)        # (3, B, L, 2)
    pe = positional_encoding(B, E)                                  # (B, E)

    kernel = _make_fused_kernel(cfg, B, L, layout)
    n_in = 11
    slab = pl.pallas_call(
        kernel,
        out_shape=jax.ShapeDtypeStruct((L, 128), jnp.float32),
        in_specs=[_vmem_spec() for _ in range(n_in)],
        out_specs=_vmem_spec(),
    )(xs, weights['ip_w'], weights['ip_b'], pe, *packed_enc, hmat, hvec)

    MIX = cfg['mix_out']
    T = cfg['num_acc_sections']
    mix_out = slab[:, 0:MIX]
    vel_out = slab[:, MIX:MIX + 1]
    acc_out = slab[:, MIX + 1:MIX + 1 + T]
    return mix_out, vel_out, acc_out


# --------------------------------------------------------------------------
if __name__ == "__main__":
    params = {
        'encoder': {'in_size': 32, 'hidden_size': 32, 'nhead': 2,
                    'dim_feedforward': 64, 'dropout': 0.0, 'num_layers': 2},
        'mixer_linear_stack': {'hidden_sizes': [32], 'out_size': 4},
        'init_vel_linear_stack': {'hidden_sizes': [32], 'out_size': 1, 'max_vel': 50.0},
        'acc_decoder': {'in_size': 16, 'hidden_size': 32,
                        'num_acc_sections': 8, 'max_acc': 10.0},
        'use_cuda': False,
    }
    assert params['encoder']['in_size'] == params['encoder']['hidden_size']
    cfg = dict(
        E=params['encoder']['hidden_size'],
        nhead=params['encoder']['nhead'],
        dim_ff=params['encoder']['dim_feedforward'],
        num_layers=params['encoder']['num_layers'],
        mix_hidden=params['mixer_linear_stack']['hidden_sizes'],
        mix_out=params['mixer_linear_stack']['out_size'],
        vel_hidden=params['init_vel_linear_stack']['hidden_sizes'],
        max_vel=params['init_vel_linear_stack']['max_vel'],
        acc_in=params['acc_decoder']['in_size'],
        acc_hidden=params['acc_decoder']['hidden_size'],
        num_acc_sections=params['acc_decoder']['num_acc_sections'],
        max_acc=params['acc_decoder']['max_acc'],
    )

    key = jax.random.PRNGKey(0)
    k1, k2, k3, kw = jax.random.split(key, 4)
    B, L = 2, 8                 # hist_len == boundary_len (required by torch.cat dim=2)
    hist = jax.random.normal(k1, (B, L, 2), jnp.float32)
    left = jax.random.normal(k2, (B, L, 2), jnp.float32)
    right = jax.random.normal(k3, (B, L, 2), jnp.float32)

    weights = init_weights(kw, cfg)
    packed_enc = pack_encoder_weights(
        [weights['enc_hist'], weights['enc_left'], weights['enc_right']], cfg)
    head_pack = pack_head_weights(weights)

    fwd = jax.jit(lambda h, l, r: mixnet_forward(weights, packed_enc, head_pack,
                                                 h, l, r, cfg))
    mix_out, vel_out, acc_out = fwd(hist, left, right)
    jax.block_until_ready((mix_out, vel_out, acc_out))

    # leading dim is L (=8) because the module reduces over dim 0 (the batch dim)
    assert mix_out.shape == (L, cfg['mix_out'])
    assert vel_out.shape == (L, 1)
    assert acc_out.shape == (L, cfg['num_acc_sections'])
    assert bool(jnp.all(jnp.isfinite(mix_out)))
    assert bool(jnp.all(jnp.isfinite(vel_out)))
    assert bool(jnp.all(jnp.isfinite(acc_out)))
    # exact (divide-based) softmax -> rows sum to 1 within f32 rounding
    assert bool(jnp.allclose(jnp.sum(mix_out, axis=1), 1.0, atol=1e-5))
    # range checks implied by sigmoid/tanh output scaling
    assert bool(jnp.all(vel_out >= 0.0)) and bool(jnp.all(vel_out <= cfg['max_vel']))
    assert bool(jnp.all(jnp.abs(acc_out) <= cfg['max_acc']))

    print("KERNEL_OK")
</pallas_src>

<mosaic_0001>
module attributes {stable_mosaic.version = 11 : i64} {
  func.func @kernel(%arg0: memref<3x2x8x2xf32, #tpu.memory_space<vmem>>, %arg1: memref<2x32xf32, #tpu.memory_space<vmem>>, %arg2: memref<1x32xf32, #tpu.memory_space<vmem>>, %arg3: memref<2x32xf32, #tpu.memory_space<vmem>>, %arg4: memref<3x2x32x96xf32, #tpu.memory_space<vmem>>, %arg5: memref<3x2x32x32xf32, #tpu.memory_space<vmem>>, %arg6: memref<3x2x32x64xf32, #tpu.memory_space<vmem>>, %arg7: memref<3x2x64x32xf32, #tpu.memory_space<vmem>>, %arg8: memref<3x2x8x128xf32, #tpu.memory_space<vmem>>, %arg9: memref<304x128xf32, #tpu.memory_space<vmem>>, %arg10: memref<16x128xf32, #tpu.memory_space<vmem>>, %arg11: memref<8x128xf32, #tpu.memory_space<vmem>>) attributes {dimension_semantics = [], scalar_prefetch = 0 : i64, scratch_operands = 0 : i64, tpu.core_type = #tpu.core_type<tc>} {
    %c0 = arith.constant 0 : index
    %c0_0 = arith.constant 0 : index
    %0 = vector.load %arg1[%c0, %c0_0] : memref<2x32xf32, #tpu.memory_space<vmem>>, vector<2x32xf32>
    %c0_1 = arith.constant 0 : index
    %c0_2 = arith.constant 0 : index
    %1 = vector.load %arg2[%c0_1, %c0_2] : memref<1x32xf32, #tpu.memory_space<vmem>>, vector<1x32xf32>
    %c0_3 = arith.constant 0 : index
    %c0_4 = arith.constant 0 : index
    %2 = vector.load %arg3[%c0_3, %c0_4] : memref<2x32xf32, #tpu.memory_space<vmem>>, vector<2x32xf32>
    %cst = arith.constant 0.000000e+00 : f32
    %3 = vector.broadcast %cst : f32 to vector<8x32xf32>
    %c0_5 = arith.constant 0 : index
    %c0_6 = arith.constant 0 : index
    %c0_7 = arith.constant 0 : index
    %c0_8 = arith.constant 0 : index
    %4 = vector.load %arg0[%c0_5, %c0_6, %c0_7, %c0_8] : memref<3x2x8x2xf32, #tpu.memory_space<vmem>>, vector<1x1x8x2xf32>
    %5 = vector.shape_cast %4 : vector<1x1x8x2xf32> to vector<8x2xf32>
    %6 = vector.extract_strided_slice %5 {offsets = [0, 0], sizes = [8, 1], strides = [1, 1]} : vector<8x2xf32> to vector<8x1xf32>
    %7 = vector.extract_strided_slice %0 {offsets = [0, 0], sizes = [1, 32], strides = [1, 1]} : vector<2x32xf32> to vector<1x32xf32>
    %8 = vector.broadcast %6 : vector<8x1xf32> to vector<8x32xf32>
    %9 = vector.broadcast %7 : vector<1x32xf32> to vector<8x32xf32>
    %10 = arith.mulf %8, %9 : vector<8x32xf32>
    %11 = vector.extract_strided_slice %5 {offsets = [0, 1], sizes = [8, 1], strides = [1, 1]} : vector<8x2xf32> to vector<8x1xf32>
    %12 = vector.extract_strided_slice %0 {offsets = [1, 0], sizes = [1, 32], strides = [1, 1]} : vector<2x32xf32> to vector<1x32xf32>
    %13 = vector.broadcast %11 : vector<8x1xf32> to vector<8x32xf32>
    %14 = vector.broadcast %12 : vector<1x32xf32> to vector<8x32xf32>
    %15 = arith.mulf %13, %14 : vector<8x32xf32>
    %16 = arith.addf %10, %15 : vector<8x32xf32>
    %17 = vector.broadcast %1 : vector<1x32xf32> to vector<8x32xf32>
    %18 = arith.addf %16, %17 : vector<8x32xf32>
    %19 = vector.extract_strided_slice %2 {offsets = [0, 0], sizes = [1, 32], strides = [1, 1]} : vector<2x32xf32> to vector<1x32xf32>
    %20 = vector.broadcast %19 : vector<1x32xf32> to vector<8x32xf32>
    %21 = arith.addf %18, %20 : vector<8x32xf32>
    %c0_9 = arith.constant 0 : index
    %c0_10 = arith.constant 0 : index
    %c0_11 = arith.constant 0 : index
    %c0_12 = arith.constant 0 : index
    %22 = vector.load %arg4[%c0_9, %c0_10, %c0_11, %c0_12] : memref<3x2x32x96xf32, #tpu.memory_space<vmem>>, vector<1x1x32x96xf32>
    %23 = vector.shape_cast %22 : vector<1x1x32x96xf32> to vector<32x96xf32>
    %c0_13 = arith.constant 0 : index
    %c0_14 = arith.constant 0 : index
    %c0_15 = arith.constant 0 : index
    %c0_16 = arith.constant 0 : index
    %24 = vector.load %arg5[%c0_13, %c0_14, %c0_15, %c0_16] : memref<3x2x32x32xf32, #tpu.memory_space<vmem>>, vector<1x1x32x32xf32>
    %25 = vector.shape_cast %24 : vector<1x1x32x32xf32> to vector<32x32xf32>
    %c0_17 = arith.constant 0 : index
    %c0_18 = arith.constant 0 : index
    %c0_19 = arith.constant 0 : index
    %c0_20 = arith.constant 0 : index
    %26 = vector.load %arg6[%c0_17, %c0_18, %c0_19, %c0_20] : memref<3x2x32x64xf32, #tpu.memory_space<vmem>>, vector<1x1x32x64xf32>
    %27 = vector.shape_cast %26 : vector<1x1x32x64xf32> to vector<32x64xf32>
    %c0_21 = arith.constant 0 : index
    %c0_22 = arith.constant 0 : index
    %c0_23 = arith.constant 0 : index
    %c0_24 = arith.constant 0 : index
    %28 = vector.load %arg7[%c0_21, %c0_22, %c0_23, %c0_24] : memref<3x2x64x32xf32, #tpu.memory_space<vmem>>, vector<1x1x64x32xf32>
    %29 = vector.shape_cast %28 : vector<1x1x64x32xf32> to vector<64x32xf32>
    %c0_25 = arith.constant 0 : index
    %c0_26 = arith.constant 0 : index
    %c0_27 = arith.constant 0 : index
    %c0_28 = arith.constant 0 : index
    %30 = vector.load %arg8[%c0_25, %c0_26, %c0_27, %c0_28] : memref<3x2x8x128xf32, #tpu.memory_space<vmem>>, vector<1x1x8x128xf32>
    %31 = vector.shape_cast %30 : vector<1x1x8x128xf32> to vector<8x128xf32>
    %32 = vector.extract_strided_slice %31 {offsets = [0, 0], sizes = [1, 96], strides = [1, 1]} : vector<8x128xf32> to vector<1x96xf32>
    %33 = vector.extract_strided_slice %31 {offsets = [1, 0], sizes = [1, 32], strides = [1, 1]} : vector<8x128xf32> to vector<1x32xf32>
    %34 = vector.extract_strided_slice %31 {offsets = [2, 0], sizes = [1, 32], strides = [1, 1]} : vector<8x128xf32> to vector<1x32xf32>
    %35 = vector.extract_strided_slice %31 {offsets = [3, 0], sizes = [1, 32], strides = [1, 1]} : vector<8x128xf32> to vector<1x32xf32>
    %36 = vector.extract_strided_slice %31 {offsets = [4, 0], sizes = [1, 64], strides = [1, 1]} : vector<8x128xf32> to vector<1x64xf32>
    %37 = vector.extract_strided_slice %31 {offsets = [5, 0], sizes = [1, 32], strides = [1, 1]} : vector<8x128xf32> to vector<1x32xf32>
    %38 = vector.extract_strided_slice %31 {offsets = [6, 0], sizes = [1, 32], strides = [1, 1]} : vector<8x128xf32> to vector<1x32xf32>
    %39 = vector.extract_strided_slice %31 {offsets = [7, 0], sizes = [1, 32], strides = [1, 1]} : vector<8x128xf32> to vector<1x32xf32>
    %cst_29 = arith.constant dense<0.000000e+00> : vector<8x96xf32>
    %40 = tpu.matmul %21, %23, %cst_29 {dimension_numbers = #tpu.dot_dimension_numbers<[1], [0], [0], [1], [0, 0, 1, 1], [], []>} : vector<8x32xf32>, vector<32x96xf32>, vector<8x96xf32> -> vector<8x96xf32>
    %41 = vector.broadcast %32 : vector<1x96xf32> to vector<8x96xf32>
    %42 = arith.addf %40, %41 : vector<8x96xf32>
    %43 = vector.extract_strided_slice %42 {offsets = [0, 0], sizes = [8, 16], strides = [1, 1]} : vector<8x96xf32> to vector<8x16xf32>
    %cst_30 = arith.constant 2.500000e-01 : f32
    %44 = vector.broadcast %cst_30 : f32 to vector<8x16xf32>
    %45 = arith.mulf %43, %44 : vector<8x16xf32>
    %46 = vector.extract_strided_slice %42 {offsets = [0, 32], sizes = [8, 16], strides = [1, 1]} : vector<8x96xf32> to vector<8x16xf32>
    %47 = vector.extract_strided_slice %42 {offsets = [0, 64], sizes = [8, 16], strides = [1, 1]} : vector<8x96xf32> to vector<8x16xf32>
    "tpu.trace_start"() <{level = 10 : i32, message = "qd,kd->qk"}> : () -> ()
    %cst_31 = arith.constant dense<0.000000e+00> : vector<8x8xf32>
    %48 = tpu.matmul %45, %46, %cst_31 {dimension_numbers = #tpu.dot_dimension_numbers<[1], [1], [0], [0], [0, 0, 1, 0], [], []>} : vector<8x16xf32>, vector<8x16xf32>, vector<8x8xf32> -> vector<8x8xf32>
    "tpu.trace_stop"() : () -> ()
    %cst_32 = arith.constant dense<0xFF800000> : vector<8xf32>
    %49 = vector.multi_reduction <maximumf>, %48, %cst_32 [1] : vector<8x8xf32> to vector<8xf32>
    %50 = vector.shape_cast %49 : vector<8xf32> to vector<8x1xf32>
    %51 = vector.broadcast %50 : vector<8x1xf32> to vector<8x8xf32>
    %52 = arith.subf %48, %51 : vector<8x8xf32>
    %53 = math.exp %52 : vector<8x8xf32>
    %cst_33 = arith.constant dense<0.000000e+00> : vector<8xf32>
    %54 = vector.multi_reduction <add>, %53, %cst_33 [1] : vector<8x8xf32> to vector<8xf32>
    %55 = vector.shape_cast %54 : vector<8xf32> to vector<8x1xf32>
    %56 = vector.broadcast %55 : vector<8x1xf32> to vector<8x8xf32>
    %57 = arith.divf %53, %56 : vector<8x8xf32>
    %cst_34 = arith.constant dense<0.000000e+00> : vector<8x16xf32>
    %58 = tpu.matmul %57, %47, %cst_34 {dimension_numbers = #tpu.dot_dimension_numbers<[1], [0], [0], [1], [0, 0, 1, 1], [], []>} : vector<8x8xf32>, vector<8x16xf32>, vector<8x16xf32> -> vector<8x16xf32>
    %59 = vector.extract_strided_slice %42 {offsets = [0, 16], sizes = [8, 16], strides = [1, 1]} : vector<8x96xf32> to vector<8x16xf32>
    %cst_35 = arith.constant 2.500000e-01 : f32
    %60 = vector.broadcast %cst_35 : f32 to vector<8x16xf32>
    %61 = arith.mulf %59, %60 : vector<8x16xf32>
    %62 = vector.extract_strided_slice %42 {offsets = [0, 48], sizes = [8, 16], strides = [1, 1]} : vector<8x96xf32> to vector<8x16xf32>
    %63 = vector.extract_strided_slice %42 {offsets = [0, 80], sizes = [8, 16], strides = [1, 1]} : vector<8x96xf32> to vector<8x16xf32>
    "tpu.trace_start"() <{level = 10 : i32, message = "qd,kd->qk"}> : () -> ()
    %cst_36 = arith.constant dense<0.000000e+00> : vector<8x8xf32>
    %64 = tpu.matmul %61, %62, %cst_36 {dimension_numbers = #tpu.dot_dimension_numbers<[1], [1], [0], [0], [0, 0, 1, 0], [], []>} : vector<8x16xf32>, vector<8x16xf32>, vector<8x8xf32> -> vector<8x8xf32>
    "tpu.trace_stop"() : () -> ()
    %cst_37 = arith.constant dense<0xFF800000> : vector<8xf32>
    %65 = vector.multi_reduction <maximumf>, %64, %cst_37 [1] : vector<8x8xf32> to vector<8xf32>
    %66 = vector.shape_cast %65 : vector<8xf32> to vector<8x1xf32>
    %67 = vector.broadcast %66 : vector<8x1xf32> to vector<8x8xf32>
    %68 = arith.subf %64, %67 : vector<8x8xf32>
    %69 = math.exp %68 : vector<8x8xf32>
    %cst_38 = arith.constant dense<0.000000e+00> : vector<8xf32>
    %70 = vector.multi_reduction <add>, %69, %cst_38 [1] : vector<8x8xf32> to vector<8xf32>
    %71 = vector.shape_cast %70 : vector<8xf32> to vector<8x1xf32>
    %72 = vector.broadcast %71 : vector<8x1xf32> to vector<8x8xf32>
    %73 = arith.divf %69, %72 : vector<8x8xf32>
    %cst_39 = arith.constant dense<0.000000e+00> : vector<8x16xf32>
    %74 = tpu.matmul %73, %63, %cst_39 {dimension_numbers = #tpu.dot_dimension_numbers<[1], [0], [0], [1], [0, 0, 1, 1], [], []>} : vector<8x8xf32>, vector<8x16xf32>, vector<8x16xf32> -> vector<8x16xf32>
    %75 = tpu.concatenate %58, %74 in 1 : vector<8x16xf32>, vector<8x16xf32> -> vector<8x32xf32>
    %cst_40 = arith.constant dense<0.000000e+00> : vector<8x32xf32>
    %76 = tpu.matmul %75, %25, %cst_40 {dimension_numbers = #tpu.dot_dimension_numbers<[1], [0], [0], [1], [0, 0, 1, 1], [], []>} : vector<8x32xf32>, vector<32x32xf32>, vector<8x32xf32> -> vector<8x32xf32>
    %77 = vector.broadcast %33 : vector<1x32xf32> to vector<8x32xf32>
    %78 = arith.addf %76, %77 : vector<8x32xf32>
    %79 = arith.addf %21, %78 : vector<8x32xf32>
    %cst_41 = arith.constant dense<0.000000e+00> : vector<8xf32>
    %80 = vector.multi_reduction <add>, %79, %cst_41 [1] : vector<8x32xf32> to vector<8xf32>
    %81 = vector.shape_cast %80 : vector<8xf32> to vector<8x1xf32>
    %cst_42 = arith.constant 3.200000e+01 : f32
    %82 = vector.broadcast %cst_42 : f32 to vector<8x1xf32>
    %83 = arith.divf %81, %82 : vector<8x1xf32>
    %84 = vector.broadcast %83 : vector<8x1xf32> to vector<8x32xf32>
    %85 = arith.subf %79, %84 : vector<8x32xf32>
    %86 = arith.mulf %85, %85 : vector<8x32xf32>
    %cst_43 = arith.constant dense<0.000000e+00> : vector<8xf32>
    %87 = vector.multi_reduction <add>, %86, %cst_43 [1] : vector<8x32xf32> to vector<8xf32>
    %88 = vector.shape_cast %87 : vector<8xf32> to vector<8x1xf32>
    %cst_44 = arith.constant 3.200000e+01 : f32
    %89 = vector.broadcast %cst_44 : f32 to vector<8x1xf32>
    %90 = arith.divf %88, %89 : vector<8x1xf32>
    %91 = vector.broadcast %83 : vector<8x1xf32> to vector<8x32xf32>
    %92 = arith.subf %79, %91 : vector<8x32xf32>
    %cst_45 = arith.constant 9.99999974E-6 : f32
    %93 = vector.broadcast %cst_45 : f32 to vector<8x1xf32>
    %94 = arith.addf %90, %93 : vector<8x1xf32>
    %95 = math.rsqrt %94 : vector<8x1xf32>
    %96 = vector.broadcast %95 : vector<8x1xf32> to vector<8x32xf32>
    %97 = arith.mulf %92, %96 : vector<8x32xf32>
    %98 = vector.broadcast %34 : vector<1x32xf32> to vector<8x32xf32>
    %99 = arith.mulf %97, %98 : vector<8x32xf32>
    %100 = vector.broadcast %35 : vector<1x32xf32> to vector<8x32xf32>
    %101 = arith.addf %99, %100 : vector<8x32xf32>
    %cst_46 = arith.constant dense<0.000000e+00> : vector<8x64xf32>
    %102 = tpu.matmul %101, %27, %cst_46 {dimension_numbers = #tpu.dot_dimension_numbers<[1], [0], [0], [1], [0, 0, 1, 1], [], []>} : vector<8x32xf32>, vector<32x64xf32>, vector<8x64xf32> -> vector<8x64xf32>
    %103 = vector.broadcast %36 : vector<1x64xf32> to vector<8x64xf32>
    %104 = arith.addf %102, %103 : vector<8x64xf32>
    %cst_47 = arith.constant 0.000000e+00 : f32
    %105 = vector.broadcast %cst_47 : f32 to vector<8x64xf32>
    %106 = arith.maximumf %104, %105 : vector<8x64xf32>
    %cst_48 = arith.constant dense<0.000000e+00> : vector<8x32xf32>
    %107 = tpu.matmul %106, %29, %cst_48 {dimension_numbers = #tpu.dot_dimension_numbers<[1], [0], [0], [1], [0, 0, 1, 1], [], []>} : vector<8x64xf32>, vector<64x32xf32>, vector<8x32xf32> -> vector<8x32xf32>
    %108 = vector.broadcast %37 : vector<1x32xf32> to vector<8x32xf32>
    %109 = arith.addf %107, %108 : vector<8x32xf32>
    %110 = arith.addf %101, %109 : vector<8x32xf32>
    %cst_49 = arith.constant dense<0.000000e+00> : vector<8xf32>
    %111 = vector.multi_reduction <add>, %110, %cst_49 [1] : vector<8x32xf32> to vector<8xf32>
    %112 = vector.shape_cast %111 : vector<8xf32> to vector<8x1xf32>
    %cst_50 = arith.constant 3.200000e+01 : f32
    %113 = vector.broadcast %cst_50 : f32 to vector<8x1xf32>
    %114 = arith.divf %112, %113 : vector<8x1xf32>
    %115 = vector.broadcast %114 : vector<8x1xf32> to vector<8x32xf32>
    %116 = arith.subf %110, %115 : vector<8x32xf32>
    %117 = arith.mulf %116, %116 : vector<8x32xf32>
    %cst_51 = arith.constant dense<0.000000e+00> : vector<8xf32>
    %118 = vector.multi_reduction <add>, %117, %cst_51 [1] : vector<8x32xf32> to vector<8xf32>
    %119 = vector.shape_cast %118 : vector<8xf32> to vector<8x1xf32>
    %cst_52 = arith.constant 3.200000e+01 : f32
    %120 = vector.broadcast %cst_52 : f32 to vector<8x1xf32>
    %121 = arith.divf %119, %120 : vector<8x1xf32>
    %122 = vector.broadcast %114 : vector<8x1xf32> to vector<8x32xf32>
    %123 = arith.subf %110, %122 : vector<8x32xf32>
    %cst_53 = arith.constant 9.99999974E-6 : f32
    %124 = vector.broadcast %cst_53 : f32 to vector<8x1xf32>
    %125 = arith.addf %121, %124 : vector<8x1xf32>
    %126 = math.rsqrt %125 : vector<8x1xf32>
    %127 = vector.broadcast %126 : vector<8x1xf32> to vector<8x32xf32>
    %128 = arith.mulf %123, %127 : vector<8x32xf32>
    %129 = vector.broadcast %38 : vector<1x32xf32> to vector<8x32xf32>
    %130 = arith.mulf %128, %129 : vector<8x32xf32>
    %131 = vector.broadcast %39 : vector<1x32xf32> to vector<8x32xf32>
    %132 = arith.addf %130, %131 : vector<8x32xf32>
    %c0_54 = arith.constant 0 : index
    %c1 = arith.constant 1 : index
    %c0_55 = arith.constant 0 : index
    %c0_56 = arith.constant 0 : index
    %133 = vector.load %arg4[%c0_54, %c1, %c0_55, %c0_56] : memref<3x2x32x96xf32, #tpu.memory_space<vmem>>, vector<1x1x32x96xf32>
    %134 = vector.shape_cast %133 : vector<1x1x32x96xf32> to vector<32x96xf32>
    %c0_57 = arith.constant 0 : index
    %c1_58 = arith.constant 1 : index
    %c0_59 = arith.constant 0 : index
    %c0_60 = arith.constant 0 : index
    %135 = vector.load %arg5[%c0_57, %c1_58, %c0_59, %c0_60] : memref<3x2x32x32xf32, #tpu.memory_space<vmem>>, vector<1x1x32x32xf32>
    %136 = vector.shape_cast %135 : vector<1x1x32x32xf32> to vector<32x32xf32>
    %c0_61 = arith.constant 0 : index
    %c1_62 = arith.constant 1 : index
    %c0_63 = arith.constant 0 : index
    %c0_64 = arith.constant 0 : index
    %137 = vector.load %arg6[%c0_61, %c1_62, %c0_63, %c0_64] : memref<3x2x32x64xf32, #tpu.memory_space<vmem>>, vector<1x1x32x64xf32>
    %138 = vector.shape_cast %137 : vector<1x1x32x64xf32> to vector<32x64xf32>
    %c0_65 = arith.constant 0 : index
    %c1_66 = arith.constant 1 : index
    %c0_67 = arith.constant 0 : index
    %c0_68 = arith.constant 0 : index
    %139 = vector.load %arg7[%c0_65, %c1_66, %c0_67, %c0_68] : memref<3x2x64x32xf32, #tpu.memory_space<vmem>>, vector<1x1x64x32xf32>
    %140 = vector.shape_cast %139 : vector<1x1x64x32xf32> to vector<64x32xf32>
    %c0_69 = arith.constant 0 : index
    %c1_70 = arith.constant 1 : index
    %c0_71 = arith.constant 0 : index
    %c0_72 = arith.constant 0 : index
    %141 = vector.load %arg8[%c0_69, %c1_70, %c0_71, %c0_72] : memref<3x2x8x128xf32, #tpu.memory_space<vmem>>, vector<1x1x8x128xf32>
    %142 = vector.shape_cast %141 : vector<1x1x8x128xf32> to vector<8x128xf32>
    %143 = vector.extract_strided_slice %142 {offsets = [0, 0], sizes = [1, 96], strides = [1, 1]} : vector<8x128xf32> to vector<1x96xf32>
    %144 = vector.extract_strided_slice %142 {offsets = [1, 0], sizes = [1, 32], strides = [1, 1]} : vector<8x128xf32> to vector<1x32xf32>
    %145 = vector.extract_strided_slice %142 {offsets = [2, 0], sizes = [1, 32], strides = [1, 1]} : vector<8x128xf32> to vector<1x32xf32>
    %146 = vector.extract_strided_slice %142 {offsets = [3, 0], sizes = [1, 32], strides = [1, 1]} : vector<8x128xf32> to vector<1x32xf32>
    %147 = vector.extract_strided_slice %142 {offsets = [4, 0], sizes = [1, 64], strides = [1, 1]} : vector<8x128xf32> to vector<1x64xf32>
    %148 = vector.extract_strided_slice %142 {offsets = [5, 0], sizes = [1, 32], strides = [1, 1]} : vector<8x128xf32> to vector<1x32xf32>
    %149 = vector.extract_strided_slice %142 {offsets = [6, 0], sizes = [1, 32], strides = [1, 1]} : vector<8x128xf32> to vector<1x32xf32>
    %150 = vector.extract_strided_slice %142 {offsets = [7, 0], sizes = [1, 32], strides = [1, 1]} : vector<8x128xf32> to vector<1x32xf32>
    %cst_73 = arith.constant dense<0.000000e+00> : vector<8x96xf32>
    %151 = tpu.matmul %132, %134, %cst_73 {dimension_numbers = #tpu.dot_dimension_numbers<[1], [0], [0], [1], [0, 0, 1, 1], [], []>} : vector<8x32xf32>, vector<32x96xf32>, vector<8x96xf32> -> vector<8x96xf32>
    %152 = vector.broadcast %143 : vector<1x96xf32> to vector<8x96xf32>
    %153 = arith.addf %151, %152 : vector<8x96xf32>
    %154 = vector.extract_strided_slice %153 {offsets = [0, 0], sizes = [8, 16], strides = [1, 1]} : vector<8x96xf32> to vector<8x16xf32>
    %cst_74 = arith.constant 2.500000e-01 : f32
    %155 = vector.broadcast %cst_74 : f32 to vector<8x16xf32>
    %156 = arith.mulf %154, %155 : vector<8x16xf32>
    %157 = vector.extract_strided_slice %153 {offsets = [0, 32], sizes = [8, 16], strides = [1, 1]} : vector<8x96xf32> to vector<8x16xf32>
    %158 = vector.extract_strided_slice %153 {offsets = [0, 64], sizes = [8, 16], strides = [1, 1]} : vector<8x96xf32> to vector<8x16xf32>
    "tpu.trace_start"() <{level = 10 : i32, message = "qd,kd->qk"}> : () -> ()
    %cst_75 = arith.constant dense<0.000000e+00> : vector<8x8xf32>
    %159 = tpu.matmul %156, %157, %cst_75 {dimension_numbers = #tpu.dot_dimension_numbers<[1], [1], [0], [0], [0, 0, 1, 0], [], []>} : vector<8x16xf32>, vector<8x16xf32>, vector<8x8xf32> -> vector<8x8xf32>
    "tpu.trace_stop"() : () -> ()
    %cst_76 = arith.constant dense<0xFF800000> : vector<8xf32>
    %160 = vector.multi_reduction <maximumf>, %159, %cst_76 [1] : vector<8x8xf32> to vector<8xf32>
    %161 = vector.shape_cast %160 : vector<8xf32> to vector<8x1xf32>
    %162 = vector.broadcast %161 : vector<8x1xf32> to vector<8x8xf32>
    %163 = arith.subf %159, %162 : vector<8x8xf32>
    %164 = math.exp %163 : vector<8x8xf32>
    %cst_77 = arith.constant dense<0.000000e+00> : vector<8xf32>
    %165 = vector.multi_reduction <add>, %164, %cst_77 [1] : vector<8x8xf32> to vector<8xf32>
    %166 = vector.shape_cast %165 : vector<8xf32> to vector<8x1xf32>
    %167 = vector.broadcast %166 : vector<8x1xf32> to vector<8x8xf32>
    %168 = arith.divf %164, %167 : vector<8x8xf32>
    %cst_78 = arith.constant dense<0.000000e+00> : vector<8x16xf32>
    %169 = tpu.matmul %168, %158, %cst_78 {dimension_numbers = #tpu.dot_dimension_numbers<[1], [0], [0], [1], [0, 0, 1, 1], [], []>} : vector<8x8xf32>, vector<8x16xf32>, vector<8x16xf32> -> vector<8x16xf32>
    %170 = vector.extract_strided_slice %153 {offsets = [0, 16], sizes = [8, 16], strides = [1, 1]} : vector<8x96xf32> to vector<8x16xf32>
    %cst_79 = arith.constant 2.500000e-01 : f32
    %171 = vector.broadcast %cst_79 : f32 to vector<8x16xf32>
    %172 = arith.mulf %170, %171 : vector<8x16xf32>
    %173 = vector.extract_strided_slice %153 {offsets = [0, 48], sizes = [8, 16], strides = [1, 1]} : vector<8x96xf32> to vector<8x16xf32>
    %174 = vector.extract_strided_slice %153 {offsets = [0, 80], sizes = [8, 16], strides = [1, 1]} : vector<8x96xf32> to vector<8x16xf32>
    "tpu.trace_start"() <{level = 10 : i32, message = "qd,kd->qk"}> : () -> ()
    %cst_80 = arith.constant dense<0.000000e+00> : vector<8x8xf32>
    %175 = tpu.matmul %172, %173, %cst_80 {dimension_numbers = #tpu.dot_dimension_numbers<[1], [1], [0], [0], [0, 0, 1, 0], [], []>} : vector<8x16xf32>, vector<8x16xf32>, vector<8x8xf32> -> vector<8x8xf32>
    "tpu.trace_stop"() : () -> ()
    %cst_81 = arith.constant dense<0xFF800000> : vector<8xf32>
    %176 = vector.multi_reduction <maximumf>, %175, %cst_81 [1] : vector<8x8xf32> to vector<8xf32>
    %177 = vector.shape_cast %176 : vector<8xf32> to vector<8x1xf32>
    %178 = vector.broadcast %177 : vector<8x1xf32> to vector<8x8xf32>
    %179 = arith.subf %175, %178 : vector<8x8xf32>
    %180 = math.exp %179 : vector<8x8xf32>
    %cst_82 = arith.constant dense<0.000000e+00> : vector<8xf32>
    %181 = vector.multi_reduction <add>, %180, %cst_82 [1] : vector<8x8xf32> to vector<8xf32>
    %182 = vector.shape_cast %181 : vector<8xf32> to vector<8x1xf32>
    %183 = vector.broadcast %182 : vector<8x1xf32> to vector<8x8xf32>
    %184 = arith.divf %180, %183 : vector<8x8xf32>
    %cst_83 = arith.constant dense<0.000000e+00> : vector<8x16xf32>
    %185 = tpu.matmul %184, %174, %cst_83 {dimension_numbers = #tpu.dot_dimension_numbers<[1], [0], [0], [1], [0, 0, 1, 1], [], []>} : vector<8x8xf32>, vector<8x16xf32>, vector<8x16xf32> -> vector<8x16xf32>
    %186 = tpu.concatenate %169, %185 in 1 : vector<8x16xf32>, vector<8x16xf32> -> vector<8x32xf32>
    %cst_84 = arith.constant dense<0.000000e+00> : vector<8x32xf32>
    %187 = tpu.matmul %186, %136, %cst_84 {dimension_numbers = #tpu.dot_dimension_numbers<[1], [0], [0], [1], [0, 0, 1, 1], [], []>} : vector<8x32xf32>, vector<32x32xf32>, vector<8x32xf32> -> vector<8x32xf32>
    %188 = vector.broadcast %144 : vector<1x32xf32> to vector<8x32xf32>
    %189 = arith.addf %187, %188 : vector<8x32xf32>
    %190 = arith.addf %132, %189 : vector<8x32xf32>
    %cst_85 = arith.constant dense<0.000000e+00> : vector<8xf32>
    %191 = vector.multi_reduction <add>, %190, %cst_85 [1] : vector<8x32xf32> to vector<8xf32>
    %192 = vector.shape_cast %191 : vector<8xf32> to vector<8x1xf32>
    %cst_86 = arith.constant 3.200000e+01 : f32
    %193 = vector.broadcast %cst_86 : f32 to vector<8x1xf32>
    %194 = arith.divf %192, %193 : vector<8x1xf32>
    %195 = vector.broadcast %194 : vector<8x1xf32> to vector<8x32xf32>
    %196 = arith.subf %190, %195 : vector<8x32xf32>
    %197 = arith.mulf %196, %196 : vector<8x32xf32>
    %cst_87 = arith.constant dense<0.000000e+00> : vector<8xf32>
    %198 = vector.multi_reduction <add>, %197, %cst_87 [1] : vector<8x32xf32> to vector<8xf32>
    %199 = vector.shape_cast %198 : vector<8xf32> to vector<8x1xf32>
    %cst_88 = arith.constant 3.200000e+01 : f32
    %200 = vector.broadcast %cst_88 : f32 to vector<8x1xf32>
    %201 = arith.divf %199, %200 : vector<8x1xf32>
    %202 = vector.broadcast %194 : vector<8x1xf32> to vector<8x32xf32>
    %203 = arith.subf %190, %202 : vector<8x32xf32>
    %cst_89 = arith.constant 9.99999974E-6 : f32
    %204 = vector.broadcast %cst_89 : f32 to vector<8x1xf32>
    %205 = arith.addf %201, %204 : vector<8x1xf32>
    %206 = math.rsqrt %205 : vector<8x1xf32>
    %207 = vector.broadcast %206 : vector<8x1xf32> to vector<8x32xf32>
    %208 = arith.mulf %203, %207 : vector<8x32xf32>
    %209 = vector.broadcast %145 : vector<1x32xf32> to vector<8x32xf32>
    %210 = arith.mulf %208, %209 : vector<8x32xf32>
    %211 = vector.broadcast %146 : vector<1x32xf32> to vector<8x32xf32>
    %212 = arith.addf %210, %211 : vector<8x32xf32>
    %cst_90 = arith.constant dense<0.000000e+00> : vector<8x64xf32>
    %213 = tpu.matmul %212, %138, %cst_90 {dimension_numbers = #tpu.dot_dimension_numbers<[1], [0], [0], [1], [0, 0, 1, 1], [], []>} : vector<8x32xf32>, vector<32x64xf32>, vector<8x64xf32> -> vector<8x64xf32>
    %214 = vector.broadcast %147 : vector<1x64xf32> to vector<8x64xf32>
    %215 = arith.addf %213, %214 : vector<8x64xf32>
    %cst_91 = arith.constant 0.000000e+00 : f32
    %216 = vector.broadcast %cst_91 : f32 to vector<8x64xf32>
    %217 = arith.maximumf %215, %216 : vector<8x64xf32>
    %cst_92 = arith.constant dense<0.000000e+00> : vector<8x32xf32>
    %218 = tpu.matmul %217, %140, %cst_92 {dimension_numbers = #tpu.dot_dimension_numbers<[1], [0], [0], [1], [0, 0, 1, 1], [], []>} : vector<8x64xf32>, vector<64x32xf32>, vector<8x32xf32> -> vector<8x32xf32>
    %219 = vector.broadcast %148 : vector<1x32xf32> to vector<8x32xf32>
    %220 = arith.addf %218, %219 : vector<8x32xf32>
    %221 = arith.addf %212, %220 : vector<8x32xf32>
    %cst_93 = arith.constant dense<0.000000e+00> : vector<8xf32>
    %222 = vector.multi_reduction <add>, %221, %cst_93 [1] : vector<8x32xf32> to vector<8xf32>
    %223 = vector.shape_cast %222 : vector<8xf32> to vector<8x1xf32>
    %cst_94 = arith.constant 3.200000e+01 : f32
    %224 = vector.broadcast %cst_94 : f32 to vector<8x1xf32>
    %225 = arith.divf %223, %224 : vector<8x1xf32>
    %226 = vector.broadcast %225 : vector<8x1xf32> to vector<8x32xf32>
    %227 = arith.subf %221, %226 : vector<8x32xf32>
    %228 = arith.mulf %227, %227 : vector<8x32xf32>
    %cst_95 = arith.constant dense<0.000000e+00> : vector<8xf32>
    %229 = vector.multi_reduction <add>, %228, %cst_95 [1] : vector<8x32xf32> to vector<8xf32>
    %230 = vector.shape_cast %229 : vector<8xf32> to vector<8x1xf32>
    %cst_96 = arith.constant 3.200000e+01 : f32
    %231 = vector.broadcast %cst_96 : f32 to vector<8x1xf32>
    %232 = arith.divf %230, %231 : vector<8x1xf32>
    %233 = vector.broadcast %225 : vector<8x1xf32> to vector<8x32xf32>
    %234 = arith.subf %221, %233 : vector<8x32xf32>
    %cst_97 = arith.constant 9.99999974E-6 : f32
    %235 = vector.broadcast %cst_97 : f32 to vector<8x1xf32>
    %236 = arith.addf %232, %235 : vector<8x1xf32>
    %237 = math.rsqrt %236 : vector<8x1xf32>
    %238 = vector.broadcast %237 : vector<8x1xf32> to vector<8x32xf32>
    %239 = arith.mulf %234, %238 : vector<8x32xf32>
    %240 = vector.broadcast %149 : vector<1x32xf32> to vector<8x32xf32>
    %241 = arith.mulf %239, %240 : vector<8x32xf32>
    %242 = vector.broadcast %150 : vector<1x32xf32> to vector<8x32xf32>
    %243 = arith.addf %241, %242 : vector<8x32xf32>
    %cst_98 = arith.constant 5.000000e-01 : f32
    %244 = vector.broadcast %cst_98 : f32 to vector<8x32xf32>
    %245 = arith.mulf %243, %244 : vector<8x32xf32>
    %246 = arith.addf %3, %245 : vector<8x32xf32>
    %c0_99 = arith.constant 0 : index
    %c1_100 = arith.constant 1 : index
    %c0_101 = arith.constant 0 : index
    %c0_102 = arith.constant 0 : index
    %247 = vector.load %arg0[%c0_99, %c1_100, %c0_101, %c0_102] : memref<3x2x8x2xf32, #tpu.memory_space<vmem>>, vector<1x1x8x2xf32>
    %248 = vector.shape_cast %247 : vector<1x1x8x2xf32> to vector<8x2xf32>
    %249 = vector.extract_strided_slice %248 {offsets = [0, 0], sizes = [8, 1], strides = [1, 1]} : vector<8x2xf32> to vector<8x1xf32>
    %250 = vector.extract_strided_slice %0 {offsets = [0, 0], sizes = [1, 32], strides = [1, 1]} : vector<2x32xf32> to vector<1x32xf32>
    %251 = vector.broadcast %249 : vector<8x1xf32> to vector<8x32xf32>
    %252 = vector.broadcast %250 : vector<1x32xf32> to vector<8x32xf32>
    %253 = arith.mulf %251, %252 : vector<8x32xf32>
    %254 = vector.extract_strided_slice %248 {offsets = [0, 1], sizes = [8, 1], strides = [1, 1]} : vector<8x2xf32> to vector<8x1xf32>
    %255 = vector.extract_strided_slice %0 {offsets = [1, 0], sizes = [1, 32], strides = [1, 1]} : vector<2x32xf32> to vector<1x32xf32>
    %256 = vector.broadcast %254 : vector<8x1xf32> to vector<8x32xf32>
    %257 = vector.broadcast %255 : vector<1x32xf32> to vector<8x32xf32>
    %258 = arith.mulf %256, %257 : vector<8x32xf32>
    %259 = arith.addf %253, %258 : vector<8x32xf32>
    %260 = vector.broadcast %1 : vector<1x32xf32> to vector<8x32xf32>
    %261 = arith.addf %259, %260 : vector<8x32xf32>
    %262 = vector.extract_strided_slice %2 {offsets = [1, 0], sizes = [1, 32], strides = [1, 1]} : vector<2x32xf32> to vector<1x32xf32>
    %263 = vector.broadcast %262 : vector<1x32xf32> to vector<8x32xf32>
    %264 = arith.addf %261, %263 : vector<8x32xf32>
    %c0_103 = arith.constant 0 : index
    %c0_104 = arith.constant 0 : index
    %c0_105 = arith.constant 0 : index
    %c0_106 = arith.constant 0 : index
    %265 = vector.load %arg4[%c0_103, %c0_104, %c0_105, %c0_106] : memref<3x2x32x96xf32, #tpu.memory_space<vmem>>, vector<1x1x32x96xf32>
    %266 = vector.shape_cast %265 : vector<1x1x32x96xf32> to vector<32x96xf32>
    %c0_107 = arith.constant 0 : index
    %c0_108 = arith.constant 0 : index
    %c0_109 = arith.constant 0 : index
    %c0_110 = arith.constant 0 : index
    %267 = vector.load %arg5[%c0_107, %c0_108, %c0_109, %c0_110] : memref<3x2x32x32xf32, #tpu.memory_space<vmem>>, vector<1x1x32x32xf32>
    %268 = vector.shape_cast %267 : vector<1x1x32x32xf32> to vector<32x32xf32>
    %c0_111 = arith.constant 0 : index
    %c0_112 = arith.constant 0 : index
    %c0_113 = arith.constant 0 : index
    %c0_114 = arith.constant 0 : index
    %269 = vector.load %arg6[%c0_111, %c0_112, %c0_113, %c0_114] : memref<3x2x32x64xf32, #tpu.memory_space<vmem>>, vector<1x1x32x64xf32>
    %270 = vector.shape_cast %269 : vector<1x1x32x64xf32> to vector<32x64xf32>
    %c0_115 = arith.constant 0 : index
    %c0_116 = arith.constant 0 : index
    %c0_117 = arith.constant 0 : index
    %c0_118 = arith.constant 0 : index
    %271 = vector.load %arg7[%c0_115, %c0_116, %c0_117, %c0_118] : memref<3x2x64x32xf32, #tpu.memory_space<vmem>>, vector<1x1x64x32xf32>
    %272 = vector.shape_cast %271 : vector<1x1x64x32xf32> to vector<64x32xf32>
    %c0_119 = arith.constant 0 : index
    %c0_120 = arith.constant 0 : index
    %c0_121 = arith.constant 0 : index
    %c0_122 = arith.constant 0 : index
    %273 = vector.load %arg8[%c0_119, %c0_120, %c0_121, %c0_122] : memref<3x2x8x128xf32, #tpu.memory_space<vmem>>, vector<1x1x8x128xf32>
    %274 = vector.shape_cast %273 : vector<1x1x8x128xf32> to vector<8x128xf32>
    %275 = vector.extract_strided_slice %274 {offsets = [0, 0], sizes = [1, 96], strides = [1, 1]} : vector<8x128xf32> to vector<1x96xf32>
    %276 = vector.extract_strided_slice %274 {offsets = [1, 0], sizes = [1, 32], strides = [1, 1]} : vector<8x128xf32> to vector<1x32xf32>
    %277 = vector.extract_strided_slice %274 {offsets = [2, 0], sizes = [1, 32], strides = [1, 1]} : vector<8x128xf32> to vector<1x32xf32>
    %278 = vector.extract_strided_slice %274 {offsets = [3, 0], sizes = [1, 32], strides = [1, 1]} : vector<8x128xf32> to vector<1x32xf32>
    %279 = vector.extract_strided_slice %274 {offsets = [4, 0], sizes = [1, 64], strides = [1, 1]} : vector<8x128xf32> to vector<1x64xf32>
    %280 = vector.extract_strided_slice %274 {offsets = [5, 0], sizes = [1, 32], strides = [1, 1]} : vector<8x128xf32> to vector<1x32xf32>
    %281 = vector.extract_strided_slice %274 {offsets = [6, 0], sizes = [1, 32], strides = [1, 1]} : vector<8x128xf32> to vector<1x32xf32>
    %282 = vector.extract_strided_slice %274 {offsets = [7, 0], sizes = [1, 32], strides = [1, 1]} : vector<8x128xf32> to vector<1x32xf32>
    %cst_123 = arith.constant dense<0.000000e+00> : vector<8x96xf32>
    %283 = tpu.matmul %264, %266, %cst_123 {dimension_numbers = #tpu.dot_dimension_numbers<[1], [0], [0], [1], [0, 0, 1, 1], [], []>} : vector<8x32xf32>, vector<32x96xf32>, vector<8x96xf32> -> vector<8x96xf32>
    %284 = vector.broadcast %275 : vector<1x96xf32> to vector<8x96xf32>
    %285 = arith.addf %283, %284 : vector<8x96xf32>
    %286 = vector.extract_strided_slice %285 {offsets = [0, 0], sizes = [8, 16], strides = [1, 1]} : vector<8x96xf32> to vector<8x16xf32>
    %cst_124 = arith.constant 2.500000e-01 : f32
    %287 = vector.broadcast %cst_124 : f32 to vector<8x16xf32>
    %288 = arith.mulf %286, %287 : vector<8x16xf32>
    %289 = vector.extract_strided_slice %285 {offsets = [0, 32], sizes = [8, 16], strides = [1, 1]} : vector<8x96xf32> to vector<8x16xf32>
    %290 = vector.extract_strided_slice %285 {offsets = [0, 64], sizes = [8, 16], strides = [1, 1]} : vector<8x96xf32> to vector<8x16xf32>
    "tpu.trace_start"() <{level = 10 : i32, message = "qd,kd->qk"}> : () -> ()
    %cst_125 = arith.constant dense<0.000000e+00> : vector<8x8xf32>
    %291 = tpu.matmul %288, %289, %cst_125 {dimension_numbers = #tpu.dot_dimension_numbers<[1], [1], [0], [0], [0, 0, 1, 0], [], []>} : vector<8x16xf32>, vector<8x16xf32>, vector<8x8xf32> -> vector<8x8xf32>
    "tpu.trace_stop"() : () -> ()
    %cst_126 = arith.constant dense<0xFF800000> : vector<8xf32>
    %292 = vector.multi_reduction <maximumf>, %291, %cst_126 [1] : vector<8x8xf32> to vector<8xf32>
    %293 = vector.shape_cast %292 : vector<8xf32> to vector<8x1xf32>
    %294 = vector.broadcast %293 : vector<8x1xf32> to vector<8x8xf32>
    %295 = arith.subf %291, %294 : vector<8x8xf32>
    %296 = math.exp %295 : vector<8x8xf32>
    %cst_127 = arith.constant dense<0.000000e+00> : vector<8xf32>
    %297 = vector.multi_reduction <add>, %296, %cst_127 [1] : vector<8x8xf32> to vector<8xf32>
    %298 = vector.shape_cast %297 : vector<8xf32> to vector<8x1xf32>
    %299 = vector.broadcast %298 : vector<8x1xf32> to vector<8x8xf32>
    %300 = arith.divf %296, %299 : vector<8x8xf32>
    %cst_128 = arith.constant dense<0.000000e+00> : vector<8x16xf32>
    %301 = tpu.matmul %300, %290, %cst_128 {dimension_numbers = #tpu.dot_dimension_numbers<[1], [0], [0], [1], [0, 0, 1, 1], [], []>} : vector<8x8xf32>, vector<8x16xf32>, vector<8x16xf32> -> vector<8x16xf32>
    %302 = vector.extract_strided_slice %285 {offsets = [0, 16], sizes = [8, 16], strides = [1, 1]} : vector<8x96xf32> to vector<8x16xf32>
    %cst_129 = arith.constant 2.500000e-01 : f32
    %303 = vector.broadcast %cst_129 : f32 to vector<8x16xf32>
    %304 = arith.mulf %302, %303 : vector<8x16xf32>
    %305 = vector.extract_strided_slice %285 {offsets = [0, 48], sizes = [8, 16], strides = [1, 1]} : vector<8x96xf32> to vector<8x16xf32>
    %306 = vector.extract_strided_slice %285 {offsets = [0, 80], sizes = [8, 16], strides = [1, 1]} : vector<8x96xf32> to vector<8x16xf32>
    "tpu.trace_start"() <{level = 10 : i32, message = "qd,kd->qk"}> : () -> ()
    %cst_130 = arith.constant dense<0.000000e+00> : vector<8x8xf32>
    %307 = tpu.matmul %304, %305, %cst_130 {dimension_numbers = #tpu.dot_dimension_numbers<[1], [1], [0], [0], [0, 0, 1, 0], [], []>} : vector<8x16xf32>, vector<8x16xf32>, vector<8x8xf32> -> vector<8x8xf32>
    "tpu.trace_stop"() : () -> ()
    %cst_131 = arith.constant dense<0xFF800000> : vector<8xf32>
    %308 = vector.multi_reduction <maximumf>, %307, %cst_131 [1] : vector<8x8xf32> to vector<8xf32>
    %309 = vector.shape_cast %308 : vector<8xf32> to vector<8x1xf32>
    %310 = vector.broadcast %309 : vector<8x1xf32> to vector<8x8xf32>
    %311 = arith.subf %307, %310 : vector<8x8xf32>
    %312 = math.exp %311 : vector<8x8xf32>
    %cst_132 = arith.constant dense<0.000000e+00> : vector<8xf32>
    %313 = vector.multi_reduction <add>, %312, %cst_132 [1] : vector<8x8xf32> to vector<8xf32>
    %314 = vector.shape_cast %313 : vector<8xf32> to vector<8x1xf32>
    %315 = vector.broadcast %314 : vector<8x1xf32> to vector<8x8xf32>
    %316 = arith.divf %312, %315 : vector<8x8xf32>
    %cst_133 = arith.constant dense<0.000000e+00> : vector<8x16xf32>
    %317 = tpu.matmul %316, %306, %cst_133 {dimension_numbers = #tpu.dot_dimension_numbers<[1], [0], [0], [1], [0, 0, 1, 1], [], []>} : vector<8x8xf32>, vector<8x16xf32>, vector<8x16xf32> -> vector<8x16xf32>
    %318 = tpu.concatenate %301, %317 in 1 : vector<8x16xf32>, vector<8x16xf32> -> vector<8x32xf32>
    %cst_134 = arith.constant dense<0.000000e+00> : vector<8x32xf32>
    %319 = tpu.matmul %318, %268, %cst_134 {dimension_numbers = #tpu.dot_dimension_numbers<[1], [0], [0], [1], [0, 0, 1, 1], [], []>} : vector<8x32xf32>, vector<32x32xf32>, vector<8x32xf32> -> vector<8x32xf32>
    %320 = vector.broadcast %276 : vector<1x32xf32> to vector<8x32xf32>
    %321 = arith.addf %319, %320 : vector<8x32xf32>
    %322 = arith.addf %264, %321 : vector<8x32xf32>
    %cst_135 = arith.constant dense<0.000000e+00> : vector<8xf32>
    %323 = vector.multi_reduction <add>, %322, %cst_135 [1] : vector<8x32xf32> to vector<8xf32>
    %324 = vector.shape_cast %323 : vector<8xf32> to vector<8x1xf32>
    %cst_136 = arith.constant 3.200000e+01 : f32
    %325 = vector.broadcast %cst_136 : f32 to vector<8x1xf32>
    %326 = arith.divf %324, %325 : vector<8x1xf32>
    %327 = vector.broadcast %326 : vector<8x1xf32> to vector<8x32xf32>
    %328 = arith.subf %322, %327 : vector<8x32xf32>
    %329 = arith.mulf %328, %328 : vector<8x32xf32>
    %cst_137 = arith.constant dense<0.000000e+00> : vector<8xf32>
    %330 = vector.multi_reduction <add>, %329, %cst_137 [1] : vector<8x32xf32> to vector<8xf32>
    %331 = vector.shape_cast %330 : vector<8xf32> to vector<8x1xf32>
    %cst_138 = arith.constant 3.200000e+01 : f32
    %332 = vector.broadcast %cst_138 : f32 to vector<8x1xf32>
    %333 = arith.divf %331, %332 : vector<8x1xf32>
    %334 = vector.broadcast %326 : vector<8x1xf32> to vector<8x32xf32>
    %335 = arith.subf %322, %334 : vector<8x32xf32>
    %cst_139 = arith.constant 9.99999974E-6 : f32
    %336 = vector.broadcast %cst_139 : f32 to vector<8x1xf32>
    %337 = arith.addf %333, %336 : vector<8x1xf32>
    %338 = math.rsqrt %337 : vector<8x1xf32>
    %339 = vector.broadcast %338 : vector<8x1xf32> to vector<8x32xf32>
    %340 = arith.mulf %335, %339 : vector<8x32xf32>
    %341 = vector.broadcast %277 : vector<1x32xf32> to vector<8x32xf32>
    %342 = arith.mulf %340, %341 : vector<8x32xf32>
    %343 = vector.broadcast %278 : vector<1x32xf32> to vector<8x32xf32>
    %344 = arith.addf %342, %343 : vector<8x32xf32>
    %cst_140 = arith.constant dense<0.000000e+00> : vector<8x64xf32>
    %345 = tpu.matmul %344, %270, %cst_140 {dimension_numbers = #tpu.dot_dimension_numbers<[1], [0], [0], [1], [0, 0, 1, 1], [], []>} : vector<8x32xf32>, vector<32x64xf32>, vector<8x64xf32> -> vector<8x64xf32>
    %346 = vector.broadcast %279 : vector<1x64xf32> to vector<8x64xf32>
    %347 = arith.addf %345, %346 : vector<8x64xf32>
    %cst_141 = arith.constant 0.000000e+00 : f32
    %348 = vector.broadcast %cst_141 : f32 to vector<8x64xf32>
    %349 = arith.maximumf %347, %348 : vector<8x64xf32>
    %cst_142 = arith.constant dense<0.000000e+00> : vector<8x32xf32>
    %350 = tpu.matmul %349, %272, %cst_142 {dimension_numbers = #tpu.dot_dimension_numbers<[1], [0], [0], [1], [0, 0, 1, 1], [], []>} : vector<8x64xf32>, vector<64x32xf32>, vector<8x32xf32> -> vector<8x32xf32>
    %351 = vector.broadcast %280 : vector<1x32xf32> to vector<8x32xf32>
    %352 = arith.addf %350, %351 : vector<8x32xf32>
    %353 = arith.addf %344, %352 : vector<8x32xf32>
    %cst_143 = arith.constant dense<0.000000e+00> : vector<8xf32>
    %354 = vector.multi_reduction <add>, %353, %cst_143 [1] : vector<8x32xf32> to vector<8xf32>
    %355 = vector.shape_cast %354 : vector<8xf32> to vector<8x1xf32>
    %cst_144 = arith.constant 3.200000e+01 : f32
    %356 = vector.broadcast %cst_144 : f32 to vector<8x1xf32>
    %357 = arith.divf %355, %356 : vector<8x1xf32>
    %358 = vector.broadcast %357 : vector<8x1xf32> to vector<8x32xf32>
    %359 = arith.subf %353, %358 : vector<8x32xf32>
    %360 = arith.mulf %359, %359 : vector<8x32xf32>
    %cst_145 = arith.constant dense<0.000000e+00> : vector<8xf32>
    %361 = vector.multi_reduction <add>, %360, %cst_145 [1] : vector<8x32xf32> to vector<8xf32>
    %362 = vector.shape_cast %361 : vector<8xf32> to vector<8x1xf32>
    %cst_146 = arith.constant 3.200000e+01 : f32
    %363 = vector.broadcast %cst_146 : f32 to vector<8x1xf32>
    %364 = arith.divf %362, %363 : vector<8x1xf32>
    %365 = vector.broadcast %357 : vector<8x1xf32> to vector<8x32xf32>
    %366 = arith.subf %353, %365 : vector<8x32xf32>
    %cst_147 = arith.constant 9.99999974E-6 : f32
    %367 = vector.broadcast %cst_147 : f32 to vector<8x1xf32>
    %368 = arith.addf %364, %367 : vector<8x1xf32>
    %369 = math.rsqrt %368 : vector<8x1xf32>
    %370 = vector.broadcast %369 : vector<8x1xf32> to vector<8x32xf32>
    %371 = arith.mulf %366, %370 : vector<8x32xf32>
    %372 = vector.broadcast %281 : vector<1x32xf32> to vector<8x32xf32>
    %373 = arith.mulf %371, %372 : vector<8x32xf32>
    %374 = vector.broadcast %282 : vector<1x32xf32> to vector<8x32xf32>
    %375 = arith.addf %373, %374 : vector<8x32xf32>
    %c0_148 = arith.constant 0 : index
    %c1_149 = arith.constant 1 : index
    %c0_150 = arith.constant 0 : index
    %c0_151 = arith.constant 0 : index
    %376 = vector.load %arg4[%c0_148, %c1_149, %c0_150, %c0_151] : memref<3x2x32x96xf32, #tpu.memory_space<vmem>>, vector<1x1x32x96xf32>
    %377 = vector.shape_cast %376 : vector<1x1x32x96xf32> to vector<32x96xf32>
    %c0_152 = arith.constant 0 : index
    %c1_153 = arith.constant 1 : index
    %c0_154 = arith.constant 0 : index
    %c0_155 = arith.constant 0 : index
    %378 = vector.load %arg5[%c0_152, %c1_153, %c0_154, %c0_155] : memref<3x2x32x32xf32, #tpu.memory_space<vmem>>, vector<1x1x32x32xf32>
    %379 = vector.shape_cast %378 : vector<1x1x32x32xf32> to vector<32x32xf32>
    %c0_156 = arith.constant 0 : index
    %c1_157 = arith.constant 1 : index
    %c0_158 = arith.constant 0 : index
    %c0_159 = arith.constant 0 : index
    %380 = vector.load %arg6[%c0_156, %c1_157, %c0_158, %c0_159] : memref<3x2x32x64xf32, #tpu.memory_space<vmem>>, vector<1x1x32x64xf32>
    %381 = vector.shape_cast %380 : vector<1x1x32x64xf32> to vector<32x64xf32>
    %c0_160 = arith.constant 0 : index
    %c1_161 = arith.constant 1 : index
    %c0_162 = arith.constant 0 : index
    %c0_163 = arith.constant 0 : index
    %382 = vector.load %arg7[%c0_160, %c1_161, %c0_162, %c0_163] : memref<3x2x64x32xf32, #tpu.memory_space<vmem>>, vector<1x1x64x32xf32>
    %383 = vector.shape_cast %382 : vector<1x1x64x32xf32> to vector<64x32xf32>
    %c0_164 = arith.constant 0 : index
    %c1_165 = arith.constant 1 : index
    %c0_166 = arith.constant 0 : index
    %c0_167 = arith.constant 0 : index
    %384 = vector.load %arg8[%c0_164, %c1_165, %c0_166, %c0_167] : memref<3x2x8x128xf32, #tpu.memory_space<vmem>>, vector<1x1x8x128xf32>
    %385 = vector.shape_cast %384 : vector<1x1x8x128xf32> to vector<8x128xf32>
    %386 = vector.extract_strided_slice %385 {offsets = [0, 0], sizes = [1, 96], strides = [1, 1]} : vector<8x128xf32> to vector<1x96xf32>
    %387 = vector.extract_strided_slice %385 {offsets = [1, 0], sizes = [1, 32], strides = [1, 1]} : vector<8x128xf32> to vector<1x32xf32>
    %388 = vector.extract_strided_slice %385 {offsets = [2, 0], sizes = [1, 32], strides = [1, 1]} : vector<8x128xf32> to vector<1x32xf32>
    %389 = vector.extract_strided_slice %385 {offsets = [3, 0], sizes = [1, 32], strides = [1, 1]} : vector<8x128xf32> to vector<1x32xf32>
    %390 = vector.extract_strided_slice %385 {offsets = [4, 0], sizes = [1, 64], strides = [1, 1]} : vector<8x128xf32> to vector<1x64xf32>
    %391 = vector.extract_strided_slice %385 {offsets = [5, 0], sizes = [1, 32], strides = [1, 1]} : vector<8x128xf32> to vector<1x32xf32>
    %392 = vector.extract_strided_slice %385 {offsets = [6, 0], sizes = [1, 32], strides = [1, 1]} : vector<8x128xf32> to vector<1x32xf32>
    %393 = vector.extract_strided_slice %385 {offsets = [7, 0], sizes = [1, 32], strides = [1, 1]} : vector<8x128xf32> to vector<1x32xf32>
    %cst_168 = arith.constant dense<0.000000e+00> : vector<8x96xf32>
    %394 = tpu.matmul %375, %377, %cst_168 {dimension_numbers = #tpu.dot_dimension_numbers<[1], [0], [0], [1], [0, 0, 1, 1], [], []>} : vector<8x32xf32>, vector<32x96xf32>, vector<8x96xf32> -> vector<8x96xf32>
    %395 = vector.broadcast %386 : vector<1x96xf32> to vector<8x96xf32>
    %396 = arith.addf %394, %395 : vector<8x96xf32>
    %397 = vector.extract_strided_slice %396 {offsets = [0, 0], sizes = [8, 16], strides = [1, 1]} : vector<8x96xf32> to vector<8x16xf32>
    %cst_169 = arith.constant 2.500000e-01 : f32
    %398 = vector.broadcast %cst_169 : f32 to vector<8x16xf32>
    %399 = arith.mulf %397, %398 : vector<8x16xf32>
    %400 = vector.extract_strided_slice %396 {offsets = [0, 32], sizes = [8, 16], strides = [1, 1]} : vector<8x96xf32> to vector<8x16xf32>
    %401 = vector.extract_strided_slice %396 {offsets = [0, 64], sizes = [8, 16], strides = [1, 1]} : vector<8x96xf32> to vector<8x16xf32>
    "tpu.trace_start"() <{level = 10 : i32, message = "qd,kd->qk"}> : () -> ()
    %cst_170 = arith.constant dense<0.000000e+00> : vector<8x8xf32>
    %402 = tpu.matmul %399, %400, %cst_170 {dimension_numbers = #tpu.dot_dimension_numbers<[1], [1], [0], [0], [0, 0, 1, 0], [], []>} : vector<8x16xf32>, vector<8x16xf32>, vector<8x8xf32> -> vector<8x8xf32>
    "tpu.trace_stop"() : () -> ()
    %cst_171 = arith.constant dense<0xFF800000> : vector<8xf32>
    %403 = vector.multi_reduction <maximumf>, %402, %cst_171 [1] : vector<8x8xf32> to vector<8xf32>
    %404 = vector.shape_cast %403 : vector<8xf32> to vector<8x1xf32>
    %405 = vector.broadcast %404 : vector<8x1xf32> to vector<8x8xf32>
    %406 = arith.subf %402, %405 : vector<8x8xf32>
    %407 = math.exp %406 : vector<8x8xf32>
    %cst_172 = arith.constant dense<0.000000e+00> : vector<8xf32>
    %408 = vector.multi_reduction <add>, %407, %cst_172 [1] : vector<8x8xf32> to vector<8xf32>
    %409 = vector.shape_cast %408 : vector<8xf32> to vector<8x1xf32>
    %410 = vector.broadcast %409 : vector<8x1xf32> to vector<8x8xf32>
    %411 = arith.divf %407, %410 : vector<8x8xf32>
    %cst_173 = arith.constant dense<0.000000e+00> : vector<8x16xf32>
    %412 = tpu.matmul %411, %401, %cst_173 {dimension_numbers = #tpu.dot_dimension_numbers<[1], [0], [0], [1], [0, 0, 1, 1], [], []>} : vector<8x8xf32>, vector<8x16xf32>, vector<8x16xf32> -> vector<8x16xf32>
    %413 = vector.extract_strided_slice %396 {offsets = [0, 16], sizes = [8, 16], strides = [1, 1]} : vector<8x96xf32> to vector<8x16xf32>
    %cst_174 = arith.constant 2.500000e-01 : f32
    %414 = vector.broadcast %cst_174 : f32 to vector<8x16xf32>
    %415 = arith.mulf %413, %414 : vector<8x16xf32>
    %416 = vector.extract_strided_slice %396 {offsets = [0, 48], sizes = [8, 16], strides = [1, 1]} : vector<8x96xf32> to vector<8x16xf32>
    %417 = vector.extract_strided_slice %396 {offsets = [0, 80], sizes = [8, 16], strides = [1, 1]} : vector<8x96xf32> to vector<8x16xf32>
    "tpu.trace_start"() <{level = 10 : i32, message = "qd,kd->qk"}> : () -> ()
    %cst_175 = arith.constant dense<0.000000e+00> : vector<8x8xf32>
    %418 = tpu.matmul %415, %416, %cst_175 {dimension_numbers = #tpu.dot_dimension_numbers<[1], [1], [0], [0], [0, 0, 1, 0], [], []>} : vector<8x16xf32>, vector<8x16xf32>, vector<8x8xf32> -> vector<8x8xf32>
    "tpu.trace_stop"() : () -> ()
    %cst_176 = arith.constant dense<0xFF800000> : vector<8xf32>
    %419 = vector.multi_reduction <maximumf>, %418, %cst_176 [1] : vector<8x8xf32> to vector<8xf32>
    %420 = vector.shape_cast %419 : vector<8xf32> to vector<8x1xf32>
    %421 = vector.broadcast %420 : vector<8x1xf32> to vector<8x8xf32>
    %422 = arith.subf %418, %421 : vector<8x8xf32>
    %423 = math.exp %422 : vector<8x8xf32>
    %cst_177 = arith.constant dense<0.000000e+00> : vector<8xf32>
    %424 = vector.multi_reduction <add>, %423, %cst_177 [1] : vector<8x8xf32> to vector<8xf32>
    %425 = vector.shape_cast %424 : vector<8xf32> to vector<8x1xf32>
    %426 = vector.broadcast %425 : vector<8x1xf32> to vector<8x8xf32>
    %427 = arith.divf %423, %426 : vector<8x8xf32>
    %cst_178 = arith.constant dense<0.000000e+00> : vector<8x16xf32>
    %428 = tpu.matmul %427, %417, %cst_178 {dimension_numbers = #tpu.dot_dimension_numbers<[1], [0], [0], [1], [0, 0, 1, 1], [], []>} : vector<8x8xf32>, vector<8x16xf32>, vector<8x16xf32> -> vector<8x16xf32>
    %429 = tpu.concatenate %412, %428 in 1 : vector<8x16xf32>, vector<8x16xf32> -> vector<8x32xf32>
    %cst_179 = arith.constant dense<0.000000e+00> : vector<8x32xf32>
    %430 = tpu.matmul %429, %379, %cst_179 {dimension_numbers = #tpu.dot_dimension_numbers<[1], [0], [0], [1], [0, 0, 1, 1], [], []>} : vector<8x32xf32>, vector<32x32xf32>, vector<8x32xf32> -> vector<8x32xf32>
    %431 = vector.broadcast %387 : vector<1x32xf32> to vector<8x32xf32>
    %432 = arith.addf %430, %431 : vector<8x32xf32>
    %433 = arith.addf %375, %432 : vector<8x32xf32>
    %cst_180 = arith.constant dense<0.000000e+00> : vector<8xf32>
    %434 = vector.multi_reduction <add>, %433, %cst_180 [1] : vector<8x32xf32> to vector<8xf32>
    %435 = vector.shape_cast %434 : vector<8xf32> to vector<8x1xf32>
    %cst_181 = arith.constant 3.200000e+01 : f32
    %436 = vector.broadcast %cst_181 : f32 to vector<8x1xf32>
    %437 = arith.divf %435, %436 : vector<8x1xf32>
    %438 = vector.broadcast %437 : vector<8x1xf32> to vector<8x32xf32>
    %439 = arith.subf %433, %438 : vector<8x32xf32>
    %440 = arith.mulf %439, %439 : vector<8x32xf32>
    %cst_182 = arith.constant dense<0.000000e+00> : vector<8xf32>
    %441 = vector.multi_reduction <add>, %440, %cst_182 [1] : vector<8x32xf32> to vector<8xf32>
    %442 = vector.shape_cast %441 : vector<8xf32> to vector<8x1xf32>
    %cst_183 = arith.constant 3.200000e+01 : f32
    %443 = vector.broadcast %cst_183 : f32 to vector<8x1xf32>
    %444 = arith.divf %442, %443 : vector<8x1xf32>
    %445 = vector.broadcast %437 : vector<8x1xf32> to vector<8x32xf32>
    %446 = arith.subf %433, %445 : vector<8x32xf32>
    %cst_184 = arith.constant 9.99999974E-6 : f32
    %447 = vector.broadcast %cst_184 : f32 to vector<8x1xf32>
    %448 = arith.addf %444, %447 : vector<8x1xf32>
    %449 = math.rsqrt %448 : vector<8x1xf32>
    %450 = vector.broadcast %449 : vector<8x1xf32> to vector<8x32xf32>
    %451 = arith.mulf %446, %450 : vector<8x32xf32>
    %452 = vector.broadcast %388 : vector<1x32xf32> to vector<8x32xf32>
    %453 = arith.mulf %451, %452 : vector<8x32xf32>
    %454 = vector.broadcast %389 : vector<1x32xf32> to vector<8x32xf32>
    %455 = arith.addf %453, %454 : vector<8x32xf32>
    %cst_185 = arith.constant dense<0.000000e+00> : vector<8x64xf32>
    %456 = tpu.matmul %455, %381, %cst_185 {dimension_numbers = #tpu.dot_dimension_numbers<[1], [0], [0], [1], [0, 0, 1, 1], [], []>} : vector<8x32xf32>, vector<32x64xf32>, vector<8x64xf32> -> vector<8x64xf32>
    %457 = vector.broadcast %390 : vector<1x64xf32> to vector<8x64xf32>
    %458 = arith.addf %456, %457 : vector<8x64xf32>
    %cst_186 = arith.constant 0.000000e+00 : f32
    %459 = vector.broadcast %cst_186 : f32 to vector<8x64xf32>
    %460 = arith.maximumf %458, %459 : vector<8x64xf32>
    %cst_187 = arith.constant dense<0.000000e+00> : vector<8x32xf32>
    %461 = tpu.matmul %460, %383, %cst_187 {dimension_numbers = #tpu.dot_dimension_numbers<[1], [0], [0], [1], [0, 0, 1, 1], [], []>} : vector<8x64xf32>, vector<64x32xf32>, vector<8x32xf32> -> vector<8x32xf32>
    %462 = vector.broadcast %391 : vector<1x32xf32> to vector<8x32xf32>
    %463 = arith.addf %461, %462 : vector<8x32xf32>
    %464 = arith.addf %455, %463 : vector<8x32xf32>
    %cst_188 = arith.constant dense<0.000000e+00> : vector<8xf32>
    %465 = vector.multi_reduction <add>, %464, %cst_188 [1] : vector<8x32xf32> to vector<8xf32>
    %466 = vector.shape_cast %465 : vector<8xf32> to vector<8x1xf32>
    %cst_189 = arith.constant 3.200000e+01 : f32
    %467 = vector.broadcast %cst_189 : f32 to vector<8x1xf32>
    %468 = arith.divf %466, %467 : vector<8x1xf32>
    %469 = vector.broadcast %468 : vector<8x1xf32> to vector<8x32xf32>
    %470 = arith.subf %464, %469 : vector<8x32xf32>
    %471 = arith.mulf %470, %470 : vector<8x32xf32>
    %cst_190 = arith.constant dense<0.000000e+00> : vector<8xf32>
    %472 = vector.multi_reduction <add>, %471, %cst_190 [1] : vector<8x32xf32> to vector<8xf32>
    %473 = vector.shape_cast %472 : vector<8xf32> to vector<8x1xf32>
    %cst_191 = arith.constant 3.200000e+01 : f32
    %474 = vector.broadcast %cst_191 : f32 to vector<8x1xf32>
    %475 = arith.divf %473, %474 : vector<8x1xf32>
    %476 = vector.broadcast %468 : vector<8x1xf32> to vector<8x32xf32>
    %477 = arith.subf %464, %476 : vector<8x32xf32>
    %cst_192 = arith.constant 9.99999974E-6 : f32
    %478 = vector.broadcast %cst_192 : f32 to vector<8x1xf32>
    %479 = arith.addf %475, %478 : vector<8x1xf32>
    %480 = math.rsqrt %479 : vector<8x1xf32>
    %481 = vector.broadcast %480 : vector<8x1xf32> to vector<8x32xf32>
    %482 = arith.mulf %477, %481 : vector<8x32xf32>
    %483 = vector.broadcast %392 : vector<1x32xf32> to vector<8x32xf32>
    %484 = arith.mulf %482, %483 : vector<8x32xf32>
    %485 = vector.broadcast %393 : vector<1x32xf32> to vector<8x32xf32>
    %486 = arith.addf %484, %485 : vector<8x32xf32>
    %cst_193 = arith.constant 5.000000e-01 : f32
    %487 = vector.broadcast %cst_193 : f32 to vector<8x32xf32>
    %488 = arith.mulf %486, %487 : vector<8x32xf32>
    %489 = arith.addf %246, %488 : vector<8x32xf32>
    %cst_194 = arith.constant 0.000000e+00 : f32
    %490 = vector.broadcast %cst_194 : f32 to vector<8x32xf32>
    %c1_195 = arith.constant 1 : index
    %c0_196 = arith.constant 0 : index
    %c0_197 = arith.constant 0 : index
    %c0_198 = arith.constant 0 : index
    %491 = vector.load %arg0[%c1_195, %c0_196, %c0_197, %c0_198] : memref<3x2x8x2xf32, #tpu.memory_space<vmem>>, vector<1x1x8x2xf32>
    %492 = vector.shape_cast %491 : vector<1x1x8x2xf32> to vector<8x2xf32>
    %493 = vector.extract_strided_slice %492 {offsets = [0, 0], sizes = [8, 1], strides = [1, 1]} : vector<8x2xf32> to vector<8x1xf32>
    %494 = vector.extract_strided_slice %0 {offsets = [0, 0], sizes = [1, 32], strides = [1, 1]} : vector<2x32xf32> to vector<1x32xf32>
    %495 = vector.broadcast %493 : vector<8x1xf32> to vector<8x32xf32>
    %496 = vector.broadcast %494 : vector<1x32xf32> to vector<8x32xf32>
    %497 = arith.mulf %495, %496 : vector<8x32xf32>
    %498 = vector.extract_strided_slice %492 {offsets = [0, 1], sizes = [8, 1], strides = [1, 1]} : vector<8x2xf32> to vector<8x1xf32>
    %499 = vector.extract_strided_slice %0 {offsets = [1, 0], sizes = [1, 32], strides = [1, 1]} : vector<2x32xf32> to vector<1x32xf32>
    %500 = vector.broadcast %498 : vector<8x1xf32> to vector<8x32xf32>
    %501 = vector.broadcast %499 : vector<1x32xf32> to vector<8x32xf32>
    %502 = arith.mulf %500, %501 : vector<8x32xf32>
    %503 = arith.addf %497, %502 : vector<8x32xf32>
    %504 = vector.broadcast %1 : vector<1x32xf32> to vector<8x32xf32>
    %505 = arith.addf %503, %504 : vector<8x32xf32>
    %506 = vector.extract_strided_slice %2 {offsets = [0, 0], sizes = [1, 32], strides = [1, 1]} : vector<2x32xf32> to vector<1x32xf32>
    %507 = vector.broadcast %506 : vector<1x32xf32> to vector<8x32xf32>
    %508 = arith.addf %505, %507 : vector<8x32xf32>
    %c1_199 = arith.constant 1 : index
    %c0_200 = arith.constant 0 : index
    %c0_201 = arith.constant 0 : index
    %c0_202 = arith.constant 0 : index
    %509 = vector.load %arg4[%c1_199, %c0_200, %c0_201, %c0_202] : memref<3x2x32x96xf32, #tpu.memory_space<vmem>>, vector<1x1x32x96xf32>
    %510 = vector.shape_cast %509 : vector<1x1x32x96xf32> to vector<32x96xf32>
    %c1_203 = arith.constant 1 : index
    %c0_204 = arith.constant 0 : index
    %c0_205 = arith.constant 0 : index
    %c0_206 = arith.constant 0 : index
    %511 = vector.load %arg5[%c1_203, %c0_204, %c0_205, %c0_206] : memref<3x2x32x32xf32, #tpu.memory_space<vmem>>, vector<1x1x32x32xf32>
    %512 = vector.shape_cast %511 : vector<1x1x32x32xf32> to vector<32x32xf32>
    %c1_207 = arith.constant 1 : index
    %c0_208 = arith.constant 0 : index
    %c0_209 = arith.constant 0 : index
    %c0_210 = arith.constant 0 : index
    %513 = vector.load %arg6[%c1_207, %c0_208, %c0_209, %c0_210] : memref<3x2x32x64xf32, #tpu.memory_space<vmem>>, vector<1x1x32x64xf32>
    %514 = vector.shape_cast %513 : vector<1x1x32x64xf32> to vector<32x64xf32>
    %c1_211 = arith.constant 1 : index
    %c0_212 = arith.constant 0 : index
    %c0_213 = arith.constant 0 : index
    %c0_214 = arith.constant 0 : index
    %515 = vector.load %arg7[%c1_211, %c0_212, %c0_213, %c0_214] : memref<3x2x64x32xf32, #tpu.memory_space<vmem>>, vector<1x1x64x32xf32>
    %516 = vector.shape_cast %515 : vector<1x1x64x32xf32> to vector<64x32xf32>
    %c1_215 = arith.constant 1 : index
    %c0_216 = arith.constant 0 : index
    %c0_217 = arith.constant 0 : index
    %c0_218 = arith.constant 0 : index
    %517 = vector.load %arg8[%c1_215, %c0_216, %c0_217, %c0_218] : memref<3x2x8x128xf32, #tpu.memory_space<vmem>>, vector<1x1x8x128xf32>
    %518 = vector.shape_cast %517 : vector<1x1x8x128xf32> to vector<8x128xf32>
    %519 = vector.extract_strided_slice %518 {offsets = [0, 0], sizes = [1, 96], strides = [1, 1]} : vector<8x128xf32> to vector<1x96xf32>
    %520 = vector.extract_strided_slice %518 {offsets = [1, 0], sizes = [1, 32], strides = [1, 1]} : vector<8x128xf32> to vector<1x32xf32>
    %521 = vector.extract_strided_slice %518 {offsets = [2, 0], sizes = [1, 32], strides = [1, 1]} : vector<8x128xf32> to vector<1x32xf32>
    %522 = vector.extract_strided_slice %518 {offsets = [3, 0], sizes = [1, 32], strides = [1, 1]} : vector<8x128xf32> to vector<1x32xf32>
    %523 = vector.extract_strided_slice %518 {offsets = [4, 0], sizes = [1, 64], strides = [1, 1]} : vector<8x128xf32> to vector<1x64xf32>
    %524 = vector.extract_strided_slice %518 {offsets = [5, 0], sizes = [1, 32], strides = [1, 1]} : vector<8x128xf32> to vector<1x32xf32>
    %525 = vector.extract_strided_slice %518 {offsets = [6, 0], sizes = [1, 32], strides = [1, 1]} : vector<8x128xf32> to vector<1x32xf32>
    %526 = vector.extract_strided_slice %518 {offsets = [7, 0], sizes = [1, 32], strides = [1, 1]} : vector<8x128xf32> to vector<1x32xf32>
    %cst_219 = arith.constant dense<0.000000e+00> : vector<8x96xf32>
    %527 = tpu.matmul %508, %510, %cst_219 {dimension_numbers = #tpu.dot_dimension_numbers<[1], [0], [0], [1], [0, 0, 1, 1], [], []>} : vector<8x32xf32>, vector<32x96xf32>, vector<8x96xf32> -> vector<8x96xf32>
    %528 = vector.broadcast %519 : vector<1x96xf32> to vector<8x96xf32>
    %529 = arith.addf %527, %528 : vector<8x96xf32>
    %530 = vector.extract_strided_slice %529 {offsets = [0, 0], sizes = [8, 16], strides = [1, 1]} : vector<8x96xf32> to vector<8x16xf32>
    %cst_220 = arith.constant 2.500000e-01 : f32
    %531 = vector.broadcast %cst_220 : f32 to vector<8x16xf32>
    %532 = arith.mulf %530, %531 : vector<8x16xf32>
    %533 = vector.extract_strided_slice %529 {offsets = [0, 32], sizes = [8, 16], strides = [1, 1]} : vector<8x96xf32> to vector<8x16xf32>
    %534 = vector.extract_strided_slice %529 {offsets = [0, 64], sizes = [8, 16], strides = [1, 1]} : vector<8x96xf32> to vector<8x16xf32>
    "tpu.trace_start"() <{level = 10 : i32, message = "qd,kd->qk"}> : () -> ()
    %cst_221 = arith.constant dense<0.000000e+00> : vector<8x8xf32>
    %535 = tpu.matmul %532, %533, %cst_221 {dimension_numbers = #tpu.dot_dimension_numbers<[1], [1], [0], [0], [0, 0, 1, 0], [], []>} : vector<8x16xf32>, vector<8x16xf32>, vector<8x8xf32> -> vector<8x8xf32>
    "tpu.trace_stop"() : () -> ()
    %cst_222 = arith.constant dense<0xFF800000> : vector<8xf32>
    %536 = vector.multi_reduction <maximumf>, %535, %cst_222 [1] : vector<8x8xf32> to vector<8xf32>
    %537 = vector.shape_cast %536 : vector<8xf32> to vector<8x1xf32>
    %538 = vector.broadcast %537 : vector<8x1xf32> to vector<8x8xf32>
    %539 = arith.subf %535, %538 : vector<8x8xf32>
    %540 = math.exp %539 : vector<8x8xf32>
    %cst_223 = arith.constant dense<0.000000e+00> : vector<8xf32>
    %541 = vector.multi_reduction <add>, %540, %cst_223 [1] : vector<8x8xf32> to vector<8xf32>
    %542 = vector.shape_cast %541 : vector<8xf32> to vector<8x1xf32>
    %543 = vector.broadcast %542 : vector<8x1xf32> to vector<8x8xf32>
    %544 = arith.divf %540, %543 : vector<8x8xf32>
    %cst_224 = arith.constant dense<0.000000e+00> : vector<8x16xf32>
    %545 = tpu.matmul %544, %534, %cst_224 {dimension_numbers = #tpu.dot_dimension_numbers<[1], [0], [0], [1], [0, 0, 1, 1], [], []>} : vector<8x8xf32>, vector<8x16xf32>, vector<8x16xf32> -> vector<8x16xf32>
    %546 = vector.extract_strided_slice %529 {offsets = [0, 16], sizes = [8, 16], strides = [1, 1]} : vector<8x96xf32> to vector<8x16xf32>
    %cst_225 = arith.constant 2.500000e-01 : f32
    %547 = vector.broadcast %cst_225 : f32 to vector<8x16xf32>
    %548 = arith.mulf %546, %547 : vector<8x16xf32>
    %549 = vector.extract_strided_slice %529 {offsets = [0, 48], sizes = [8, 16], strides = [1, 1]} : vector<8x96xf32> to vector<8x16xf32>
    %550 = vector.extract_strided_slice %529 {offsets = [0, 80], sizes = [8, 16], strides = [1, 1]} : vector<8x96xf32> to vector<8x16xf32>
    "tpu.trace_start"() <{level = 10 : i32, message = "qd,kd->qk"}> : () -> ()
    %cst_226 = arith.constant dense<0.000000e+00> : vector<8x8xf32>
    %551 = tpu.matmul %548, %549, %cst_226 {dimension_numbers = #tpu.dot_dimension_numbers<[1], [1], [0], [0], [0, 0, 1, 0], [], []>} : vector<8x16xf32>, vector<8x16xf32>, vector<8x8xf32> -> vector<8x8xf32>
    "tpu.trace_stop"() : () -> ()
    %cst_227 = arith.constant dense<0xFF800000> : vector<8xf32>
    %552 = vector.multi_reduction <maximumf>, %551, %cst_227 [1] : vector<8x8xf32> to vector<8xf32>
    %553 = vector.shape_cast %552 : vector<8xf32> to vector<8x1xf32>
    %554 = vector.broadcast %553 : vector<8x1xf32> to vector<8x8xf32>
    %555 = arith.subf %551, %554 : vector<8x8xf32>
    %556 = math.exp %555 : vector<8x8xf32>
    %cst_228 = arith.constant dense<0.000000e+00> : vector<8xf32>
    %557 = vector.multi_reduction <add>, %556, %cst_228 [1] : vector<8x8xf32> to vector<8xf32>
    %558 = vector.shape_cast %557 : vector<8xf32> to vector<8x1xf32>
    %559 = vector.broadcast %558 : vector<8x1xf32> to vector<8x8xf32>
    %560 = arith.divf %556, %559 : vector<8x8xf32>
    %cst_229 = arith.constant dense<0.000000e+00> : vector<8x16xf32>
    %561 = tpu.matmul %560, %550, %cst_229 {dimension_numbers = #tpu.dot_dimension_numbers<[1], [0], [0], [1], [0, 0, 1, 1], [], []>} : vector<8x8xf32>, vector<8x16xf32>, vector<8x16xf32> -> vector<8x16xf32>
    %562 = tpu.concatenate %545, %561 in 1 : vector<8x16xf32>, vector<8x16xf32> -> vector<8x32xf32>
    %cst_230 = arith.constant dense<0.000000e+00> : vector<8x32xf32>
    %563 = tpu.matmul %562, %512, %cst_230 {dimension_numbers = #tpu.dot_dimension_numbers<[1], [0], [0], [1], [0, 0, 1, 1], [], []>} : vector<8x32xf32>, vector<32x32xf32>, vector<8x32xf32> -> vector<8x32xf32>
    %564 = vector.broadcast %520 : vector<1x32xf32> to vector<8x32xf32>
    %565 = arith.addf %563, %564 : vector<8x32xf32>
    %566 = arith.addf %508, %565 : vector<8x32xf32>
    %cst_231 = arith.constant dense<0.000000e+00> : vector<8xf32>
    %567 = vector.multi_reduction <add>, %566, %cst_231 [1] : vector<8x32xf32> to vector<8xf32>
    %568 = vector.shape_cast %567 : vector<8xf32> to vector<8x1xf32>
    %cst_232 = arith.constant 3.200000e+01 : f32
    %569 = vector.broadcast %cst_232 : f32 to vector<8x1xf32>
    %570 = arith.divf %568, %569 : vector<8x1xf32>
    %571 = vector.broadcast %570 : vector<8x1xf32> to vector<8x32xf32>
    %572 = arith.subf %566, %571 : vector<8x32xf32>
    %573 = arith.mulf %572, %572 : vector<8x32xf32>
    %cst_233 = arith.constant dense<0.000000e+00> : vector<8xf32>
    %574 = vector.multi_reduction <add>, %573, %cst_233 [1] : vector<8x32xf32> to vector<8xf32>
    %575 = vector.shape_cast %574 : vector<8xf32> to vector<8x1xf32>
    %cst_234 = arith.constant 3.200000e+01 : f32
    %576 = vector.broadcast %cst_234 : f32 to vector<8x1xf32>
    %577 = arith.divf %575, %576 : vector<8x1xf32>
    %578 = vector.broadcast %570 : vector<8x1xf32> to vector<8x32xf32>
    %579 = arith.subf %566, %578 : vector<8x32xf32>
    %cst_235 = arith.constant 9.99999974E-6 : f32
    %580 = vector.broadcast %cst_235 : f32 to vector<8x1xf32>
    %581 = arith.addf %577, %580 : vector<8x1xf32>
    %582 = math.rsqrt %581 : vector<8x1xf32>
    %583 = vector.broadcast %582 : vector<8x1xf32> to vector<8x32xf32>
    %584 = arith.mulf %579, %583 : vector<8x32xf32>
    %585 = vector.broadcast %521 : vector<1x32xf32> to vector<8x32xf32>
    %586 = arith.mulf %584, %585 : vector<8x32xf32>
    %587 = vector.broadcast %522 : vector<1x32xf32> to vector<8x32xf32>
    %588 = arith.addf %586, %587 : vector<8x32xf32>
    %cst_236 = arith.constant dense<0.000000e+00> : vector<8x64xf32>
    %589 = tpu.matmul %588, %514, %cst_236 {dimension_numbers = #tpu.dot_dimension_numbers<[1], [0], [0], [1], [0, 0, 1, 1], [], []>} : vector<8x32xf32>, vector<32x64xf32>, vector<8x64xf32> -> vector<8x64xf32>
    %590 = vector.broadcast %523 : vector<1x64xf32> to vector<8x64xf32>
    %591 = arith.addf %589, %590 : vector<8x64xf32>
    %cst_237 = arith.constant 0.000000e+00 : f32
    %592 = vector.broadcast %cst_237 : f32 to vector<8x64xf32>
    %593 = arith.maximumf %591, %592 : vector<8x64xf32>
    %cst_238 = arith.constant dense<0.000000e+00> : vector<8x32xf32>
    %594 = tpu.matmul %593, %516, %cst_238 {dimension_numbers = #tpu.dot_dimension_numbers<[1], [0], [0], [1], [0, 0, 1, 1], [], []>} : vector<8x64xf32>, vector<64x32xf32>, vector<8x32xf32> -> vector<8x32xf32>
    %595 = vector.broadcast %524 : vector<1x32xf32> to vector<8x32xf32>
    %596 = arith.addf %594, %595 : vector<8x32xf32>
    %597 = arith.addf %588, %596 : vector<8x32xf32>
    %cst_239 = arith.constant dense<0.000000e+00> : vector<8xf32>
    %598 = vector.multi_reduction <add>, %597, %cst_239 [1] : vector<8x32xf32> to vector<8xf32>
    %599 = vector.shape_cast %598 : vector<8xf32> to vector<8x1xf32>
    %cst_240 = arith.constant 3.200000e+01 : f32
    %600 = vector.broadcast %cst_240 : f32 to vector<8x1xf32>
    %601 = arith.divf %599, %600 : vector<8x1xf32>
    %602 = vector.broadcast %601 : vector<8x1xf32> to vector<8x32xf32>
    %603 = arith.subf %597, %602 : vector<8x32xf32>
    %604 = arith.mulf %603, %603 : vector<8x32xf32>
    %cst_241 = arith.constant dense<0.000000e+00> : vector<8xf32>
    %605 = vector.multi_reduction <add>, %604, %cst_241 [1] : vector<8x32xf32> to vector<8xf32>
    %606 = vector.shape_cast %605 : vector<8xf32> to vector<8x1xf32>
    %cst_242 = arith.constant 3.200000e+01 : f32
    %607 = vector.broadcast %cst_242 : f32 to vector<8x1xf32>
    %608 = arith.divf %606, %607 : vector<8x1xf32>
    %609 = vector.broadcast %601 : vector<8x1xf32> to vector<8x32xf32>
    %610 = arith.subf %597, %609 : vector<8x32xf32>
    %cst_243 = arith.constant 9.99999974E-6 : f32
    %611 = vector.broadcast %cst_243 : f32 to vector<8x1xf32>
    %612 = arith.addf %608, %611 : vector<8x1xf32>
    %613 = math.rsqrt %612 : vector<8x1xf32>
    %614 = vector.broadcast %613 : vector<8x1xf32> to vector<8x32xf32>
    %615 = arith.mulf %610, %614 : vector<8x32xf32>
    %616 = vector.broadcast %525 : vector<1x32xf32> to vector<8x32xf32>
    %617 = arith.mulf %615, %616 : vector<8x32xf32>
    %618 = vector.broadcast %526 : vector<1x32xf32> to vector<8x32xf32>
    %619 = arith.addf %617, %618 : vector<8x32xf32>
    %c1_244 = arith.constant 1 : index
    %c1_245 = arith.constant 1 : index
    %c0_246 = arith.constant 0 : index
    %c0_247 = arith.constant 0 : index
    %620 = vector.load %arg4[%c1_244, %c1_245, %c0_246, %c0_247] : memref<3x2x32x96xf32, #tpu.memory_space<vmem>>, vector<1x1x32x96xf32>
    %621 = vector.shape_cast %620 : vector<1x1x32x96xf32> to vector<32x96xf32>
    %c1_248 = arith.constant 1 : index
    %c1_249 = arith.constant 1 : index
    %c0_250 = arith.constant 0 : index
    %c0_251 = arith.constant 0 : index
    %622 = vector.load %arg5[%c1_248, %c1_249, %c0_250, %c0_251] : memref<3x2x32x32xf32, #tpu.memory_space<vmem>>, vector<1x1x32x32xf32>
    %623 = vector.shape_cast %622 : vector<1x1x32x32xf32> to vector<32x32xf32>
    %c1_252 = arith.constant 1 : index
    %c1_253 = arith.constant 1 : index
    %c0_254 = arith.constant 0 : index
    %c0_255 = arith.constant 0 : index
    %624 = vector.load %arg6[%c1_252, %c1_253, %c0_254, %c0_255] : memref<3x2x32x64xf32, #tpu.memory_space<vmem>>, vector<1x1x32x64xf32>
    %625 = vector.shape_cast %624 : vector<1x1x32x64xf32> to vector<32x64xf32>
    %c1_256 = arith.constant 1 : index
    %c1_257 = arith.constant 1 : index
    %c0_258 = arith.constant 0 : index
    %c0_259 = arith.constant 0 : index
    %626 = vector.load %arg7[%c1_256, %c1_257, %c0_258, %c0_259] : memref<3x2x64x32xf32, #tpu.memory_space<vmem>>, vector<1x1x64x32xf32>
    %627 = vector.shape_cast %626 : vector<1x1x64x32xf32> to vector<64x32xf32>
    %c1_260 = arith.constant 1 : index
    %c1_261 = arith.constant 1 : index
    %c0_262 = arith.constant 0 : index
    %c0_263 = arith.constant 0 : index
    %628 = vector.load %arg8[%c1_260, %c1_261, %c0_262, %c0_263] : memref<3x2x8x128xf32, #tpu.memory_space<vmem>>, vector<1x1x8x128xf32>
    %629 = vector.shape_cast %628 : vector<1x1x8x128xf32> to vector<8x128xf32>
    %630 = vector.extract_strided_slice %629 {offsets = [0, 0], sizes = [1, 96], strides = [1, 1]} : vector<8x128xf32> to vector<1x96xf32>
    %631 = vector.extract_strided_slice %629 {offsets = [1, 0], sizes = [1, 32], strides = [1, 1]} : vector<8x128xf32> to vector<1x32xf32>
    %632 = vector.extract_strided_slice %629 {offsets = [2, 0], sizes = [1, 32], strides = [1, 1]} : vector<8x128xf32> to vector<1x32xf32>
    %633 = vector.extract_strided_slice %629 {offsets = [3, 0], sizes = [1, 32], strides = [1, 1]} : vector<8x128xf32> to vector<1x32xf32>
    %634 = vector.extract_strided_slice %629 {offsets = [4, 0], sizes = [1, 64], strides = [1, 1]} : vector<8x128xf32> to vector<1x64xf32>
    %635 = vector.extract_strided_slice %629 {offsets = [5, 0], sizes = [1, 32], strides = [1, 1]} : vector<8x128xf32> to vector<1x32xf32>
    %636 = vector.extract_strided_slice %629 {offsets = [6, 0], sizes = [1, 32], strides = [1, 1]} : vector<8x128xf32> to vector<1x32xf32>
    %637 = vector.extract_strided_slice %629 {offsets = [7, 0], sizes = [1, 32], strides = [1, 1]} : vector<8x128xf32> to vector<1x32xf32>
    %cst_264 = arith.constant dense<0.000000e+00> : vector<8x96xf32>
    %638 = tpu.matmul %619, %621, %cst_264 {dimension_numbers = #tpu.dot_dimension_numbers<[1], [0], [0], [1], [0, 0, 1, 1], [], []>} : vector<8x32xf32>, vector<32x96xf32>, vector<8x96xf32> -> vector<8x96xf32>
    %639 = vector.broadcast %630 : vector<1x96xf32> to vector<8x96xf32>
    %640 = arith.addf %638, %639 : vector<8x96xf32>
    %641 = vector.extract_strided_slice %640 {offsets = [0, 0], sizes = [8, 16], strides = [1, 1]} : vector<8x96xf32> to vector<8x16xf32>
    %cst_265 = arith.constant 2.500000e-01 : f32
    %642 = vector.broadcast %cst_265 : f32 to vector<8x16xf32>
    %643 = arith.mulf %641, %642 : vector<8x16xf32>
    %644 = vector.extract_strided_slice %640 {offsets = [0, 32], sizes = [8, 16], strides = [1, 1]} : vector<8x96xf32> to vector<8x16xf32>
    %645 = vector.extract_strided_slice %640 {offsets = [0, 64], sizes = [8, 16], strides = [1, 1]} : vector<8x96xf32> to vector<8x16xf32>
    "tpu.trace_start"() <{level = 10 : i32, message = "qd,kd->qk"}> : () -> ()
    %cst_266 = arith.constant dense<0.000000e+00> : vector<8x8xf32>
    %646 = tpu.matmul %643, %644, %cst_266 {dimension_numbers = #tpu.dot_dimension_numbers<[1], [1], [0], [0], [0, 0, 1, 0], [], []>} : vector<8x16xf32>, vector<8x16xf32>, vector<8x8xf32> -> vector<8x8xf32>
    "tpu.trace_stop"() : () -> ()
    %cst_267 = arith.constant dense<0xFF800000> : vector<8xf32>
    %647 = vector.multi_reduction <maximumf>, %646, %cst_267 [1] : vector<8x8xf32> to vector<8xf32>
    %648 = vector.shape_cast %647 : vector<8xf32> to vector<8x1xf32>
    %649 = vector.broadcast %648 : vector<8x1xf32> to vector<8x8xf32>
    %650 = arith.subf %646, %649 : vector<8x8xf32>
    %651 = math.exp %650 : vector<8x8xf32>
    %cst_268 = arith.constant dense<0.000000e+00> : vector<8xf32>
    %652 = vector.multi_reduction <add>, %651, %cst_268 [1] : vector<8x8xf32> to vector<8xf32>
    %653 = vector.shape_cast %652 : vector<8xf32> to vector<8x1xf32>
    %654 = vector.broadcast %653 : vector<8x1xf32> to vector<8x8xf32>
    %655 = arith.divf %651, %654 : vector<8x8xf32>
    %cst_269 = arith.constant dense<0.000000e+00> : vector<8x16xf32>
    %656 = tpu.matmul %655, %645, %cst_269 {dimension_numbers = #tpu.dot_dimension_numbers<[1], [0], [0], [1], [0, 0, 1, 1], [], []>} : vector<8x8xf32>, vector<8x16xf32>, vector<8x16xf32> -> vector<8x16xf32>
    %657 = vector.extract_strided_slice %640 {offsets = [0, 16], sizes = [8, 16], strides = [1, 1]} : vector<8x96xf32> to vector<8x16xf32>
    %cst_270 = arith.constant 2.500000e-01 : f32
    %658 = vector.broadcast %cst_270 : f32 to vector<8x16xf32>
    %659 = arith.mulf %657, %658 : vector<8x16xf32>
    %660 = vector.extract_strided_slice %640 {offsets = [0, 48], sizes = [8, 16], strides = [1, 1]} : vector<8x96xf32> to vector<8x16xf32>
    %661 = vector.extract_strided_slice %640 {offsets = [0, 80], sizes = [8, 16], strides = [1, 1]} : vector<8x96xf32> to vector<8x16xf32>
    "tpu.trace_start"() <{level = 10 : i32, message = "qd,kd->qk"}> : () -> ()
    %cst_271 = arith.constant dense<0.000000e+00> : vector<8x8xf32>
    %662 = tpu.matmul %659, %660, %cst_271 {dimension_numbers = #tpu.dot_dimension_numbers<[1], [1], [0], [0], [0, 0, 1, 0], [], []>} : vector<8x16xf32>, vector<8x16xf32>, vector<8x8xf32> -> vector<8x8xf32>
    "tpu.trace_stop"() : () -> ()
    %cst_272 = arith.constant dense<0xFF800000> : vector<8xf32>
    %663 = vector.multi_reduction <maximumf>, %662, %cst_272 [1] : vector<8x8xf32> to vector<8xf32>
    %664 = vector.shape_cast %663 : vector<8xf32> to vector<8x1xf32>
    %665 = vector.broadcast %664 : vector<8x1xf32> to vector<8x8xf32>
    %666 = arith.subf %662, %665 : vector<8x8xf32>
    %667 = math.exp %666 : vector<8x8xf32>
    %cst_273 = arith.constant dense<0.000000e+00> : vector<8xf32>
    %668 = vector.multi_reduction <add>, %667, %cst_273 [1] : vector<8x8xf32> to vector<8xf32>
    %669 = vector.shape_cast %668 : vector<8xf32> to vector<8x1xf32>
    %670 = vector.broadcast %669 : vector<8x1xf32> to vector<8x8xf32>
    %671 = arith.divf %667, %670 : vector<8x8xf32>
    %cst_274 = arith.constant dense<0.000000e+00> : vector<8x16xf32>
    %672 = tpu.matmul %671, %661, %cst_274 {dimension_numbers = #tpu.dot_dimension_numbers<[1], [0], [0], [1], [0, 0, 1, 1], [], []>} : vector<8x8xf32>, vector<8x16xf32>, vector<8x16xf32> -> vector<8x16xf32>
    %673 = tpu.concatenate %656, %672 in 1 : vector<8x16xf32>, vector<8x16xf32> -> vector<8x32xf32>
    %cst_275 = arith.constant dense<0.000000e+00> : vector<8x32xf32>
    %674 = tpu.matmul %673, %623, %cst_275 {dimension_numbers = #tpu.dot_dimension_numbers<[1], [0], [0], [1], [0, 0, 1, 1], [], []>} : vector<8x32xf32>, vector<32x32xf32>, vector<8x32xf32> -> vector<8x32xf32>
    %675 = vector.broadcast %631 : vector<1x32xf32> to vector<8x32xf32>
    %676 = arith.addf %674, %675 : vector<8x32xf32>
    %677 = arith.addf %619, %676 : vector<8x32xf32>
    %cst_276 = arith.constant dense<0.000000e+00> : vector<8xf32>
    %678 = vector.multi_reduction <add>, %677, %cst_276 [1] : vector<8x32xf32> to vector<8xf32>
    %679 = vector.shape_cast %678 : vector<8xf32> to vector<8x1xf32>
    %cst_277 = arith.constant 3.200000e+01 : f32
    %680 = vector.broadcast %cst_277 : f32 to vector<8x1xf32>
    %681 = arith.divf %679, %680 : vector<8x1xf32>
    %682 = vector.broadcast %681 : vector<8x1xf32> to vector<8x32xf32>
    %683 = arith.subf %677, %682 : vector<8x32xf32>
    %684 = arith.mulf %683, %683 : vector<8x32xf32>
    %cst_278 = arith.constant dense<0.000000e+00> : vector<8xf32>
    %685 = vector.multi_reduction <add>, %684, %cst_278 [1] : vector<8x32xf32> to vector<8xf32>
    %686 = vector.shape_cast %685 : vector<8xf32> to vector<8x1xf32>
    %cst_279 = arith.constant 3.200000e+01 : f32
    %687 = vector.broadcast %cst_279 : f32 to vector<8x1xf32>
    %688 = arith.divf %686, %687 : vector<8x1xf32>
    %689 = vector.broadcast %681 : vector<8x1xf32> to vector<8x32xf32>
    %690 = arith.subf %677, %689 : vector<8x32xf32>
    %cst_280 = arith.constant 9.99999974E-6 : f32
    %691 = vector.broadcast %cst_280 : f32 to vector<8x1xf32>
    %692 = arith.addf %688, %691 : vector<8x1xf32>
    %693 = math.rsqrt %692 : vector<8x1xf32>
    %694 = vector.broadcast %693 : vector<8x1xf32> to vector<8x32xf32>
    %695 = arith.mulf %690, %694 : vector<8x32xf32>
    %696 = vector.broadcast %632 : vector<1x32xf32> to vector<8x32xf32>
    %697 = arith.mulf %695, %696 : vector<8x32xf32>
    %698 = vector.broadcast %633 : vector<1x32xf32> to vector<8x32xf32>
    %699 = arith.addf %697, %698 : vector<8x32xf32>
    %cst_281 = arith.constant dense<0.000000e+00> : vector<8x64xf32>
    %700 = tpu.matmul %699, %625, %cst_281 {dimension_numbers = #tpu.dot_dimension_numbers<[1], [0], [0], [1], [0, 0, 1, 1], [], []>} : vector<8x32xf32>, vector<32x64xf32>, vector<8x64xf32> -> vector<8x64xf32>
    %701 = vector.broadcast %634 : vector<1x64xf32> to vector<8x64xf32>
    %702 = arith.addf %700, %701 : vector<8x64xf32>
    %cst_282 = arith.constant 0.000000e+00 : f32
    %703 = vector.broadcast %cst_282 : f32 to vector<8x64xf32>
    %704 = arith.maximumf %702, %703 : vector<8x64xf32>
    %cst_283 = arith.constant dense<0.000000e+00> : vector<8x32xf32>
    %705 = tpu.matmul %704, %627, %cst_283 {dimension_numbers = #tpu.dot_dimension_numbers<[1], [0], [0], [1], [0, 0, 1, 1], [], []>} : vector<8x64xf32>, vector<64x32xf32>, vector<8x32xf32> -> vector<8x32xf32>
    %706 = vector.broadcast %635 : vector<1x32xf32> to vector<8x32xf32>
    %707 = arith.addf %705, %706 : vector<8x32xf32>
    %708 = arith.addf %699, %707 : vector<8x32xf32>
    %cst_284 = arith.constant dense<0.000000e+00> : vector<8xf32>
    %709 = vector.multi_reduction <add>, %708, %cst_284 [1] : vector<8x32xf32> to vector<8xf32>
    %710 = vector.shape_cast %709 : vector<8xf32> to vector<8x1xf32>
    %cst_285 = arith.constant 3.200000e+01 : f32
    %711 = vector.broadcast %cst_285 : f32 to vector<8x1xf32>
    %712 = arith.divf %710, %711 : vector<8x1xf32>
    %713 = vector.broadcast %712 : vector<8x1xf32> to vector<8x32xf32>
    %714 = arith.subf %708, %713 : vector<8x32xf32>
    %715 = arith.mulf %714, %714 : vector<8x32xf32>
    %cst_286 = arith.constant dense<0.000000e+00> : vector<8xf32>
    %716 = vector.multi_reduction <add>, %715, %cst_286 [1] : vector<8x32xf32> to vector<8xf32>
    %717 = vector.shape_cast %716 : vector<8xf32> to vector<8x1xf32>
    %cst_287 = arith.constant 3.200000e+01 : f32
    %718 = vector.broadcast %cst_287 : f32 to vector<8x1xf32>
    %719 = arith.divf %717, %718 : vector<8x1xf32>
    %720 = vector.broadcast %712 : vector<8x1xf32> to vector<8x32xf32>
    %721 = arith.subf %708, %720 : vector<8x32xf32>
    %cst_288 = arith.constant 9.99999974E-6 : f32
    %722 = vector.broadcast %cst_288 : f32 to vector<8x1xf32>
    %723 = arith.addf %719, %722 : vector<8x1xf32>
    %724 = math.rsqrt %723 : vector<8x1xf32>
    %725 = vector.broadcast %724 : vector<8x1xf32> to vector<8x32xf32>
    %726 = arith.mulf %721, %725 : vector<8x32xf32>
    %727 = vector.broadcast %636 : vector<1x32xf32> to vector<8x32xf32>
    %728 = arith.mulf %726, %727 : vector<8x32xf32>
    %729 = vector.broadcast %637 : vector<1x32xf32> to vector<8x32xf32>
    %730 = arith.addf %728, %729 : vector<8x32xf32>
    %cst_289 = arith.constant 5.000000e-01 : f32
    %731 = vector.broadcast %cst_289 : f32 to vector<8x32xf32>
    %732 = arith.mulf %730, %731 : vector<8x32xf32>
    %733 = arith.addf %490, %732 : vector<8x32xf32>
    %c1_290 = arith.constant 1 : index
    %c1_291 = arith.constant 1 : index
    %c0_292 = arith.constant 0 : index
    %c0_293 = arith.constant 0 : index
    %734 = vector.load %arg0[%c1_290, %c1_291, %c0_292, %c0_293] : memref<3x2x8x2xf32, #tpu.memory_space<vmem>>, vector<1x1x8x2xf32>
    %735 = vector.shape_cast %734 : vector<1x1x8x2xf32> to vector<8x2xf32>
    %736 = vector.extract_strided_slice %735 {offsets = [0, 0], sizes = [8, 1], strides = [1, 1]} : vector<8x2xf32> to vector<8x1xf32>
    %737 = vector.extract_strided_slice %0 {offsets = [0, 0], sizes = [1, 32], strides = [1, 1]} : vector<2x32xf32> to vector<1x32xf32>
    %738 = vector.broadcast %736 : vector<8x1xf32> to vector<8x32xf32>
    %739 = vector.broadcast %737 : vector<1x32xf32> to vector<8x32xf32>
    %740 = arith.mulf %738, %739 : vector<8x32xf32>
    %741 = vector.extract_strided_slice %735 {offsets = [0, 1], sizes = [8, 1], strides = [1, 1]} : vector<8x2xf32> to vector<8x1xf32>
    %742 = vector.extract_strided_slice %0 {offsets = [1, 0], sizes = [1, 32], strides = [1, 1]} : vector<2x32xf32> to vector<1x32xf32>
    %743 = vector.broadcast %741 : vector<8x1xf32> to vector<8x32xf32>
    %744 = vector.broadcast %742 : vector<1x32xf32> to vector<8x32xf32>
    %745 = arith.mulf %743, %744 : vector<8x32xf32>
    %746 = arith.addf %740, %745 : vector<8x32xf32>
    %747 = vector.broadcast %1 : vector<1x32xf32> to vector<8x32xf32>
    %748 = arith.addf %746, %747 : vector<8x32xf32>
    %749 = vector.extract_strided_slice %2 {offsets = [1, 0], sizes = [1, 32], strides = [1, 1]} : vector<2x32xf32> to vector<1x32xf32>
    %750 = vector.broadcast %749 : vector<1x32xf32> to vector<8x32xf32>
    %751 = arith.addf %748, %750 : vector<8x32xf32>
    %c1_294 = arith.constant 1 : index
    %c0_295 = arith.constant 0 : index
    %c0_296 = arith.constant 0 : index
    %c0_297 = arith.constant 0 : index
    %752 = vector.load %arg4[%c1_294, %c0_295, %c0_296, %c0_297] : memref<3x2x32x96xf32, #tpu.memory_space<vmem>>, vector<1x1x32x96xf32>
    %753 = vector.shape_cast %752 : vector<1x1x32x96xf32> to vector<32x96xf32>
    %c1_298 = arith.constant 1 : index
    %c0_299 = arith.constant 0 : index
    %c0_300 = arith.constant 0 : index
    %c0_301 = arith.constant 0 : index
    %754 = vector.load %arg5[%c1_298, %c0_299, %c0_300, %c0_301] : memref<3x2x32x32xf32, #tpu.memory_space<vmem>>, vector<1x1x32x32xf32>
    %755 = vector.shape_cast %754 : vector<1x1x32x32xf32> to vector<32x32xf32>
    %c1_302 = arith.constant 1 : index
    %c0_303 = arith.constant 0 : index
    %c0_304 = arith.constant 0 : index
    %c0_305 = arith.constant 0 : index
    %756 = vector.load %arg6[%c1_302, %c0_303, %c0_304, %c0_305] : memref<3x2x32x64xf32, #tpu.memory_space<vmem>>, vector<1x1x32x64xf32>
    %757 = vector.shape_cast %756 : vector<1x1x32x64xf32> to vector<32x64xf32>
    %c1_306 = arith.constant 1 : index
    %c0_307 = arith.constant 0 : index
    %c0_308 = arith.constant 0 : index
    %c0_309 = arith.constant 0 : index
    %758 = vector.load %arg7[%c1_306, %c0_307, %c0_308, %c0_309] : memref<3x2x64x32xf32, #tpu.memory_space<vmem>>, vector<1x1x64x32xf32>
    %759 = vector.shape_cast %758 : vector<1x1x64x32xf32> to vector<64x32xf32>
    %c1_310 = arith.constant 1 : index
    %c0_311 = arith.constant 0 : index
    %c0_312 = arith.constant 0 : index
    %c0_313 = arith.constant 0 : index
    %760 = vector.load %arg8[%c1_310, %c0_311, %c0_312, %c0_313] : memref<3x2x8x128xf32, #tpu.memory_space<vmem>>, vector<1x1x8x128xf32>
    %761 = vector.shape_cast %760 : vector<1x1x8x128xf32> to vector<8x128xf32>
    %762 = vector.extract_strided_slice %761 {offsets = [0, 0], sizes = [1, 96], strides = [1, 1]} : vector<8x128xf32> to vector<1x96xf32>
    %763 = vector.extract_strided_slice %761 {offsets = [1, 0], sizes = [1, 32], strides = [1, 1]} : vector<8x128xf32> to vector<1x32xf32>
    %764 = vector.extract_strided_slice %761 {offsets = [2, 0], sizes = [1, 32], strides = [1, 1]} : vector<8x128xf32> to vector<1x32xf32>
    %765 = vector.extract_strided_slice %761 {offsets = [3, 0], sizes = [1, 32], strides = [1, 1]} : vector<8x128xf32> to vector<1x32xf32>
    %766 = vector.extract_strided_slice %761 {offsets = [4, 0], sizes = [1, 64], strides = [1, 1]} : vector<8x128xf32> to vector<1x64xf32>
    %767 = vector.extract_strided_slice %761 {offsets = [5, 0], sizes = [1, 32], strides = [1, 1]} : vector<8x128xf32> to vector<1x32xf32>
    %768 = vector.extract_strided_slice %761 {offsets = [6, 0], sizes = [1, 32], strides = [1, 1]} : vector<8x128xf32> to vector<1x32xf32>
    %769 = vector.extract_strided_slice %761 {offsets = [7, 0], sizes = [1, 32], strides = [1, 1]} : vector<8x128xf32> to vector<1x32xf32>
    %cst_314 = arith.constant dense<0.000000e+00> : vector<8x96xf32>
    %770 = tpu.matmul %751, %753, %cst_314 {dimension_numbers = #tpu.dot_dimension_numbers<[1], [0], [0], [1], [0, 0, 1, 1], [], []>} : vector<8x32xf32>, vector<32x96xf32>, vector<8x96xf32> -> vector<8x96xf32>
    %771 = vector.broadcast %762 : vector<1x96xf32> to vector<8x96xf32>
    %772 = arith.addf %770, %771 : vector<8x96xf32>
    %773 = vector.extract_strided_slice %772 {offsets = [0, 0], sizes = [8, 16], strides = [1, 1]} : vector<8x96xf32> to vector<8x16xf32>
    %cst_315 = arith.constant 2.500000e-01 : f32
    %774 = vector.broadcast %cst_315 : f32 to vector<8x16xf32>
    %775 = arith.mulf %773, %774 : vector<8x16xf32>
    %776 = vector.extract_strided_slice %772 {offsets = [0, 32], sizes = [8, 16], strides = [1, 1]} : vector<8x96xf32> to vector<8x16xf32>
    %777 = vector.extract_strided_slice %772 {offsets = [0, 64], sizes = [8, 16], strides = [1, 1]} : vector<8x96xf32> to vector<8x16xf32>
    "tpu.trace_start"() <{level = 10 : i32, message = "qd,kd->qk"}> : () -> ()
    %cst_316 = arith.constant dense<0.000000e+00> : vector<8x8xf32>
    %778 = tpu.matmul %775, %776, %cst_316 {dimension_numbers = #tpu.dot_dimension_numbers<[1], [1], [0], [0], [0, 0, 1, 0], [], []>} : vector<8x16xf32>, vector<8x16xf32>, vector<8x8xf32> -> vector<8x8xf32>
    "tpu.trace_stop"() : () -> ()
    %cst_317 = arith.constant dense<0xFF800000> : vector<8xf32>
    %779 = vector.multi_reduction <maximumf>, %778, %cst_317 [1] : vector<8x8xf32> to vector<8xf32>
    %780 = vector.shape_cast %779 : vector<8xf32> to vector<8x1xf32>
    %781 = vector.broadcast %780 : vector<8x1xf32> to vector<8x8xf32>
    %782 = arith.subf %778, %781 : vector<8x8xf32>
    %783 = math.exp %782 : vector<8x8xf32>
    %cst_318 = arith.constant dense<0.000000e+00> : vector<8xf32>
    %784 = vector.multi_reduction <add>, %783, %cst_318 [1] : vector<8x8xf32> to vector<8xf32>
    %785 = vector.shape_cast %784 : vector<8xf32> to vector<8x1xf32>
    %786 = vector.broadcast %785 : vector<8x1xf32> to vector<8x8xf32>
    %787 = arith.divf %783, %786 : vector<8x8xf32>
    %cst_319 = arith.constant dense<0.000000e+00> : vector<8x16xf32>
    %788 = tpu.matmul %787, %777, %cst_319 {dimension_numbers = #tpu.dot_dimension_numbers<[1], [0], [0], [1], [0, 0, 1, 1], [], []>} : vector<8x8xf32>, vector<8x16xf32>, vector<8x16xf32> -> vector<8x16xf32>
    %789 = vector.extract_strided_slice %772 {offsets = [0, 16], sizes = [8, 16], strides = [1, 1]} : vector<8x96xf32> to vector<8x16xf32>
    %cst_320 = arith.constant 2.500000e-01 : f32
    %790 = vector.broadcast %cst_320 : f32 to vector<8x16xf32>
    %791 = arith.mulf %789, %790 : vector<8x16xf32>
    %792 = vector.extract_strided_slice %772 {offsets = [0, 48], sizes = [8, 16], strides = [1, 1]} : vector<8x96xf32> to vector<8x16xf32>
    %793 = vector.extract_strided_slice %772 {offsets = [0, 80], sizes = [8, 16], strides = [1, 1]} : vector<8x96xf32> to vector<8x16xf32>
    "tpu.trace_start"() <{level = 10 : i32, message = "qd,kd->qk"}> : () -> ()
    %cst_321 = arith.constant dense<0.000000e+00> : vector<8x8xf32>
    %794 = tpu.matmul %791, %792, %cst_321 {dimension_numbers = #tpu.dot_dimension_numbers<[1], [1], [0], [0], [0, 0, 1, 0], [], []>} : vector<8x16xf32>, vector<8x16xf32>, vector<8x8xf32> -> vector<8x8xf32>
    "tpu.trace_stop"() : () -> ()
    %cst_322 = arith.constant dense<0xFF800000> : vector<8xf32>
    %795 = vector.multi_reduction <maximumf>, %794, %cst_322 [1] : vector<8x8xf32> to vector<8xf32>
    %796 = vector.shape_cast %795 : vector<8xf32> to vector<8x1xf32>
    %797 = vector.broadcast %796 : vector<8x1xf32> to vector<8x8xf32>
    %798 = arith.subf %794, %797 : vector<8x8xf32>
    %799 = math.exp %798 : vector<8x8xf32>
    %cst_323 = arith.constant dense<0.000000e+00> : vector<8xf32>
    %800 = vector.multi_reduction <add>, %799, %cst_323 [1] : vector<8x8xf32> to vector<8xf32>
    %801 = vector.shape_cast %800 : vector<8xf32> to vector<8x1xf32>
    %802 = vector.broadcast %801 : vector<8x1xf32> to vector<8x8xf32>
    %803 = arith.divf %799, %802 : vector<8x8xf32>
    %cst_324 = arith.constant dense<0.000000e+00> : vector<8x16xf32>
    %804 = tpu.matmul %803, %793, %cst_324 {dimension_numbers = #tpu.dot_dimension_numbers<[1], [0], [0], [1], [0, 0, 1, 1], [], []>} : vector<8x8xf32>, vector<8x16xf32>, vector<8x16xf32> -> vector<8x16xf32>
    %805 = tpu.concatenate %788, %804 in 1 : vector<8x16xf32>, vector<8x16xf32> -> vector<8x32xf32>
    %cst_325 = arith.constant dense<0.000000e+00> : vector<8x32xf32>
    %806 = tpu.matmul %805, %755, %cst_325 {dimension_numbers = #tpu.dot_dimension_numbers<[1], [0], [0], [1], [0, 0, 1, 1], [], []>} : vector<8x32xf32>, vector<32x32xf32>, vector<8x32xf32> -> vector<8x32xf32>
    %807 = vector.broadcast %763 : vector<1x32xf32> to vector<8x32xf32>
    %808 = arith.addf %806, %807 : vector<8x32xf32>
    %809 = arith.addf %751, %808 : vector<8x32xf32>
    %cst_326 = arith.constant dense<0.000000e+00> : vector<8xf32>
    %810 = vector.multi_reduction <add>, %809, %cst_326 [1] : vector<8x32xf32> to vector<8xf32>
    %811 = vector.shape_cast %810 : vector<8xf32> to vector<8x1xf32>
    %cst_327 = arith.constant 3.200000e+01 : f32
    %812 = vector.broadcast %cst_327 : f32 to vector<8x1xf32>
    %813 = arith.divf %811, %812 : vector<8x1xf32>
    %814 = vector.broadcast %813 : vector<8x1xf32> to vector<8x32xf32>
    %815 = arith.subf %809, %814 : vector<8x32xf32>
    %816 = arith.mulf %815, %815 : vector<8x32xf32>
    %cst_328 = arith.constant dense<0.000000e+00> : vector<8xf32>
    %817 = vector.multi_reduction <add>, %816, %cst_328 [1] : vector<8x32xf32> to vector<8xf32>
    %818 = vector.shape_cast %817 : vector<8xf32> to vector<8x1xf32>
    %cst_329 = arith.constant 3.200000e+01 : f32
    %819 = vector.broadcast %cst_329 : f32 to vector<8x1xf32>
    %820 = arith.divf %818, %819 : vector<8x1xf32>
    %821 = vector.broadcast %813 : vector<8x1xf32> to vector<8x32xf32>
    %822 = arith.subf %809, %821 : vector<8x32xf32>
    %cst_330 = arith.constant 9.99999974E-6 : f32
    %823 = vector.broadcast %cst_330 : f32 to vector<8x1xf32>
    %824 = arith.addf %820, %823 : vector<8x1xf32>
    %825 = math.rsqrt %824 : vector<8x1xf32>
    %826 = vector.broadcast %825 : vector<8x1xf32> to vector<8x32xf32>
    %827 = arith.mulf %822, %826 : vector<8x32xf32>
    %828 = vector.broadcast %764 : vector<1x32xf32> to vector<8x32xf32>
    %829 = arith.mulf %827, %828 : vector<8x32xf32>
    %830 = vector.broadcast %765 : vector<1x32xf32> to vector<8x32xf32>
    %831 = arith.addf %829, %830 : vector<8x32xf32>
    %cst_331 = arith.constant dense<0.000000e+00> : vector<8x64xf32>
    %832 = tpu.matmul %831, %757, %cst_331 {dimension_numbers = #tpu.dot_dimension_numbers<[1], [0], [0], [1], [0, 0, 1, 1], [], []>} : vector<8x32xf32>, vector<32x64xf32>, vector<8x64xf32> -> vector<8x64xf32>
    %833 = vector.broadcast %766 : vector<1x64xf32> to vector<8x64xf32>
    %834 = arith.addf %832, %833 : vector<8x64xf32>
    %cst_332 = arith.constant 0.000000e+00 : f32
    %835 = vector.broadcast %cst_332 : f32 to vector<8x64xf32>
    %836 = arith.maximumf %834, %835 : vector<8x64xf32>
    %cst_333 = arith.constant dense<0.000000e+00> : vector<8x32xf32>
    %837 = tpu.matmul %836, %759, %cst_333 {dimension_numbers = #tpu.dot_dimension_numbers<[1], [0], [0], [1], [0, 0, 1, 1], [], []>} : vector<8x64xf32>, vector<64x32xf32>, vector<8x32xf32> -> vector<8x32xf32>
    %838 = vector.broadcast %767 : vector<1x32xf32> to vector<8x32xf32>
    %839 = arith.addf %837, %838 : vector<8x32xf32>
    %840 = arith.addf %831, %839 : vector<8x32xf32>
    %cst_334 = arith.constant dense<0.000000e+00> : vector<8xf32>
    %841 = vector.multi_reduction <add>, %840, %cst_334 [1] : vector<8x32xf32> to vector<8xf32>
    %842 = vector.shape_cast %841 : vector<8xf32> to vector<8x1xf32>
    %cst_335 = arith.constant 3.200000e+01 : f32
    %843 = vector.broadcast %cst_335 : f32 to vector<8x1xf32>
    %844 = arith.divf %842, %843 : vector<8x1xf32>
    %845 = vector.broadcast %844 : vector<8x1xf32> to vector<8x32xf32>
    %846 = arith.subf %840, %845 : vector<8x32xf32>
    %847 = arith.mulf %846, %846 : vector<8x32xf32>
    %cst_336 = arith.constant dense<0.000000e+00> : vector<8xf32>
    %848 = vector.multi_reduction <add>, %847, %cst_336 [1] : vector<8x32xf32> to vector<8xf32>
    %849 = vector.shape_cast %848 : vector<8xf32> to vector<8x1xf32>
    %cst_337 = arith.constant 3.200000e+01 : f32
    %850 = vector.broadcast %cst_337 : f32 to vector<8x1xf32>
    %851 = arith.divf %849, %850 : vector<8x1xf32>
    %852 = vector.broadcast %844 : vector<8x1xf32> to vector<8x32xf32>
    %853 = arith.subf %840, %852 : vector<8x32xf32>
    %cst_338 = arith.constant 9.99999974E-6 : f32
    %854 = vector.broadcast %cst_338 : f32 to vector<8x1xf32>
    %855 = arith.addf %851, %854 : vector<8x1xf32>
    %856 = math.rsqrt %855 : vector<8x1xf32>
    %857 = vector.broadcast %856 : vector<8x1xf32> to vector<8x32xf32>
    %858 = arith.mulf %853, %857 : vector<8x32xf32>
    %859 = vector.broadcast %768 : vector<1x32xf32> to vector<8x32xf32>
    %860 = arith.mulf %858, %859 : vector<8x32xf32>
    %861 = vector.broadcast %769 : vector<1x32xf32> to vector<8x32xf32>
    %862 = arith.addf %860, %861 : vector<8x32xf32>
    %c1_339 = arith.constant 1 : index
    %c1_340 = arith.constant 1 : index
    %c0_341 = arith.constant 0 : index
    %c0_342 = arith.constant 0 : index
    %863 = vector.load %arg4[%c1_339, %c1_340, %c0_341, %c0_342] : memref<3x2x32x96xf32, #tpu.memory_space<vmem>>, vector<1x1x32x96xf32>
    %864 = vector.shape_cast %863 : vector<1x1x32x96xf32> to vector<32x96xf32>
    %c1_343 = arith.constant 1 : index
    %c1_344 = arith.constant 1 : index
    %c0_345 = arith.constant 0 : index
    %c0_346 = arith.constant 0 : index
    %865 = vector.load %arg5[%c1_343, %c1_344, %c0_345, %c0_346] : memref<3x2x32x32xf32, #tpu.memory_space<vmem>>, vector<1x1x32x32xf32>
    %866 = vector.shape_cast %865 : vector<1x1x32x32xf32> to vector<32x32xf32>
    %c1_347 = arith.constant 1 : index
    %c1_348 = arith.constant 1 : index
    %c0_349 = arith.constant 0 : index
    %c0_350 = arith.constant 0 : index
    %867 = vector.load %arg6[%c1_347, %c1_348, %c0_349, %c0_350] : memref<3x2x32x64xf32, #tpu.memory_space<vmem>>, vector<1x1x32x64xf32>
    %868 = vector.shape_cast %867 : vector<1x1x32x64xf32> to vector<32x64xf32>
    %c1_351 = arith.constant 1 : index
    %c1_352 = arith.constant 1 : index
    %c0_353 = arith.constant 0 : index
    %c0_354 = arith.constant 0 : index
    %869 = vector.load %arg7[%c1_351, %c1_352, %c0_353, %c0_354] : memref<3x2x64x32xf32, #tpu.memory_space<vmem>>, vector<1x1x64x32xf32>
    %870 = vector.shape_cast %869 : vector<1x1x64x32xf32> to vector<64x32xf32>
    %c1_355 = arith.constant 1 : index
    %c1_356 = arith.constant 1 : index
    %c0_357 = arith.constant 0 : index
    %c0_358 = arith.constant 0 : index
    %871 = vector.load %arg8[%c1_355, %c1_356, %c0_357, %c0_358] : memref<3x2x8x128xf32, #tpu.memory_space<vmem>>, vector<1x1x8x128xf32>
    %872 = vector.shape_cast %871 : vector<1x1x8x128xf32> to vector<8x128xf32>
    %873 = vector.extract_strided_slice %872 {offsets = [0, 0], sizes = [1, 96], strides = [1, 1]} : vector<8x128xf32> to vector<1x96xf32>
    %874 = vector.extract_strided_slice %872 {offsets = [1, 0], sizes = [1, 32], strides = [1, 1]} : vector<8x128xf32> to vector<1x32xf32>
    %875 = vector.extract_strided_slice %872 {offsets = [2, 0], sizes = [1, 32], strides = [1, 1]} : vector<8x128xf32> to vector<1x32xf32>
    %876 = vector.extract_strided_slice %872 {offsets = [3, 0], sizes = [1, 32], strides = [1, 1]} : vector<8x128xf32> to vector<1x32xf32>
    %877 = vector.extract_strided_slice %872 {offsets = [4, 0], sizes = [1, 64], strides = [1, 1]} : vector<8x128xf32> to vector<1x64xf32>
    %878 = vector.extract_strided_slice %872 {offsets = [5, 0], sizes = [1, 32], strides = [1, 1]} : vector<8x128xf32> to vector<1x32xf32>
    %879 = vector.extract_strided_slice %872 {offsets = [6, 0], sizes = [1, 32], strides = [1, 1]} : vector<8x128xf32> to vector<1x32xf32>
    %880 = vector.extract_strided_slice %872 {offsets = [7, 0], sizes = [1, 32], strides = [1, 1]} : vector<8x128xf32> to vector<1x32xf32>
    %cst_359 = arith.constant dense<0.000000e+00> : vector<8x96xf32>
    %881 = tpu.matmul %862, %864, %cst_359 {dimension_numbers = #tpu.dot_dimension_numbers<[1], [0], [0], [1], [0, 0, 1, 1], [], []>} : vector<8x32xf32>, vector<32x96xf32>, vector<8x96xf32> -> vector<8x96xf32>
    %882 = vector.broadcast %873 : vector<1x96xf32> to vector<8x96xf32>
    %883 = arith.addf %881, %882 : vector<8x96xf32>
    %884 = vector.extract_strided_slice %883 {offsets = [0, 0], sizes = [8, 16], strides = [1, 1]} : vector<8x96xf32> to vector<8x16xf32>
    %cst_360 = arith.constant 2.500000e-01 : f32
    %885 = vector.broadcast %cst_360 : f32 to vector<8x16xf32>
    %886 = arith.mulf %884, %885 : vector<8x16xf32>
    %887 = vector.extract_strided_slice %883 {offsets = [0, 32], sizes = [8, 16], strides = [1, 1]} : vector<8x96xf32> to vector<8x16xf32>
    %888 = vector.extract_strided_slice %883 {offsets = [0, 64], sizes = [8, 16], strides = [1, 1]} : vector<8x96xf32> to vector<8x16xf32>
    "tpu.trace_start"() <{level = 10 : i32, message = "qd,kd->qk"}> : () -> ()
    %cst_361 = arith.constant dense<0.000000e+00> : vector<8x8xf32>
    %889 = tpu.matmul %886, %887, %cst_361 {dimension_numbers = #tpu.dot_dimension_numbers<[1], [1], [0], [0], [0, 0, 1, 0], [], []>} : vector<8x16xf32>, vector<8x16xf32>, vector<8x8xf32> -> vector<8x8xf32>
    "tpu.trace_stop"() : () -> ()
    %cst_362 = arith.constant dense<0xFF800000> : vector<8xf32>
    %890 = vector.multi_reduction <maximumf>, %889, %cst_362 [1] : vector<8x8xf32> to vector<8xf32>
    %891 = vector.shape_cast %890 : vector<8xf32> to vector<8x1xf32>
    %892 = vector.broadcast %891 : vector<8x1xf32> to vector<8x8xf32>
    %893 = arith.subf %889, %892 : vector<8x8xf32>
    %894 = math.exp %893 : vector<8x8xf32>
    %cst_363 = arith.constant dense<0.000000e+00> : vector<8xf32>
    %895 = vector.multi_reduction <add>, %894, %cst_363 [1] : vector<8x8xf32> to vector<8xf32>
    %896 = vector.shape_cast %895 : vector<8xf32> to vector<8x1xf32>
    %897 = vector.broadcast %896 : vector<8x1xf32> to vector<8x8xf32>
    %898 = arith.divf %894, %897 : vector<8x8xf32>
    %cst_364 = arith.constant dense<0.000000e+00> : vector<8x16xf32>
    %899 = tpu.matmul %898, %888, %cst_364 {dimension_numbers = #tpu.dot_dimension_numbers<[1], [0], [0], [1], [0, 0, 1, 1], [], []>} : vector<8x8xf32>, vector<8x16xf32>, vector<8x16xf32> -> vector<8x16xf32>
    %900 = vector.extract_strided_slice %883 {offsets = [0, 16], sizes = [8, 16], strides = [1, 1]} : vector<8x96xf32> to vector<8x16xf32>
    %cst_365 = arith.constant 2.500000e-01 : f32
    %901 = vector.broadcast %cst_365 : f32 to vector<8x16xf32>
    %902 = arith.mulf %900, %901 : vector<8x16xf32>
    %903 = vector.extract_strided_slice %883 {offsets = [0, 48], sizes = [8, 16], strides = [1, 1]} : vector<8x96xf32> to vector<8x16xf32>
    %904 = vector.extract_strided_slice %883 {offsets = [0, 80], sizes = [8, 16], strides = [1, 1]} : vector<8x96xf32> to vector<8x16xf32>
    "tpu.trace_start"() <{level = 10 : i32, message = "qd,kd->qk"}> : () -> ()
    %cst_366 = arith.constant dense<0.000000e+00> : vector<8x8xf32>
    %905 = tpu.matmul %902, %903, %cst_366 {dimension_numbers = #tpu.dot_dimension_numbers<[1], [1], [0], [0], [0, 0, 1, 0], [], []>} : vector<8x16xf32>, vector<8x16xf32>, vector<8x8xf32> -> vector<8x8xf32>
    "tpu.trace_stop"() : () -> ()
    %cst_367 = arith.constant dense<0xFF800000> : vector<8xf32>
    %906 = vector.multi_reduction <maximumf>, %905, %cst_367 [1] : vector<8x8xf32> to vector<8xf32>
    %907 = vector.shape_cast %906 : vector<8xf32> to vector<8x1xf32>
    %908 = vector.broadcast %907 : vector<8x1xf32> to vector<8x8xf32>
    %909 = arith.subf %905, %908 : vector<8x8xf32>
    %910 = math.exp %909 : vector<8x8xf32>
    %cst_368 = arith.constant dense<0.000000e+00> : vector<8xf32>
    %911 = vector.multi_reduction <add>, %910, %cst_368 [1] : vector<8x8xf32> to vector<8xf32>
    %912 = vector.shape_cast %911 : vector<8xf32> to vector<8x1xf32>
    %913 = vector.broadcast %912 : vector<8x1xf32> to vector<8x8xf32>
    %914 = arith.divf %910, %913 : vector<8x8xf32>
    %cst_369 = arith.constant dense<0.000000e+00> : vector<8x16xf32>
    %915 = tpu.matmul %914, %904, %cst_369 {dimension_numbers = #tpu.dot_dimension_numbers<[1], [0], [0], [1], [0, 0, 1, 1], [], []>} : vector<8x8xf32>, vector<8x16xf32>, vector<8x16xf32> -> vector<8x16xf32>
    %916 = tpu.concatenate %899, %915 in 1 : vector<8x16xf32>, vector<8x16xf32> -> vector<8x32xf32>
    %cst_370 = arith.constant dense<0.000000e+00> : vector<8x32xf32>
    %917 = tpu.matmul %916, %866, %cst_370 {dimension_numbers = #tpu.dot_dimension_numbers<[1], [0], [0], [1], [0, 0, 1, 1], [], []>} : vector<8x32xf32>, vector<32x32xf32>, vector<8x32xf32> -> vector<8x32xf32>
    %918 = vector.broadcast %874 : vector<1x32xf32> to vector<8x32xf32>
    %919 = arith.addf %917, %918 : vector<8x32xf32>
    %920 = arith.addf %862, %919 : vector<8x32xf32>
    %cst_371 = arith.constant dense<0.000000e+00> : vector<8xf32>
    %921 = vector.multi_reduction <add>, %920, %cst_371 [1] : vector<8x32xf32> to vector<8xf32>
    %922 = vector.shape_cast %921 : vector<8xf32> to vector<8x1xf32>
    %cst_372 = arith.constant 3.200000e+01 : f32
    %923 = vector.broadcast %cst_372 : f32 to vector<8x1xf32>
    %924 = arith.divf %922, %923 : vector<8x1xf32>
    %925 = vector.broadcast %924 : vector<8x1xf32> to vector<8x32xf32>
    %926 = arith.subf %920, %925 : vector<8x32xf32>
    %927 = arith.mulf %926, %926 : vector<8x32xf32>
    %cst_373 = arith.constant dense<0.000000e+00> : vector<8xf32>
    %928 = vector.multi_reduction <add>, %927, %cst_373 [1] : vector<8x32xf32> to vector<8xf32>
    %929 = vector.shape_cast %928 : vector<8xf32> to vector<8x1xf32>
    %cst_374 = arith.constant 3.200000e+01 : f32
    %930 = vector.broadcast %cst_374 : f32 to vector<8x1xf32>
    %931 = arith.divf %929, %930 : vector<8x1xf32>
    %932 = vector.broadcast %924 : vector<8x1xf32> to vector<8x32xf32>
    %933 = arith.subf %920, %932 : vector<8x32xf32>
    %cst_375 = arith.constant 9.99999974E-6 : f32
    %934 = vector.broadcast %cst_375 : f32 to vector<8x1xf32>
    %935 = arith.addf %931, %934 : vector<8x1xf32>
    %936 = math.rsqrt %935 : vector<8x1xf32>
    %937 = vector.broadcast %936 : vector<8x1xf32> to vector<8x32xf32>
    %938 = arith.mulf %933, %937 : vector<8x32xf32>
    %939 = vector.broadcast %875 : vector<1x32xf32> to vector<8x32xf32>
    %940 = arith.mulf %938, %939 : vector<8x32xf32>
    %941 = vector.broadcast %876 : vector<1x32xf32> to vector<8x32xf32>
    %942 = arith.addf %940, %941 : vector<8x32xf32>
    %cst_376 = arith.constant dense<0.000000e+00> : vector<8x64xf32>
    %943 = tpu.matmul %942, %868, %cst_376 {dimension_numbers = #tpu.dot_dimension_numbers<[1], [0], [0], [1], [0, 0, 1, 1], [], []>} : vector<8x32xf32>, vector<32x64xf32>, vector<8x64xf32> -> vector<8x64xf32>
    %944 = vector.broadcast %877 : vector<1x64xf32> to vector<8x64xf32>
    %945 = arith.addf %943, %944 : vector<8x64xf32>
    %cst_377 = arith.constant 0.000000e+00 : f32
    %946 = vector.broadcast %cst_377 : f32 to vector<8x64xf32>
    %947 = arith.maximumf %945, %946 : vector<8x64xf32>
    %cst_378 = arith.constant dense<0.000000e+00> : vector<8x32xf32>
    %948 = tpu.matmul %947, %870, %cst_378 {dimension_numbers = #tpu.dot_dimension_numbers<[1], [0], [0], [1], [0, 0, 1, 1], [], []>} : vector<8x64xf32>, vector<64x32xf32>, vector<8x32xf32> -> vector<8x32xf32>
    %949 = vector.broadcast %878 : vector<1x32xf32> to vector<8x32xf32>
    %950 = arith.addf %948, %949 : vector<8x32xf32>
    %951 = arith.addf %942, %950 : vector<8x32xf32>
    %cst_379 = arith.constant dense<0.000000e+00> : vector<8xf32>
    %952 = vector.multi_reduction <add>, %951, %cst_379 [1] : vector<8x32xf32> to vector<8xf32>
    %953 = vector.shape_cast %952 : vector<8xf32> to vector<8x1xf32>
    %cst_380 = arith.constant 3.200000e+01 : f32
    %954 = vector.broadcast %cst_380 : f32 to vector<8x1xf32>
    %955 = arith.divf %953, %954 : vector<8x1xf32>
    %956 = vector.broadcast %955 : vector<8x1xf32> to vector<8x32xf32>
    %957 = arith.subf %951, %956 : vector<8x32xf32>
    %958 = arith.mulf %957, %957 : vector<8x32xf32>
    %cst_381 = arith.constant dense<0.000000e+00> : vector<8xf32>
    %959 = vector.multi_reduction <add>, %958, %cst_381 [1] : vector<8x32xf32> to vector<8xf32>
    %960 = vector.shape_cast %959 : vector<8xf32> to vector<8x1xf32>
    %cst_382 = arith.constant 3.200000e+01 : f32
    %961 = vector.broadcast %cst_382 : f32 to vector<8x1xf32>
    %962 = arith.divf %960, %961 : vector<8x1xf32>
    %963 = vector.broadcast %955 : vector<8x1xf32> to vector<8x32xf32>
    %964 = arith.subf %951, %963 : vector<8x32xf32>
    %cst_383 = arith.constant 9.99999974E-6 : f32
    %965 = vector.broadcast %cst_383 : f32 to vector<8x1xf32>
    %966 = arith.addf %962, %965 : vector<8x1xf32>
    %967 = math.rsqrt %966 : vector<8x1xf32>
    %968 = vector.broadcast %967 : vector<8x1xf32> to vector<8x32xf32>
    %969 = arith.mulf %964, %968 : vector<8x32xf32>
    %970 = vector.broadcast %879 : vector<1x32xf32> to vector<8x32xf32>
    %971 = arith.mulf %969, %970 : vector<8x32xf32>
    %972 = vector.broadcast %880 : vector<1x32xf32> to vector<8x32xf32>
    %973 = arith.addf %971, %972 : vector<8x32xf32>
    %cst_384 = arith.constant 5.000000e-01 : f32
    %974 = vector.broadcast %cst_384 : f32 to vector<8x32xf32>
    %975 = arith.mulf %973, %974 : vector<8x32xf32>
    %976 = arith.addf %733, %975 : vector<8x32xf32>
    %cst_385 = arith.constant 0.000000e+00 : f32
    %977 = vector.broadcast %cst_385 : f32 to vector<8x32xf32>
    %c2 = arith.constant 2 : index
    %c0_386 = arith.constant 0 : index
    %c0_387 = arith.constant 0 : index
    %c0_388 = arith.constant 0 : index
    %978 = vector.load %arg0[%c2, %c0_386, %c0_387, %c0_388] : memref<3x2x8x2xf32, #tpu.memory_space<vmem>>, vector<1x1x8x2xf32>
    %979 = vector.shape_cast %978 : vector<1x1x8x2xf32> to vector<8x2xf32>
    %980 = vector.extract_strided_slice %979 {offsets = [0, 0], sizes = [8, 1], strides = [1, 1]} : vector<8x2xf32> to vector<8x1xf32>
    %981 = vector.extract_strided_slice %0 {offsets = [0, 0], sizes = [1, 32], strides = [1, 1]} : vector<2x32xf32> to vector<1x32xf32>
    %982 = vector.broadcast %980 : vector<8x1xf32> to vector<8x32xf32>
    %983 = vector.broadcast %981 : vector<1x32xf32> to vector<8x32xf32>
    %984 = arith.mulf %982, %983 : vector<8x32xf32>
    %985 = vector.extract_strided_slice %979 {offsets = [0, 1], sizes = [8, 1], strides = [1, 1]} : vector<8x2xf32> to vector<8x1xf32>
    %986 = vector.extract_strided_slice %0 {offsets = [1, 0], sizes = [1, 32], strides = [1, 1]} : vector<2x32xf32> to vector<1x32xf32>
    %987 = vector.broadcast %985 : vector<8x1xf32> to vector<8x32xf32>
    %988 = vector.broadcast %986 : vector<1x32xf32> to vector<8x32xf32>
    %989 = arith.mulf %987, %988 : vector<8x32xf32>
    %990 = arith.addf %984, %989 : vector<8x32xf32>
    %991 = vector.broadcast %1 : vector<1x32xf32> to vector<8x32xf32>
    %992 = arith.addf %990, %991 : vector<8x32xf32>
    %993 = vector.extract_strided_slice %2 {offsets = [0, 0], sizes = [1, 32], strides = [1, 1]} : vector<2x32xf32> to vector<1x32xf32>
    %994 = vector.broadcast %993 : vector<1x32xf32> to vector<8x32xf32>
    %995 = arith.addf %992, %994 : vector<8x32xf32>
    %c2_389 = arith.constant 2 : index
    %c0_390 = arith.constant 0 : index
    %c0_391 = arith.constant 0 : index
    %c0_392 = arith.constant 0 : index
    %996 = vector.load %arg4[%c2_389, %c0_390, %c0_391, %c0_392] : memref<3x2x32x96xf32, #tpu.memory_space<vmem>>, vector<1x1x32x96xf32>
    %997 = vector.shape_cast %996 : vector<1x1x32x96xf32> to vector<32x96xf32>
    %c2_393 = arith.constant 2 : index
    %c0_394 = arith.constant 0 : index
    %c0_395 = arith.constant 0 : index
    %c0_396 = arith.constant 0 : index
    %998 = vector.load %arg5[%c2_393, %c0_394, %c0_395, %c0_396] : memref<3x2x32x32xf32, #tpu.memory_space<vmem>>, vector<1x1x32x32xf32>
    %999 = vector.shape_cast %998 : vector<1x1x32x32xf32> to vector<32x32xf32>
    %c2_397 = arith.constant 2 : index
    %c0_398 = arith.constant 0 : index
    %c0_399 = arith.constant 0 : index
    %c0_400 = arith.constant 0 : index
    %1000 = vector.load %arg6[%c2_397, %c0_398, %c0_399, %c0_400] : memref<3x2x32x64xf32, #tpu.memory_space<vmem>>, vector<1x1x32x64xf32>
    %1001 = vector.shape_cast %1000 : vector<1x1x32x64xf32> to vector<32x64xf32>
    %c2_401 = arith.constant 2 : index
    %c0_402 = arith.constant 0 : index
    %c0_403 = arith.constant 0 : index
    %c0_404 = arith.constant 0 : index
    %1002 = vector.load %arg7[%c2_401, %c0_402, %c0_403, %c0_404] : memref<3x2x64x32xf32, #tpu.memory_space<vmem>>, vector<1x1x64x32xf32>
    %1003 = vector.shape_cast %1002 : vector<1x1x64x32xf32> to vector<64x32xf32>
    %c2_405 = arith.constant 2 : index
    %c0_406 = arith.constant 0 : index
    %c0_407 = arith.constant 0 : index
    %c0_408 = arith.constant 0 : index
    %1004 = vector.load %arg8[%c2_405, %c0_406, %c0_407, %c0_408] : memref<3x2x8x128xf32, #tpu.memory_space<vmem>>, vector<1x1x8x128xf32>
    %1005 = vector.shape_cast %1004 : vector<1x1x8x128xf32> to vector<8x128xf32>
    %1006 = vector.extract_strided_slice %1005 {offsets = [0, 0], sizes = [1, 96], strides = [1, 1]} : vector<8x128xf32> to vector<1x96xf32>
    %1007 = vector.extract_strided_slice %1005 {offsets = [1, 0], sizes = [1, 32], strides = [1, 1]} : vector<8x128xf32> to vector<1x32xf32>
    %1008 = vector.extract_strided_slice %1005 {offsets = [2, 0], sizes = [1, 32], strides = [1, 1]} : vector<8x128xf32> to vector<1x32xf32>
    %1009 = vector.extract_strided_slice %1005 {offsets = [3, 0], sizes = [1, 32], strides = [1, 1]} : vector<8x128xf32> to vector<1x32xf32>
    %1010 = vector.extract_strided_slice %1005 {offsets = [4, 0], sizes = [1, 64], strides = [1, 1]} : vector<8x128xf32> to vector<1x64xf32>
    %1011 = vector.extract_strided_slice %1005 {offsets = [5, 0], sizes = [1, 32], strides = [1, 1]} : vector<8x128xf32> to vector<1x32xf32>
    %1012 = vector.extract_strided_slice %1005 {offsets = [6, 0], sizes = [1, 32], strides = [1, 1]} : vector<8x128xf32> to vector<1x32xf32>
    %1013 = vector.extract_strided_slice %1005 {offsets = [7, 0], sizes = [1, 32], strides = [1, 1]} : vector<8x128xf32> to vector<1x32xf32>
    %cst_409 = arith.constant dense<0.000000e+00> : vector<8x96xf32>
    %1014 = tpu.matmul %995, %997, %cst_409 {dimension_numbers = #tpu.dot_dimension_numbers<[1], [0], [0], [1], [0, 0, 1, 1], [], []>} : vector<8x32xf32>, vector<32x96xf32>, vector<8x96xf32> -> vector<8x96xf32>
    %1015 = vector.broadcast %1006 : vector<1x96xf32> to vector<8x96xf32>
    %1016 = arith.addf %1014, %1015 : vector<8x96xf32>
    %1017 = vector.extract_strided_slice %1016 {offsets = [0, 0], sizes = [8, 16], strides = [1, 1]} : vector<8x96xf32> to vector<8x16xf32>
    %cst_410 = arith.constant 2.500000e-01 : f32
    %1018 = vector.broadcast %cst_410 : f32 to vector<8x16xf32>
    %1019 = arith.mulf %1017, %1018 : vector<8x16xf32>
    %1020 = vector.extract_strided_slice %1016 {offsets = [0, 32], sizes = [8, 16], strides = [1, 1]} : vector<8x96xf32> to vector<8x16xf32>
    %1021 = vector.extract_strided_slice %1016 {offsets = [0, 64], sizes = [8, 16], strides = [1, 1]} : vector<8x96xf32> to vector<8x16xf32>
    "tpu.trace_start"() <{level = 10 : i32, message = "qd,kd->qk"}> : () -> ()
    %cst_411 = arith.constant dense<0.000000e+00> : vector<8x8xf32>
    %1022 = tpu.matmul %1019, %1020, %cst_411 {dimension_numbers = #tpu.dot_dimension_numbers<[1], [1], [0], [0], [0, 0, 1, 0], [], []>} : vector<8x16xf32>, vector<8x16xf32>, vector<8x8xf32> -> vector<8x8xf32>
    "tpu.trace_stop"() : () -> ()
    %cst_412 = arith.constant dense<0xFF800000> : vector<8xf32>
    %1023 = vector.multi_reduction <maximumf>, %1022, %cst_412 [1] : vector<8x8xf32> to vector<8xf32>
    %1024 = vector.shape_cast %1023 : vector<8xf32> to vector<8x1xf32>
    %1025 = vector.broadcast %1024 : vector<8x1xf32> to vector<8x8xf32>
    %1026 = arith.subf %1022, %1025 : vector<8x8xf32>
    %1027 = math.exp %1026 : vector<8x8xf32>
    %cst_413 = arith.constant dense<0.000000e+00> : vector<8xf32>
    %1028 = vector.multi_reduction <add>, %1027, %cst_413 [1] : vector<8x8xf32> to vector<8xf32>
    %1029 = vector.shape_cast %1028 : vector<8xf32> to vector<8x1xf32>
    %1030 = vector.broadcast %1029 : vector<8x1xf32> to vector<8x8xf32>
    %1031 = arith.divf %1027, %1030 : vector<8x8xf32>
    %cst_414 = arith.constant dense<0.000000e+00> : vector<8x16xf32>
    %1032 = tpu.matmul %1031, %1021, %cst_414 {dimension_numbers = #tpu.dot_dimension_numbers<[1], [0], [0], [1], [0, 0, 1, 1], [], []>} : vector<8x8xf32>, vector<8x16xf32>, vector<8x16xf32> -> vector<8x16xf32>
    %1033 = vector.extract_strided_slice %1016 {offsets = [0, 16], sizes = [8, 16], strides = [1, 1]} : vector<8x96xf32> to vector<8x16xf32>
    %cst_415 = arith.constant 2.500000e-01 : f32
    %1034 = vector.broadcast %cst_415 : f32 to vector<8x16xf32>
    %1035 = arith.mulf %1033, %1034 : vector<8x16xf32>
    %1036 = vector.extract_strided_slice %1016 {offsets = [0, 48], sizes = [8, 16], strides = [1, 1]} : vector<8x96xf32> to vector<8x16xf32>
    %1037 = vector.extract_strided_slice %1016 {offsets = [0, 80], sizes = [8, 16], strides = [1, 1]} : vector<8x96xf32> to vector<8x16xf32>
    "tpu.trace_start"() <{level = 10 : i32, message = "qd,kd->qk"}> : () -> ()
    %cst_416 = arith.constant dense<0.000000e+00> : vector<8x8xf32>
    %1038 = tpu.matmul %1035, %1036, %cst_416 {dimension_numbers = #tpu.dot_dimension_numbers<[1], [1], [0], [0], [0, 0, 1, 0], [], []>} : vector<8x16xf32>, vector<8x16xf32>, vector<8x8xf32> -> vector<8x8xf32>
    "tpu.trace_stop"() : () -> ()
    %cst_417 = arith.constant dense<0xFF800000> : vector<8xf32>
    %1039 = vector.multi_reduction <maximumf>, %1038, %cst_417 [1] : vector<8x8xf32> to vector<8xf32>
    %1040 = vector.shape_cast %1039 : vector<8xf32> to vector<8x1xf32>
    %1041 = vector.broadcast %1040 : vector<8x1xf32> to vector<8x8xf32>
    %1042 = arith.subf %1038, %1041 : vector<8x8xf32>
    %1043 = math.exp %1042 : vector<8x8xf32>
    %cst_418 = arith.constant dense<0.000000e+00> : vector<8xf32>
    %1044 = vector.multi_reduction <add>, %1043, %cst_418 [1] : vector<8x8xf32> to vector<8xf32>
    %1045 = vector.shape_cast %1044 : vector<8xf32> to vector<8x1xf32>
    %1046 = vector.broadcast %1045 : vector<8x1xf32> to vector<8x8xf32>
    %1047 = arith.divf %1043, %1046 : vector<8x8xf32>
    %cst_419 = arith.constant dense<0.000000e+00> : vector<8x16xf32>
    %1048 = tpu.matmul %1047, %1037, %cst_419 {dimension_numbers = #tpu.dot_dimension_numbers<[1], [0], [0], [1], [0, 0, 1, 1], [], []>} : vector<8x8xf32>, vector<8x16xf32>, vector<8x16xf32> -> vector<8x16xf32>
    %1049 = tpu.concatenate %1032, %1048 in 1 : vector<8x16xf32>, vector<8x16xf32> -> vector<8x32xf32>
    %cst_420 = arith.constant dense<0.000000e+00> : vector<8x32xf32>
    %1050 = tpu.matmul %1049, %999, %cst_420 {dimension_numbers = #tpu.dot_dimension_numbers<[1], [0], [0], [1], [0, 0, 1, 1], [], []>} : vector<8x32xf32>, vector<32x32xf32>, vector<8x32xf32> -> vector<8x32xf32>
    %1051 = vector.broadcast %1007 : vector<1x32xf32> to vector<8x32xf32>
    %1052 = arith.addf %1050, %1051 : vector<8x32xf32>
    %1053 = arith.addf %995, %1052 : vector<8x32xf32>
    %cst_421 = arith.constant dense<0.000000e+00> : vector<8xf32>
    %1054 = vector.multi_reduction <add>, %1053, %cst_421 [1] : vector<8x32xf32> to vector<8xf32>
    %1055 = vector.shape_cast %1054 : vector<8xf32> to vector<8x1xf32>
    %cst_422 = arith.constant 3.200000e+01 : f32
    %1056 = vector.broadcast %cst_422 : f32 to vector<8x1xf32>
    %1057 = arith.divf %1055, %1056 : vector<8x1xf32>
    %1058 = vector.broadcast %1057 : vector<8x1xf32> to vector<8x32xf32>
    %1059 = arith.subf %1053, %1058 : vector<8x32xf32>
    %1060 = arith.mulf %1059, %1059 : vector<8x32xf32>
    %cst_423 = arith.constant dense<0.000000e+00> : vector<8xf32>
    %1061 = vector.multi_reduction <add>, %1060, %cst_423 [1] : vector<8x32xf32> to vector<8xf32>
    %1062 = vector.shape_cast %1061 : vector<8xf32> to vector<8x1xf32>
    %cst_424 = arith.constant 3.200000e+01 : f32
    %1063 = vector.broadcast %cst_424 : f32 to vector<8x1xf32>
    %1064 = arith.divf %1062, %1063 : vector<8x1xf32>
    %1065 = vector.broadcast %1057 : vector<8x1xf32> to vector<8x32xf32>
    %1066 = arith.subf %1053, %1065 : vector<8x32xf32>
    %cst_425 = arith.constant 9.99999974E-6 : f32
    %1067 = vector.broadcast %cst_425 : f32 to vector<8x1xf32>
    %1068 = arith.addf %1064, %1067 : vector<8x1xf32>
    %1069 = math.rsqrt %1068 : vector<8x1xf32>
    %1070 = vector.broadcast %1069 : vector<8x1xf32> to vector<8x32xf32>
    %1071 = arith.mulf %1066, %1070 : vector<8x32xf32>
    %1072 = vector.broadcast %1008 : vector<1x32xf32> to vector<8x32xf32>
    %1073 = arith.mulf %1071, %1072 : vector<8x32xf32>
    %1074 = vector.broadcast %1009 : vector<1x32xf32> to vector<8x32xf32>
    %1075 = arith.addf %1073, %1074 : vector<8x32xf32>
    %cst_426 = arith.constant dense<0.000000e+00> : vector<8x64xf32>
    %1076 = tpu.matmul %1075, %1001, %cst_426 {dimension_numbers = #tpu.dot_dimension_numbers<[1], [0], [0], [1], [0, 0, 1, 1], [], []>} : vector<8x32xf32>, vector<32x64xf32>, vector<8x64xf32> -> vector<8x64xf32>
    %1077 = vector.broadcast %1010 : vector<1x64xf32> to vector<8x64xf32>
    %1078 = arith.addf %1076, %1077 : vector<8x64xf32>
    %cst_427 = arith.constant 0.000000e+00 : f32
    %1079 = vector.broadcast %cst_427 : f32 to vector<8x64xf32>
    %1080 = arith.maximumf %1078, %1079 : vector<8x64xf32>
    %cst_428 = arith.constant dense<0.000000e+00> : vector<8x32xf32>
    %1081 = tpu.matmul %1080, %1003, %cst_428 {dimension_numbers = #tpu.dot_dimension_numbers<[1], [0], [0], [1], [0, 0, 1, 1], [], []>} : vector<8x64xf32>, vector<64x32xf32>, vector<8x32xf32> -> vector<8x32xf32>
    %1082 = vector.broadcast %1011 : vector<1x32xf32> to vector<8x32xf32>
    %1083 = arith.addf %1081, %1082 : vector<8x32xf32>
    %1084 = arith.addf %1075, %1083 : vector<8x32xf32>
    %cst_429 = arith.constant dense<0.000000e+00> : vector<8xf32>
    %1085 = vector.multi_reduction <add>, %1084, %cst_429 [1] : vector<8x32xf32> to vector<8xf32>
    %1086 = vector.shape_cast %1085 : vector<8xf32> to vector<8x1xf32>
    %cst_430 = arith.constant 3.200000e+01 : f32
    %1087 = vector.broadcast %cst_430 : f32 to vector<8x1xf32>
    %1088 = arith.divf %1086, %1087 : vector<8x1xf32>
    %1089 = vector.broadcast %1088 : vector<8x1xf32> to vector<8x32xf32>
    %1090 = arith.subf %1084, %1089 : vector<8x32xf32>
    %1091 = arith.mulf %1090, %1090 : vector<8x32xf32>
    %cst_431 = arith.constant dense<0.000000e+00> : vector<8xf32>
    %1092 = vector.multi_reduction <add>, %1091, %cst_431 [1] : vector<8x32xf32> to vector<8xf32>
    %1093 = vector.shape_cast %1092 : vector<8xf32> to vector<8x1xf32>
    %cst_432 = arith.constant 3.200000e+01 : f32
    %1094 = vector.broadcast %cst_432 : f32 to vector<8x1xf32>
    %1095 = arith.divf %1093, %1094 : vector<8x1xf32>
    %1096 = vector.broadcast %1088 : vector<8x1xf32> to vector<8x32xf32>
    %1097 = arith.subf %1084, %1096 : vector<8x32xf32>
    %cst_433 = arith.constant 9.99999974E-6 : f32
    %1098 = vector.broadcast %cst_433 : f32 to vector<8x1xf32>
    %1099 = arith.addf %1095, %1098 : vector<8x1xf32>
    %1100 = math.rsqrt %1099 : vector<8x1xf32>
    %1101 = vector.broadcast %1100 : vector<8x1xf32> to vector<8x32xf32>
    %1102 = arith.mulf %1097, %1101 : vector<8x32xf32>
    %1103 = vector.broadcast %1012 : vector<1x32xf32> to vector<8x32xf32>
    %1104 = arith.mulf %1102, %1103 : vector<8x32xf32>
    %1105 = vector.broadcast %1013 : vector<1x32xf32> to vector<8x32xf32>
    %1106 = arith.addf %1104, %1105 : vector<8x32xf32>
    %c2_434 = arith.constant 2 : index
    %c1_435 = arith.constant 1 : index
    %c0_436 = arith.constant 0 : index
    %c0_437 = arith.constant 0 : index
    %1107 = vector.load %arg4[%c2_434, %c1_435, %c0_436, %c0_437] : memref<3x2x32x96xf32, #tpu.memory_space<vmem>>, vector<1x1x32x96xf32>
    %1108 = vector.shape_cast %1107 : vector<1x1x32x96xf32> to vector<32x96xf32>
    %c2_438 = arith.constant 2 : index
    %c1_439 = arith.constant 1 : index
    %c0_440 = arith.constant 0 : index
    %c0_441 = arith.constant 0 : index
    %1109 = vector.load %arg5[%c2_438, %c1_439, %c0_440, %c0_441] : memref<3x2x32x32xf32, #tpu.memory_space<vmem>>, vector<1x1x32x32xf32>
    %1110 = vector.shape_cast %1109 : vector<1x1x32x32xf32> to vector<32x32xf32>
    %c2_442 = arith.constant 2 : index
    %c1_443 = arith.constant 1 : index
    %c0_444 = arith.constant 0 : index
    %c0_445 = arith.constant 0 : index
    %1111 = vector.load %arg6[%c2_442, %c1_443, %c0_444, %c0_445] : memref<3x2x32x64xf32, #tpu.memory_space<vmem>>, vector<1x1x32x64xf32>
    %1112 = vector.shape_cast %1111 : vector<1x1x32x64xf32> to vector<32x64xf32>
    %c2_446 = arith.constant 2 : index
    %c1_447 = arith.constant 1 : index
    %c0_448 = arith.constant 0 : index
    %c0_449 = arith.constant 0 : index
    %1113 = vector.load %arg7[%c2_446, %c1_447, %c0_448, %c0_449] : memref<3x2x64x32xf32, #tpu.memory_space<vmem>>, vector<1x1x64x32xf32>
    %1114 = vector.shape_cast %1113 : vector<1x1x64x32xf32> to vector<64x32xf32>
    %c2_450 = arith.constant 2 : index
    %c1_451 = arith.constant 1 : index
    %c0_452 = arith.constant 0 : index
    %c0_453 = arith.constant 0 : index
    %1115 = vector.load %arg8[%c2_450, %c1_451, %c0_452, %c0_453] : memref<3x2x8x128xf32, #tpu.memory_space<vmem>>, vector<1x1x8x128xf32>
    %1116 = vector.shape_cast %1115 : vector<1x1x8x128xf32> to vector<8x128xf32>
    %1117 = vector.extract_strided_slice %1116 {offsets = [0, 0], sizes = [1, 96], strides = [1, 1]} : vector<8x128xf32> to vector<1x96xf32>
    %1118 = vector.extract_strided_slice %1116 {offsets = [1, 0], sizes = [1, 32], strides = [1, 1]} : vector<8x128xf32> to vector<1x32xf32>
    %1119 = vector.extract_strided_slice %1116 {offsets = [2, 0], sizes = [1, 32], strides = [1, 1]} : vector<8x128xf32> to vector<1x32xf32>
    %1120 = vector.extract_strided_slice %1116 {offsets = [3, 0], sizes = [1, 32], strides = [1, 1]} : vector<8x128xf32> to vector<1x32xf32>
    %1121 = vector.extract_strided_slice %1116 {offsets = [4, 0], sizes = [1, 64], strides = [1, 1]} : vector<8x128xf32> to vector<1x64xf32>
    %1122 = vector.extract_strided_slice %1116 {offsets = [5, 0], sizes = [1, 32], strides = [1, 1]} : vector<8x128xf32> to vector<1x32xf32>
    %1123 = vector.extract_strided_slice %1116 {offsets = [6, 0], sizes = [1, 32], strides = [1, 1]} : vector<8x128xf32> to vector<1x32xf32>
    %1124 = vector.extract_strided_slice %1116 {offsets = [7, 0], sizes = [1, 32], strides = [1, 1]} : vector<8x128xf32> to vector<1x32xf32>
    %cst_454 = arith.constant dense<0.000000e+00> : vector<8x96xf32>
    %1125 = tpu.matmul %1106, %1108, %cst_454 {dimension_numbers = #tpu.dot_dimension_numbers<[1], [0], [0], [1], [0, 0, 1, 1], [], []>} : vector<8x32xf32>, vector<32x96xf32>, vector<8x96xf32> -> vector<8x96xf32>
    %1126 = vector.broadcast %1117 : vector<1x96xf32> to vector<8x96xf32>
    %1127 = arith.addf %1125, %1126 : vector<8x96xf32>
    %1128 = vector.extract_strided_slice %1127 {offsets = [0, 0], sizes = [8, 16], strides = [1, 1]} : vector<8x96xf32> to vector<8x16xf32>
    %cst_455 = arith.constant 2.500000e-01 : f32
    %1129 = vector.broadcast %cst_455 : f32 to vector<8x16xf32>
    %1130 = arith.mulf %1128, %1129 : vector<8x16xf32>
    %1131 = vector.extract_strided_slice %1127 {offsets = [0, 32], sizes = [8, 16], strides = [1, 1]} : vector<8x96xf32> to vector<8x16xf32>
    %1132 = vector.extract_strided_slice %1127 {offsets = [0, 64], sizes = [8, 16], strides = [1, 1]} : vector<8x96xf32> to vector<8x16xf32>
    "tpu.trace_start"() <{level = 10 : i32, message = "qd,kd->qk"}> : () -> ()
    %cst_456 = arith.constant dense<0.000000e+00> : vector<8x8xf32>
    %1133 = tpu.matmul %1130, %1131, %cst_456 {dimension_numbers = #tpu.dot_dimension_numbers<[1], [1], [0], [0], [0, 0, 1, 0], [], []>} : vector<8x16xf32>, vector<8x16xf32>, vector<8x8xf32> -> vector<8x8xf32>
    "tpu.trace_stop"() : () -> ()
    %cst_457 = arith.constant dense<0xFF800000> : vector<8xf32>
    %1134 = vector.multi_reduction <maximumf>, %1133, %cst_457 [1] : vector<8x8xf32> to vector<8xf32>
    %1135 = vector.shape_cast %1134 : vector<8xf32> to vector<8x1xf32>
    %1136 = vector.broadcast %1135 : vector<8x1xf32> to vector<8x8xf32>
    %1137 = arith.subf %1133, %1136 : vector<8x8xf32>
    %1138 = math.exp %1137 : vector<8x8xf32>
    %cst_458 = arith.constant dense<0.000000e+00> : vector<8xf32>
    %1139 = vector.multi_reduction <add>, %1138, %cst_458 [1] : vector<8x8xf32> to vector<8xf32>
    %1140 = vector.shape_cast %1139 : vector<8xf32> to vector<8x1xf32>
    %1141 = vector.broadcast %1140 : vector<8x1xf32> to vector<8x8xf32>
    %1142 = arith.divf %1138, %1141 : vector<8x8xf32>
    %cst_459 = arith.constant dense<0.000000e+00> : vector<8x16xf32>
    %1143 = tpu.matmul %1142, %1132, %cst_459 {dimension_numbers = #tpu.dot_dimension_numbers<[1], [0], [0], [1], [0, 0, 1, 1], [], []>} : vector<8x8xf32>, vector<8x16xf32>, vector<8x16xf32> -> vector<8x16xf32>
    %1144 = vector.extract_strided_slice %1127 {offsets = [0, 16], sizes = [8, 16], strides = [1, 1]} : vector<8x96xf32> to vector<8x16xf32>
    %cst_460 = arith.constant 2.500000e-01 : f32
    %1145 = vector.broadcast %cst_460 : f32 to vector<8x16xf32>
    %1146 = arith.mulf %1144, %1145 : vector<8x16xf32>
    %1147 = vector.extract_strided_slice %1127 {offsets = [0, 48], sizes = [8, 16], strides = [1, 1]} : vector<8x96xf32> to vector<8x16xf32>
    %1148 = vector.extract_strided_slice %1127 {offsets = [0, 80], sizes = [8, 16], strides = [1, 1]} : vector<8x96xf32> to vector<8x16xf32>
    "tpu.trace_start"() <{level = 10 : i32, message = "qd,kd->qk"}> : () -> ()
    %cst_461 = arith.constant dense<0.000000e+00> : vector<8x8xf32>
    %1149 = tpu.matmul %1146, %1147, %cst_461 {dimension_numbers = #tpu.dot_dimension_numbers<[1], [1], [0], [0], [0, 0, 1, 0], [], []>} : vector<8x16xf32>, vector<8x16xf32>, vector<8x8xf32> -> vector<8x8xf32>
    "tpu.trace_stop"() : () -> ()
    %cst_462 = arith.constant dense<0xFF800000> : vector<8xf32>
    %1150 = vector.multi_reduction <maximumf>, %1149, %cst_462 [1] : vector<8x8xf32> to vector<8xf32>
    %1151 = vector.shape_cast %1150 : vector<8xf32> to vector<8x1xf32>
    %1152 = vector.broadcast %1151 : vector<8x1xf32> to vector<8x8xf32>
    %1153 = arith.subf %1149, %1152 : vector<8x8xf32>
    %1154 = math.exp %1153 : vector<8x8xf32>
    %cst_463 = arith.constant dense<0.000000e+00> : vector<8xf32>
    %1155 = vector.multi_reduction <add>, %1154, %cst_463 [1] : vector<8x8xf32> to vector<8xf32>
    %1156 = vector.shape_cast %1155 : vector<8xf32> to vector<8x1xf32>
    %1157 = vector.broadcast %1156 : vector<8x1xf32> to vector<8x8xf32>
    %1158 = arith.divf %1154, %1157 : vector<8x8xf32>
    %cst_464 = arith.constant dense<0.000000e+00> : vector<8x16xf32>
    %1159 = tpu.matmul %1158, %1148, %cst_464 {dimension_numbers = #tpu.dot_dimension_numbers<[1], [0], [0], [1], [0, 0, 1, 1], [], []>} : vector<8x8xf32>, vector<8x16xf32>, vector<8x16xf32> -> vector<8x16xf32>
    %1160 = tpu.concatenate %1143, %1159 in 1 : vector<8x16xf32>, vector<8x16xf32> -> vector<8x32xf32>
    %cst_465 = arith.constant dense<0.000000e+00> : vector<8x32xf32>
    %1161 = tpu.matmul %1160, %1110, %cst_465 {dimension_numbers = #tpu.dot_dimension_numbers<[1], [0], [0], [1], [0, 0, 1, 1], [], []>} : vector<8x32xf32>, vector<32x32xf32>, vector<8x32xf32> -> vector<8x32xf32>
    %1162 = vector.broadcast %1118 : vector<1x32xf32> to vector<8x32xf32>
    %1163 = arith.addf %1161, %1162 : vector<8x32xf32>
    %1164 = arith.addf %1106, %1163 : vector<8x32xf32>
    %cst_466 = arith.constant dense<0.000000e+00> : vector<8xf32>
    %1165 = vector.multi_reduction <add>, %1164, %cst_466 [1] : vector<8x32xf32> to vector<8xf32>
    %1166 = vector.shape_cast %1165 : vector<8xf32> to vector<8x1xf32>
    %cst_467 = arith.constant 3.200000e+01 : f32
    %1167 = vector.broadcast %cst_467 : f32 to vector<8x1xf32>
    %1168 = arith.divf %1166, %1167 : vector<8x1xf32>
    %1169 = vector.broadcast %1168 : vector<8x1xf32> to vector<8x32xf32>
    %1170 = arith.subf %1164, %1169 : vector<8x32xf32>
    %1171 = arith.mulf %1170, %1170 : vector<8x32xf32>
    %cst_468 = arith.constant dense<0.000000e+00> : vector<8xf32>
    %1172 = vector.multi_reduction <add>, %1171, %cst_468 [1] : vector<8x32xf32> to vector<8xf32>
    %1173 = vector.shape_cast %1172 : vector<8xf32> to vector<8x1xf32>
    %cst_469 = arith.constant 3.200000e+01 : f32
    %1174 = vector.broadcast %cst_469 : f32 to vector<8x1xf32>
    %1175 = arith.divf %1173, %1174 : vector<8x1xf32>
    %1176 = vector.broadcast %1168 : vector<8x1xf32> to vector<8x32xf32>
    %1177 = arith.subf %1164, %1176 : vector<8x32xf32>
    %cst_470 = arith.constant 9.99999974E-6 : f32
    %1178 = vector.broadcast %cst_470 : f32 to vector<8x1xf32>
    %1179 = arith.addf %1175, %1178 : vector<8x1xf32>
    %1180 = math.rsqrt %1179 : vector<8x1xf32>
    %1181 = vector.broadcast %1180 : vector<8x1xf32> to vector<8x32xf32>
    %1182 = arith.mulf %1177, %1181 : vector<8x32xf32>
    %1183 = vector.broadcast %1119 : vector<1x32xf32> to vector<8x32xf32>
    %1184 = arith.mulf %1182, %1183 : vector<8x32xf32>
    %1185 = vector.broadcast %1120 : vector<1x32xf32> to vector<8x32xf32>
    %1186 = arith.addf %1184, %1185 : vector<8x32xf32>
    %cst_471 = arith.constant dense<0.000000e+00> : vector<8x64xf32>
    %1187 = tpu.matmul %1186, %1112, %cst_471 {dimension_numbers = #tpu.dot_dimension_numbers<[1], [0], [0], [1], [0, 0, 1, 1], [], []>} : vector<8x32xf32>, vector<32x64xf32>, vector<8x64xf32> -> vector<8x64xf32>
    %1188 = vector.broadcast %1121 : vector<1x64xf32> to vector<8x64xf32>
    %1189 = arith.addf %1187, %1188 : vector<8x64xf32>
    %cst_472 = arith.constant 0.000000e+00 : f32
    %1190 = vector.broadcast %cst_472 : f32 to vector<8x64xf32>
    %1191 = arith.maximumf %1189, %1190 : vector<8x64xf32>
    %cst_473 = arith.constant dense<0.000000e+00> : vector<8x32xf32>
    %1192 = tpu.matmul %1191, %1114, %cst_473 {dimension_numbers = #tpu.dot_dimension_numbers<[1], [0], [0], [1], [0, 0, 1, 1], [], []>} : vector<8x64xf32>, vector<64x32xf32>, vector<8x32xf32> -> vector<8x32xf32>
    %1193 = vector.broadcast %1122 : vector<1x32xf32> to vector<8x32xf32>
    %1194 = arith.addf %1192, %1193 : vector<8x32xf32>
    %1195 = arith.addf %1186, %1194 : vector<8x32xf32>
    %cst_474 = arith.constant dense<0.000000e+00> : vector<8xf32>
    %1196 = vector.multi_reduction <add>, %1195, %cst_474 [1] : vector<8x32xf32> to vector<8xf32>
    %1197 = vector.shape_cast %1196 : vector<8xf32> to vector<8x1xf32>
    %cst_475 = arith.constant 3.200000e+01 : f32
    %1198 = vector.broadcast %cst_475 : f32 to vector<8x1xf32>
    %1199 = arith.divf %1197, %1198 : vector<8x1xf32>
    %1200 = vector.broadcast %1199 : vector<8x1xf32> to vector<8x32xf32>
    %1201 = arith.subf %1195, %1200 : vector<8x32xf32>
    %1202 = arith.mulf %1201, %1201 : vector<8x32xf32>
    %cst_476 = arith.constant dense<0.000000e+00> : vector<8xf32>
    %1203 = vector.multi_reduction <add>, %1202, %cst_476 [1] : vector<8x32xf32> to vector<8xf32>
    %1204 = vector.shape_cast %1203 : vector<8xf32> to vector<8x1xf32>
    %cst_477 = arith.constant 3.200000e+01 : f32
    %1205 = vector.broadcast %cst_477 : f32 to vector<8x1xf32>
    %1206 = arith.divf %1204, %1205 : vector<8x1xf32>
    %1207 = vector.broadcast %1199 : vector<8x1xf32> to vector<8x32xf32>
    %1208 = arith.subf %1195, %1207 : vector<8x32xf32>
    %cst_478 = arith.constant 9.99999974E-6 : f32
    %1209 = vector.broadcast %cst_478 : f32 to vector<8x1xf32>
    %1210 = arith.addf %1206, %1209 : vector<8x1xf32>
    %1211 = math.rsqrt %1210 : vector<8x1xf32>
    %1212 = vector.broadcast %1211 : vector<8x1xf32> to vector<8x32xf32>
    %1213 = arith.mulf %1208, %1212 : vector<8x32xf32>
    %1214 = vector.broadcast %1123 : vector<1x32xf32> to vector<8x32xf32>
    %1215 = arith.mulf %1213, %1214 : vector<8x32xf32>
    %1216 = vector.broadcast %1124 : vector<1x32xf32> to vector<8x32xf32>
    %1217 = arith.addf %1215, %1216 : vector<8x32xf32>
    %cst_479 = arith.constant 5.000000e-01 : f32
    %1218 = vector.broadcast %cst_479 : f32 to vector<8x32xf32>
    %1219 = arith.mulf %1217, %1218 : vector<8x32xf32>
    %1220 = arith.addf %977, %1219 : vector<8x32xf32>
    %c2_480 = arith.constant 2 : index
    %c1_481 = arith.constant 1 : index
    %c0_482 = arith.constant 0 : index
    %c0_483 = arith.constant 0 : index
    %1221 = vector.load %arg0[%c2_480, %c1_481, %c0_482, %c0_483] : memref<3x2x8x2xf32, #tpu.memory_space<vmem>>, vector<1x1x8x2xf32>
    %1222 = vector.shape_cast %1221 : vector<1x1x8x2xf32> to vector<8x2xf32>
    %1223 = vector.extract_strided_slice %1222 {offsets = [0, 0], sizes = [8, 1], strides = [1, 1]} : vector<8x2xf32> to vector<8x1xf32>
    %1224 = vector.extract_strided_slice %0 {offsets = [0, 0], sizes = [1, 32], strides = [1, 1]} : vector<2x32xf32> to vector<1x32xf32>
    %1225 = vector.broadcast %1223 : vector<8x1xf32> to vector<8x32xf32>
    %1226 = vector.broadcast %1224 : vector<1x32xf32> to vector<8x32xf32>
    %1227 = arith.mulf %1225, %1226 : vector<8x32xf32>
    %1228 = vector.extract_strided_slice %1222 {offsets = [0, 1], sizes = [8, 1], strides = [1, 1]} : vector<8x2xf32> to vector<8x1xf32>
    %1229 = vector.extract_strided_slice %0 {offsets = [1, 0], sizes = [1, 32], strides = [1, 1]} : vector<2x32xf32> to vector<1x32xf32>
    %1230 = vector.broadcast %1228 : vector<8x1xf32> to vector<8x32xf32>
    %1231 = vector.broadcast %1229 : vector<1x32xf32> to vector<8x32xf32>
    %1232 = arith.mulf %1230, %1231 : vector<8x32xf32>
    %1233 = arith.addf %1227, %1232 : vector<8x32xf32>
    %1234 = vector.broadcast %1 : vector<1x32xf32> to vector<8x32xf32>
    %1235 = arith.addf %1233, %1234 : vector<8x32xf32>
    %1236 = vector.extract_strided_slice %2 {offsets = [1, 0], sizes = [1, 32], strides = [1, 1]} : vector<2x32xf32> to vector<1x32xf32>
    %1237 = vector.broadcast %1236 : vector<1x32xf32> to vector<8x32xf32>
    %1238 = arith.addf %1235, %1237 : vector<8x32xf32>
    %c2_484 = arith.constant 2 : index
    %c0_485 = arith.constant 0 : index
    %c0_486 = arith.constant 0 : index
    %c0_487 = arith.constant 0 : index
    %1239 = vector.load %arg4[%c2_484, %c0_485, %c0_486, %c0_487] : memref<3x2x32x96xf32, #tpu.memory_space<vmem>>, vector<1x1x32x96xf32>
    %1240 = vector.shape_cast %1239 : vector<1x1x32x96xf32> to vector<32x96xf32>
    %c2_488 = arith.constant 2 : index
    %c0_489 = arith.constant 0 : index
    %c0_490 = arith.constant 0 : index
    %c0_491 = arith.constant 0 : index
    %1241 = vector.load %arg5[%c2_488, %c0_489, %c0_490, %c0_491] : memref<3x2x32x32xf32, #tpu.memory_space<vmem>>, vector<1x1x32x32xf32>
    %1242 = vector.shape_cast %1241 : vector<1x1x32x32xf32> to vector<32x32xf32>
    %c2_492 = arith.constant 2 : index
    %c0_493 = arith.constant 0 : index
    %c0_494 = arith.constant 0 : index
    %c0_495 = arith.constant 0 : index
    %1243 = vector.load %arg6[%c2_492, %c0_493, %c0_494, %c0_495] : memref<3x2x32x64xf32, #tpu.memory_space<vmem>>, vector<1x1x32x64xf32>
    %1244 = vector.shape_cast %1243 : vector<1x1x32x64xf32> to vector<32x64xf32>
    %c2_496 = arith.constant 2 : index
    %c0_497 = arith.constant 0 : index
    %c0_498 = arith.constant 0 : index
    %c0_499 = arith.constant 0 : index
    %1245 = vector.load %arg7[%c2_496, %c0_497, %c0_498, %c0_499] : memref<3x2x64x32xf32, #tpu.memory_space<vmem>>, vector<1x1x64x32xf32>
    %1246 = vector.shape_cast %1245 : vector<1x1x64x32xf32> to vector<64x32xf32>
    %c2_500 = arith.constant 2 : index
    %c0_501 = arith.constant 0 : index
    %c0_502 = arith.constant 0 : index
    %c0_503 = arith.constant 0 : index
    %1247 = vector.load %arg8[%c2_500, %c0_501, %c0_502, %c0_503] : memref<3x2x8x128xf32, #tpu.memory_space<vmem>>, vector<1x1x8x128xf32>
    %1248 = vector.shape_cast %1247 : vector<1x1x8x128xf32> to vector<8x128xf32>
    %1249 = vector.extract_strided_slice %1248 {offsets = [0, 0], sizes = [1, 96], strides = [1, 1]} : vector<8x128xf32> to vector<1x96xf32>
    %1250 = vector.extract_strided_slice %1248 {offsets = [1, 0], sizes = [1, 32], strides = [1, 1]} : vector<8x128xf32> to vector<1x32xf32>
    %1251 = vector.extract_strided_slice %1248 {offsets = [2, 0], sizes = [1, 32], strides = [1, 1]} : vector<8x128xf32> to vector<1x32xf32>
    %1252 = vector.extract_strided_slice %1248 {offsets = [3, 0], sizes = [1, 32], strides = [1, 1]} : vector<8x128xf32> to vector<1x32xf32>
    %1253 = vector.extract_strided_slice %1248 {offsets = [4, 0], sizes = [1, 64], strides = [1, 1]} : vector<8x128xf32> to vector<1x64xf32>
    %1254 = vector.extract_strided_slice %1248 {offsets = [5, 0], sizes = [1, 32], strides = [1, 1]} : vector<8x128xf32> to vector<1x32xf32>
    %1255 = vector.extract_strided_slice %1248 {offsets = [6, 0], sizes = [1, 32], strides = [1, 1]} : vector<8x128xf32> to vector<1x32xf32>
    %1256 = vector.extract_strided_slice %1248 {offsets = [7, 0], sizes = [1, 32], strides = [1, 1]} : vector<8x128xf32> to vector<1x32xf32>
    %cst_504 = arith.constant dense<0.000000e+00> : vector<8x96xf32>
    %1257 = tpu.matmul %1238, %1240, %cst_504 {dimension_numbers = #tpu.dot_dimension_numbers<[1], [0], [0], [1], [0, 0, 1, 1], [], []>} : vector<8x32xf32>, vector<32x96xf32>, vector<8x96xf32> -> vector<8x96xf32>
    %1258 = vector.broadcast %1249 : vector<1x96xf32> to vector<8x96xf32>
    %1259 = arith.addf %1257, %1258 : vector<8x96xf32>
    %1260 = vector.extract_strided_slice %1259 {offsets = [0, 0], sizes = [8, 16], strides = [1, 1]} : vector<8x96xf32> to vector<8x16xf32>
    %cst_505 = arith.constant 2.500000e-01 : f32
    %1261 = vector.broadcast %cst_505 : f32 to vector<8x16xf32>
    %1262 = arith.mulf %1260, %1261 : vector<8x16xf32>
    %1263 = vector.extract_strided_slice %1259 {offsets = [0, 32], sizes = [8, 16], strides = [1, 1]} : vector<8x96xf32> to vector<8x16xf32>
    %1264 = vector.extract_strided_slice %1259 {offsets = [0, 64], sizes = [8, 16], strides = [1, 1]} : vector<8x96xf32> to vector<8x16xf32>
    "tpu.trace_start"() <{level = 10 : i32, message = "qd,kd->qk"}> : () -> ()
    %cst_506 = arith.constant dense<0.000000e+00> : vector<8x8xf32>
    %1265 = tpu.matmul %1262, %1263, %cst_506 {dimension_numbers = #tpu.dot_dimension_numbers<[1], [1], [0], [0], [0, 0, 1, 0], [], []>} : vector<8x16xf32>, vector<8x16xf32>, vector<8x8xf32> -> vector<8x8xf32>
    "tpu.trace_stop"() : () -> ()
    %cst_507 = arith.constant dense<0xFF800000> : vector<8xf32>
    %1266 = vector.multi_reduction <maximumf>, %1265, %cst_507 [1] : vector<8x8xf32> to vector<8xf32>
    %1267 = vector.shape_cast %1266 : vector<8xf32> to vector<8x1xf32>
    %1268 = vector.broadcast %1267 : vector<8x1xf32> to vector<8x8xf32>
    %1269 = arith.subf %1265, %1268 : vector<8x8xf32>
    %1270 = math.exp %1269 : vector<8x8xf32>
    %cst_508 = arith.constant dense<0.000000e+00> : vector<8xf32>
    %1271 = vector.multi_reduction <add>, %1270, %cst_508 [1] : vector<8x8xf32> to vector<8xf32>
    %1272 = vector.shape_cast %1271 : vector<8xf32> to vector<8x1xf32>
    %1273 = vector.broadcast %1272 : vector<8x1xf32> to vector<8x8xf32>
    %1274 = arith.divf %1270, %1273 : vector<8x8xf32>
    %cst_509 = arith.constant dense<0.000000e+00> : vector<8x16xf32>
    %1275 = tpu.matmul %1274, %1264, %cst_509 {dimension_numbers = #tpu.dot_dimension_numbers<[1], [0], [0], [1], [0, 0, 1, 1], [], []>} : vector<8x8xf32>, vector<8x16xf32>, vector<8x16xf32> -> vector<8x16xf32>
    %1276 = vector.extract_strided_slice %1259 {offsets = [0, 16], sizes = [8, 16], strides = [1, 1]} : vector<8x96xf32> to vector<8x16xf32>
    %cst_510 = arith.constant 2.500000e-01 : f32
    %1277 = vector.broadcast %cst_510 : f32 to vector<8x16xf32>
    %1278 = arith.mulf %1276, %1277 : vector<8x16xf32>
    %1279 = vector.extract_strided_slice %1259 {offsets = [0, 48], sizes = [8, 16], strides = [1, 1]} : vector<8x96xf32> to vector<8x16xf32>
    %1280 = vector.extract_strided_slice %1259 {offsets = [0, 80], sizes = [8, 16], strides = [1, 1]} : vector<8x96xf32> to vector<8x16xf32>
    "tpu.trace_start"() <{level = 10 : i32, message = "qd,kd->qk"}> : () -> ()
    %cst_511 = arith.constant dense<0.000000e+00> : vector<8x8xf32>
    %1281 = tpu.matmul %1278, %1279, %cst_511 {dimension_numbers = #tpu.dot_dimension_numbers<[1], [1], [0], [0], [0, 0, 1, 0], [], []>} : vector<8x16xf32>, vector<8x16xf32>, vector<8x8xf32> -> vector<8x8xf32>
    "tpu.trace_stop"() : () -> ()
    %cst_512 = arith.constant dense<0xFF800000> : vector<8xf32>
    %1282 = vector.multi_reduction <maximumf>, %1281, %cst_512 [1] : vector<8x8xf32> to vector<8xf32>
    %1283 = vector.shape_cast %1282 : vector<8xf32> to vector<8x1xf32>
    %1284 = vector.broadcast %1283 : vector<8x1xf32> to vector<8x8xf32>
    %1285 = arith.subf %1281, %1284 : vector<8x8xf32>
    %1286 = math.exp %1285 : vector<8x8xf32>
    %cst_513 = arith.constant dense<0.000000e+00> : vector<8xf32>
    %1287 = vector.multi_reduction <add>, %1286, %cst_513 [1] : vector<8x8xf32> to vector<8xf32>
    %1288 = vector.shape_cast %1287 : vector<8xf32> to vector<8x1xf32>
    %1289 = vector.broadcast %1288 : vector<8x1xf32> to vector<8x8xf32>
    %1290 = arith.divf %1286, %1289 : vector<8x8xf32>
    %cst_514 = arith.constant dense<0.000000e+00> : vector<8x16xf32>
    %1291 = tpu.matmul %1290, %1280, %cst_514 {dimension_numbers = #tpu.dot_dimension_numbers<[1], [0], [0], [1], [0, 0, 1, 1], [], []>} : vector<8x8xf32>, vector<8x16xf32>, vector<8x16xf32> -> vector<8x16xf32>
    %1292 = tpu.concatenate %1275, %1291 in 1 : vector<8x16xf32>, vector<8x16xf32> -> vector<8x32xf32>
    %cst_515 = arith.constant dense<0.000000e+00> : vector<8x32xf32>
    %1293 = tpu.matmul %1292, %1242, %cst_515 {dimension_numbers = #tpu.dot_dimension_numbers<[1], [0], [0], [1], [0, 0, 1, 1], [], []>} : vector<8x32xf32>, vector<32x32xf32>, vector<8x32xf32> -> vector<8x32xf32>
    %1294 = vector.broadcast %1250 : vector<1x32xf32> to vector<8x32xf32>
    %1295 = arith.addf %1293, %1294 : vector<8x32xf32>
    %1296 = arith.addf %1238, %1295 : vector<8x32xf32>
    %cst_516 = arith.constant dense<0.000000e+00> : vector<8xf32>
    %1297 = vector.multi_reduction <add>, %1296, %cst_516 [1] : vector<8x32xf32> to vector<8xf32>
    %1298 = vector.shape_cast %1297 : vector<8xf32> to vector<8x1xf32>
    %cst_517 = arith.constant 3.200000e+01 : f32
    %1299 = vector.broadcast %cst_517 : f32 to vector<8x1xf32>
    %1300 = arith.divf %1298, %1299 : vector<8x1xf32>
    %1301 = vector.broadcast %1300 : vector<8x1xf32> to vector<8x32xf32>
    %1302 = arith.subf %1296, %1301 : vector<8x32xf32>
    %1303 = arith.mulf %1302, %1302 : vector<8x32xf32>
    %cst_518 = arith.constant dense<0.000000e+00> : vector<8xf32>
    %1304 = vector.multi_reduction <add>, %1303, %cst_518 [1] : vector<8x32xf32> to vector<8xf32>
    %1305 = vector.shape_cast %1304 : vector<8xf32> to vector<8x1xf32>
    %cst_519 = arith.constant 3.200000e+01 : f32
    %1306 = vector.broadcast %cst_519 : f32 to vector<8x1xf32>
    %1307 = arith.divf %1305, %1306 : vector<8x1xf32>
    %1308 = vector.broadcast %1300 : vector<8x1xf32> to vector<8x32xf32>
    %1309 = arith.subf %1296, %1308 : vector<8x32xf32>
    %cst_520 = arith.constant 9.99999974E-6 : f32
    %1310 = vector.broadcast %cst_520 : f32 to vector<8x1xf32>
    %1311 = arith.addf %1307, %1310 : vector<8x1xf32>
    %1312 = math.rsqrt %1311 : vector<8x1xf32>
    %1313 = vector.broadcast %1312 : vector<8x1xf32> to vector<8x32xf32>
    %1314 = arith.mulf %1309, %1313 : vector<8x32xf32>
    %1315 = vector.broadcast %1251 : vector<1x32xf32> to vector<8x32xf32>
    %1316 = arith.mulf %1314, %1315 : vector<8x32xf32>
    %1317 = vector.broadcast %1252 : vector<1x32xf32> to vector<8x32xf32>
    %1318 = arith.addf %1316, %1317 : vector<8x32xf32>
    %cst_521 = arith.constant dense<0.000000e+00> : vector<8x64xf32>
    %1319 = tpu.matmul %1318, %1244, %cst_521 {dimension_numbers = #tpu.dot_dimension_numbers<[1], [0], [0], [1], [0, 0, 1, 1], [], []>} : vector<8x32xf32>, vector<32x64xf32>, vector<8x64xf32> -> vector<8x64xf32>
    %1320 = vector.broadcast %1253 : vector<1x64xf32> to vector<8x64xf32>
    %1321 = arith.addf %1319, %1320 : vector<8x64xf32>
    %cst_522 = arith.constant 0.000000e+00 : f32
    %1322 = vector.broadcast %cst_522 : f32 to vector<8x64xf32>
    %1323 = arith.maximumf %1321, %1322 : vector<8x64xf32>
    %cst_523 = arith.constant dense<0.000000e+00> : vector<8x32xf32>
    %1324 = tpu.matmul %1323, %1246, %cst_523 {dimension_numbers = #tpu.dot_dimension_numbers<[1], [0], [0], [1], [0, 0, 1, 1], [], []>} : vector<8x64xf32>, vector<64x32xf32>, vector<8x32xf32> -> vector<8x32xf32>
    %1325 = vector.broadcast %1254 : vector<1x32xf32> to vector<8x32xf32>
    %1326 = arith.addf %1324, %1325 : vector<8x32xf32>
    %1327 = arith.addf %1318, %1326 : vector<8x32xf32>
    %cst_524 = arith.constant dense<0.000000e+00> : vector<8xf32>
    %1328 = vector.multi_reduction <add>, %1327, %cst_524 [1] : vector<8x32xf32> to vector<8xf32>
    %1329 = vector.shape_cast %1328 : vector<8xf32> to vector<8x1xf32>
    %cst_525 = arith.constant 3.200000e+01 : f32
    %1330 = vector.broadcast %cst_525 : f32 to vector<8x1xf32>
    %1331 = arith.divf %1329, %1330 : vector<8x1xf32>
    %1332 = vector.broadcast %1331 : vector<8x1xf32> to vector<8x32xf32>
    %1333 = arith.subf %1327, %1332 : vector<8x32xf32>
    %1334 = arith.mulf %1333, %1333 : vector<8x32xf32>
    %cst_526 = arith.constant dense<0.000000e+00> : vector<8xf32>
    %1335 = vector.multi_reduction <add>, %1334, %cst_526 [1] : vector<8x32xf32> to vector<8xf32>
    %1336 = vector.shape_cast %1335 : vector<8xf32> to vector<8x1xf32>
    %cst_527 = arith.constant 3.200000e+01 : f32
    %1337 = vector.broadcast %cst_527 : f32 to vector<8x1xf32>
    %1338 = arith.divf %1336, %1337 : vector<8x1xf32>
    %1339 = vector.broadcast %1331 : vector<8x1xf32> to vector<8x32xf32>
    %1340 = arith.subf %1327, %1339 : vector<8x32xf32>
    %cst_528 = arith.constant 9.99999974E-6 : f32
    %1341 = vector.broadcast %cst_528 : f32 to vector<8x1xf32>
    %1342 = arith.addf %1338, %1341 : vector<8x1xf32>
    %1343 = math.rsqrt %1342 : vector<8x1xf32>
    %1344 = vector.broadcast %1343 : vector<8x1xf32> to vector<8x32xf32>
    %1345 = arith.mulf %1340, %1344 : vector<8x32xf32>
    %1346 = vector.broadcast %1255 : vector<1x32xf32> to vector<8x32xf32>
    %1347 = arith.mulf %1345, %1346 : vector<8x32xf32>
    %1348 = vector.broadcast %1256 : vector<1x32xf32> to vector<8x32xf32>
    %1349 = arith.addf %1347, %1348 : vector<8x32xf32>
    %c2_529 = arith.constant 2 : index
    %c1_530 = arith.constant 1 : index
    %c0_531 = arith.constant 0 : index
    %c0_532 = arith.constant 0 : index
    %1350 = vector.load %arg4[%c2_529, %c1_530, %c0_531, %c0_532] : memref<3x2x32x96xf32, #tpu.memory_space<vmem>>, vector<1x1x32x96xf32>
    %1351 = vector.shape_cast %1350 : vector<1x1x32x96xf32> to vector<32x96xf32>
    %c2_533 = arith.constant 2 : index
    %c1_534 = arith.constant 1 : index
    %c0_535 = arith.constant 0 : index
    %c0_536 = arith.constant 0 : index
    %1352 = vector.load %arg5[%c2_533, %c1_534, %c0_535, %c0_536] : memref<3x2x32x32xf32, #tpu.memory_space<vmem>>, vector<1x1x32x32xf32>
    %1353 = vector.shape_cast %1352 : vector<1x1x32x32xf32> to vector<32x32xf32>
    %c2_537 = arith.constant 2 : index
    %c1_538 = arith.constant 1 : index
    %c0_539 = arith.constant 0 : index
    %c0_540 = arith.constant 0 : index
    %1354 = vector.load %arg6[%c2_537, %c1_538, %c0_539, %c0_540] : memref<3x2x32x64xf32, #tpu.memory_space<vmem>>, vector<1x1x32x64xf32>
    %1355 = vector.shape_cast %1354 : vector<1x1x32x64xf32> to vector<32x64xf32>
    %c2_541 = arith.constant 2 : index
    %c1_542 = arith.constant 1 : index
    %c0_543 = arith.constant 0 : index
    %c0_544 = arith.constant 0 : index
    %1356 = vector.load %arg7[%c2_541, %c1_542, %c0_543, %c0_544] : memref<3x2x64x32xf32, #tpu.memory_space<vmem>>, vector<1x1x64x32xf32>
    %1357 = vector.shape_cast %1356 : vector<1x1x64x32xf32> to vector<64x32xf32>
    %c2_545 = arith.constant 2 : index
    %c1_546 = arith.constant 1 : index
    %c0_547 = arith.constant 0 : index
    %c0_548 = arith.constant 0 : index
    %1358 = vector.load %arg8[%c2_545, %c1_546, %c0_547, %c0_548] : memref<3x2x8x128xf32, #tpu.memory_space<vmem>>, vector<1x1x8x128xf32>
    %1359 = vector.shape_cast %1358 : vector<1x1x8x128xf32> to vector<8x128xf32>
    %1360 = vector.extract_strided_slice %1359 {offsets = [0, 0], sizes = [1, 96], strides = [1, 1]} : vector<8x128xf32> to vector<1x96xf32>
    %1361 = vector.extract_strided_slice %1359 {offsets = [1, 0], sizes = [1, 32], strides = [1, 1]} : vector<8x128xf32> to vector<1x32xf32>
    %1362 = vector.extract_strided_slice %1359 {offsets = [2, 0], sizes = [1, 32], strides = [1, 1]} : vector<8x128xf32> to vector<1x32xf32>
    %1363 = vector.extract_strided_slice %1359 {offsets = [3, 0], sizes = [1, 32], strides = [1, 1]} : vector<8x128xf32> to vector<1x32xf32>
    %1364 = vector.extract_strided_slice %1359 {offsets = [4, 0], sizes = [1, 64], strides = [1, 1]} : vector<8x128xf32> to vector<1x64xf32>
    %1365 = vector.extract_strided_slice %1359 {offsets = [5, 0], sizes = [1, 32], strides = [1, 1]} : vector<8x128xf32> to vector<1x32xf32>
    %1366 = vector.extract_strided_slice %1359 {offsets = [6, 0], sizes = [1, 32], strides = [1, 1]} : vector<8x128xf32> to vector<1x32xf32>
    %1367 = vector.extract_strided_slice %1359 {offsets = [7, 0], sizes = [1, 32], strides = [1, 1]} : vector<8x128xf32> to vector<1x32xf32>
    %cst_549 = arith.constant dense<0.000000e+00> : vector<8x96xf32>
    %1368 = tpu.matmul %1349, %1351, %cst_549 {dimension_numbers = #tpu.dot_dimension_numbers<[1], [0], [0], [1], [0, 0, 1, 1], [], []>} : vector<8x32xf32>, vector<32x96xf32>, vector<8x96xf32> -> vector<8x96xf32>
    %1369 = vector.broadcast %1360 : vector<1x96xf32> to vector<8x96xf32>
    %1370 = arith.addf %1368, %1369 : vector<8x96xf32>
    %1371 = vector.extract_strided_slice %1370 {offsets = [0, 0], sizes = [8, 16], strides = [1, 1]} : vector<8x96xf32> to vector<8x16xf32>
    %cst_550 = arith.constant 2.500000e-01 : f32
    %1372 = vector.broadcast %cst_550 : f32 to vector<8x16xf32>
    %1373 = arith.mulf %1371, %1372 : vector<8x16xf32>
    %1374 = vector.extract_strided_slice %1370 {offsets = [0, 32], sizes = [8, 16], strides = [1, 1]} : vector<8x96xf32> to vector<8x16xf32>
    %1375 = vector.extract_strided_slice %1370 {offsets = [0, 64], sizes = [8, 16], strides = [1, 1]} : vector<8x96xf32> to vector<8x16xf32>
    "tpu.trace_start"() <{level = 10 : i32, message = "qd,kd->qk"}> : () -> ()
    %cst_551 = arith.constant dense<0.000000e+00> : vector<8x8xf32>
    %1376 = tpu.matmul %1373, %1374, %cst_551 {dimension_numbers = #tpu.dot_dimension_numbers<[1], [1], [0], [0], [0, 0, 1, 0], [], []>} : vector<8x16xf32>, vector<8x16xf32>, vector<8x8xf32> -> vector<8x8xf32>
    "tpu.trace_stop"() : () -> ()
    %cst_552 = arith.constant dense<0xFF800000> : vector<8xf32>
    %1377 = vector.multi_reduction <maximumf>, %1376, %cst_552 [1] : vector<8x8xf32> to vector<8xf32>
    %1378 = vector.shape_cast %1377 : vector<8xf32> to vector<8x1xf32>
    %1379 = vector.broadcast %1378 : vector<8x1xf32> to vector<8x8xf32>
    %1380 = arith.subf %1376, %1379 : vector<8x8xf32>
    %1381 = math.exp %1380 : vector<8x8xf32>
    %cst_553 = arith.constant dense<0.000000e+00> : vector<8xf32>
    %1382 = vector.multi_reduction <add>, %1381, %cst_553 [1] : vector<8x8xf32> to vector<8xf32>
    %1383 = vector.shape_cast %1382 : vector<8xf32> to vector<8x1xf32>
    %1384 = vector.broadcast %1383 : vector<8x1xf32> to vector<8x8xf32>
    %1385 = arith.divf %1381, %1384 : vector<8x8xf32>
    %cst_554 = arith.constant dense<0.000000e+00> : vector<8x16xf32>
    %1386 = tpu.matmul %1385, %1375, %cst_554 {dimension_numbers = #tpu.dot_dimension_numbers<[1], [0], [0], [1], [0, 0, 1, 1], [], []>} : vector<8x8xf32>, vector<8x16xf32>, vector<8x16xf32> -> vector<8x16xf32>
    %1387 = vector.extract_strided_slice %1370 {offsets = [0, 16], sizes = [8, 16], strides = [1, 1]} : vector<8x96xf32> to vector<8x16xf32>
    %cst_555 = arith.constant 2.500000e-01 : f32
    %1388 = vector.broadcast %cst_555 : f32 to vector<8x16xf32>
    %1389 = arith.mulf %1387, %1388 : vector<8x16xf32>
    %1390 = vector.extract_strided_slice %1370 {offsets = [0, 48], sizes = [8, 16], strides = [1, 1]} : vector<8x96xf32> to vector<8x16xf32>
    %1391 = vector.extract_strided_slice %1370 {offsets = [0, 80], sizes = [8, 16], strides = [1, 1]} : vector<8x96xf32> to vector<8x16xf32>
    "tpu.trace_start"() <{level = 10 : i32, message = "qd,kd->qk"}> : () -> ()
    %cst_556 = arith.constant dense<0.000000e+00> : vector<8x8xf32>
    %1392 = tpu.matmul %1389, %1390, %cst_556 {dimension_numbers = #tpu.dot_dimension_numbers<[1], [1], [0], [0], [0, 0, 1, 0], [], []>} : vector<8x16xf32>, vector<8x16xf32>, vector<8x8xf32> -> vector<8x8xf32>
    "tpu.trace_stop"() : () -> ()
    %cst_557 = arith.constant dense<0xFF800000> : vector<8xf32>
    %1393 = vector.multi_reduction <maximumf>, %1392, %cst_557 [1] : vector<8x8xf32> to vector<8xf32>
    %1394 = vector.shape_cast %1393 : vector<8xf32> to vector<8x1xf32>
    %1395 = vector.broadcast %1394 : vector<8x1xf32> to vector<8x8xf32>
    %1396 = arith.subf %1392, %1395 : vector<8x8xf32>
    %1397 = math.exp %1396 : vector<8x8xf32>
    %cst_558 = arith.constant dense<0.000000e+00> : vector<8xf32>
    %1398 = vector.multi_reduction <add>, %1397, %cst_558 [1] : vector<8x8xf32> to vector<8xf32>
    %1399 = vector.shape_cast %1398 : vector<8xf32> to vector<8x1xf32>
    %1400 = vector.broadcast %1399 : vector<8x1xf32> to vector<8x8xf32>
    %1401 = arith.divf %1397, %1400 : vector<8x8xf32>
    %cst_559 = arith.constant dense<0.000000e+00> : vector<8x16xf32>
    %1402 = tpu.matmul %1401, %1391, %cst_559 {dimension_numbers = #tpu.dot_dimension_numbers<[1], [0], [0], [1], [0, 0, 1, 1], [], []>} : vector<8x8xf32>, vector<8x16xf32>, vector<8x16xf32> -> vector<8x16xf32>
    %1403 = tpu.concatenate %1386, %1402 in 1 : vector<8x16xf32>, vector<8x16xf32> -> vector<8x32xf32>
    %cst_560 = arith.constant dense<0.000000e+00> : vector<8x32xf32>
    %1404 = tpu.matmul %1403, %1353, %cst_560 {dimension_numbers = #tpu.dot_dimension_numbers<[1], [0], [0], [1], [0, 0, 1, 1], [], []>} : vector<8x32xf32>, vector<32x32xf32>, vector<8x32xf32> -> vector<8x32xf32>
    %1405 = vector.broadcast %1361 : vector<1x32xf32> to vector<8x32xf32>
    %1406 = arith.addf %1404, %1405 : vector<8x32xf32>
    %1407 = arith.addf %1349, %1406 : vector<8x32xf32>
    %cst_561 = arith.constant dense<0.000000e+00> : vector<8xf32>
    %1408 = vector.multi_reduction <add>, %1407, %cst_561 [1] : vector<8x32xf32> to vector<8xf32>
    %1409 = vector.shape_cast %1408 : vector<8xf32> to vector<8x1xf32>
    %cst_562 = arith.constant 3.200000e+01 : f32
    %1410 = vector.broadcast %cst_562 : f32 to vector<8x1xf32>
    %1411 = arith.divf %1409, %1410 : vector<8x1xf32>
    %1412 = vector.broadcast %1411 : vector<8x1xf32> to vector<8x32xf32>
    %1413 = arith.subf %1407, %1412 : vector<8x32xf32>
    %1414 = arith.mulf %1413, %1413 : vector<8x32xf32>
    %cst_563 = arith.constant dense<0.000000e+00> : vector<8xf32>
    %1415 = vector.multi_reduction <add>, %1414, %cst_563 [1] : vector<8x32xf32> to vector<8xf32>
    %1416 = vector.shape_cast %1415 : vector<8xf32> to vector<8x1xf32>
    %cst_564 = arith.constant 3.200000e+01 : f32
    %1417 = vector.broadcast %cst_564 : f32 to vector<8x1xf32>
    %1418 = arith.divf %1416, %1417 : vector<8x1xf32>
    %1419 = vector.broadcast %1411 : vector<8x1xf32> to vector<8x32xf32>
    %1420 = arith.subf %1407, %1419 : vector<8x32xf32>
    %cst_565 = arith.constant 9.99999974E-6 : f32
    %1421 = vector.broadcast %cst_565 : f32 to vector<8x1xf32>
    %1422 = arith.addf %1418, %1421 : vector<8x1xf32>
    %1423 = math.rsqrt %1422 : vector<8x1xf32>
    %1424 = vector.broadcast %1423 : vector<8x1xf32> to vector<8x32xf32>
    %1425 = arith.mulf %1420, %1424 : vector<8x32xf32>
    %1426 = vector.broadcast %1362 : vector<1x32xf32> to vector<8x32xf32>
    %1427 = arith.mulf %1425, %1426 : vector<8x32xf32>
    %1428 = vector.broadcast %1363 : vector<1x32xf32> to vector<8x32xf32>
    %1429 = arith.addf %1427, %1428 : vector<8x32xf32>
    %cst_566 = arith.constant dense<0.000000e+00> : vector<8x64xf32>
    %1430 = tpu.matmul %1429, %1355, %cst_566 {dimension_numbers = #tpu.dot_dimension_numbers<[1], [0], [0], [1], [0, 0, 1, 1], [], []>} : vector<8x32xf32>, vector<32x64xf32>, vector<8x64xf32> -> vector<8x64xf32>
    %1431 = vector.broadcast %1364 : vector<1x64xf32> to vector<8x64xf32>
    %1432 = arith.addf %1430, %1431 : vector<8x64xf32>
    %cst_567 = arith.constant 0.000000e+00 : f32
    %1433 = vector.broadcast %cst_567 : f32 to vector<8x64xf32>
    %1434 = arith.maximumf %1432, %1433 : vector<8x64xf32>
    %cst_568 = arith.constant dense<0.000000e+00> : vector<8x32xf32>
    %1435 = tpu.matmul %1434, %1357, %cst_568 {dimension_numbers = #tpu.dot_dimension_numbers<[1], [0], [0], [1], [0, 0, 1, 1], [], []>} : vector<8x64xf32>, vector<64x32xf32>, vector<8x32xf32> -> vector<8x32xf32>
    %1436 = vector.broadcast %1365 : vector<1x32xf32> to vector<8x32xf32>
    %1437 = arith.addf %1435, %1436 : vector<8x32xf32>
    %1438 = arith.addf %1429, %1437 : vector<8x32xf32>
    %cst_569 = arith.constant dense<0.000000e+00> : vector<8xf32>
    %1439 = vector.multi_reduction <add>, %1438, %cst_569 [1] : vector<8x32xf32> to vector<8xf32>
    %1440 = vector.shape_cast %1439 : vector<8xf32> to vector<8x1xf32>
    %cst_570 = arith.constant 3.200000e+01 : f32
    %1441 = vector.broadcast %cst_570 : f32 to vector<8x1xf32>
    %1442 = arith.divf %1440, %1441 : vector<8x1xf32>
    %1443 = vector.broadcast %1442 : vector<8x1xf32> to vector<8x32xf32>
    %1444 = arith.subf %1438, %1443 : vector<8x32xf32>
    %1445 = arith.mulf %1444, %1444 : vector<8x32xf32>
    %cst_571 = arith.constant dense<0.000000e+00> : vector<8xf32>
    %1446 = vector.multi_reduction <add>, %1445, %cst_571 [1] : vector<8x32xf32> to vector<8xf32>
    %1447 = vector.shape_cast %1446 : vector<8xf32> to vector<8x1xf32>
    %cst_572 = arith.constant 3.200000e+01 : f32
    %1448 = vector.broadcast %cst_572 : f32 to vector<8x1xf32>
    %1449 = arith.divf %1447, %1448 : vector<8x1xf32>
    %1450 = vector.broadcast %1442 : vector<8x1xf32> to vector<8x32xf32>
    %1451 = arith.subf %1438, %1450 : vector<8x32xf32>
    %cst_573 = arith.constant 9.99999974E-6 : f32
    %1452 = vector.broadcast %cst_573 : f32 to vector<8x1xf32>
    %1453 = arith.addf %1449, %1452 : vector<8x1xf32>
    %1454 = math.rsqrt %1453 : vector<8x1xf32>
    %1455 = vector.broadcast %1454 : vector<8x1xf32> to vector<8x32xf32>
    %1456 = arith.mulf %1451, %1455 : vector<8x32xf32>
    %1457 = vector.broadcast %1366 : vector<1x32xf32> to vector<8x32xf32>
    %1458 = arith.mulf %1456, %1457 : vector<8x32xf32>
    %1459 = vector.broadcast %1367 : vector<1x32xf32> to vector<8x32xf32>
    %1460 = arith.addf %1458, %1459 : vector<8x32xf32>
    %cst_574 = arith.constant 5.000000e-01 : f32
    %1461 = vector.broadcast %cst_574 : f32 to vector<8x32xf32>
    %1462 = arith.mulf %1460, %1461 : vector<8x32xf32>
    %1463 = arith.addf %1220, %1462 : vector<8x32xf32>
    %1464 = tpu.concatenate %489, %976, %1463 in 1 : vector<8x32xf32>, vector<8x32xf32>, vector<8x32xf32> -> vector<8x96xf32>
    %c0_575 = arith.constant 0 : index
    %c0_576 = arith.constant 0 : index
    %1465 = vector.load %arg10[%c0_575, %c0_576] : memref<16x128xf32, #tpu.memory_space<vmem>>, vector<16x128xf32>
    %c0_577 = arith.constant 0 : index
    %c0_578 = arith.constant 0 : index
    %1466 = vector.load %arg9[%c0_577, %c0_578] : memref<304x128xf32, #tpu.memory_space<vmem>>, vector<96x32xf32>
    %cst_579 = arith.constant dense<0.000000e+00> : vector<8x32xf32>
    %1467 = tpu.matmul %1464, %1466, %cst_579 {dimension_numbers = #tpu.dot_dimension_numbers<[1], [0], [0], [1], [0, 0, 1, 1], [], []>} : vector<8x96xf32>, vector<96x32xf32>, vector<8x32xf32> -> vector<8x32xf32>
    %1468 = vector.extract_strided_slice %1465 {offsets = [0, 0], sizes = [1, 32], strides = [1, 1]} : vector<16x128xf32> to vector<1x32xf32>
    %1469 = vector.broadcast %1468 : vector<1x32xf32> to vector<8x32xf32>
    %1470 = arith.addf %1467, %1469 : vector<8x32xf32>
    %cst_580 = arith.constant 0.000000e+00 : f32
    %1471 = vector.broadcast %cst_580 : f32 to vector<8x32xf32>
    %1472 = arith.cmpf oge, %1470, %1471 : vector<8x32xf32>
    %cst_581 = arith.constant 0.00999999977 : f32
    %1473 = vector.broadcast %cst_581 : f32 to vector<8x32xf32>
    %1474 = arith.mulf %1473, %1470 : vector<8x32xf32>
    %1475 = arith.select %1472, %1470, %1474 : vector<8x32xi1>, vector<8x32xf32>
    %c96 = arith.constant 96 : index
    %c0_582 = arith.constant 0 : index
    %1476 = vector.load %arg9[%c96, %c0_582] : memref<304x128xf32, #tpu.memory_space<vmem>>, vector<32x4xf32>
    %cst_583 = arith.constant dense<0.000000e+00> : vector<8x4xf32>
    %1477 = tpu.matmul %1475, %1476, %cst_583 {dimension_numbers = #tpu.dot_dimension_numbers<[1], [0], [0], [1], [0, 0, 1, 1], [], []>} : vector<8x32xf32>, vector<32x4xf32>, vector<8x4xf32> -> vector<8x4xf32>
    %1478 = vector.extract_strided_slice %1465 {offsets = [1, 0], sizes = [1, 4], strides = [1, 1]} : vector<16x128xf32> to vector<1x4xf32>
    %1479 = vector.broadcast %1478 : vector<1x4xf32> to vector<8x4xf32>
    %1480 = arith.addf %1477, %1479 : vector<8x4xf32>
    %cst_584 = arith.constant dense<0xFF800000> : vector<8xf32>
    %1481 = vector.multi_reduction <maximumf>, %1480, %cst_584 [1] : vector<8x4xf32> to vector<8xf32>
    %1482 = vector.shape_cast %1481 : vector<8xf32> to vector<8x1xf32>
    %1483 = vector.broadcast %1482 : vector<8x1xf32> to vector<8x4xf32>
    %1484 = arith.subf %1480, %1483 : vector<8x4xf32>
    %1485 = math.exp %1484 : vector<8x4xf32>
    %cst_585 = arith.constant dense<0.000000e+00> : vector<8xf32>
    %1486 = vector.multi_reduction <add>, %1485, %cst_585 [1] : vector<8x4xf32> to vector<8xf32>
    %1487 = vector.shape_cast %1486 : vector<8xf32> to vector<8x1xf32>
    %1488 = vector.broadcast %1487 : vector<8x1xf32> to vector<8x4xf32>
    %1489 = arith.divf %1485, %1488 : vector<8x4xf32>
    %c128 = arith.constant 128 : index
    %c0_586 = arith.constant 0 : index
    %1490 = vector.load %arg9[%c128, %c0_586] : memref<304x128xf32, #tpu.memory_space<vmem>>, vector<32x32xf32>
    %cst_587 = arith.constant dense<0.000000e+00> : vector<8x32xf32>
    %1491 = tpu.matmul %489, %1490, %cst_587 {dimension_numbers = #tpu.dot_dimension_numbers<[1], [0], [0], [1], [0, 0, 1, 1], [], []>} : vector<8x32xf32>, vector<32x32xf32>, vector<8x32xf32> -> vector<8x32xf32>
    %1492 = vector.extract_strided_slice %1465 {offsets = [2, 0], sizes = [1, 32], strides = [1, 1]} : vector<16x128xf32> to vector<1x32xf32>
    %1493 = vector.broadcast %1492 : vector<1x32xf32> to vector<8x32xf32>
    %1494 = arith.addf %1491, %1493 : vector<8x32xf32>
    %cst_588 = arith.constant 0.000000e+00 : f32
    %1495 = vector.broadcast %cst_588 : f32 to vector<8x32xf32>
    %1496 = arith.cmpf oge, %1494, %1495 : vector<8x32xf32>
    %cst_589 = arith.constant 0.00999999977 : f32
    %1497 = vector.broadcast %cst_589 : f32 to vector<8x32xf32>
    %1498 = arith.mulf %1497, %1494 : vector<8x32xf32>
    %1499 = arith.select %1496, %1494, %1498 : vector<8x32xi1>, vector<8x32xf32>
    %1500 = vector.extract_strided_slice %1465 {offsets = [3, 0], sizes = [1, 32], strides = [1, 1]} : vector<16x128xf32> to vector<1x32xf32>
    %1501 = vector.broadcast %1500 : vector<1x32xf32> to vector<8x32xf32>
    %1502 = arith.mulf %1499, %1501 : vector<8x32xf32>
    %cst_590 = arith.constant dense<0.000000e+00> : vector<8xf32>
    %1503 = vector.multi_reduction <add>, %1502, %cst_590 [1] : vector<8x32xf32> to vector<8xf32>
    %1504 = vector.shape_cast %1503 : vector<8xf32> to vector<8x1xf32>
    %1505 = vector.extract_strided_slice %1465 {offsets = [4, 0], sizes = [1, 1], strides = [1, 1]} : vector<16x128xf32> to vector<1x1xf32>
    %1506 = vector.broadcast %1505 : vector<1x1xf32> to vector<8x1xf32>
    %1507 = arith.addf %1504, %1506 : vector<8x1xf32>
    %1508 = arith.negf %1507 : vector<8x1xf32>
    %1509 = math.exp %1508 : vector<8x1xf32>
    %cst_591 = arith.constant 1.000000e+00 : f32
    %1510 = vector.broadcast %cst_591 : f32 to vector<8x1xf32>
    %1511 = arith.addf %1510, %1509 : vector<8x1xf32>
    %1512 = arith.divf %1510, %1511 : vector<8x1xf32>
    %cst_592 = arith.constant 5.000000e+01 : f32
    %1513 = vector.broadcast %cst_592 : f32 to vector<8x1xf32>
    %1514 = arith.mulf %1512, %1513 : vector<8x1xf32>
    %c160 = arith.constant 160 : index
    %c0_593 = arith.constant 0 : index
    %1515 = vector.load %arg9[%c160, %c0_593] : memref<304x128xf32, #tpu.memory_space<vmem>>, vector<96x16xf32>
    %cst_594 = arith.constant dense<0.000000e+00> : vector<8x16xf32>
    %1516 = tpu.matmul %1464, %1515, %cst_594 {dimension_numbers = #tpu.dot_dimension_numbers<[1], [0], [0], [1], [0, 0, 1, 1], [], []>} : vector<8x96xf32>, vector<96x16xf32>, vector<8x16xf32> -> vector<8x16xf32>
    %1517 = vector.extract_strided_slice %1465 {offsets = [5, 0], sizes = [1, 16], strides = [1, 1]} : vector<16x128xf32> to vector<1x16xf32>
    %1518 = vector.broadcast %1517 : vector<1x16xf32> to vector<8x16xf32>
    %1519 = arith.addf %1516, %1518 : vector<8x16xf32>
    %cst_595 = arith.constant 0.000000e+00 : f32
    %1520 = vector.broadcast %cst_595 : f32 to vector<8x16xf32>
    %1521 = arith.maximumf %1519, %1520 : vector<8x16xf32>
    %c256 = arith.constant 256 : index
    %c0_596 = arith.constant 0 : index
    %1522 = vector.load %arg9[%c256, %c0_596] : memref<304x128xf32, #tpu.memory_space<vmem>>, vector<16x128xf32>
    %cst_597 = arith.constant dense<0.000000e+00> : vector<8x128xf32>
    %1523 = tpu.matmul %1521, %1522, %cst_597 {dimension_numbers = #tpu.dot_dimension_numbers<[1], [0], [0], [1], [0, 0, 1, 1], [], []>} : vector<8x16xf32>, vector<16x128xf32>, vector<8x128xf32> -> vector<8x128xf32>
    %1524 = vector.extract_strided_slice %1465 {offsets = [6, 0], sizes = [1, 128], strides = [1, 1]} : vector<16x128xf32> to vector<1x128xf32>
    %1525 = vector.broadcast %1524 : vector<1x128xf32> to vector<8x128xf32>
    %1526 = arith.addf %1523, %1525 : vector<8x128xf32>
    %c272 = arith.constant 272 : index
    %c0_598 = arith.constant 0 : index
    %1527 = vector.load %arg9[%c272, %c0_598] : memref<304x128xf32, #tpu.memory_space<vmem>>, vector<32x128xf32>
    %1528 = vector.extract_strided_slice %1465 {offsets = [7, 0], sizes = [1, 32], strides = [1, 1]} : vector<16x128xf32> to vector<1x32xf32>
    %1529 = vector.extract_strided_slice %1465 {offsets = [8, 0], sizes = [1, 1], strides = [1, 1]} : vector<16x128xf32> to vector<1x1xf32>
    %cst_599 = arith.constant 0.000000e+00 : f32
    %1530 = vector.broadcast %cst_599 : f32 to vector<8x32xf32>
    %cst_600 = arith.constant 0.000000e+00 : f32
    %1531 = vector.broadcast %cst_600 : f32 to vector<8x32xf32>
    %cst_601 = arith.constant dense<0.000000e+00> : vector<8x128xf32>
    %1532 = tpu.matmul %1530, %1527, %cst_601 {dimension_numbers = #tpu.dot_dimension_numbers<[1], [0], [0], [1], [0, 0, 1, 1], [], []>} : vector<8x32xf32>, vector<32x128xf32>, vector<8x128xf32> -> vector<8x128xf32>
    %1533 = arith.addf %1526, %1532 : vector<8x128xf32>
    %1534 = vector.extract_strided_slice %1533 {offsets = [0, 0], sizes = [8, 32], strides = [1, 1]} : vector<8x128xf32> to vector<8x32xf32>
    %1535 = arith.negf %1534 : vector<8x32xf32>
    %1536 = math.exp %1535 : vector<8x32xf32>
    %cst_602 = arith.constant 1.000000e+00 : f32
    %1537 = vector.broadcast %cst_602 : f32 to vector<8x32xf32>
    %1538 = arith.addf %1537, %1536 : vector<8x32xf32>
    %1539 = arith.divf %1537, %1538 : vector<8x32xf32>
    %1540 = vector.extract_strided_slice %1533 {offsets = [0, 32], sizes = [8, 32], strides = [1, 1]} : vector<8x128xf32> to vector<8x32xf32>
    %1541 = arith.negf %1540 : vector<8x32xf32>
    %1542 = math.exp %1541 : vector<8x32xf32>
    %cst_603 = arith.constant 1.000000e+00 : f32
    %1543 = vector.broadcast %cst_603 : f32 to vector<8x32xf32>
    %1544 = arith.addf %1543, %1542 : vector<8x32xf32>
    %1545 = arith.divf %1543, %1544 : vector<8x32xf32>
    %1546 = vector.extract_strided_slice %1533 {offsets = [0, 64], sizes = [8, 32], strides = [1, 1]} : vector<8x128xf32> to vector<8x32xf32>
    %1547 = math.tanh %1546 : vector<8x32xf32>
    %1548 = vector.extract_strided_slice %1533 {offsets = [0, 96], sizes = [8, 32], strides = [1, 1]} : vector<8x128xf32> to vector<8x32xf32>
    %1549 = arith.negf %1548 : vector<8x32xf32>
    %1550 = math.exp %1549 : vector<8x32xf32>
    %cst_604 = arith.constant 1.000000e+00 : f32
    %1551 = vector.broadcast %cst_604 : f32 to vector<8x32xf32>
    %1552 = arith.addf %1551, %1550 : vector<8x32xf32>
    %1553 = arith.divf %1551, %1552 : vector<8x32xf32>
    %1554 = arith.mulf %1545, %1531 : vector<8x32xf32>
    %1555 = arith.mulf %1539, %1547 : vector<8x32xf32>
    %1556 = arith.addf %1554, %1555 : vector<8x32xf32>
    %1557 = math.tanh %1556 : vector<8x32xf32>
    %1558 = arith.mulf %1553, %1557 : vector<8x32xf32>
    %cst_605 = arith.constant 0.000000e+00 : f32
    %1559 = vector.broadcast %cst_605 : f32 to vector<8x32xf32>
    %1560 = arith.maximumf %1558, %1559 : vector<8x32xf32>
    %1561 = vector.broadcast %1528 : vector<1x32xf32> to vector<8x32xf32>
    %1562 = arith.mulf %1560, %1561 : vector<8x32xf32>
    %cst_606 = arith.constant dense<0.000000e+00> : vector<8xf32>
    %1563 = vector.multi_reduction <add>, %1562, %cst_606 [1] : vector<8x32xf32> to vector<8xf32>
    %1564 = vector.shape_cast %1563 : vector<8xf32> to vector<8x1xf32>
    %1565 = vector.broadcast %1529 : vector<1x1xf32> to vector<8x1xf32>
    %1566 = arith.addf %1564, %1565 : vector<8x1xf32>
    %cst_607 = arith.constant dense<0.000000e+00> : vector<8x128xf32>
    %1567 = tpu.matmul %1558, %1527, %cst_607 {dimension_numbers = #tpu.dot_dimension_numbers<[1], [0], [0], [1], [0, 0, 1, 1], [], []>} : vector<8x32xf32>, vector<32x128xf32>, vector<8x128xf32> -> vector<8x128xf32>
    %1568 = arith.addf %1526, %1567 : vector<8x128xf32>
    %1569 = vector.extract_strided_slice %1568 {offsets = [0, 0], sizes = [8, 32], strides = [1, 1]} : vector<8x128xf32> to vector<8x32xf32>
    %1570 = arith.negf %1569 : vector<8x32xf32>
    %1571 = math.exp %1570 : vector<8x32xf32>
    %cst_608 = arith.constant 1.000000e+00 : f32
    %1572 = vector.broadcast %cst_608 : f32 to vector<8x32xf32>
    %1573 = arith.addf %1572, %1571 : vector<8x32xf32>
    %1574 = arith.divf %1572, %1573 : vector<8x32xf32>
    %1575 = vector.extract_strided_slice %1568 {offsets = [0, 32], sizes = [8, 32], strides = [1, 1]} : vector<8x128xf32> to vector<8x32xf32>
    %1576 = arith.negf %1575 : vector<8x32xf32>
    %1577 = math.exp %1576 : vector<8x32xf32>
    %cst_609 = arith.constant 1.000000e+00 : f32
    %1578 = vector.broadcast %cst_609 : f32 to vector<8x32xf32>
    %1579 = arith.addf %1578, %1577 : vector<8x32xf32>
    %1580 = arith.divf %1578, %1579 : vector<8x32xf32>
    %1581 = vector.extract_strided_slice %1568 {offsets = [0, 64], sizes = [8, 32], strides = [1, 1]} : vector<8x128xf32> to vector<8x32xf32>
    %1582 = math.tanh %1581 : vector<8x32xf32>
    %1583 = vector.extract_strided_slice %1568 {offsets = [0, 96], sizes = [8, 32], strides = [1, 1]} : vector<8x128xf32> to vector<8x32xf32>
    %1584 = arith.negf %1583 : vector<8x32xf32>
    %1585 = math.exp %1584 : vector<8x32xf32>
    %cst_610 = arith.constant 1.000000e+00 : f32
    %1586 = vector.broadcast %cst_610 : f32 to vector<8x32xf32>
    %1587 = arith.addf %1586, %1585 : vector<8x32xf32>
    %1588 = arith.divf %1586, %1587 : vector<8x32xf32>
    %1589 = arith.mulf %1580, %1556 : vector<8x32xf32>
    %1590 = arith.mulf %1574, %1582 : vector<8x32xf32>
    %1591 = arith.addf %1589, %1590 : vector<8x32xf32>
    %1592 = math.tanh %1591 : vector<8x32xf32>
    %1593 = arith.mulf %1588, %1592 : vector<8x32xf32>
    %cst_611 = arith.constant 0.000000e+00 : f32
    %1594 = vector.broadcast %cst_611 : f32 to vector<8x32xf32>
    %1595 = arith.maximumf %1593, %1594 : vector<8x32xf32>
    %1596 = vector.broadcast %1528 : vector<1x32xf32> to vector<8x32xf32>
    %1597 = arith.mulf %1595, %1596 : vector<8x32xf32>
    %cst_612 = arith.constant dense<0.000000e+00> : vector<8xf32>
    %1598 = vector.multi_reduction <add>, %1597, %cst_612 [1] : vector<8x32xf32> to vector<8xf32>
    %1599 = vector.shape_cast %1598 : vector<8xf32> to vector<8x1xf32>
    %1600 = vector.broadcast %1529 : vector<1x1xf32> to vector<8x1xf32>
    %1601 = arith.addf %1599, %1600 : vector<8x1xf32>
    %cst_613 = arith.constant dense<0.000000e+00> : vector<8x128xf32>
    %1602 = tpu.matmul %1593, %1527, %cst_613 {dimension_numbers = #tpu.dot_dimension_numbers<[1], [0], [0], [1], [0, 0, 1, 1], [], []>} : vector<8x32xf32>, vector<32x128xf32>, vector<8x128xf32> -> vector<8x128xf32>
    %1603 = arith.addf %1526, %1602 : vector<8x128xf32>
    %1604 = vector.extract_strided_slice %1603 {offsets = [0, 0], sizes = [8, 32], strides = [1, 1]} : vector<8x128xf32> to vector<8x32xf32>
    %1605 = arith.negf %1604 : vector<8x32xf32>
    %1606 = math.exp %1605 : vector<8x32xf32>
    %cst_614 = arith.constant 1.000000e+00 : f32
    %1607 = vector.broadcast %cst_614 : f32 to vector<8x32xf32>
    %1608 = arith.addf %1607, %1606 : vector<8x32xf32>
    %1609 = arith.divf %1607, %1608 : vector<8x32xf32>
    %1610 = vector.extract_strided_slice %1603 {offsets = [0, 32], sizes = [8, 32], strides = [1, 1]} : vector<8x128xf32> to vector<8x32xf32>
    %1611 = arith.negf %1610 : vector<8x32xf32>
    %1612 = math.exp %1611 : vector<8x32xf32>
    %cst_615 = arith.constant 1.000000e+00 : f32
    %1613 = vector.broadcast %cst_615 : f32 to vector<8x32xf32>
    %1614 = arith.addf %1613, %1612 : vector<8x32xf32>
    %1615 = arith.divf %1613, %1614 : vector<8x32xf32>
    %1616 = vector.extract_strided_slice %1603 {offsets = [0, 64], sizes = [8, 32], strides = [1, 1]} : vector<8x128xf32> to vector<8x32xf32>
    %1617 = math.tanh %1616 : vector<8x32xf32>
    %1618 = vector.extract_strided_slice %1603 {offsets = [0, 96], sizes = [8, 32], strides = [1, 1]} : vector<8x128xf32> to vector<8x32xf32>
    %1619 = arith.negf %1618 : vector<8x32xf32>
    %1620 = math.exp %1619 : vector<8x32xf32>
    %cst_616 = arith.constant 1.000000e+00 : f32
    %1621 = vector.broadcast %cst_616 : f32 to vector<8x32xf32>
    %1622 = arith.addf %1621, %1620 : vector<8x32xf32>
    %1623 = arith.divf %1621, %1622 : vector<8x32xf32>
    %1624 = arith.mulf %1615, %1591 : vector<8x32xf32>
    %1625 = arith.mulf %1609, %1617 : vector<8x32xf32>
    %1626 = arith.addf %1624, %1625 : vector<8x32xf32>
    %1627 = math.tanh %1626 : vector<8x32xf32>
    %1628 = arith.mulf %1623, %1627 : vector<8x32xf32>
    %cst_617 = arith.constant 0.000000e+00 : f32
    %1629 = vector.broadcast %cst_617 : f32 to vector<8x32xf32>
    %1630 = arith.maximumf %1628, %1629 : vector<8x32xf32>
    %1631 = vector.broadcast %1528 : vector<1x32xf32> to vector<8x32xf32>
    %1632 = arith.mulf %1630, %1631 : vector<8x32xf32>
    %cst_618 = arith.constant dense<0.000000e+00> : vector<8xf32>
    %1633 = vector.multi_reduction <add>, %1632, %cst_618 [1] : vector<8x32xf32> to vector<8xf32>
    %1634 = vector.shape_cast %1633 : vector<8xf32> to vector<8x1xf32>
    %1635 = vector.broadcast %1529 : vector<1x1xf32> to vector<8x1xf32>
    %1636 = arith.addf %1634, %1635 : vector<8x1xf32>
    %cst_619 = arith.constant dense<0.000000e+00> : vector<8x128xf32>
    %1637 = tpu.matmul %1628, %1527, %cst_619 {dimension_numbers = #tpu.dot_dimension_numbers<[1], [0], [0], [1], [0, 0, 1, 1], [], []>} : vector<8x32xf32>, vector<32x128xf32>, vector<8x128xf32> -> vector<8x128xf32>
    %1638 = arith.addf %1526, %1637 : vector<8x128xf32>
    %1639 = vector.extract_strided_slice %1638 {offsets = [0, 0], sizes = [8, 32], strides = [1, 1]} : vector<8x128xf32> to vector<8x32xf32>
    %1640 = arith.negf %1639 : vector<8x32xf32>
    %1641 = math.exp %1640 : vector<8x32xf32>
    %cst_620 = arith.constant 1.000000e+00 : f32
    %1642 = vector.broadcast %cst_620 : f32 to vector<8x32xf32>
    %1643 = arith.addf %1642, %1641 : vector<8x32xf32>
    %1644 = arith.divf %1642, %1643 : vector<8x32xf32>
    %1645 = vector.extract_strided_slice %1638 {offsets = [0, 32], sizes = [8, 32], strides = [1, 1]} : vector<8x128xf32> to vector<8x32xf32>
    %1646 = arith.negf %1645 : vector<8x32xf32>
    %1647 = math.exp %1646 : vector<8x32xf32>
    %cst_621 = arith.constant 1.000000e+00 : f32
    %1648 = vector.broadcast %cst_621 : f32 to vector<8x32xf32>
    %1649 = arith.addf %1648, %1647 : vector<8x32xf32>
    %1650 = arith.divf %1648, %1649 : vector<8x32xf32>
    %1651 = vector.extract_strided_slice %1638 {offsets = [0, 64], sizes = [8, 32], strides = [1, 1]} : vector<8x128xf32> to vector<8x32xf32>
    %1652 = math.tanh %1651 : vector<8x32xf32>
    %1653 = vector.extract_strided_slice %1638 {offsets = [0, 96], sizes = [8, 32], strides = [1, 1]} : vector<8x128xf32> to vector<8x32xf32>
    %1654 = arith.negf %1653 : vector<8x32xf32>
    %1655 = math.exp %1654 : vector<8x32xf32>
    %cst_622 = arith.constant 1.000000e+00 : f32
    %1656 = vector.broadcast %cst_622 : f32 to vector<8x32xf32>
    %1657 = arith.addf %1656, %1655 : vector<8x32xf32>
    %1658 = arith.divf %1656, %1657 : vector<8x32xf32>
    %1659 = arith.mulf %1650, %1626 : vector<8x32xf32>
    %1660 = arith.mulf %1644, %1652 : vector<8x32xf32>
    %1661 = arith.addf %1659, %1660 : vector<8x32xf32>
    %1662 = math.tanh %1661 : vector<8x32xf32>
    %1663 = arith.mulf %1658, %1662 : vector<8x32xf32>
    %cst_623 = arith.constant 0.000000e+00 : f32
    %1664 = vector.broadcast %cst_623 : f32 to vector<8x32xf32>
    %1665 = arith.maximumf %1663, %1664 : vector<8x32xf32>
    %1666 = vector.broadcast %1528 : vector<1x32xf32> to vector<8x32xf32>
    %1667 = arith.mulf %1665, %1666 : vector<8x32xf32>
    %cst_624 = arith.constant dense<0.000000e+00> : vector<8xf32>
    %1668 = vector.multi_reduction <add>, %1667, %cst_624 [1] : vector<8x32xf32> to vector<8xf32>
    %1669 = vector.shape_cast %1668 : vector<8xf32> to vector<8x1xf32>
    %1670 = vector.broadcast %1529 : vector<1x1xf32> to vector<8x1xf32>
    %1671 = arith.addf %1669, %1670 : vector<8x1xf32>
    %cst_625 = arith.constant dense<0.000000e+00> : vector<8x128xf32>
    %1672 = tpu.matmul %1663, %1527, %cst_625 {dimension_numbers = #tpu.dot_dimension_numbers<[1], [0], [0], [1], [0, 0, 1, 1], [], []>} : vector<8x32xf32>, vector<32x128xf32>, vector<8x128xf32> -> vector<8x128xf32>
    %1673 = arith.addf %1526, %1672 : vector<8x128xf32>
    %1674 = vector.extract_strided_slice %1673 {offsets = [0, 0], sizes = [8, 32], strides = [1, 1]} : vector<8x128xf32> to vector<8x32xf32>
    %1675 = arith.negf %1674 : vector<8x32xf32>
    %1676 = math.exp %1675 : vector<8x32xf32>
    %cst_626 = arith.constant 1.000000e+00 : f32
    %1677 = vector.broadcast %cst_626 : f32 to vector<8x32xf32>
    %1678 = arith.addf %1677, %1676 : vector<8x32xf32>
    %1679 = arith.divf %1677, %1678 : vector<8x32xf32>
    %1680 = vector.extract_strided_slice %1673 {offsets = [0, 32], sizes = [8, 32], strides = [1, 1]} : vector<8x128xf32> to vector<8x32xf32>
    %1681 = arith.negf %1680 : vector<8x32xf32>
    %1682 = math.exp %1681 : vector<8x32xf32>
    %cst_627 = arith.constant 1.000000e+00 : f32
    %1683 = vector.broadcast %cst_627 : f32 to vector<8x32xf32>
    %1684 = arith.addf %1683, %1682 : vector<8x32xf32>
    %1685 = arith.divf %1683, %1684 : vector<8x32xf32>
    %1686 = vector.extract_strided_slice %1673 {offsets = [0, 64], sizes = [8, 32], strides = [1, 1]} : vector<8x128xf32> to vector<8x32xf32>
    %1687 = math.tanh %1686 : vector<8x32xf32>
    %1688 = vector.extract_strided_slice %1673 {offsets = [0, 96], sizes = [8, 32], strides = [1, 1]} : vector<8x128xf32> to vector<8x32xf32>
    %1689 = arith.negf %1688 : vector<8x32xf32>
    %1690 = math.exp %1689 : vector<8x32xf32>
    %cst_628 = arith.constant 1.000000e+00 : f32
    %1691 = vector.broadcast %cst_628 : f32 to vector<8x32xf32>
    %1692 = arith.addf %1691, %1690 : vector<8x32xf32>
    %1693 = arith.divf %1691, %1692 : vector<8x32xf32>
    %1694 = arith.mulf %1685, %1661 : vector<8x32xf32>
    %1695 = arith.mulf %1679, %1687 : vector<8x32xf32>
    %1696 = arith.addf %1694, %1695 : vector<8x32xf32>
    %1697 = math.tanh %1696 : vector<8x32xf32>
    %1698 = arith.mulf %1693, %1697 : vector<8x32xf32>
    %cst_629 = arith.constant 0.000000e+00 : f32
    %1699 = vector.broadcast %cst_629 : f32 to vector<8x32xf32>
    %1700 = arith.maximumf %1698, %1699 : vector<8x32xf32>
    %1701 = vector.broadcast %1528 : vector<1x32xf32> to vector<8x32xf32>
    %1702 = arith.mulf %1700, %1701 : vector<8x32xf32>
    %cst_630 = arith.constant dense<0.000000e+00> : vector<8xf32>
    %1703 = vector.multi_reduction <add>, %1702, %cst_630 [1] : vector<8x32xf32> to vector<8xf32>
    %1704 = vector.shape_cast %1703 : vector<8xf32> to vector<8x1xf32>
    %1705 = vector.broadcast %1529 : vector<1x1xf32> to vector<8x1xf32>
    %1706 = arith.addf %1704, %1705 : vector<8x1xf32>
    %cst_631 = arith.constant dense<0.000000e+00> : vector<8x128xf32>
    %1707 = tpu.matmul %1698, %1527, %cst_631 {dimension_numbers = #tpu.dot_dimension_numbers<[1], [0], [0], [1], [0, 0, 1, 1], [], []>} : vector<8x32xf32>, vector<32x128xf32>, vector<8x128xf32> -> vector<8x128xf32>
    %1708 = arith.addf %1526, %1707 : vector<8x128xf32>
    %1709 = vector.extract_strided_slice %1708 {offsets = [0, 0], sizes = [8, 32], strides = [1, 1]} : vector<8x128xf32> to vector<8x32xf32>
    %1710 = arith.negf %1709 : vector<8x32xf32>
    %1711 = math.exp %1710 : vector<8x32xf32>
    %cst_632 = arith.constant 1.000000e+00 : f32
    %1712 = vector.broadcast %cst_632 : f32 to vector<8x32xf32>
    %1713 = arith.addf %1712, %1711 : vector<8x32xf32>
    %1714 = arith.divf %1712, %1713 : vector<8x32xf32>
    %1715 = vector.extract_strided_slice %1708 {offsets = [0, 32], sizes = [8, 32], strides = [1, 1]} : vector<8x128xf32> to vector<8x32xf32>
    %1716 = arith.negf %1715 : vector<8x32xf32>
    %1717 = math.exp %1716 : vector<8x32xf32>
    %cst_633 = arith.constant 1.000000e+00 : f32
    %1718 = vector.broadcast %cst_633 : f32 to vector<8x32xf32>
    %1719 = arith.addf %1718, %1717 : vector<8x32xf32>
    %1720 = arith.divf %1718, %1719 : vector<8x32xf32>
    %1721 = vector.extract_strided_slice %1708 {offsets = [0, 64], sizes = [8, 32], strides = [1, 1]} : vector<8x128xf32> to vector<8x32xf32>
    %1722 = math.tanh %1721 : vector<8x32xf32>
    %1723 = vector.extract_strided_slice %1708 {offsets = [0, 96], sizes = [8, 32], strides = [1, 1]} : vector<8x128xf32> to vector<8x32xf32>
    %1724 = arith.negf %1723 : vector<8x32xf32>
    %1725 = math.exp %1724 : vector<8x32xf32>
    %cst_634 = arith.constant 1.000000e+00 : f32
    %1726 = vector.broadcast %cst_634 : f32 to vector<8x32xf32>
    %1727 = arith.addf %1726, %1725 : vector<8x32xf32>
    %1728 = arith.divf %1726, %1727 : vector<8x32xf32>
    %1729 = arith.mulf %1720, %1696 : vector<8x32xf32>
    %1730 = arith.mulf %1714, %1722 : vector<8x32xf32>
    %1731 = arith.addf %1729, %1730 : vector<8x32xf32>
    %1732 = math.tanh %1731 : vector<8x32xf32>
    %1733 = arith.mulf %1728, %1732 : vector<8x32xf32>
    %cst_635 = arith.constant 0.000000e+00 : f32
    %1734 = vector.broadcast %cst_635 : f32 to vector<8x32xf32>
    %1735 = arith.maximumf %1733, %1734 : vector<8x32xf32>
    %1736 = vector.broadcast %1528 : vector<1x32xf32> to vector<8x32xf32>
    %1737 = arith.mulf %1735, %1736 : vector<8x32xf32>
    %cst_636 = arith.constant dense<0.000000e+00> : vector<8xf32>
    %1738 = vector.multi_reduction <add>, %1737, %cst_636 [1] : vector<8x32xf32> to vector<8xf32>
    %1739 = vector.shape_cast %1738 : vector<8xf32> to vector<8x1xf32>
    %1740 = vector.broadcast %1529 : vector<1x1xf32> to vector<8x1xf32>
    %1741 = arith.addf %1739, %1740 : vector<8x1xf32>
    %cst_637 = arith.constant dense<0.000000e+00> : vector<8x128xf32>
    %1742 = tpu.matmul %1733, %1527, %cst_637 {dimension_numbers = #tpu.dot_dimension_numbers<[1], [0], [0], [1], [0, 0, 1, 1], [], []>} : vector<8x32xf32>, vector<32x128xf32>, vector<8x128xf32> -> vector<8x128xf32>
    %1743 = arith.addf %1526, %1742 : vector<8x128xf32>
    %1744 = vector.extract_strided_slice %1743 {offsets = [0, 0], sizes = [8, 32], strides = [1, 1]} : vector<8x128xf32> to vector<8x32xf32>
    %1745 = arith.negf %1744 : vector<8x32xf32>
    %1746 = math.exp %1745 : vector<8x32xf32>
    %cst_638 = arith.constant 1.000000e+00 : f32
    %1747 = vector.broadcast %cst_638 : f32 to vector<8x32xf32>
    %1748 = arith.addf %1747, %1746 : vector<8x32xf32>
    %1749 = arith.divf %1747, %1748 : vector<8x32xf32>
    %1750 = vector.extract_strided_slice %1743 {offsets = [0, 32], sizes = [8, 32], strides = [1, 1]} : vector<8x128xf32> to vector<8x32xf32>
    %1751 = arith.negf %1750 : vector<8x32xf32>
    %1752 = math.exp %1751 : vector<8x32xf32>
    %cst_639 = arith.constant 1.000000e+00 : f32
    %1753 = vector.broadcast %cst_639 : f32 to vector<8x32xf32>
    %1754 = arith.addf %1753, %1752 : vector<8x32xf32>
    %1755 = arith.divf %1753, %1754 : vector<8x32xf32>
    %1756 = vector.extract_strided_slice %1743 {offsets = [0, 64], sizes = [8, 32], strides = [1, 1]} : vector<8x128xf32> to vector<8x32xf32>
    %1757 = math.tanh %1756 : vector<8x32xf32>
    %1758 = vector.extract_strided_slice %1743 {offsets = [0, 96], sizes = [8, 32], strides = [1, 1]} : vector<8x128xf32> to vector<8x32xf32>
    %1759 = arith.negf %1758 : vector<8x32xf32>
    %1760 = math.exp %1759 : vector<8x32xf32>
    %cst_640 = arith.constant 1.000000e+00 : f32
    %1761 = vector.broadcast %cst_640 : f32 to vector<8x32xf32>
    %1762 = arith.addf %1761, %1760 : vector<8x32xf32>
    %1763 = arith.divf %1761, %1762 : vector<8x32xf32>
    %1764 = arith.mulf %1755, %1731 : vector<8x32xf32>
    %1765 = arith.mulf %1749, %1757 : vector<8x32xf32>
    %1766 = arith.addf %1764, %1765 : vector<8x32xf32>
    %1767 = math.tanh %1766 : vector<8x32xf32>
    %1768 = arith.mulf %1763, %1767 : vector<8x32xf32>
    %cst_641 = arith.constant 0.000000e+00 : f32
    %1769 = vector.broadcast %cst_641 : f32 to vector<8x32xf32>
    %1770 = arith.maximumf %1768, %1769 : vector<8x32xf32>
    %1771 = vector.broadcast %1528 : vector<1x32xf32> to vector<8x32xf32>
    %1772 = arith.mulf %1770, %1771 : vector<8x32xf32>
    %cst_642 = arith.constant dense<0.000000e+00> : vector<8xf32>
    %1773 = vector.multi_reduction <add>, %1772, %cst_642 [1] : vector<8x32xf32> to vector<8xf32>
    %1774 = vector.shape_cast %1773 : vector<8xf32> to vector<8x1xf32>
    %1775 = vector.broadcast %1529 : vector<1x1xf32> to vector<8x1xf32>
    %1776 = arith.addf %1774, %1775 : vector<8x1xf32>
    %cst_643 = arith.constant dense<0.000000e+00> : vector<8x128xf32>
    %1777 = tpu.matmul %1768, %1527, %cst_643 {dimension_numbers = #tpu.dot_dimension_numbers<[1], [0], [0], [1], [0, 0, 1, 1], [], []>} : vector<8x32xf32>, vector<32x128xf32>, vector<8x128xf32> -> vector<8x128xf32>
    %1778 = arith.addf %1526, %1777 : vector<8x128xf32>
    %1779 = vector.extract_strided_slice %1778 {offsets = [0, 0], sizes = [8, 32], strides = [1, 1]} : vector<8x128xf32> to vector<8x32xf32>
    %1780 = arith.negf %1779 : vector<8x32xf32>
    %1781 = math.exp %1780 : vector<8x32xf32>
    %cst_644 = arith.constant 1.000000e+00 : f32
    %1782 = vector.broadcast %cst_644 : f32 to vector<8x32xf32>
    %1783 = arith.addf %1782, %1781 : vector<8x32xf32>
    %1784 = arith.divf %1782, %1783 : vector<8x32xf32>
    %1785 = vector.extract_strided_slice %1778 {offsets = [0, 32], sizes = [8, 32], strides = [1, 1]} : vector<8x128xf32> to vector<8x32xf32>
    %1786 = arith.negf %1785 : vector<8x32xf32>
    %1787 = math.exp %1786 : vector<8x32xf32>
    %cst_645 = arith.constant 1.000000e+00 : f32
    %1788 = vector.broadcast %cst_645 : f32 to vector<8x32xf32>
    %1789 = arith.addf %1788, %1787 : vector<8x32xf32>
    %1790 = arith.divf %1788, %1789 : vector<8x32xf32>
    %1791 = vector.extract_strided_slice %1778 {offsets = [0, 64], sizes = [8, 32], strides = [1, 1]} : vector<8x128xf32> to vector<8x32xf32>
    %1792 = math.tanh %1791 : vector<8x32xf32>
    %1793 = vector.extract_strided_slice %1778 {offsets = [0, 96], sizes = [8, 32], strides = [1, 1]} : vector<8x128xf32> to vector<8x32xf32>
    %1794 = arith.negf %1793 : vector<8x32xf32>
    %1795 = math.exp %1794 : vector<8x32xf32>
    %cst_646 = arith.constant 1.000000e+00 : f32
    %1796 = vector.broadcast %cst_646 : f32 to vector<8x32xf32>
    %1797 = arith.addf %1796, %1795 : vector<8x32xf32>
    %1798 = arith.divf %1796, %1797 : vector<8x32xf32>
    %1799 = arith.mulf %1790, %1766 : vector<8x32xf32>
    %1800 = arith.mulf %1784, %1792 : vector<8x32xf32>
    %1801 = arith.addf %1799, %1800 : vector<8x32xf32>
    %1802 = math.tanh %1801 : vector<8x32xf32>
    %1803 = arith.mulf %1798, %1802 : vector<8x32xf32>
    %cst_647 = arith.constant 0.000000e+00 : f32
    %1804 = vector.broadcast %cst_647 : f32 to vector<8x32xf32>
    %1805 = arith.maximumf %1803, %1804 : vector<8x32xf32>
    %1806 = vector.broadcast %1528 : vector<1x32xf32> to vector<8x32xf32>
    %1807 = arith.mulf %1805, %1806 : vector<8x32xf32>
    %cst_648 = arith.constant dense<0.000000e+00> : vector<8xf32>
    %1808 = vector.multi_reduction <add>, %1807, %cst_648 [1] : vector<8x32xf32> to vector<8xf32>
    %1809 = vector.shape_cast %1808 : vector<8xf32> to vector<8x1xf32>
    %1810 = vector.broadcast %1529 : vector<1x1xf32> to vector<8x1xf32>
    %1811 = arith.addf %1809, %1810 : vector<8x1xf32>
    %1812 = tpu.concatenate %1566, %1601, %1636, %1671, %1706, %1741, %1776, %1811 in 1 : vector<8x1xf32>, vector<8x1xf32>, vector<8x1xf32>, vector<8x1xf32>, vector<8x1xf32>, vector<8x1xf32>, vector<8x1xf32>, vector<8x1xf32> -> vector<8x8xf32>
    %1813 = math.tanh %1812 : vector<8x8xf32>
    %cst_649 = arith.constant 1.000000e+01 : f32
    %1814 = vector.broadcast %cst_649 : f32 to vector<8x8xf32>
    %1815 = arith.mulf %1813, %1814 : vector<8x8xf32>
    %cst_650 = arith.constant 0.000000e+00 : f32
    %1816 = vector.broadcast %cst_650 : f32 to vector<8x128xf32>
    %c0_651 = arith.constant 0 : index
    %c0_652 = arith.constant 0 : index
    %1817 = vector.load %arg11[%c0_651, %c0_652] : memref<8x128xf32, #tpu.memory_space<vmem>>, vector<8x128xf32>
    tpu.vector_store %arg11[%c0_651, %c0_652], %1816 {strides = array<i32>} : memref<8x128xf32, #tpu.memory_space<vmem>>, vector<8x128xf32>,
    %c0_653 = arith.constant 0 : index
    %c0_654 = arith.constant 0 : index
    %1818 = vector.load %arg11[%c0_653, %c0_654] : memref<8x128xf32, #tpu.memory_space<vmem>>, vector<8x4xf32>
    tpu.vector_store %arg11[%c0_653, %c0_654], %1489 {strides = array<i32>} : memref<8x128xf32, #tpu.memory_space<vmem>>, vector<8x4xf32>,
    %c0_655 = arith.constant 0 : index
    %c4 = arith.constant 4 : index
    %1819 = vector.load %arg11[%c0_655, %c4] : memref<8x128xf32, #tpu.memory_space<vmem>>, vector<8x1xf32>
    tpu.vector_store %arg11[%c0_655, %c4], %1514 {strides = array<i32>} : memref<8x128xf32, #tpu.memory_space<vmem>>, vector<8x1xf32>,
    %c0_656 = arith.constant 0 : index
    %c5 = arith.constant 5 : index
    %1820 = vector.load %arg11[%c0_656, %c5] : memref<8x128xf32, #tpu.memory_space<vmem>>, vector<8x8xf32>
    tpu.vector_store %arg11[%c0_656, %c5], %1815 {strides = array<i32>} : memref<8x128xf32, #tpu.memory_space<vmem>>, vector<8x8xf32>,
    return
  }
}

</mosaic_0001>

<bundles_post_ra>
// kernel: _lambda_.1
= control target key start
LH: loop header
LB: loop body
LE: loop exit
PB: predicated region body
PF: predicated region fallthrough
CT: control target
= control target key end

     0   :  { %16 = vsyncpa [#allocation3], 0  ;;  %s7239_s0 = inlined_call_operand.vmem [shape: f32[3,2,8,2], index: 0, kind: input, shape index: {}]   ;;  %s7240_s1 = inlined_call_operand.vmem [shape: f32[2,32], index: 1, kind: input, shape index: {}]   ;;  %s7241_s2 = inlined_call_operand.vmem [shape: f32[1,32], index: 2, kind: input, shape index: {}]   ;;  %s7242_s3 = inlined_call_operand.vmem [shape: f32[2,32], index: 3, kind: input, shape index: {}]   ;;  %s7243_s4 = inlined_call_operand.hbm [shape: f32[3,2,32,96], index: 4, kind: input, shape index: {}]   ;;  %s7244_s5 = inlined_call_operand.hbm [shape: f32[3,2,32,32], index: 5, kind: input, shape index: {}]   ;;  %s7245_s6 = inlined_call_operand.hbm [shape: f32[3,2,32,64], index: 6, kind: input, shape index: {}]   ;;  %s7246_s7 = inlined_call_operand.hbm [shape: f32[3,2,64,32], index: 7, kind: input, shape index: {}]   ;;  %s7247_s8 = inlined_call_operand.vmem [shape: f32[3,2,8,128], index: 8, kind: input, shape index: {}]   ;;  %s7248_s9 = inlined_call_operand.hbm [shape: f32[304,128], index: 9, kind: input, shape index: {}]   ;;  %s7249_s10 = inlined_call_operand.vmem [shape: f32[16,128], index: 10, kind: input, shape index: {}]   ;;  %s7250_s11 = inlined_call_operand.vmem [shape: f32[8,128], index: 11, kind: output, shape index: {}]  }
   0x1   :  { %17 = vsyncpa [#allocation5], 0 }
   0x2   :  { %18 = vsyncpa [#allocation8], 0  ;;  %s44_s19 = sshll.u32 %s7244_s5, 4  ;;  %s5697_s20 = smov [#allocation4]   ;;  %s45_s19 = int_to_ptr.hbm [resolvable:$true] %s44_s19 }
   0x3   :  { %s46_s21 = sshll.u32 %s5697_s20, 4  ;;  %s70_s24 = sshll.u32 %s7246_s7, 4  ;;  %s47_s21 = int_to_ptr.vmem [resolvable:$true] %s46_s21  ;;  %s71_s24 = int_to_ptr.hbm [resolvable:$true] %s70_s24 }
   0x4   :  { %s5698_s25 = smov 128   ;;  %s5699_s26 = smov 8  }
   0x5   :  { %52 = dma.hbm_to_vmem [thread:$0]  %s45_s19, 3072, %s47_s21, [#allocation5], %s5698_s25, %s5698_s25, %s5699_s26  }
   0x6   :  { %s5700_s27 = smov [#allocation7]   ;;  %s31_s12 = sshll.u32 %s7243_s4, 4  ;;  %s32_s12 = int_to_ptr.hbm [resolvable:$true] %s31_s12 }
   0x7   :  { %s72_s28 = sshll.u32 %s5700_s27, 4  ;;  %s57_s14 = sshll.u32 %s7245_s6, 4  ;;  %s73_s28 = int_to_ptr.vmem [resolvable:$true] %s72_s28  ;;  %s58_s14 = int_to_ptr.hbm [resolvable:$true] %s57_s14 }
   0x8   :  { %78 = dma.hbm_to_vmem [thread:$0]  %s71_s24, 6144, %s73_s28, [#allocation8], %s5698_s25, %s5698_s25, %s5699_s26  }
   0x9   :  { %s5701_s15 = smov [#allocation2]   ;;  %s5702_s7 = smov [#allocation6]  }
   0xa   :  { %s33_s16 = sshll.u32 %s5701_s15, 4  ;;  %s59_s17 = sshll.u32 %s5702_s7, 4  ;;  %s34_s16 = int_to_ptr.vmem [resolvable:$true] %s33_s16  ;;  %s60_s17 = int_to_ptr.vmem [resolvable:$true] %s59_s17 }
   0xb   :  { %39 = dma.hbm_to_vmem [thread:$0]  %s32_s12, 3072, %s34_s16, [#allocation3], %s5698_s25, %s5698_s25, %s5699_s26  }
   0xc   :  { %s85_s20 = sshll.u32 %s7248_s9, 4  ;;  %s5703_s4 = smov [#allocation9]   ;;  %s86_s20 = int_to_ptr.hbm [resolvable:$true] %s85_s20 }
   0xd   :  { %65 = dma.hbm_to_vmem [thread:$0]  %s58_s14, 3072, %s60_s17, [#allocation5], %s5698_s25, %s5698_s25, %s5699_s26  }
   0xe   :  { %s87_s21 = sshll.u32 %s5703_s4, 4  ;;  %s88_s21 = int_to_ptr.vmem [resolvable:$true] %s87_s21 }
   0xf   :  { %93 = dma.hbm_to_vmem [thread:$0]  %s86_s20, 4864, %s88_s21, [#allocation8], %s5698_s25, %s5698_s25, %s5699_s26  }
  0x10   :  { %5691 = dma.done.wait [#allocation3], 3072  }
  0x11   :  { %5692 = vsyncadd [#allocation3], 4294964224 }
  0x12   :  { %5693 = dma.done.wait [#allocation5], 6144  }
  0x13   :  { %5694 = vsyncadd [#allocation5], 4294961152 }
  0x14   :  { %5695 = dma.done.wait [#allocation8], 11008  }
  0x15   :  { %5696 = vsyncadd [#allocation8], 4294956288  ;;  %v5704_v0 = vmov 0   ;;  %v7251_v1 = vmov 1   ;;  %v119_v2 = vld [vmem:[%s7239_s0] sm:$0xff]  ;;  %v5804_v3 = vld [vmem:[#allocation2 + $0x18] sm:$0xff] }
  0x16   :  { %5337 = vset.pattern.permute.xlu0 %v5704_v0  ;;  %5339 = vset.pattern.permute.xlu1 %v5704_v0  ;;  %v5807_v4 = vld [vmem:[#allocation2 + $0x10] sm:$0xff]  ;;  %v5810_v5 = vld [vmem:[#allocation2 + $0x8] sm:$0xff]  ;;  %v5812_v6 = vld [vmem:[#allocation2] sm:$0xff]  ;;  %vm162_vm0 = vcmask 261120   ;;  %s5706_s28 = smov 96   ;;  %s5707_s29 = smov 112  }
  0x17   :  { %5340 = vset.pattern.permute.xlu2 %v7251_v1  ;;  %122 = vperm.xlu0 %5337, %v119_v2   ;;  %v116_v8 = vld [vmem:[%s7240_s1] sm:$0x3]  ;;  %s5708_s30 = smov 80   ;;  %vm190_vm1 = vcmask 130048   ;;  %vm216_vm2 = vcmask 64512   ;;  %s5709_s12 = smov 48  }
  0x18   :  { %178 = vmatpush.msra.mxu0 %v5804_v3  ;;  %v5819_v9 = vperm.slane %v116_v8, 0  ;;  %v5821_v10 = vperm.slane %v116_v8, 1  ;;  %v5826_v12 = vld [vmem:[%s7242_s3] sm:$0x3]  ;;  %s5710_s5 = smov 64   ;;  %s5711_s13 = smov 16  }
  0x19   :  { %v5833_v15 = vld [vmem:[%s7241_s2] ss:$0 sm:$0xff]  ;;  %v5836_v17 = vperm.slane %v5826_v12, 0  ;;  %vm434_vm15 = vcmask 523264   ;;  %s5715_s9 = smov 1   ;;  %s5718_s22 = smov 3  }
  0x1a   :  { %179 = vmatpush.msra.mxu0 %v5807_v4  ;;  %v5847_v20 = vld [vmem:[%s7247_s8] sm:$0xff]  ;;  %s5719_s23 = smov 4   ;;  %s5720_s24 = smov 6  }
  0x1b   :  { %v161_v21 = vperm.slane %v5847_v20, 0  ;;  %s5721_s27 = smov 7  }
  0x1c   :  { %180 = vmatpush.msra.mxu0 %v5810_v5 }
  0x1e   :  { %181 = vmatpush.msra.mxu0 %v5812_v6 }
  0x1f   :  { %5338 = vset.pattern.permute.xlu0 %v7251_v1 }
  0x20   :  { %128 = vperm.xlu0 %5338, %v119_v2  }
  0x89   :  { %v123_v7 = vpop.permute.xlu0 %122 }
  0x8a   :  { %v126_v13 = vmul.f32 %v5819_v9, %v123_v7 }
  0x92   :  { %v129_v11 = vpop.permute.xlu0 %128 }
  0x93   :  { %v132_v14 = vmul.f32 %v5821_v10, %v129_v11 }
  0x95   :  { %v133_v16 = vadd.f32 %v132_v14, %v126_v13  ;;  %v5867_v13 = vld [vmem:[#allocation4 + $0x18] sm:$0xff]  ;;  %v5869_v14 = vld [vmem:[#allocation4 + $0x10] sm:$0xff] }
  0x97   :  { %v137_v18 = vadd.f32 %v5833_v15, %v133_v16  ;;  %v5872_v16 = vld [vmem:[#allocation4 + $0x8] sm:$0xff] }
  0x99   :  { %v5840_v19 = vadd.f32 %v5836_v17, %v137_v18 }
  0x9b   :  { %5156 = vmatmul.msk.f32.vlgmr.msra.gmra.mxu0 %vm162_vm0, %v5840_v19 }
 0x118   :  { %v183_v22 = vpop.f32.mrf.mxu0 }
 0x119   :  { %v184_v23 = vadd.f32 %v183_v22, %v161_v21 }
 0x11b   :  { %188 = vrot.lane.b32.xlu1 %v184_v23, %s5706_s28  ;;  %v186_v24 = vmul.f32 0.25, %v184_v23 }
 0x11d   :  { %267 = vrot.lane.b32.xlu2 %v186_v24, %s5707_s29 }
 0x123   :  { %269 = vrot.lane.b32.xlu1 %v184_v23, %s5708_s30 }
 0x177   :  { %v268_v27 = vpop.permute.xlu2 %267 }
 0x18d   :  { %v189_v25 = vpop.permute.xlu1 %188 }
 0x18e   :  { %5157 = vmatpush.xpose.msk.msra.mxu1 %vm190_vm1, %v189_v25 }
 0x191   :  { %5158 = vmatmul.msk.f32.vlgmr.msra.gmra.mxu1 %vm190_vm1, %v186_v24 }
 0x192   :  { %366 = vmatpush.msrb.mxu1 %v5867_v13 }
 0x194   :  { %367 = vmatpush.msrb.mxu1 %v5869_v14 }
 0x195   :  { %v270_v26 = vpop.permute.xlu1 %269 }
 0x196   :  { %5160 = vmatpush.xpose.msk.msra.mxu3 %vm190_vm1, %v270_v26  ;;  %368 = vmatpush.msrb.mxu1 %v5872_v16  ;;  %v350_v26 = vperm.slane %v5847_v20, 1 }
 0x199   :  { %5161 = vmatmul.msk.f32.vlgmr.msra.gmra.mxu3 %vm190_vm1, %v268_v27 }
 0x20e   :  { %v213_v28 = vpop.f32.mrf.mxu1 }
 0x20f   :  { %v217_v29 = vsel %vm216_vm2, %v213_v28, -inf }
 0x210   :  { %218 = vmax.xlane.f32.xlu2 %v217_v29 }
 0x21c   :  { %v292_v30 = vpop.f32.mrf.mxu3 }
 0x21d   :  { %v295_v31 = vsel %vm216_vm2, %v292_v30, -inf }
 0x21e   :  { %296 = vmax.xlane.f32.xlu1 %v295_v31  ;;  %v5712_v31 = vmov 32.0  }
 0x237   :  { %319 = vrot.lane.b32.xlu1 %v184_v23, %s5709_s12 }
 0x283   :  { %v219_v32 = vpop.xlane.xlu2 %218 }
 0x284   :  { %v220_v33 = vsub.f32 %v213_v28, %v219_v32 }
 0x286   :  { %v221_v34 = vmul.f32 1.442695, %v220_v33 }
 0x288   :  { %5346 = vpow2.f32 %v221_v34 }
 0x28e   :  { %v5347_v35 = vpop.eup %5346 }
 0x28f   :  { %v223_v36 = vsel %vm216_vm2, %v5347_v35, 0.0 }
 0x290   :  { %224 = vadd.xlane.f32.xlu0 %v223_v36 }
 0x291   :  { %v297_v37 = vpop.xlane.xlu1 %296 }
 0x292   :  { %v298_v38 = vsub.f32 %v292_v30, %v297_v37 }
 0x294   :  { %v299_v39 = vmul.f32 1.442695, %v298_v38 }
 0x296   :  { %5348 = vpow2.f32 %v299_v39 }
 0x29c   :  { %v5349_v40 = vpop.eup %5348 }
 0x29d   :  { %v301_v41 = vsel %vm216_vm2, %v5349_v40, 0.0 }
 0x29e   :  { %302 = vadd.xlane.f32.xlu2 %v301_v41 }
 0x2a9   :  { %v320_v58 = vpop.permute.xlu1 %319 }
 0x2b6   :  { %241 = vrot.lane.b32.xlu2 %v184_v23, %s5710_s5  ;;  %v5877_v23 = vld [vmem:[#allocation4] sm:$0xff] }
 0x2b7   :  { %369 = vmatpush.msrb.mxu1 %v5877_v23 }
 0x303   :  { %v225_v42 = vpop.xlane.xlu0 %224 }
 0x304   :  { %5350 = vrcp.f32 %v225_v42  ;;  %v237_v47 = vand.u32 2147483648, %v225_v42  ;;  %vm231_vm4 = vweird.f32 %v225_v42  ;;  %v235_v50 = vand.u32 2147483647, %v225_v42 }
 0x306   :  { %v238_v52 = vor.u32 1.1754944e-38, %v237_v47  ;;  %vm236_vm6 = vcmp.eq.f32.partialorder %v235_v50, 8.507059e+37  ;;  %v5905_v47 = vld [vmem:[#allocation7 + $0x30] sm:$0xff] }
 0x30a   :  { %v5351_v43 = vpop.eup %5350 }
 0x30b   :  { %v227_v44 = vmul.f32 %v5351_v43, %v225_v42  ;;  %vm232_vm3 = vweird.f32 %v5351_v43  ;;  %v5891_v42 = vld [vmem:[#allocation6 + $0x18] sm:$0xff] }
 0x30c   :  { %vm233_vm5 = vmor %vm231_vm4, %vm232_vm3  ;;  %424 = vmatpush.msrb.mxu3 %v5891_v42 }
 0x30d   :  { %v228_v45 = vsub.f32 1.0, %v227_v44  ;;  %v5896_v44 = vld [vmem:[#allocation6 + $0x8] sm:$0xff] }
 0x30f   :  { %v229_v46 = vmul.f32 %v5351_v43, %v228_v45  ;;  %v5899_v45 = vld [vmem:[#allocation6] sm:$0xff] }
 0x311   :  { %v303_v48 = vpop.xlane.xlu2 %302  ;;  %v230_v49 = vadd.f32 %v5351_v43, %v229_v46  ;;  %v5903_v46 = vld [vmem:[#allocation7 + $0x38] sm:$0xff] }
 0x312   :  { %5352 = vrcp.f32 %v303_v48  ;;  %v315_v60 = vand.u32 2147483648, %v303_v48  ;;  %v313_v62 = vand.u32 2147483647, %v303_v48  ;;  %vm309_vm8 = vweird.f32 %v303_v48  ;;  %446 = vmatpush.msrb.mxu0 %v5903_v46 }
 0x313   :  { %v234_v51 = vsel %vm233_vm5, %v5351_v43, %v230_v49  ;;  %5354 = vrcp.f32 %v5712_v31  ;;  %v5894_v43 = vld [vmem:[#allocation6 + $0x10] sm:$0xff] }
 0x314   :  { %v239_v53 = vsel %vm236_vm6, %v238_v52, %v234_v51  ;;  %v316_v2 = vor.u32 1.1754944e-38, %v315_v60  ;;  %vm314_vm10 = vcmp.eq.f32.partialorder %v313_v62, 8.507059e+37  ;;  %425 = vmatpush.msrb.mxu3 %v5894_v43  ;;  %447 = vmatpush.msrb.mxu0 %v5905_v47  ;;  %v5912_v51 = vld [vmem:[#allocation7 + $0x20] sm:$0xff]  ;;  %v404_v60 = vperm.slane %v5847_v20, 2 }
 0x315   :  { %v240_v57 = vmul.f32 %v5347_v35, %v239_v53  ;;  %v5915_v53 = vld [vmem:[#allocation7 + $0x18] sm:$0xff] }
 0x316   :  { %426 = vmatpush.msrb.mxu3 %v5896_v44 }
 0x318   :  { %v5353_v54 = vpop.eup %5352  ;;  %427 = vmatpush.msrb.mxu3 %v5899_v45 }
 0x319   :  { %v305_v55 = vmul.f32 %v5353_v54, %v303_v48  ;;  %v242_v56 = vpop.permute.xlu2 %241  ;;  %vm310_vm7 = vweird.f32 %v5353_v54  ;;  %v5355_v32 = vpop.eup %5354  ;;  %v5908_v48 = vld [vmem:[#allocation7 + $0x28] sm:$0xff] }
 0x31a   :  { %262 = vmatpush.msra.mxu2 %v242_v56  ;;  %vm311_vm9 = vmor %vm309_vm8, %vm310_vm7  ;;  %v379_v33 = vmul.f32 32.0, %v5355_v32  ;;  %vm383_vm11 = vweird.f32 %v5355_v32  ;;  %448 = vmatpush.msrb.mxu0 %v5908_v48 }
 0x31b   :  { %v306_v59 = vsub.f32 1.0, %v305_v55  ;;  %5159 = vmatmul.msk.f32.vlgmr.msra.gmra.mxu2 %vm216_vm2, %v240_v57 }
 0x31c   :  { %340 = vmatpush.msrb.mxu2 %v320_v58  ;;  %v380_v34 = vsub.f32 1.0, %v379_v33  ;;  %449 = vmatpush.msrb.mxu0 %v5912_v51 }
 0x31d   :  { %v307_v61 = vmul.f32 %v5353_v54, %v306_v59 }
 0x31e   :  { %v381_v35 = vmul.f32 %v5355_v32, %v380_v34  ;;  %450 = vmatpush.msrb.mxu0 %v5915_v53 }
 0x31f   :  { %v308_v63 = vadd.f32 %v5353_v54, %v307_v61 }
 0x320   :  { %v382_v36 = vadd.f32 %v5355_v32, %v381_v35 }
 0x321   :  { %v312_v7 = vsel %vm311_vm9, %v5353_v54, %v308_v63  ;;  %v406_v63 = vperm.slane %v5847_v20, 3 }
 0x322   :  { %v317_v8 = vsel %vm314_vm10, %v316_v2, %v312_v7  ;;  %v5887_v37 = vsel %vm383_vm11, %v5355_v32, %v382_v36 }
 0x323   :  { %v318_v11 = vmul.f32 %v5349_v40, %v317_v8  ;;  %v5926_v8 = vld [vmem:[#allocation7 + $0x10] sm:$0xff] }
 0x324   :  { %451 = vmatpush.msrb.mxu0 %v5926_v8 }
 0x325   :  { %5162 = vmatmul.msk.f32.vlgmr.msrb.gmra.mxu2 %vm216_vm2, %v318_v11  ;;  %v5929_v11 = vld [vmem:[#allocation7 + $0x8] sm:$0xff] }
 0x326   :  { %452 = vmatpush.msrb.mxu0 %v5929_v11 }
 0x39e   :  { %v264_v18 = vpop.f32.mrf.mxu2 }
 0x3a8   :  { %v342_v22 = vpop.f32.mrf.mxu2 }
 0x3a9   :  { %346 = vrot.lane.b32.xlu0 %v342_v22, %s5711_s13  ;;  %v408_v22 = vperm.slane %v5847_v20, 4 }
 0x41b   :  { %v347_v24 = vpop.permute.xlu0 %346 }
 0x41c   :  { %v349_v25 = vsel %vm190_vm1, %v264_v18, %v347_v24  ;;  %v5932_v18 = vld [vmem:[#allocation7] sm:$0xff] }
 0x41d   :  { %5163 = vmatmul.msk.f32.vlgmr.msrb.gmra.mxu1 %vm162_vm0, %v349_v25  ;;  %453 = vmatpush.msrb.mxu0 %v5932_v18 }
 0x49a   :  { %v371_v27 = vpop.f32.mrf.mxu1 }
 0x49b   :  { %v372_v28 = vadd.f32 %v371_v27, %v350_v26 }
 0x49d   :  { %v374_v29 = vadd.f32 %v372_v28, %v5840_v19  ;;  %v433_v28 = vperm.slane %v5847_v20, 5 }
 0x49f   :  { %v375_v30 = vsel %vm162_vm0, %v374_v29, 0.0 }
 0x4a0   :  { %376 = vadd.xlane.f32.xlu2 %v375_v30 }
 0x513   :  { %v377_v38 = vpop.xlane.xlu2 %376 }
 0x514   :  { %v385_v39 = vmul.f32 %v5887_v37, %v377_v38 }
 0x516   :  { %v386_v40 = vsub.f32 %v374_v29, %v385_v39  ;;  %v5945_v39 = vld [vmem:[#allocation2 + $0x38] sm:$0xff] }
 0x517   :  { %527 = vmatpush.msra.mxu2 %v5945_v39 }
 0x518   :  { %v387_v41 = vmul.f32 %v386_v40, %v386_v40 }
 0x51a   :  { %v388_v19 = vsel %vm162_vm0, %v387_v41, 0.0  ;;  %v5951_v41 = vld [vmem:[#allocation2 + $0x28] sm:$0xff] }
 0x51b   :  { %389 = vadd.xlane.f32.xlu1 %v388_v19  ;;  %v5953_v19 = vld [vmem:[#allocation2 + $0x20] sm:$0xff] }
 0x58e   :  { %v390_v49 = vpop.xlane.xlu1 %389 }
 0x58f   :  { %v391_v50 = vmul.f32 %v390_v49, %v5887_v37 }
 0x591   :  { %v392_v52 = vadd.f32 1e-05, %v391_v50 }
 0x593   :  { %5356 = vrsqrt.f32 %v392_v52  ;;  %vm399_vm13 = vweird.f32 %v392_v52 }
 0x599   :  { %v5357_v54 = vpop.eup %5356 }
 0x59a   :  { %v394_v55 = vmul.f32 %v5357_v54, %v392_v52  ;;  %vm400_vm12 = vweird.f32 %v5357_v54 }
 0x59b   :  { %vm401_vm14 = vmor %vm399_vm13, %vm400_vm12 }
 0x59c   :  { %v395_v56 = vmul.f32 %v5357_v54, %v394_v55 }
 0x59e   :  { %v396_v57 = vmul.f32 0.5, %v395_v56 }
 0x5a0   :  { %v397_v58 = vsub.f32 1.5, %v396_v57 }
 0x5a2   :  { %v398_v59 = vmul.f32 %v5357_v54, %v397_v58 }
 0x5a4   :  { %v402_v61 = vsel %vm401_vm14, %v5357_v54, %v398_v59 }
 0x5a5   :  { %v403_v62 = vmul.f32 %v402_v61, %v386_v40  ;;  %v5948_v40 = vld [vmem:[#allocation2 + $0x30] sm:$0xff]  ;;  %v481_v61 = vperm.slane %v5847_v20, 6 }
 0x5a6   :  { %528 = vmatpush.msra.mxu2 %v5948_v40 }
 0x5a7   :  { %v405_v2 = vmul.f32 %v404_v60, %v403_v62 }
 0x5a8   :  { %529 = vmatpush.msra.mxu2 %v5951_v41 }
 0x5a9   :  { %v407_v7 = vadd.f32 %v406_v63, %v405_v2 }
 0x5aa   :  { %530 = vmatpush.msra.mxu2 %v5953_v19 }
 0x5ab   :  { %5164 = vmatmul.msk.f32.vlgmr.msrb.gmra.mxu3 %vm162_vm0, %v407_v7 }
 0x62e   :  { %v429_v24 = vpop.f32.mrf.mxu3 }
 0x62f   :  { %v430_v25 = vadd.f32 %v429_v24, %v408_v22 }
 0x631   :  { %v432_v27 = vmax.f32 %v430_v25, 0.0 }
 0x633   :  { %5165 = vmatmul.msk.f32.vlgmr.msrb.gmra.mxu0 %vm434_vm15, %v432_v27  ;;  %v5971_v27 = vld [vmem:[%s7247_s8 + $0x8] sm:$0xff] }
 0x6b0   :  { %v455_v29 = vpop.f32.mrf.mxu0 }
 0x6b1   :  { %v456_v30 = vadd.f32 %v455_v29, %v433_v28  ;;  %v511_v29 = vperm.slane %v5971_v27, 0 }
 0x6b3   :  { %v458_v31 = vadd.f32 %v456_v30, %v407_v7  ;;  %v483_v7 = vperm.slane %v5847_v20, 7 }
 0x6b5   :  { %v459_v32 = vsel %vm162_vm0, %v458_v31, 0.0 }
 0x6b6   :  { %460 = vadd.xlane.f32.xlu0 %v459_v32 }
 0x729   :  { %v461_v33 = vpop.xlane.xlu0 %460 }
 0x72a   :  { %v462_v34 = vmul.f32 %v461_v33, %v5887_v37 }
 0x72c   :  { %v463_v35 = vsub.f32 %v458_v31, %v462_v34 }
 0x72e   :  { %v464_v36 = vmul.f32 %v463_v35, %v463_v35 }
 0x730   :  { %v465_v38 = vsel %vm162_vm0, %v464_v36, 0.0 }
 0x731   :  { %466 = vadd.xlane.f32.xlu2 %v465_v38 }
 0x7a4   :  { %v467_v49 = vpop.xlane.xlu2 %466 }
 0x7a5   :  { %v468_v50 = vmul.f32 %v467_v49, %v5887_v37 }
 0x7a7   :  { %v469_v52 = vadd.f32 1e-05, %v468_v50 }
 0x7a9   :  { %5358 = vrsqrt.f32 %v469_v52  ;;  %vm476_vm4 = vweird.f32 %v469_v52 }
 0x7af   :  { %v5359_v54 = vpop.eup %5358 }
 0x7b0   :  { %v471_v55 = vmul.f32 %v5359_v54, %v469_v52  ;;  %vm477_vm3 = vweird.f32 %v5359_v54 }
 0x7b1   :  { %vm478_vm5 = vmor %vm476_vm4, %vm477_vm3 }
 0x7b2   :  { %v472_v56 = vmul.f32 %v5359_v54, %v471_v55 }
 0x7b4   :  { %v473_v57 = vmul.f32 0.5, %v472_v56 }
 0x7b6   :  { %v474_v58 = vsub.f32 1.5, %v473_v57 }
 0x7b8   :  { %v475_v59 = vmul.f32 %v5359_v54, %v474_v58  ;;  %v5177_v58 = vld [vmem:[%s7239_s0 + $0x8] sm:$0xff] }
 0x7ba   :  { %v479_v62 = vsel %vm478_vm5, %v5359_v54, %v475_v59 }
 0x7bb   :  { %v480_v2 = vmul.f32 %v479_v62, %v463_v35 }
 0x7bd   :  { %v482_v24 = vmul.f32 %v481_v61, %v480_v2 }
 0x7bf   :  { %v5964_v25 = vadd.f32 %v483_v7, %v482_v24 }
 0x7c1   :  { %5167 = vmatmul.msk.f32.vlgmr.msra.gmra.mxu2 %vm162_vm0, %v5964_v25 }
 0x844   :  { %v532_v30 = vpop.f32.mrf.mxu2 }
 0x845   :  { %v533_v31 = vadd.f32 %v532_v30, %v511_v29 }
 0x847   :  { %537 = vrot.lane.b32.xlu2 %v533_v31, %s5706_s28  ;;  %616 = vrot.lane.b32.xlu1 %v533_v31, %s5708_s30  ;;  %v535_v32 = vmul.f32 0.25, %v533_v31 }
 0x849   :  { %614 = vrot.lane.b32.xlu0 %v535_v32, %s5707_s29 }
 0x8a1   :  { %v538_v33 = vpop.permute.xlu2 %537 }
 0x8a2   :  { %5168 = vmatpush.xpose.msk.msra.mxu1 %vm190_vm1, %v538_v33 }
 0x8a5   :  { %5169 = vmatmul.msk.f32.vlgmr.msra.gmra.mxu1 %vm190_vm1, %v535_v32 }
 0x8b9   :  { %v617_v34 = vpop.permute.xlu1 %616 }
 0x8ba   :  { %5171 = vmatpush.xpose.msk.msrb.mxu2 %vm190_vm1, %v617_v34 }
 0x8bb   :  { %v615_v35 = vpop.permute.xlu0 %614 }
 0x8bd   :  { %5172 = vmatmul.msk.f32.vlgmr.msrb.gmra.mxu2 %vm190_vm1, %v615_v35 }
 0x922   :  { %v561_v36 = vpop.f32.mrf.mxu1 }
 0x923   :  { %v564_v38 = vsel %vm216_vm2, %v561_v36, -inf }
 0x924   :  { %565 = vmax.xlane.f32.xlu2 %v564_v38 }
 0x93c   :  { %835 = vperm.xlu2 %5340, %v5177_v58  }
 0x940   :  { %v639_v49 = vpop.f32.mrf.mxu2 }
 0x941   :  { %v642_v50 = vsel %vm216_vm2, %v639_v49, -inf }
 0x942   :  { %643 = vmax.xlane.f32.xlu0 %v642_v50 }
 0x944   :  { %5341 = vset.pattern.permute.xlu2 %v5704_v0 }
 0x956   :  { %666 = vrot.lane.b32.xlu0 %v533_v31, %s5709_s12 }
 0x997   :  { %v566_v52 = vpop.xlane.xlu2 %565 }
 0x998   :  { %v567_v54 = vsub.f32 %v561_v36, %v566_v52 }
 0x99a   :  { %v568_v55 = vmul.f32 1.442695, %v567_v54 }
 0x99c   :  { %5360 = vpow2.f32 %v568_v55 }
 0x9a2   :  { %v5986_v56 = vpop.eup %5360 }
 0x9a3   :  { %v570_v57 = vsel %vm216_vm2, %v5986_v56, 0.0 }
 0x9a4   :  { %571 = vadd.xlane.f32.xlu0 %v570_v57 }
 0x9b5   :  { %v644_v59 = vpop.xlane.xlu0 %643 }
 0x9b6   :  { %v645_v62 = vsub.f32 %v639_v49, %v644_v59  ;;  %v836_v59 = vpop.permute.xlu2 %835 }
 0x9b8   :  { %v646_v2 = vmul.f32 1.442695, %v645_v62 }
 0x9ba   :  { %5362 = vpow2.f32 %v646_v2 }
 0x9c0   :  { %v5363_v24 = vpop.eup %5362 }
 0x9c1   :  { %v648_v30 = vsel %vm216_vm2, %v5363_v24, 0.0 }
 0x9c2   :  { %649 = vadd.xlane.f32.xlu1 %v648_v30  ;;  %v838_v30 = vmul.f32 %v836_v59, %v5821_v10 }
 0x9c8   :  { %v667_v32 = vpop.permute.xlu0 %666 }
 0x9c9   :  { %687 = vmatpush.msrb.mxu1 %v667_v32 }
 0x9cb   :  { %880 = vmatpush.msra.mxu1 %v5804_v3 }
 0x9cd   :  { %881 = vmatpush.msra.mxu1 %v5807_v4 }
 0x9cf   :  { %882 = vmatpush.msra.mxu1 %v5810_v5 }
 0x9d1   :  { %883 = vmatpush.msra.mxu1 %v5812_v6 }
 0x9db   :  { %830 = vperm.xlu1 %5339, %v5177_v58  }
 0x9e3   :  { %588 = vrot.lane.b32.xlu1 %v533_v31, %s5710_s5 }
 0xa17   :  { %v572_v33 = vpop.xlane.xlu0 %571 }
 0xa18   :  { %5364 = vrcp.f32 %v572_v33  ;;  %v584_v2 = vand.u32 2147483648, %v572_v33  ;;  %vm578_vm11 = vweird.f32 %v572_v33  ;;  %v582_v32 = vand.u32 2147483647, %v572_v33 }
 0xa1a   :  { %vm583_vm13 = vcmp.eq.f32.partialorder %v582_v32, 8.507059e+37 }
 0xa1e   :  { %v5365_v35 = vpop.eup %5364 }
 0xa1f   :  { %v574_v49 = vmul.f32 %v5365_v35, %v572_v33  ;;  %vm579_vm10 = vweird.f32 %v5365_v35 }
 0xa20   :  { %vm580_vm12 = vmor %vm578_vm11, %vm579_vm10 }
 0xa21   :  { %v575_v54 = vsub.f32 1.0, %v574_v49 }
 0xa23   :  { %v576_v57 = vmul.f32 %v5365_v35, %v575_v54 }
 0xa25   :  { %v577_v62 = vadd.f32 %v5365_v35, %v576_v57 }
 0xa27   :  { %v581_v49 = vsel %vm580_vm12, %v5365_v35, %v577_v62 }
 0xa35   :  { %v650_v34 = vpop.xlane.xlu1 %649 }
 0xa36   :  { %5366 = vrcp.f32 %v650_v34  ;;  %v662_v52 = vand.u32 2147483648, %v650_v34  ;;  %v660_v4 = vand.u32 2147483647, %v650_v34  ;;  %vm656_vm7 = vweird.f32 %v650_v34 }
 0xa38   :  { %v663_v6 = vor.u32 1.1754944e-38, %v662_v52  ;;  %vm661_vm9 = vcmp.eq.f32.partialorder %v660_v4, 8.507059e+37 }
 0xa3c   :  { %v5367_v36 = vpop.eup %5366 }
 0xa3d   :  { %v652_v38 = vmul.f32 %v5367_v36, %v650_v34  ;;  %vm657_vm6 = vweird.f32 %v5367_v36 }
 0xa3e   :  { %vm658_vm8 = vmor %vm656_vm7, %vm657_vm6 }
 0xa3f   :  { %v653_v50 = vsub.f32 1.0, %v652_v38 }
 0xa41   :  { %v654_v3 = vmul.f32 %v5367_v36, %v653_v50  ;;  %v585_v50 = vor.u32 1.1754944e-38, %v584_v2 }
 0xa43   :  { %v655_v5 = vadd.f32 %v5367_v36, %v654_v3  ;;  %v586_v3 = vsel %vm583_vm13, %v585_v50, %v581_v49 }
 0xa44   :  { %v587_v33 = vmul.f32 %v5986_v56, %v586_v3  ;;  %v6025_v56 = vld [vmem:[#allocation4 + $0x38] sm:$0xff] }
 0xa45   :  { %v659_v55 = vsel %vm658_vm8, %v5367_v36, %v655_v5  ;;  %v6004_v36 = vperm.slane %v5826_v12, 1 }
 0xa46   :  { %v664_v31 = vsel %vm661_vm9, %v663_v6, %v659_v55  ;;  %v6027_v6 = vld [vmem:[#allocation4 + $0x30] sm:$0xff]  ;;  %v6034_v55 = vld [vmem:[#allocation4 + $0x20] sm:$0xff] }
 0xa47   :  { %v665_v58 = vmul.f32 %v5363_v24, %v664_v31 }
 0xa49   :  { %5173 = vmatmul.msk.f32.vlgmr.msrb.gmra.mxu1 %vm216_vm2, %v665_v58 }
 0xa4d   :  { %v831_v38 = vpop.permute.xlu1 %830 }
 0xa4e   :  { %v833_v34 = vmul.f32 %v831_v38, %v5819_v9 }
 0xa50   :  { %v839_v24 = vadd.f32 %v838_v30, %v833_v34 }
 0xa52   :  { %v840_v52 = vadd.f32 %v5833_v15, %v839_v24 }
 0xa54   :  { %v6008_v4 = vadd.f32 %v6004_v36, %v840_v52 }
 0xa55   :  { %v589_v54 = vpop.permute.xlu1 %588 }
 0xa56   :  { %609 = vmatpush.msra.mxu3 %v589_v54  ;;  %5178 = vmatmul.msk.f32.vlgmr.msra.gmra.mxu1 %vm162_vm0, %v6008_v4 }
 0xa57   :  { %5170 = vmatmul.msk.f32.vlgmr.msra.gmra.mxu3 %vm216_vm2, %v587_v33 }
 0xa58   :  { %713 = vmatpush.msrb.mxu3 %v6025_v56 }
 0xa5a   :  { %714 = vmatpush.msrb.mxu3 %v6027_v6 }
 0xac6   :  { %v689_v12 = vpop.f32.mrf.mxu1 }
 0xad3   :  { %v885_v35 = vpop.f32.mrf.mxu1 }
 0xad4   :  { %v6016_v5 = vadd.f32 %v885_v35, %v161_v21  ;;  %v6030_v21 = vld [vmem:[#allocation4 + $0x28] sm:$0xff] }
 0xad5   :  { %715 = vmatpush.msrb.mxu3 %v6030_v21 }
 0xad6   :  { %969 = vrot.lane.b32.xlu2 %v6016_v5, %s5708_s30  ;;  %v888_v15 = vmul.f32 0.25, %v6016_v5 }
 0xad7   :  { %716 = vmatpush.msrb.mxu3 %v6034_v55 }
 0xad8   :  { %967 = vrot.lane.b32.xlu1 %v888_v15, %s5707_s29 }
 0xada   :  { %v611_v57 = vpop.f32.mrf.mxu3 }
 0xade   :  { %693 = vrot.lane.b32.xlu2 %v689_v12, %s5711_s13 }
 0xae0   :  { %890 = vrot.lane.b32.xlu1 %v6016_v5, %s5706_s28 }
 0xb30   :  { %v970_v31 = vpop.permute.xlu2 %969 }
 0xb31   :  { %5182 = vmatpush.xpose.msk.msrb.mxu1 %vm190_vm1, %v970_v31 }
 0xb35   :  { %1138 = vmatpush.msra.mxu1 %v5903_v46 }
 0xb37   :  { %1139 = vmatpush.msra.mxu1 %v5905_v47 }
 0xb38   :  { %v694_v58 = vpop.permute.xlu2 %693 }
 0xb39   :  { %1140 = vmatpush.msra.mxu1 %v5908_v48  ;;  %v696_v59 = vsel %vm190_vm1, %v611_v57, %v694_v58  ;;  %v697_v48 = vperm.slane %v5971_v27, 1  ;;  %v499_v57 = vld [vmem:[#allocation6 + $0x38] sm:$0xff]  ;;  %v498_v58 = vld [vmem:[#allocation6 + $0x30] sm:$0xff] }
 0xb3a   :  { %5174 = vmatmul.msk.f32.vlgmr.msrb.gmra.mxu3 %vm162_vm0, %v696_v59  ;;  %764 = vmatpush.msra.mxu0 %v499_v57  ;;  %v497_v59 = vld [vmem:[#allocation6 + $0x28] sm:$0xff] }
 0xb3b   :  { %1141 = vmatpush.msra.mxu1 %v5912_v51 }
 0xb3c   :  { %765 = vmatpush.msra.mxu0 %v498_v58 }
 0xb3d   :  { %1142 = vmatpush.msra.mxu1 %v5915_v53 }
 0xb3e   :  { %766 = vmatpush.msra.mxu0 %v497_v59 }
 0xb3f   :  { %1143 = vmatpush.msra.mxu1 %v5926_v8 }
 0xb41   :  { %1144 = vmatpush.msra.mxu1 %v5929_v11 }
 0xb43   :  { %1145 = vmatpush.msra.mxu1 %v5932_v18 }
 0xb4a   :  { %v968_v46 = vpop.permute.xlu1 %967 }
 0xb4b   :  { %5183 = vmatmul.msk.f32.vlgmr.msrb.gmra.mxu1 %vm190_vm1, %v968_v46  ;;  %v496_v46 = vld [vmem:[#allocation6 + $0x20] sm:$0xff] }
 0xb4c   :  { %1451 = vmatpush.msrb.mxu1 %v499_v57  ;;  %767 = vmatpush.msra.mxu0 %v496_v46  ;;  %v746_v57 = vperm.slane %v5971_v27, 3 }
 0xb4e   :  { %1452 = vmatpush.msrb.mxu1 %v498_v58  ;;  %v6086_v58 = vld [vmem:[#allocation7 + $0x58] sm:$0xff] }
 0xb50   :  { %1453 = vmatpush.msrb.mxu1 %v497_v59 }
 0xb52   :  { %v891_v47 = vpop.permute.xlu1 %890  ;;  %1454 = vmatpush.msrb.mxu1 %v496_v46 }
 0xb53   :  { %5179 = vmatpush.xpose.msk.msra.mxu3 %vm190_vm1, %v891_v47 }
 0xb56   :  { %5180 = vmatmul.msk.f32.vlgmr.msra.gmra.mxu3 %vm190_vm1, %v888_v15 }
 0xbbd   :  { %v718_v51 = vpop.f32.mrf.mxu3 }
 0xbbe   :  { %v719_v53 = vadd.f32 %v718_v51, %v697_v48 }
 0xbc0   :  { %v721_v8 = vadd.f32 %v719_v53, %v5964_v25 }
 0xbc2   :  { %v722_v11 = vsel %vm162_vm0, %v721_v8, 0.0 }
 0xbc3   :  { %723 = vadd.xlane.f32.xlu1 %v722_v11 }
 0xbc8   :  { %v992_v18 = vpop.f32.mrf.mxu1 }
 0xbc9   :  { %v995_v62 = vsel %vm216_vm2, %v992_v18, -inf }
 0xbca   :  { %996 = vmax.xlane.f32.xlu2 %v995_v62 }
 0xbd9   :  { %v914_v2 = vpop.f32.mrf.mxu3 }
 0xbda   :  { %v917_v30 = vsel %vm216_vm2, %v914_v2, -inf }
 0xbdb   :  { %918 = vmax.xlane.f32.xlu0 %v917_v30  ;;  %v6073_v30 = vld [vmem:[#allocation7 + $0x78] sm:$0xff] }
 0xbdc   :  { %785 = vmatpush.msra.mxu2 %v6073_v30 }
 0xc36   :  { %v724_v32 = vpop.xlane.xlu1 %723 }
 0xc37   :  { %v725_v38 = vmul.f32 %v724_v32, %v5887_v37  ;;  %v6075_v32 = vld [vmem:[#allocation7 + $0x70] sm:$0xff] }
 0xc38   :  { %786 = vmatpush.msra.mxu2 %v6075_v32 }
 0xc39   :  { %v726_v34 = vsub.f32 %v721_v8, %v725_v38 }
 0xc3b   :  { %v727_v49 = vmul.f32 %v726_v34, %v726_v34 }
 0xc3d   :  { %v997_v50 = vpop.xlane.xlu2 %996  ;;  %v728_v24 = vsel %vm162_vm0, %v727_v49, 0.0 }
 0xc3e   :  { %v998_v25 = vsub.f32 %v992_v18, %v997_v50  ;;  %729 = vadd.xlane.f32.xlu2 %v728_v24  ;;  %v6078_v50 = vld [vmem:[#allocation7 + $0x68] sm:$0xff] }
 0xc3f   :  { %787 = vmatpush.msra.mxu2 %v6078_v50 }
 0xc40   :  { %v999_v52 = vmul.f32 1.442695, %v998_v25 }
 0xc42   :  { %5368 = vpow2.f32 %v999_v52  ;;  %v744_v52 = vperm.slane %v5971_v27, 2 }
 0xc48   :  { %v6060_v3 = vpop.eup %5368 }
 0xc49   :  { %v1001_v54 = vsel %vm216_vm2, %v6060_v3, 0.0 }
 0xc4a   :  { %1002 = vadd.xlane.f32.xlu0 %v1001_v54  ;;  %v6082_v54 = vld [vmem:[#allocation7 + $0x60] sm:$0xff] }
 0xc4b   :  { %788 = vmatpush.msra.mxu2 %v6082_v54 }
 0xc4d   :  { %789 = vmatpush.msra.mxu2 %v6086_v58 }
 0xc4e   :  { %v919_v33 = vpop.xlane.xlu0 %918 }
 0xc4f   :  { %v920_v12 = vsub.f32 %v914_v2, %v919_v33 }
 0xc51   :  { %v921_v35 = vmul.f32 1.442695, %v920_v12 }
 0xc53   :  { %5370 = vpow2.f32 %v921_v35 }
 0xc56   :  { %941 = vrot.lane.b32.xlu2 %v6016_v5, %s5710_s5 }
 0xc59   :  { %v6066_v15 = vpop.eup %5370 }
 0xc5a   :  { %v923_v31 = vsel %vm216_vm2, %v6066_v15, 0.0 }
 0xc5b   :  { %924 = vadd.xlane.f32.xlu1 %v923_v31 }
 0xc5e   :  { %1019 = vrot.lane.b32.xlu0 %v6016_v5, %s5709_s12 }
 0xcb1   :  { %v730_v47 = vpop.xlane.xlu2 %729 }
 0xcb2   :  { %v731_v51 = vmul.f32 %v730_v47, %v5887_v37 }
 0xcb4   :  { %v732_v53 = vadd.f32 1e-05, %v731_v51 }
 0xcb6   :  { %5372 = vrsqrt.f32 %v732_v53  ;;  %vm739_vm3 = vweird.f32 %v732_v53 }
 0xcb9   :  { %v942_v8 = vpop.permute.xlu2 %941 }
 0xcba   :  { %962 = vmatpush.msrb.mxu0 %v942_v8 }
 0xcbc   :  { %v5373_v5 = vpop.eup %5372 }
 0xcbd   :  { %v734_v11 = vmul.f32 %v5373_v5, %v732_v53  ;;  %v1003_v18 = vpop.xlane.xlu0 %1002  ;;  %vm740_vm14 = vweird.f32 %v5373_v5 }
 0xcbe   :  { %5374 = vrcp.f32 %v1003_v18  ;;  %vm741_vm4 = vmor %vm739_vm3, %vm740_vm14  ;;  %v1015_v31 = vand.u32 2147483648, %v1003_v18  ;;  %v1013_v46 = vand.u32 2147483647, %v1003_v18  ;;  %vm1009_vm6 = vweird.f32 %v1003_v18 }
 0xcbf   :  { %v735_v62 = vmul.f32 %v5373_v5, %v734_v11 }
 0xcc0   :  { %v1016_v53 = vor.u32 1.1754944e-38, %v1015_v31  ;;  %vm1014_vm8 = vcmp.eq.f32.partialorder %v1013_v46, 8.507059e+37 }
 0xcc1   :  { %v736_v2 = vmul.f32 0.5, %v735_v62 }
 0xcc3   :  { %v737_v38 = vsub.f32 1.5, %v736_v2 }
 0xcc4   :  { %v5375_v49 = vpop.eup %5374 }
 0xcc5   :  { %v738_v24 = vmul.f32 %v5373_v5, %v737_v38  ;;  %v1005_v25 = vmul.f32 %v5375_v49, %v1003_v18  ;;  %vm1010_vm5 = vweird.f32 %v5375_v49 }
 0xcc6   :  { %vm1011_vm7 = vmor %vm1009_vm6, %vm1010_vm5 }
 0xcc7   :  { %v742_v33 = vsel %vm741_vm4, %v5373_v5, %v738_v24  ;;  %v1006_v12 = vsub.f32 1.0, %v1005_v25 }
 0xcc8   :  { %v743_v35 = vmul.f32 %v742_v33, %v726_v34 }
 0xcc9   :  { %v1007_v59 = vmul.f32 %v5375_v49, %v1006_v12 }
 0xcca   :  { %v745_v47 = vmul.f32 %v744_v52, %v743_v35 }
 0xccb   :  { %v1008_v51 = vadd.f32 %v5375_v49, %v1007_v59 }
 0xccc   :  { %v6094_v34 = vadd.f32 %v746_v57, %v745_v47 }
 0xccd   :  { %v1012_v8 = vsel %vm1011_vm7, %v5375_v49, %v1008_v51 }
 0xcce   :  { %5175 = vmatmul.msk.f32.vlgmr.msra.gmra.mxu0 %vm162_vm0, %v6094_v34  ;;  %v925_v5 = vpop.xlane.xlu1 %924  ;;  %v1017_v11 = vsel %vm1014_vm8, %v1016_v53, %v1012_v8 }
 0xccf   :  { %5376 = vrcp.f32 %v925_v5  ;;  %1066 = vmatpush.msra.mxu0 %v5867_v13  ;;  %v1018_v18 = vmul.f32 %v6060_v3, %v1017_v11  ;;  %v937_v49 = vand.u32 2147483648, %v925_v5  ;;  %vm931_vm10 = vweird.f32 %v925_v5 }
 0xcd0   :  { %v1020_v62 = vpop.permute.xlu0 %1019 }
 0xcd1   :  { %1040 = vmatpush.msrb.mxu3 %v1020_v62  ;;  %1067 = vmatpush.msra.mxu0 %v5869_v14  ;;  %v935_v14 = vand.u32 2147483647, %v925_v5 }
 0xcd2   :  { %5184 = vmatmul.msk.f32.vlgmr.msrb.gmra.mxu3 %vm216_vm2, %v1018_v18 }
 0xcd3   :  { %1068 = vmatpush.msra.mxu0 %v5872_v16  ;;  %1214 = vmatpush.msra.mxu3 %v5945_v39  ;;  %v938_v16 = vor.u32 1.1754944e-38, %v937_v49  ;;  %vm936_vm12 = vcmp.eq.f32.partialorder %v935_v14, 8.507059e+37 }
 0xcd5   :  { %v5377_v2 = vpop.eup %5376  ;;  %1069 = vmatpush.msra.mxu0 %v5877_v23  ;;  %1215 = vmatpush.msra.mxu3 %v5948_v40  ;;  %v6110_v40 = vld [vmem:[#allocation7 + $0x50] sm:$0xff] }
 0xcd6   :  { %v927_v38 = vmul.f32 %v5377_v2, %v925_v5  ;;  %vm932_vm9 = vweird.f32 %v5377_v2  ;;  %790 = vmatpush.msra.mxu2 %v6110_v40 }
 0xcd7   :  { %1216 = vmatpush.msra.mxu3 %v5951_v41  ;;  %vm933_vm11 = vmor %vm931_vm10, %vm932_vm9  ;;  %v6113_v41 = vld [vmem:[#allocation7 + $0x48] sm:$0xff] }
 0xcd8   :  { %v928_v13 = vsub.f32 1.0, %v927_v38  ;;  %791 = vmatpush.msra.mxu2 %v6113_v41 }
 0xcd9   :  { %1217 = vmatpush.msra.mxu3 %v5953_v19  ;;  %v6116_v19 = vld [vmem:[#allocation7 + $0x40] sm:$0xff] }
 0xcda   :  { %v929_v3 = vmul.f32 %v5377_v2, %v928_v13  ;;  %792 = vmatpush.msra.mxu2 %v6116_v19 }
 0xcdc   :  { %v930_v24 = vadd.f32 %v5377_v2, %v929_v3  ;;  %1117 = vmatpush.msrb.mxu2 %v5891_v42 }
 0xcde   :  { %v934_v39 = vsel %vm933_vm11, %v5377_v2, %v930_v24  ;;  %1118 = vmatpush.msrb.mxu2 %v5894_v43 }
 0xcdf   :  { %v939_v25 = vsel %vm936_vm12, %v938_v16, %v934_v39 }
 0xce0   :  { %v940_v23 = vmul.f32 %v6066_v15, %v939_v25  ;;  %1119 = vmatpush.msrb.mxu2 %v5896_v44  ;;  %v748_v15 = vperm.slane %v5971_v27, 4 }
 0xce2   :  { %5181 = vmatmul.msk.f32.vlgmr.msrb.gmra.mxu0 %vm216_vm2, %v940_v23  ;;  %1120 = vmatpush.msrb.mxu2 %v5899_v45 }
 0xd4b   :  { %v769_v33 = vpop.f32.mrf.mxu0 }
 0xd4c   :  { %v770_v12 = vadd.f32 %v769_v33, %v748_v15 }
 0xd4e   :  { %v772_v35 = vmax.f32 %v770_v12, 0.0 }
 0xd50   :  { %5176 = vmatmul.msk.f32.vlgmr.msra.gmra.mxu2 %vm434_vm15, %v772_v35 }
 0xd55   :  { %v1042_v31 = vpop.f32.mrf.mxu3 }
 0xd56   :  { %1046 = vrot.lane.b32.xlu0 %v1042_v31, %s5711_s13 }
 0xd5f   :  { %v964_v59 = vpop.f32.mrf.mxu0 }
 0xdc8   :  { %v1047_v42 = vpop.permute.xlu0 %1046 }
 0xdc9   :  { %v1049_v43 = vsel %vm190_vm1, %v964_v59, %v1047_v42 }
 0xdca   :  { %5185 = vmatmul.msk.f32.vlgmr.msra.gmra.mxu0 %vm162_vm0, %v1049_v43 }
 0xdd3   :  { %v6142_v25 = vpop.f32.mrf.mxu2 }
 0xe47   :  { %v1071_v44 = vpop.f32.mrf.mxu0 }
 0xe48   :  { %v1072_v45 = vadd.f32 %v1071_v44, %v350_v26 }
 0xe4a   :  { %v1074_v46 = vadd.f32 %v1072_v45, %v6008_v4 }
 0xe4c   :  { %v1075_v47 = vsel %vm162_vm0, %v1074_v46, 0.0 }
 0xe4d   :  { %1076 = vadd.xlane.f32.xlu1 %v1075_v47 }
 0xec0   :  { %v1077_v51 = vpop.xlane.xlu1 %1076 }
 0xec1   :  { %v1078_v53 = vmul.f32 %v1077_v51, %v5887_v37 }
 0xec3   :  { %v1079_v8 = vsub.f32 %v1074_v46, %v1078_v53 }
 0xec5   :  { %v1080_v5 = vmul.f32 %v1079_v8, %v1079_v8 }
 0xec7   :  { %v1081_v11 = vsel %vm162_vm0, %v1080_v5, 0.0 }
 0xec8   :  { %1082 = vadd.xlane.f32.xlu0 %v1081_v11 }
 0xf3b   :  { %v1083_v62 = vpop.xlane.xlu0 %1082 }
 0xf3c   :  { %v1084_v18 = vmul.f32 %v1083_v62, %v5887_v37 }
 0xf3e   :  { %v1085_v2 = vadd.f32 1e-05, %v1084_v18 }
 0xf40   :  { %5378 = vrsqrt.f32 %v1085_v2  ;;  %vm1092_vm14 = vweird.f32 %v1085_v2 }
 0xf46   :  { %v5379_v38 = vpop.eup %5378 }
 0xf47   :  { %v1087_v26 = vmul.f32 %v5379_v38, %v1085_v2  ;;  %vm1093_vm13 = vweird.f32 %v5379_v38 }
 0xf48   :  { %vm1094_vm3 = vmor %vm1092_vm14, %vm1093_vm13 }
 0xf49   :  { %v1088_v13 = vmul.f32 %v5379_v38, %v1087_v26 }
 0xf4b   :  { %v1089_v4 = vmul.f32 0.5, %v1088_v13 }
 0xf4d   :  { %v1090_v49 = vsub.f32 1.5, %v1089_v4 }
 0xf4f   :  { %v1091_v3 = vmul.f32 %v5379_v38, %v1090_v49 }
 0xf51   :  { %v1095_v14 = vsel %vm1094_vm3, %v5379_v38, %v1091_v3 }
 0xf52   :  { %v1096_v24 = vmul.f32 %v1095_v14, %v1079_v8 }
 0xf54   :  { %v1098_v16 = vmul.f32 %v1096_v24, %v404_v60 }
 0xf56   :  { %v1100_v39 = vadd.f32 %v1098_v16, %v406_v63 }
 0xf58   :  { %5186 = vmatmul.msk.f32.vlgmr.msrb.gmra.mxu2 %vm162_vm0, %v1100_v39 }
 0xfdb   :  { %v1122_v23 = vpop.f32.mrf.mxu2 }
 0xfdc   :  { %v1123_v33 = vadd.f32 %v1122_v23, %v408_v22 }
 0xfde   :  { %v1125_v12 = vmax.f32 %v1123_v33, 0.0 }
 0xfe0   :  { %5187 = vmatmul.msk.f32.vlgmr.msra.gmra.mxu1 %vm434_vm15, %v1125_v12  ;;  %v6192_v12 = vld [vmem:[#allocation2 + $0x58] sm:$0xff] }
0x105d   :  { %v1147_v35 = vpop.f32.mrf.mxu1 }
0x105e   :  { %v1148_v31 = vadd.f32 %v1147_v35, %v433_v28 }
0x1060   :  { %v1150_v59 = vadd.f32 %v1148_v31, %v1100_v39 }
0x1062   :  { %v1151_v60 = vsel %vm162_vm0, %v1150_v59, 0.0 }
0x1063   :  { %1152 = vadd.xlane.f32.xlu1 %v1151_v60 }
0x10d6   :  { %v1153_v63 = vpop.xlane.xlu1 %1152 }
0x10d7   :  { %v1154_v42 = vmul.f32 %v1153_v63, %v5887_v37 }
0x10d9   :  { %v1155_v43 = vsub.f32 %v1150_v59, %v1154_v42 }
0x10db   :  { %v1156_v44 = vmul.f32 %v1155_v43, %v1155_v43 }
0x10dd   :  { %v1157_v45 = vsel %vm162_vm0, %v1156_v44, 0.0 }
0x10de   :  { %1158 = vadd.xlane.f32.xlu1 %v1157_v45 }
0x1151   :  { %v1159_v22 = vpop.xlane.xlu1 %1158 }
0x1152   :  { %v1160_v46 = vmul.f32 %v1159_v22, %v5887_v37 }
0x1154   :  { %v1161_v47 = vadd.f32 1e-05, %v1160_v46 }
0x1156   :  { %5380 = vrsqrt.f32 %v1161_v47  ;;  %vm1168_vm5 = vweird.f32 %v1161_v47 }
0x115c   :  { %v5381_v51 = vpop.eup %5380 }
0x115d   :  { %v1163_v53 = vmul.f32 %v5381_v51, %v1161_v47  ;;  %vm1169_vm4 = vweird.f32 %v5381_v51 }
0x115e   :  { %vm1170_vm6 = vmor %vm1168_vm5, %vm1169_vm4 }
0x115f   :  { %v1164_v28 = vmul.f32 %v5381_v51, %v1163_v53 }
0x1161   :  { %v1165_v8 = vmul.f32 0.5, %v1164_v28 }
0x1163   :  { %v1166_v5 = vsub.f32 1.5, %v1165_v8 }
0x1165   :  { %v1167_v11 = vmul.f32 %v5381_v51, %v1166_v5  ;;  %v6210_v5 = vld [vmem:[%s7241_s2] ss:$0 sm:$0xff] }
0x1167   :  { %v1171_v62 = vsel %vm1170_vm6, %v5381_v51, %v1167_v11 }
0x1168   :  { %v1172_v18 = vmul.f32 %v1171_v62, %v1155_v43 }
0x116a   :  { %v1174_v2 = vmul.f32 %v1172_v18, %v481_v61 }
0x116c   :  { %v6157_v38 = vadd.f32 %v1174_v2, %v483_v7 }
0x116e   :  { %5189 = vmatmul.msk.f32.vlgmr.msra.gmra.mxu3 %vm162_vm0, %v6157_v38 }
0x11f1   :  { %v1219_v26 = vpop.f32.mrf.mxu3 }
0x11f2   :  { %v1220_v13 = vadd.f32 %v1219_v26, %v511_v29 }
0x11f4   :  { %1353 = vrot.lane.b32.xlu0 %v1220_v13, %s5709_s12  ;;  %1303 = vrot.lane.b32.xlu2 %v1220_v13, %s5708_s30  ;;  %v1222_v4 = vmul.f32 0.25, %v1220_v13 }
0x11f6   :  { %1301 = vrot.lane.b32.xlu1 %v1222_v4, %s5707_s29 }
0x11fc   :  { %1224 = vrot.lane.b32.xlu2 %v1220_v13, %s5706_s28 }
0x124e   :  { %v1304_v61 = vpop.permute.xlu2 %1303 }
0x124f   :  { %5193 = vmatpush.xpose.msk.msrb.mxu3 %vm190_vm1, %v1304_v61 }
0x1253   :  { %1472 = vmatpush.msra.mxu3 %v6073_v30 }
0x1255   :  { %1473 = vmatpush.msra.mxu3 %v6075_v32 }
0x1256   :  { %v1225_v20 = vpop.permute.xlu2 %1224 }
0x1257   :  { %1474 = vmatpush.msra.mxu3 %v6078_v50  ;;  %5190 = vmatpush.xpose.msk.msrb.mxu0 %vm190_vm1, %v1225_v20 }
0x1259   :  { %1475 = vmatpush.msra.mxu3 %v6082_v54 }
0x125a   :  { %5191 = vmatmul.msk.f32.vlgmr.msrb.gmra.mxu0 %vm190_vm1, %v1222_v4 }
0x125b   :  { %1476 = vmatpush.msra.mxu3 %v6086_v58  ;;  %v5199_v58 = vld [vmem:[%s7239_s0 + $0x10] sm:$0xff] }
0x125d   :  { %1477 = vmatpush.msra.mxu3 %v6110_v40 }
0x125f   :  { %1478 = vmatpush.msra.mxu3 %v6113_v41 }
0x1261   :  { %1479 = vmatpush.msra.mxu3 %v6116_v19 }
0x1266   :  { %v1354_v7 = vpop.permute.xlu0 %1353 }
0x1267   :  { %1374 = vmatpush.msra.mxu0 %v1354_v7 }
0x1268   :  { %v1302_v29 = vpop.permute.xlu1 %1301 }
0x1269   :  { %5194 = vmatmul.msk.f32.vlgmr.msrb.gmra.mxu3 %vm190_vm1, %v1302_v29  ;;  %1571 = vmatpush.msrb.mxu0 %v6192_v12 }
0x12d7   :  { %v1248_v30 = vpop.f32.mrf.mxu0 }
0x12d8   :  { %v1251_v32 = vsel %vm216_vm2, %v1248_v30, -inf }
0x12d9   :  { %1252 = vmax.xlane.f32.xlu1 %v1251_v32 }
0x12ec   :  { %v1326_v50 = vpop.f32.mrf.mxu3 }
0x12ed   :  { %v1329_v54 = vsel %vm216_vm2, %v1326_v50, -inf }
0x12ee   :  { %1330 = vmax.xlane.f32.xlu2 %v1329_v54 }
0x12f2   :  { %1275 = vrot.lane.b32.xlu1 %v1220_v13, %s5710_s5 }
0x1306   :  { %1517 = vperm.xlu2 %5341, %v5199_v58  }
0x130e   :  { %5342 = vset.pattern.permute.xlu2 %v7251_v1 }
0x134c   :  { %v1253_v40 = vpop.xlane.xlu1 %1252 }
0x134d   :  { %v1254_v16 = vsub.f32 %v1248_v30, %v1253_v40 }
0x134f   :  { %v1255_v39 = vmul.f32 1.442695, %v1254_v16 }
0x1361   :  { %v1331_v41 = vpop.xlane.xlu2 %1330 }
0x1362   :  { %v1332_v19 = vsub.f32 %v1326_v50, %v1331_v41 }
0x1364   :  { %v1333_v49 = vmul.f32 1.442695, %v1332_v19  ;;  %v1276_v3 = vpop.permute.xlu1 %1275 }
0x1365   :  { %1296 = vmatpush.msra.mxu2 %v1276_v3 }
0x1366   :  { %5382 = vpow2.f32 %v1333_v49 }
0x1367   :  { %1400 = vmatpush.msrb.mxu2 %v6025_v56  ;;  %5384 = vpow2.f32 %v1255_v39  ;;  %v6195_v56 = vld [vmem:[#allocation2 + $0x50] sm:$0xff] }
0x1368   :  { %1572 = vmatpush.msrb.mxu0 %v6195_v56 }
0x1369   :  { %1401 = vmatpush.msrb.mxu2 %v6027_v6  ;;  %v6198_v6 = vld [vmem:[#allocation2 + $0x48] sm:$0xff]  ;;  %v1518_v45 = vpop.permute.xlu2 %1517 }
0x136a   :  { %1573 = vmatpush.msrb.mxu0 %v6198_v6  ;;  %v1520_v47 = vmul.f32 %v1518_v45, %v5819_v9 }
0x136b   :  { %1402 = vmatpush.msrb.mxu2 %v6030_v21  ;;  %v6201_v21 = vld [vmem:[#allocation2 + $0x40] sm:$0xff] }
0x136c   :  { %v5383_v14 = vpop.eup %5382  ;;  %1574 = vmatpush.msrb.mxu0 %v6201_v21 }
0x136d   :  { %1403 = vmatpush.msrb.mxu2 %v6034_v55  ;;  %v1335_v24 = vsel %vm216_vm2, %v5383_v14, 0.0  ;;  %v5385_v23 = vpop.eup %5384 }
0x136e   :  { %1336 = vadd.xlane.f32.xlu0 %v1335_v24  ;;  %v1257_v33 = vsel %vm216_vm2, %v5385_v23, 0.0 }
0x1382   :  { %1522 = vperm.xlu0 %5338, %v5199_v58   ;;  %v6222_v58 = vld [vmem:[%s7247_s8 + $0x10] sm:$0xff] }
0x1383   :  { %v1555_v40 = vperm.slane %v6222_v58, 0 }
0x13ac   :  { %1258 = vadd.xlane.f32.xlu0 %v1257_v33 }
0x13e1   :  { %v1337_v55 = vpop.xlane.xlu0 %1336 }
0x13e2   :  { %5386 = vrcp.f32 %v1337_v55  ;;  %v1349_v60 = vand.u32 2147483648, %v1337_v55  ;;  %v1347_v42 = vand.u32 2147483647, %v1337_v55  ;;  %vm1343_vm8 = vweird.f32 %v1337_v55 }
0x13e4   :  { %v1350_v44 = vor.u32 1.1754944e-38, %v1349_v60  ;;  %vm1348_vm10 = vcmp.eq.f32.partialorder %v1347_v42, 8.507059e+37 }
0x13e8   :  { %v5387_v35 = vpop.eup %5386 }
0x13e9   :  { %v1339_v31 = vmul.f32 %v5387_v35, %v1337_v55  ;;  %vm1344_vm7 = vweird.f32 %v5387_v35 }
0x13ea   :  { %vm1345_vm9 = vmor %vm1343_vm8, %vm1344_vm7 }
0x13eb   :  { %v1340_v59 = vsub.f32 1.0, %v1339_v31 }
0x13ed   :  { %v1341_v63 = vmul.f32 %v5387_v35, %v1340_v59 }
0x13ef   :  { %v1342_v43 = vadd.f32 %v5387_v35, %v1341_v63 }
0x13f1   :  { %v1346_v22 = vsel %vm1345_vm9, %v5387_v35, %v1342_v43 }
0x13f2   :  { %v1351_v46 = vsel %vm1348_vm10, %v1350_v44, %v1346_v22 }
0x13f3   :  { %v1352_v51 = vmul.f32 %v5383_v14, %v1351_v46 }
0x13f4   :  { %v1523_v53 = vpop.permute.xlu0 %1522 }
0x13f5   :  { %v1525_v28 = vmul.f32 %v1523_v53, %v5821_v10  ;;  %5195 = vmatmul.msk.f32.vlgmr.msra.gmra.mxu0 %vm216_vm2, %v1352_v51 }
0x13f7   :  { %v1526_v8 = vadd.f32 %v1525_v28, %v1520_v47 }
0x13f9   :  { %v1527_v11 = vadd.f32 %v6210_v5, %v1526_v8 }
0x13fb   :  { %v6214_v62 = vadd.f32 %v1527_v11, %v5836_v17 }
0x13fd   :  { %5201 = vmatmul.msk.f32.vlgmr.msrb.gmra.mxu0 %vm162_vm0, %v6214_v62 }
0x141f   :  { %v1259_v18 = vpop.xlane.xlu0 %1258 }
0x1420   :  { %5388 = vrcp.f32 %v1259_v18  ;;  %v1271_v4 = vand.u32 2147483648, %v1259_v18  ;;  %v1269_v20 = vand.u32 2147483647, %v1259_v18  ;;  %vm1265_vm12 = vweird.f32 %v1259_v18 }
0x1422   :  { %v1272_v29 = vor.u32 1.1754944e-38, %v1271_v4  ;;  %vm1270_vm14 = vcmp.eq.f32.partialorder %v1269_v20, 8.507059e+37 }
0x1426   :  { %v5389_v2 = vpop.eup %5388 }
0x1427   :  { %v1261_v26 = vmul.f32 %v5389_v2, %v1259_v18  ;;  %vm1266_vm11 = vweird.f32 %v5389_v2 }
0x1428   :  { %vm1267_vm13 = vmor %vm1265_vm12, %vm1266_vm11 }
0x1429   :  { %v1262_v13 = vsub.f32 1.0, %v1261_v26 }
0x142b   :  { %v1263_v61 = vmul.f32 %v5389_v2, %v1262_v13 }
0x142d   :  { %v1264_v7 = vadd.f32 %v5389_v2, %v1263_v61 }
0x142f   :  { %v1268_v30 = vsel %vm1267_vm13, %v5389_v2, %v1264_v7 }
0x1430   :  { %v1273_v32 = vsel %vm1270_vm14, %v1272_v29, %v1268_v30 }
0x1431   :  { %v1274_v50 = vmul.f32 %v5385_v23, %v1273_v32 }
0x1433   :  { %5192 = vmatmul.msk.f32.vlgmr.msra.gmra.mxu2 %vm216_vm2, %v1274_v50 }
0x1472   :  { %v1376_v54 = vpop.f32.mrf.mxu0 }
0x147a   :  { %v1576_v41 = vpop.f32.mrf.mxu0 }
0x147b   :  { %v1577_v19 = vadd.f32 %v1576_v41, %v1555_v40 }
0x147d   :  { %1660 = vrot.lane.b32.xlu2 %v1577_v19, %s5708_s30  ;;  %1581 = vrot.lane.b32.xlu1 %v1577_v19, %s5706_s28  ;;  %v1579_v49 = vmul.f32 0.25, %v1577_v19 }
0x1485   :  { %1658 = vrot.lane.b32.xlu2 %v1579_v49, %s5707_s29 }
0x148d   :  { %1380 = vrot.lane.b32.xlu2 %v1376_v54, %s5711_s13 }
0x14b6   :  { %v1298_v24 = vpop.f32.mrf.mxu2 }
0x14d7   :  { %v1661_v3 = vpop.permute.xlu2 %1660 }
0x14d8   :  { %5205 = vmatpush.xpose.msk.msra.mxu0 %vm190_vm1, %v1661_v3 }
0x14df   :  { %v1659_v14 = vpop.permute.xlu2 %1658 }
0x14e0   :  { %5206 = vmatmul.msk.f32.vlgmr.msra.gmra.mxu0 %vm190_vm1, %v1659_v14 }
0x14e7   :  { %v1381_v16 = vpop.permute.xlu2 %1380 }
0x14e8   :  { %v1383_v39 = vsel %vm190_vm1, %v1298_v24, %v1381_v16 }
0x14e9   :  { %5196 = vmatmul.msk.f32.vlgmr.msrb.gmra.mxu2 %vm162_vm0, %v1383_v39 }
0x14ef   :  { %v1582_v23 = vpop.permute.xlu1 %1581 }
0x14f0   :  { %5202 = vmatpush.xpose.msk.msra.mxu2 %vm190_vm1, %v1582_v23 }
0x14f3   :  { %5203 = vmatmul.msk.f32.vlgmr.msra.gmra.mxu2 %vm190_vm1, %v1579_v49 }
0x155d   :  { %v1683_v33 = vpop.f32.mrf.mxu0 }
0x155e   :  { %v1686_v55 = vsel %vm216_vm2, %v1683_v33, -inf }
0x155f   :  { %1687 = vmax.xlane.f32.xlu2 %v1686_v55 }
0x156c   :  { %v1405_v35 = vpop.f32.mrf.mxu2 }
0x156d   :  { %v1406_v31 = vadd.f32 %v1405_v35, %v697_v48 }
0x156f   :  { %v1408_v59 = vadd.f32 %v1406_v31, %v6157_v38 }
0x1571   :  { %v1409_v60 = vsel %vm162_vm0, %v1408_v59, 0.0 }
0x1572   :  { %1410 = vadd.xlane.f32.xlu1 %v1409_v60 }
0x1576   :  { %v1605_v63 = vpop.f32.mrf.mxu2 }
0x1577   :  { %v1608_v42 = vsel %vm216_vm2, %v1605_v63, -inf }
0x1578   :  { %1609 = vmax.xlane.f32.xlu0 %v1608_v42 }
0x158b   :  { %1632 = vrot.lane.b32.xlu1 %v1577_v19, %s5710_s5 }
0x15d2   :  { %v1688_v43 = vpop.xlane.xlu2 %1687 }
0x15d3   :  { %v1689_v44 = vsub.f32 %v1683_v33, %v1688_v43 }
0x15d5   :  { %v1690_v45 = vmul.f32 1.442695, %v1689_v44 }
0x15d7   :  { %5390 = vpow2.f32 %v1690_v45 }
0x15dd   :  { %v5391_v22 = vpop.eup %5390 }
0x15de   :  { %v1692_v46 = vsel %vm216_vm2, %v5391_v22, 0.0 }
0x15df   :  { %1693 = vadd.xlane.f32.xlu0 %v1692_v46 }
0x15e5   :  { %v1411_v51 = vpop.xlane.xlu1 %1410 }
0x15e6   :  { %v1412_v11 = vmul.f32 %v1411_v51, %v5887_v37 }
0x15e8   :  { %v1413_v18 = vsub.f32 %v1408_v59, %v1412_v11  ;;  %v6265_v11 = vld [vmem:[#allocation4 + $0x58] sm:$0xff] }
0x15ea   :  { %v1414_v2 = vmul.f32 %v1413_v18, %v1413_v18 }
0x15eb   :  { %v1610_v48 = vpop.xlane.xlu0 %1609 }
0x15ec   :  { %v1611_v47 = vsub.f32 %v1605_v63, %v1610_v48  ;;  %v1415_v26 = vsel %vm162_vm0, %v1414_v2, 0.0  ;;  %v6274_v2 = vld [vmem:[#allocation4 + $0x40] sm:$0xff] }
0x15ee   :  { %v1612_v38 = vmul.f32 1.442695, %v1611_v47 }
0x15f0   :  { %5392 = vpow2.f32 %v1612_v38 }
0x15f3   :  { %1710 = vrot.lane.b32.xlu0 %v1577_v19, %s5709_s12 }
0x15f6   :  { %v6246_v53 = vpop.eup %5392 }
0x15f7   :  { %v1614_v28 = vsel %vm216_vm2, %v6246_v53, 0.0 }
0x15f8   :  { %1615 = vadd.xlane.f32.xlu2 %v1614_v28 }
0x15fd   :  { %v1633_v8 = vpop.permute.xlu1 %1632 }
0x15fe   :  { %1653 = vmatpush.msra.mxu1 %v1633_v8 }
0x161d   :  { %1416 = vadd.xlane.f32.xlu0 %v1415_v26 }
0x1652   :  { %v1694_v13 = vpop.xlane.xlu0 %1693 }
0x1653   :  { %5394 = vrcp.f32 %v1694_v13  ;;  %v1706_v7 = vand.u32 2147483648, %v1694_v13  ;;  %v1704_v30 = vand.u32 2147483647, %v1694_v13  ;;  %vm1700_vm4 = vweird.f32 %v1694_v13 }
0x1655   :  { %v1707_v50 = vor.u32 1.1754944e-38, %v1706_v7  ;;  %vm1705_vm6 = vcmp.eq.f32.partialorder %v1704_v30, 8.507059e+37  ;;  %v1741_v7 = vperm.slane %v6222_v58, 1 }
0x1659   :  { %v5395_v4 = vpop.eup %5394 }
0x165a   :  { %v1696_v61 = vmul.f32 %v5395_v4, %v1694_v13  ;;  %vm1701_vm3 = vweird.f32 %v5395_v4 }
0x165b   :  { %vm1702_vm5 = vmor %vm1700_vm4, %vm1701_vm3 }
0x165c   :  { %v1697_v20 = vsub.f32 1.0, %v1696_v61 }
0x165e   :  { %v1698_v29 = vmul.f32 %v5395_v4, %v1697_v20 }
0x1660   :  { %v1699_v32 = vadd.f32 %v5395_v4, %v1698_v29 }
0x1662   :  { %v1703_v54 = vsel %vm1702_vm5, %v5395_v4, %v1699_v32 }
0x1663   :  { %v1708_v41 = vsel %vm1705_vm6, %v1707_v50, %v1703_v54 }
0x1664   :  { %v1709_v19 = vmul.f32 %v5391_v22, %v1708_v41 }
0x1665   :  { %v1711_v49 = vpop.permute.xlu0 %1710 }
0x1666   :  { %1731 = vmatpush.msrb.mxu2 %v1711_v49  ;;  %v6289_v49 = vld [vmem:[#allocation6 + $0x58] sm:$0xff] }
0x1667   :  { %5207 = vmatmul.msk.f32.vlgmr.msrb.gmra.mxu2 %vm216_vm2, %v1709_v19  ;;  %1808 = vmatpush.msrb.mxu3 %v6289_v49 }
0x166b   :  { %v1616_v14 = vpop.xlane.xlu2 %1615 }
0x166c   :  { %5396 = vrcp.f32 %v1616_v14  ;;  %v1628_v46 = vand.u32 2147483648, %v1616_v14  ;;  %vm1622_vm11 = vweird.f32 %v1616_v14  ;;  %v1626_v48 = vand.u32 2147483647, %v1616_v14 }
0x166e   :  { %v1629_v51 = vor.u32 1.1754944e-38, %v1628_v46  ;;  %vm1627_vm13 = vcmp.eq.f32.partialorder %v1626_v48, 8.507059e+37  ;;  %v1790_v48 = vperm.slane %v6222_v58, 3 }
0x1672   :  { %v5397_v39 = vpop.eup %5396 }
0x1673   :  { %v1618_v55 = vmul.f32 %v5397_v39, %v1616_v14  ;;  %vm1623_vm10 = vweird.f32 %v5397_v39  ;;  %v6297_v14 = vld [vmem:[#allocation6 + $0x40] sm:$0xff] }
0x1674   :  { %vm1624_vm12 = vmor %vm1622_vm11, %vm1623_vm10 }
0x1675   :  { %v1619_v59 = vsub.f32 1.0, %v1618_v55  ;;  %v6310_v55 = vld [vmem:[#allocation7 + $0xa0] sm:$0xff] }
0x1677   :  { %v1620_v42 = vmul.f32 %v5397_v39, %v1619_v59 }
0x1679   :  { %v1621_v45 = vadd.f32 %v5397_v39, %v1620_v42 }
0x167b   :  { %v1625_v38 = vsel %vm1624_vm12, %v5397_v39, %v1621_v45  ;;  %v6306_v39 = vld [vmem:[#allocation7 + $0xa8] sm:$0xff]  ;;  %v1788_v45 = vperm.slane %v6222_v58, 2 }
0x167c   :  { %v1630_v28 = vsel %vm1627_vm13, %v1629_v51, %v1625_v38 }
0x167d   :  { %v1631_v8 = vmul.f32 %v6246_v53, %v1630_v28  ;;  %v6324_v28 = vld [vmem:[#allocation7 + $0x90] sm:$0xff] }
0x1690   :  { %v1417_v3 = vpop.xlane.xlu0 %1416 }
0x1691   :  { %v1418_v24 = vmul.f32 %v1417_v3, %v5887_v37  ;;  %v6292_v3 = vld [vmem:[#allocation6 + $0x50] sm:$0xff] }
0x1692   :  { %1809 = vmatpush.msrb.mxu3 %v6292_v3 }
0x1693   :  { %v1419_v16 = vadd.f32 1e-05, %v1418_v24  ;;  %v6301_v24 = vld [vmem:[#allocation7 + $0xb8] sm:$0xff] }
0x1694   :  { %1829 = vmatpush.msrb.mxu0 %v6301_v24 }
0x1695   :  { %5398 = vrsqrt.f32 %v1419_v16  ;;  %vm1426_vm8 = vweird.f32 %v1419_v16 }
0x169b   :  { %v5399_v23 = vpop.eup %5398 }
0x169c   :  { %v1421_v33 = vmul.f32 %v5399_v23, %v1419_v16  ;;  %vm1427_vm7 = vweird.f32 %v5399_v23  ;;  %v6303_v16 = vld [vmem:[#allocation7 + $0xb0] sm:$0xff] }
0x169d   :  { %vm1428_vm9 = vmor %vm1426_vm8, %vm1427_vm7  ;;  %1830 = vmatpush.msrb.mxu0 %v6303_v16 }
0x169e   :  { %v1422_v35 = vmul.f32 %v5399_v23, %v1421_v33 }
0x169f   :  { %1831 = vmatpush.msrb.mxu0 %v6306_v39 }
0x16a0   :  { %v1423_v31 = vmul.f32 0.5, %v1422_v35 }
0x16a1   :  { %1832 = vmatpush.msrb.mxu0 %v6310_v55 }
0x16a2   :  { %v1424_v60 = vsub.f32 1.5, %v1423_v31  ;;  %v6313_v31 = vld [vmem:[#allocation7 + $0x98] sm:$0xff] }
0x16a3   :  { %1833 = vmatpush.msrb.mxu0 %v6313_v31 }
0x16a4   :  { %v1425_v63 = vmul.f32 %v5399_v23, %v1424_v60 }
0x16a5   :  { %1834 = vmatpush.msrb.mxu0 %v6324_v28 }
0x16a6   :  { %v1429_v43 = vsel %vm1428_vm9, %v5399_v23, %v1425_v63 }
0x16a7   :  { %v1430_v44 = vmul.f32 %v1429_v43, %v1413_v18  ;;  %v6267_v18 = vld [vmem:[#allocation4 + $0x50] sm:$0xff] }
0x16a9   :  { %v1432_v22 = vmul.f32 %v1430_v44, %v744_v52 }
0x16ab   :  { %v6258_v47 = vadd.f32 %v1432_v22, %v746_v57  ;;  %v6270_v57 = vld [vmem:[#allocation4 + $0x48] sm:$0xff] }
0x16ad   :  { %5197 = vmatmul.msk.f32.vlgmr.msrb.gmra.mxu1 %vm162_vm0, %v6258_v47 }
0x16ae   :  { %1757 = vmatpush.msrb.mxu1 %v6265_v11 }
0x16b0   :  { %1758 = vmatpush.msrb.mxu1 %v6267_v18 }
0x16b2   :  { %1759 = vmatpush.msrb.mxu1 %v6270_v57 }
0x16b4   :  { %1760 = vmatpush.msrb.mxu1 %v6274_v2 }
0x16b5   :  { %5204 = vmatmul.msk.f32.vlgmr.msra.gmra.mxu1 %vm216_vm2, %v1631_v8  ;;  %v6327_v8 = vld [vmem:[#allocation7 + $0x88] sm:$0xff] }
0x16b6   :  { %1835 = vmatpush.msrb.mxu0 %v6327_v8 }
0x16ea   :  { %v1733_v52 = vpop.f32.mrf.mxu2 }
0x16eb   :  { %1737 = vrot.lane.b32.xlu2 %v1733_v52, %s5711_s13  ;;  %v6330_v52 = vld [vmem:[#allocation7 + $0x80] sm:$0xff] }
0x16ec   :  { %1836 = vmatpush.msrb.mxu0 %v6330_v52 }
0x172a   :  { %v1456_v53 = vpop.f32.mrf.mxu1 }
0x172b   :  { %v1457_v26 = vadd.f32 %v1456_v53, %v748_v15 }
0x172d   :  { %v1459_v13 = vmax.f32 %v1457_v26, 0.0  ;;  %v1792_v26 = vperm.slane %v6222_v58, 4 }
0x172f   :  { %5198 = vmatmul.msk.f32.vlgmr.msra.gmra.mxu3 %vm434_vm15, %v1459_v13 }
0x1732   :  { %v1655_v4 = vpop.f32.mrf.mxu1 }
0x1745   :  { %v1738_v61 = vpop.permute.xlu2 %1737 }
0x1746   :  { %v1740_v20 = vsel %vm190_vm1, %v1655_v4, %v1738_v61 }
0x1747   :  { %5208 = vmatmul.msk.f32.vlgmr.msrb.gmra.mxu1 %vm162_vm0, %v1740_v20  ;;  %v1817_v20 = vperm.slane %v6222_v58, 5 }
0x17b2   :  { %v6333_v53 = vpop.f32.mrf.mxu3 }
0x17c4   :  { %v1762_v29 = vpop.f32.mrf.mxu1 }
0x17c5   :  { %v1763_v30 = vadd.f32 %v1762_v29, %v1741_v7 }
0x17c7   :  { %v1765_v32 = vadd.f32 %v1763_v30, %v6214_v62  ;;  %v6295_v62 = vld [vmem:[#allocation6 + $0x48] sm:$0xff] }
0x17c8   :  { %1810 = vmatpush.msrb.mxu3 %v6295_v62 }
0x17c9   :  { %v1766_v27 = vsel %vm162_vm0, %v1765_v32, 0.0 }
0x17ca   :  { %1767 = vadd.xlane.f32.xlu1 %v1766_v27  ;;  %1811 = vmatpush.msrb.mxu3 %v6297_v14 }
0x183d   :  { %v1768_v15 = vpop.xlane.xlu1 %1767 }
0x183e   :  { %v1769_v50 = vmul.f32 %v1768_v15, %v5887_v37 }
0x1840   :  { %v1770_v54 = vsub.f32 %v1765_v32, %v1769_v50 }
0x1842   :  { %v1771_v41 = vmul.f32 %v1770_v54, %v1770_v54 }
0x1844   :  { %v1772_v19 = vsel %vm162_vm0, %v1771_v41, 0.0 }
0x1845   :  { %1773 = vadd.xlane.f32.xlu2 %v1772_v19 }
0x18b8   :  { %v1774_v23 = vpop.xlane.xlu2 %1773 }
0x18b9   :  { %v1775_v33 = vmul.f32 %v1774_v23, %v5887_v37  ;;  %v6345_v23 = vld [vmem:[#allocation2 + $0x78] sm:$0xff] }
0x18ba   :  { %1910 = vmatpush.msra.mxu2 %v6345_v23 }
0x18bb   :  { %v1776_v35 = vadd.f32 1e-05, %v1775_v33  ;;  %v6348_v33 = vld [vmem:[#allocation2 + $0x70] sm:$0xff] }
0x18bc   :  { %1911 = vmatpush.msra.mxu2 %v6348_v33 }
0x18bd   :  { %5400 = vrsqrt.f32 %v1776_v35  ;;  %vm1783_vm3 = vweird.f32 %v1776_v35 }
0x18c3   :  { %v5401_v59 = vpop.eup %5400 }
0x18c4   :  { %v1778_v60 = vmul.f32 %v5401_v59, %v1776_v35  ;;  %vm1784_vm14 = vweird.f32 %v5401_v59  ;;  %v6351_v35 = vld [vmem:[#allocation2 + $0x68] sm:$0xff] }
0x18c5   :  { %vm1785_vm4 = vmor %vm1783_vm3, %vm1784_vm14  ;;  %1912 = vmatpush.msra.mxu2 %v6351_v35 }
0x18c6   :  { %v1779_v63 = vmul.f32 %v5401_v59, %v1778_v60 }
0x18c8   :  { %v1780_v42 = vmul.f32 0.5, %v1779_v63 }
0x18ca   :  { %v1781_v43 = vsub.f32 1.5, %v1780_v42 }
0x18cc   :  { %v1782_v44 = vmul.f32 %v5401_v59, %v1781_v43 }
0x18ce   :  { %v1786_v22 = vsel %vm1785_vm4, %v5401_v59, %v1782_v44  ;;  %v6353_v59 = vld [vmem:[#allocation2 + $0x60] sm:$0xff] }
0x18cf   :  { %v1787_v46 = vmul.f32 %v1786_v22, %v1770_v54  ;;  %1913 = vmatpush.msra.mxu2 %v6353_v59 }
0x18d1   :  { %v1789_v38 = vmul.f32 %v1788_v45, %v1787_v46 }
0x18d3   :  { %v1791_v51 = vadd.f32 %v1790_v48, %v1789_v38 }
0x18d5   :  { %5209 = vmatmul.msk.f32.vlgmr.msrb.gmra.mxu3 %vm162_vm0, %v1791_v51 }
0x1958   :  { %v1813_v13 = vpop.f32.mrf.mxu3 }
0x1959   :  { %v1814_v4 = vadd.f32 %v1813_v13, %v1792_v26  ;;  %v1864_v13 = vperm.slane %v6222_v58, 6 }
0x195b   :  { %v1816_v61 = vmax.f32 %v1814_v4, 0.0 }
0x195d   :  { %5210 = vmatmul.msk.f32.vlgmr.msrb.gmra.mxu0 %vm434_vm15, %v1816_v61 }
0x19da   :  { %v1838_v29 = vpop.f32.mrf.mxu0 }
0x19db   :  { %v1839_v30 = vadd.f32 %v1838_v29, %v1817_v20  ;;  %v1866_v29 = vperm.slane %v6222_v58, 7 }
0x19dd   :  { %v1841_v32 = vadd.f32 %v1839_v30, %v1791_v51 }
0x19df   :  { %v1842_v27 = vsel %vm162_vm0, %v1841_v32, 0.0 }
0x19e0   :  { %1843 = vadd.xlane.f32.xlu0 %v1842_v27  ;;  %v6371_v27 = vld [vmem:[%s7247_s8 + $0x18] sm:$0xff] }
0x1a53   :  { %v1844_v15 = vpop.xlane.xlu0 %1843 }
0x1a54   :  { %v1845_v50 = vmul.f32 %v1844_v15, %v5887_v37  ;;  %v1894_v15 = vperm.slane %v6371_v27, 0 }
0x1a56   :  { %v1846_v54 = vsub.f32 %v1841_v32, %v1845_v50 }
0x1a58   :  { %v1847_v41 = vmul.f32 %v1846_v54, %v1846_v54 }
0x1a5a   :  { %v1848_v19 = vsel %vm162_vm0, %v1847_v41, 0.0 }
0x1a5b   :  { %1849 = vadd.xlane.f32.xlu0 %v1848_v19 }
0x1ace   :  { %v1850_v60 = vpop.xlane.xlu0 %1849 }
0x1acf   :  { %v1851_v63 = vmul.f32 %v1850_v60, %v5887_v37 }
0x1ad1   :  { %v1852_v42 = vadd.f32 1e-05, %v1851_v63 }
0x1ad3   :  { %5402 = vrsqrt.f32 %v1852_v42  ;;  %vm1859_vm6 = vweird.f32 %v1852_v42 }
0x1ad9   :  { %v5403_v43 = vpop.eup %5402 }
0x1ada   :  { %v1854_v44 = vmul.f32 %v5403_v43, %v1852_v42  ;;  %vm1860_vm5 = vweird.f32 %v5403_v43 }
0x1adb   :  { %vm1861_vm7 = vmor %vm1859_vm6, %vm1860_vm5 }
0x1adc   :  { %v1855_v22 = vmul.f32 %v5403_v43, %v1854_v44 }
0x1ade   :  { %v1856_v46 = vmul.f32 0.5, %v1855_v22 }
0x1ae0   :  { %v1857_v38 = vsub.f32 1.5, %v1856_v46  ;;  %v5222_v46 = vld [vmem:[%s7239_s0 + $0x18] sm:$0xff] }
0x1ae2   :  { %v1858_v51 = vmul.f32 %v5403_v43, %v1857_v38 }
0x1ae4   :  { %v1862_v4 = vsel %vm1861_vm7, %v5403_v43, %v1858_v51 }
0x1ae5   :  { %v1863_v61 = vmul.f32 %v1862_v4, %v1846_v54 }
0x1ae7   :  { %v1865_v30 = vmul.f32 %v1864_v13, %v1863_v61 }
0x1ae9   :  { %v6364_v32 = vadd.f32 %v1866_v29, %v1865_v30 }
0x1aeb   :  { %5212 = vmatmul.msk.f32.vlgmr.msra.gmra.mxu2 %vm162_vm0, %v6364_v32 }
0x1b6e   :  { %v1915_v50 = vpop.f32.mrf.mxu2 }
0x1b6f   :  { %v1916_v54 = vadd.f32 %v1915_v50, %v1894_v15 }
0x1b71   :  { %1920 = vrot.lane.b32.xlu2 %v1916_v54, %s5706_s28  ;;  %1999 = vrot.lane.b32.xlu0 %v1916_v54, %s5708_s30  ;;  %v1918_v41 = vmul.f32 0.25, %v1916_v54 }
0x1b73   :  { %1997 = vrot.lane.b32.xlu1 %v1918_v41, %s5707_s29 }
0x1bcb   :  { %v1921_v19 = vpop.permute.xlu2 %1920 }
0x1bcc   :  { %5213 = vmatpush.xpose.msk.msra.mxu1 %vm190_vm1, %v1921_v19 }
0x1bcf   :  { %5214 = vmatmul.msk.f32.vlgmr.msra.gmra.mxu1 %vm190_vm1, %v1918_v41 }
0x1be3   :  { %v2000_v60 = vpop.permute.xlu0 %1999 }
0x1be4   :  { %5216 = vmatpush.xpose.msk.msrb.mxu2 %vm190_vm1, %v2000_v60 }
0x1be5   :  { %v1998_v63 = vpop.permute.xlu1 %1997 }
0x1be7   :  { %5217 = vmatmul.msk.f32.vlgmr.msrb.gmra.mxu2 %vm190_vm1, %v1998_v63 }
0x1c4c   :  { %v1944_v42 = vpop.f32.mrf.mxu1 }
0x1c4d   :  { %v1947_v43 = vsel %vm216_vm2, %v1944_v42, -inf }
0x1c4e   :  { %1948 = vmax.xlane.f32.xlu2 %v1947_v43 }
0x1c6a   :  { %v2022_v44 = vpop.f32.mrf.mxu2 }
0x1c6b   :  { %v2025_v22 = vsel %vm216_vm2, %v2022_v44, -inf }
0x1c6c   :  { %2026 = vmax.xlane.f32.xlu0 %v2025_v22 }
0x1c80   :  { %2049 = vrot.lane.b32.xlu0 %v1916_v54, %s5709_s12 }
0x1c88   :  { %2218 = vperm.xlu0 %5338, %v5222_v46  }
0x1c90   :  { %1971 = vrot.lane.b32.xlu0 %v1916_v54, %s5710_s5 }
0x1cc1   :  { %v1949_v38 = vpop.xlane.xlu2 %1948 }
0x1cc2   :  { %v1950_v51 = vsub.f32 %v1944_v42, %v1949_v38 }
0x1cc4   :  { %v1951_v4 = vmul.f32 1.442695, %v1950_v51 }
0x1cc6   :  { %5404 = vpow2.f32 %v1951_v4 }
0x1ccc   :  { %v5405_v61 = vpop.eup %5404 }
0x1ccd   :  { %v1953_v30 = vsel %vm216_vm2, %v5405_v61, 0.0 }
0x1cce   :  { %1954 = vadd.xlane.f32.xlu2 %v1953_v30 }
0x1cdf   :  { %v2027_v50 = vpop.xlane.xlu0 %2026 }
0x1ce0   :  { %v2028_v41 = vsub.f32 %v2022_v44, %v2027_v50 }
0x1ce2   :  { %v2029_v19 = vmul.f32 1.442695, %v2028_v41 }
0x1ce4   :  { %5406 = vpow2.f32 %v2029_v19 }
0x1cea   :  { %v5407_v60 = vpop.eup %5406 }
0x1ceb   :  { %v2031_v63 = vsel %vm216_vm2, %v5407_v60, 0.0 }
0x1cec   :  { %2032 = vadd.xlane.f32.xlu1 %v2031_v63 }
0x1cf2   :  { %v2050_v43 = vpop.permute.xlu0 %2049 }
0x1cf3   :  { %2070 = vmatpush.msrb.mxu1 %v2050_v43 }
0x1cf5   :  { %2262 = vmatpush.msra.mxu1 %v6192_v12 }
0x1cf7   :  { %2263 = vmatpush.msra.mxu1 %v6195_v56 }
0x1cf9   :  { %2264 = vmatpush.msra.mxu1 %v6198_v6 }
0x1cfa   :  { %v2219_v54 = vpop.permute.xlu0 %2218 }
0x1cfb   :  { %2265 = vmatpush.msra.mxu1 %v6201_v21 }
0x1d02   :  { %v1972_v42 = vpop.permute.xlu0 %1971 }
0x1d03   :  { %1992 = vmatpush.msra.mxu3 %v1972_v42 }
0x1d05   :  { %2213 = vperm.xlu1 %5339, %v5222_v46  }
0x1d41   :  { %v1955_v44 = vpop.xlane.xlu2 %1954 }
0x1d42   :  { %5408 = vrcp.f32 %v1955_v44  ;;  %v1967_v4 = vand.u32 2147483648, %v1955_v44  ;;  %v1965_v50 = vand.u32 2147483647, %v1955_v44  ;;  %vm1961_vm9 = vweird.f32 %v1955_v44 }
0x1d44   :  { %v1968_v56 = vor.u32 1.1754944e-38, %v1967_v4  ;;  %vm1966_vm11 = vcmp.eq.f32.partialorder %v1965_v50, 8.507059e+37  ;;  %v2221_v50 = vmul.f32 %v2219_v54, %v5821_v10  ;;  %v6417_v54 = vld [vmem:[#allocation4 + $0x78] sm:$0xff] }
0x1d45   :  { %2096 = vmatpush.msrb.mxu3 %v6417_v54 }
0x1d48   :  { %v5409_v22 = vpop.eup %5408 }
0x1d49   :  { %v1957_v38 = vmul.f32 %v5409_v22, %v1955_v44  ;;  %vm1962_vm8 = vweird.f32 %v5409_v22 }
0x1d4a   :  { %vm1963_vm10 = vmor %vm1961_vm9, %vm1962_vm8 }
0x1d4b   :  { %v1958_v51 = vsub.f32 1.0, %v1957_v38 }
0x1d4d   :  { %v1959_v30 = vmul.f32 %v5409_v22, %v1958_v51 }
0x1d4f   :  { %v1960_v12 = vadd.f32 %v5409_v22, %v1959_v30 }
0x1d51   :  { %v1964_v6 = vsel %vm1963_vm10, %v5409_v22, %v1960_v12 }
0x1d52   :  { %v1969_v41 = vsel %vm1966_vm11, %v1968_v56, %v1964_v6 }
0x1d53   :  { %v1970_v21 = vmul.f32 %v5405_v61, %v1969_v41 }
0x1d55   :  { %5215 = vmatmul.msk.f32.vlgmr.msra.gmra.mxu3 %vm216_vm2, %v1970_v21 }
0x1d5f   :  { %v2033_v46 = vpop.xlane.xlu1 %2032 }
0x1d60   :  { %5410 = vrcp.f32 %v2033_v46  ;;  %v2045_v42 = vand.u32 2147483648, %v2033_v46  ;;  %v2043_v51 = vand.u32 2147483647, %v2033_v46  ;;  %vm2039_vm13 = vweird.f32 %v2033_v46 }
0x1d62   :  { %v2046_v44 = vor.u32 1.1754944e-38, %v2045_v42  ;;  %vm2044_vm3 = vcmp.eq.f32.partialorder %v2043_v51, 8.507059e+37 }
0x1d66   :  { %v5411_v19 = vpop.eup %5410 }
0x1d67   :  { %v2035_v63 = vmul.f32 %v5411_v19, %v2033_v46  ;;  %vm2040_vm12 = vweird.f32 %v5411_v19  ;;  %v6419_v46 = vld [vmem:[#allocation4 + $0x70] sm:$0xff] }
0x1d68   :  { %vm2041_vm14 = vmor %vm2039_vm13, %vm2040_vm12  ;;  %2097 = vmatpush.msrb.mxu3 %v6419_v46 }
0x1d69   :  { %v2036_v43 = vsub.f32 1.0, %v2035_v63 }
0x1d6b   :  { %v2037_v38 = vmul.f32 %v5411_v19, %v2036_v43 }
0x1d6d   :  { %v2038_v1 = vadd.f32 %v5411_v19, %v2037_v38 }
0x1d6f   :  { %v2042_v4 = vsel %vm2041_vm14, %v5411_v19, %v2038_v1  ;;  %v6425_v19 = vld [vmem:[#allocation4 + $0x60] sm:$0xff] }
0x1d70   :  { %v2047_v22 = vsel %vm2044_vm3, %v2046_v44, %v2042_v4 }
0x1d71   :  { %v2048_v30 = vmul.f32 %v5407_v60, %v2047_v22 }
0x1d73   :  { %5218 = vmatmul.msk.f32.vlgmr.msrb.gmra.mxu1 %vm216_vm2, %v2048_v30 }
0x1d77   :  { %v2214_v61 = vpop.permute.xlu1 %2213 }
0x1d78   :  { %v2216_v12 = vmul.f32 %v2214_v61, %v5819_v9 }
0x1d7a   :  { %v2222_v56 = vadd.f32 %v2221_v50, %v2216_v12 }
0x1d7c   :  { %v2223_v6 = vadd.f32 %v6210_v5, %v2222_v56 }
0x1d7e   :  { %v6402_v41 = vadd.f32 %v2223_v6, %v6004_v36 }
0x1d80   :  { %5224 = vmatmul.msk.f32.vlgmr.msra.gmra.mxu1 %vm162_vm0, %v6402_v41 }
0x1df0   :  { %v2072_v1 = vpop.f32.mrf.mxu1 }
0x1dfd   :  { %v2267_v21 = vpop.f32.mrf.mxu1 }
0x1dfe   :  { %v6408_v60 = vadd.f32 %v2267_v21, %v1555_v40  ;;  %v6422_v40 = vld [vmem:[#allocation4 + $0x68] sm:$0xff] }
0x1dff   :  { %2098 = vmatpush.msrb.mxu3 %v6422_v40 }
0x1e00   :  { %2272 = vrot.lane.b32.xlu1 %v6408_v60, %s5706_s28  ;;  %2351 = vrot.lane.b32.xlu2 %v6408_v60, %s5708_s30  ;;  %v2270_v5 = vmul.f32 0.25, %v6408_v60 }
0x1e01   :  { %2099 = vmatpush.msrb.mxu3 %v6425_v19 }
0x1e02   :  { %2349 = vrot.lane.b32.xlu0 %v2270_v5, %s5707_s29 }
0x1e0a   :  { %2076 = vrot.lane.b32.xlu0 %v2072_v1, %s5711_s13 }
0x1e5a   :  { %v2352_v63 = vpop.permute.xlu2 %2351 }
0x1e5b   :  { %5228 = vmatpush.xpose.msk.msrb.mxu1 %vm190_vm1, %v2352_v63 }
0x1e5f   :  { %2520 = vmatpush.msra.mxu1 %v6301_v24  ;;  %v1994_v24 = vpop.f32.mrf.mxu3 }
0x1e61   :  { %2521 = vmatpush.msra.mxu1 %v6303_v16 }
0x1e63   :  { %2522 = vmatpush.msra.mxu1 %v6306_v39 }
0x1e65   :  { %2523 = vmatpush.msra.mxu1 %v6310_v55 }
0x1e67   :  { %2524 = vmatpush.msra.mxu1 %v6313_v31 }
0x1e69   :  { %2525 = vmatpush.msra.mxu1 %v6324_v28  ;;  %v2080_v28 = vperm.slane %v6371_v27, 1 }
0x1e6b   :  { %2526 = vmatpush.msra.mxu1 %v6327_v8 }
0x1e6d   :  { %2527 = vmatpush.msra.mxu1 %v6330_v52 }
0x1e72   :  { %v2273_v43 = vpop.permute.xlu1 %2272 }
0x1e73   :  { %5225 = vmatpush.xpose.msk.msra.mxu3 %vm190_vm1, %v2273_v43 }
0x1e74   :  { %v2350_v42 = vpop.permute.xlu0 %2349 }
0x1e75   :  { %5229 = vmatmul.msk.f32.vlgmr.msrb.gmra.mxu1 %vm190_vm1, %v2350_v42 }
0x1e7c   :  { %v2077_v16 = vpop.permute.xlu0 %2076 }
0x1e7d   :  { %v2079_v39 = vsel %vm190_vm1, %v1994_v24, %v2077_v16  ;;  %v1882_v16 = vld [vmem:[#allocation6 + $0x78] sm:$0xff] }
0x1e7e   :  { %5219 = vmatmul.msk.f32.vlgmr.msrb.gmra.mxu3 %vm162_vm0, %v2079_v39  ;;  %2147 = vmatpush.msra.mxu0 %v1882_v16  ;;  %v1880_v39 = vld [vmem:[#allocation6 + $0x68] sm:$0xff] }
0x1e7f   :  { %2833 = vmatpush.msrb.mxu1 %v1882_v16 }
0x1e86   :  { %5226 = vmatmul.msk.f32.vlgmr.msra.gmra.mxu3 %vm190_vm1, %v2270_v5 }
0x1ef2   :  { %v2374_v55 = vpop.f32.mrf.mxu1 }
0x1ef3   :  { %v2377_v31 = vsel %vm216_vm2, %v2374_v55, -inf }
0x1ef4   :  { %2378 = vmax.xlane.f32.xlu0 %v2377_v31 }
0x1f01   :  { %v2101_v8 = vpop.f32.mrf.mxu3 }
0x1f02   :  { %v2102_v52 = vadd.f32 %v2101_v8, %v2080_v28 }
0x1f04   :  { %v2104_v38 = vadd.f32 %v2102_v52, %v6364_v32 }
0x1f06   :  { %v2105_v51 = vsel %vm162_vm0, %v2104_v38, 0.0 }
0x1f07   :  { %2106 = vadd.xlane.f32.xlu1 %v2105_v51 }
0x1f08   :  { %2401 = vrot.lane.b32.xlu0 %v6408_v60, %s5709_s12 }
0x1f09   :  { %v2296_v44 = vpop.f32.mrf.mxu3 }
0x1f0a   :  { %v2299_v4 = vsel %vm216_vm2, %v2296_v44, -inf }
0x1f0b   :  { %2300 = vmax.xlane.f32.xlu2 %v2299_v4 }
0x1f67   :  { %v2379_v22 = vpop.xlane.xlu0 %2378 }
0x1f68   :  { %v2380_v30 = vsub.f32 %v2374_v55, %v2379_v22 }
0x1f6a   :  { %v2381_v61 = vmul.f32 1.442695, %v2380_v30 }
0x1f6c   :  { %5412 = vpow2.f32 %v2381_v61 }
0x1f72   :  { %v5413_v50 = vpop.eup %5412 }
0x1f73   :  { %v2383_v12 = vsel %vm216_vm2, %v5413_v50, 0.0 }
0x1f74   :  { %2384 = vadd.xlane.f32.xlu2 %v2383_v12 }
0x1f7a   :  { %v2107_v56 = vpop.xlane.xlu1 %2106  ;;  %v2402_v32 = vpop.permute.xlu0 %2401 }
0x1f7b   :  { %v2108_v6 = vmul.f32 %v2107_v56, %v5887_v37  ;;  %2422 = vmatpush.msrb.mxu3 %v2402_v32 }
0x1f7d   :  { %2596 = vmatpush.msra.mxu3 %v6345_v23  ;;  %v6455_v1 = vsub.f32 %v2104_v38, %v2108_v6 }
0x1f7e   :  { %v2301_v21 = vpop.xlane.xlu2 %2300 }
0x1f7f   :  { %2597 = vmatpush.msra.mxu3 %v6348_v33  ;;  %v2302_v5 = vsub.f32 %v2296_v44, %v2301_v21  ;;  %v2110_v63 = vmul.f32 %v6455_v1, %v6455_v1 }
0x1f81   :  { %2598 = vmatpush.msra.mxu3 %v6351_v35  ;;  %v2303_v43 = vmul.f32 1.442695, %v2302_v5  ;;  %v2111_v42 = vsel %vm162_vm0, %v2110_v63, 0.0  ;;  %v1881_v35 = vld [vmem:[#allocation6 + $0x70] sm:$0xff] }
0x1f82   :  { %2112 = vadd.xlane.f32.xlu1 %v2111_v42  ;;  %2148 = vmatpush.msra.mxu0 %v1881_v35 }
0x1f83   :  { %2599 = vmatpush.msra.mxu3 %v6353_v59  ;;  %5414 = vpow2.f32 %v2303_v43  ;;  %2834 = vmatpush.msrb.mxu1 %v1881_v35  ;;  %v1879_v59 = vld [vmem:[#allocation6 + $0x60] sm:$0xff]  ;;  %v2127_v35 = vperm.slane %v6371_v27, 2 }
0x1f84   :  { %2149 = vmatpush.msra.mxu0 %v1880_v39 }
0x1f85   :  { %2835 = vmatpush.msrb.mxu1 %v1880_v39 }
0x1f86   :  { %2150 = vmatpush.msra.mxu0 %v1879_v59 }
0x1f87   :  { %2836 = vmatpush.msrb.mxu1 %v1879_v59 }
0x1f89   :  { %v6463_v24 = vpop.eup %5414 }
0x1f8a   :  { %v2305_v23 = vsel %vm216_vm2, %v6463_v24, 0.0 }
0x1f8b   :  { %2306 = vadd.xlane.f32.xlu2 %v2305_v23 }
0x1f9b   :  { %2323 = vrot.lane.b32.xlu1 %v6408_v60, %s5710_s5 }
0x1fe7   :  { %v2385_v33 = vpop.xlane.xlu2 %2384 }
0x1fe8   :  { %5416 = vrcp.f32 %v2385_v33  ;;  %v2397_v52 = vand.u32 2147483648, %v2385_v33  ;;  %v2395_v60 = vand.u32 2147483647, %v2385_v33  ;;  %vm2391_vm5 = vweird.f32 %v2385_v33 }
0x1fea   :  { %v2398_v4 = vor.u32 1.1754944e-38, %v2397_v52  ;;  %vm2396_vm7 = vcmp.eq.f32.partialorder %v2395_v60, 8.507059e+37 }
0x1fee   :  { %v5417_v55 = vpop.eup %5416 }
0x1fef   :  { %v2387_v31 = vmul.f32 %v5417_v55, %v2385_v33  ;;  %vm2392_vm4 = vweird.f32 %v5417_v55 }
0x1ff0   :  { %vm2393_vm6 = vmor %vm2391_vm5, %vm2392_vm4 }
0x1ff1   :  { %v2388_v8 = vsub.f32 1.0, %v2387_v31 }
0x1ff3   :  { %v2389_v38 = vmul.f32 %v5417_v55, %v2388_v8 }
0x1ff5   :  { %v2390_v51 = vadd.f32 %v5417_v55, %v2389_v38  ;;  %v2113_v44 = vpop.xlane.xlu1 %2112 }
0x1ff6   :  { %v2114_v22 = vmul.f32 %v2113_v44, %v5887_v37 }
0x1ff7   :  { %v2394_v30 = vsel %vm2393_vm6, %v5417_v55, %v2390_v51  ;;  %v2129_v55 = vperm.slane %v6371_v27, 3 }
0x1ff8   :  { %v2399_v61 = vsel %vm2396_vm7, %v2398_v4, %v2394_v30  ;;  %v2115_v12 = vadd.f32 1e-05, %v2114_v22  ;;  %v6488_v30 = vld [vmem:[#allocation7 + $0xf8] sm:$0xff] }
0x1ff9   :  { %v2400_v56 = vmul.f32 %v5413_v50, %v2399_v61  ;;  %v6490_v61 = vld [vmem:[#allocation7 + $0xf0] sm:$0xff]  ;;  %2168 = vmatpush.msra.mxu2 %v6488_v30 }
0x1ffa   :  { %5418 = vrsqrt.f32 %v2115_v12  ;;  %vm2122_vm9 = vweird.f32 %v2115_v12 }
0x1ffb   :  { %5230 = vmatmul.msk.f32.vlgmr.msrb.gmra.mxu3 %vm216_vm2, %v2400_v56  ;;  %2169 = vmatpush.msra.mxu2 %v6490_v61 }
0x1ffe   :  { %v2307_v32 = vpop.xlane.xlu2 %2306 }
0x1fff   :  { %5420 = vrcp.f32 %v2307_v32  ;;  %v2319_v38 = vand.u32 2147483648, %v2307_v32  ;;  %vm2313_vm12 = vweird.f32 %v2307_v32  ;;  %v2317_v60 = vand.u32 2147483647, %v2307_v32 }
0x2000   :  { %v5419_v6 = vpop.eup %5418 }
0x2001   :  { %v2117_v21 = vmul.f32 %v5419_v6, %v2115_v12  ;;  %vm2123_vm8 = vweird.f32 %v5419_v6  ;;  %vm2318_vm14 = vcmp.eq.f32.partialorder %v2317_v60, 8.507059e+37  ;;  %v6493_v12 = vld [vmem:[#allocation7 + $0xe8] sm:$0xff] }
0x2002   :  { %vm2124_vm10 = vmor %vm2122_vm9, %vm2123_vm8  ;;  %2170 = vmatpush.msra.mxu2 %v6493_v12 }
0x2003   :  { %v2118_v5 = vmul.f32 %v5419_v6, %v2117_v21 }
0x2005   :  { %v5421_v63 = vpop.eup %5420  ;;  %v2119_v43 = vmul.f32 0.5, %v2118_v5 }
0x2006   :  { %v2309_v42 = vmul.f32 %v5421_v63, %v2307_v32  ;;  %vm2314_vm11 = vweird.f32 %v5421_v63  ;;  %v2131_v32 = vperm.slane %v6371_v27, 4  ;;  %v6671_v27 = vld [vmem:[#allocation4 + $0x80] sm:$0xff] }
0x2007   :  { %v2120_v23 = vsub.f32 1.5, %v2119_v43  ;;  %vm2315_vm13 = vmor %vm2313_vm12, %vm2314_vm11 }
0x2008   :  { %v2310_v33 = vsub.f32 1.0, %v2309_v42 }
0x2009   :  { %v2121_v16 = vmul.f32 %v5419_v6, %v2120_v23 }
0x200a   :  { %v2311_v50 = vmul.f32 %v5421_v63, %v2310_v33 }
0x200b   :  { %v2125_v39 = vsel %vm2124_vm10, %v5419_v6, %v2121_v16 }
0x200c   :  { %v2126_v59 = vmul.f32 %v2125_v39, %v6455_v1  ;;  %v2312_v52 = vadd.f32 %v5421_v63, %v2311_v50  ;;  %v2320_v1 = vor.u32 1.1754944e-38, %v2319_v38 }
0x200d   :  { %v2324_v31 = vpop.permute.xlu1 %2323 }
0x200e   :  { %v2128_v8 = vmul.f32 %v2127_v35, %v2126_v59  ;;  %2344 = vmatpush.msrb.mxu0 %v2324_v31  ;;  %v2316_v44 = vsel %vm2315_vm13, %v5421_v63, %v2312_v52 }
0x200f   :  { %v2321_v4 = vsel %vm2318_vm14, %v2320_v1, %v2316_v44 }
0x2010   :  { %v6478_v51 = vadd.f32 %v2129_v55, %v2128_v8  ;;  %v2322_v22 = vmul.f32 %v6463_v24, %v2321_v4  ;;  %v6509_v24 = vld [vmem:[#allocation7 + $0xc0] sm:$0xff] }
0x2012   :  { %5220 = vmatmul.msk.f32.vlgmr.msra.gmra.mxu0 %vm162_vm0, %v6478_v51 }
0x2013   :  { %2448 = vmatpush.msra.mxu0 %v6265_v11  ;;  %v6496_v11 = vld [vmem:[#allocation7 + $0xe0] sm:$0xff] }
0x2014   :  { %2171 = vmatpush.msra.mxu2 %v6496_v11 }
0x2015   :  { %2449 = vmatpush.msra.mxu0 %v6267_v18  ;;  %v6499_v18 = vld [vmem:[#allocation7 + $0xd8] sm:$0xff] }
0x2016   :  { %2172 = vmatpush.msra.mxu2 %v6499_v18 }
0x2017   :  { %2450 = vmatpush.msra.mxu0 %v6270_v57  ;;  %v6503_v57 = vld [vmem:[#allocation7 + $0xd0] sm:$0xff] }
0x2018   :  { %2173 = vmatpush.msra.mxu2 %v6503_v57 }
0x2019   :  { %2451 = vmatpush.msra.mxu0 %v6274_v2  ;;  %v6506_v2 = vld [vmem:[#allocation7 + $0xc8] sm:$0xff] }
0x201a   :  { %5227 = vmatmul.msk.f32.vlgmr.msrb.gmra.mxu0 %vm216_vm2, %v2322_v22  ;;  %2174 = vmatpush.msra.mxu2 %v6506_v2 }
0x201c   :  { %2175 = vmatpush.msra.mxu2 %v6509_v24 }
0x201e   :  { %2499 = vmatpush.msrb.mxu2 %v6289_v49 }
0x2020   :  { %2500 = vmatpush.msrb.mxu2 %v6292_v3 }
0x2022   :  { %2501 = vmatpush.msrb.mxu2 %v6295_v62 }
0x2024   :  { %2502 = vmatpush.msrb.mxu2 %v6297_v14 }
0x207e   :  { %v2424_v56 = vpop.f32.mrf.mxu3 }
0x207f   :  { %2428 = vrot.lane.b32.xlu2 %v2424_v56, %s5711_s13 }
0x208f   :  { %v2152_v6 = vpop.f32.mrf.mxu0 }
0x2090   :  { %v2153_v21 = vadd.f32 %v2152_v6, %v2131_v32 }
0x2092   :  { %v2155_v5 = vmax.f32 %v2153_v21, 0.0 }
0x2094   :  { %5221 = vmatmul.msk.f32.vlgmr.msra.gmra.mxu2 %vm434_vm15, %v2155_v5 }
0x2097   :  { %v2346_v63 = vpop.f32.mrf.mxu0 }
0x20d9   :  { %v2429_v49 = vpop.permute.xlu2 %2428 }
0x20da   :  { %v2431_v3 = vsel %vm190_vm1, %v2346_v63, %v2429_v49 }
0x20db   :  { %5231 = vmatmul.msk.f32.vlgmr.msra.gmra.mxu0 %vm162_vm0, %v2431_v3 }
0x2117   :  { %v6535_v6 = vpop.f32.mrf.mxu2 }
0x2158   :  { %v2453_v62 = vpop.f32.mrf.mxu0 }
0x2159   :  { %v2454_v14 = vadd.f32 %v2453_v62, %v1741_v7 }
0x215b   :  { %v2456_v43 = vadd.f32 %v2454_v14, %v6402_v41 }
0x215d   :  { %v2457_v42 = vsel %vm162_vm0, %v2456_v43, 0.0 }
0x215e   :  { %2458 = vadd.xlane.f32.xlu0 %v2457_v42 }
0x21d1   :  { %v2459_v23 = vpop.xlane.xlu0 %2458 }
0x21d2   :  { %v2460_v33 = vmul.f32 %v2459_v23, %v5887_v37 }
0x21d4   :  { %v2461_v16 = vsub.f32 %v2456_v43, %v2460_v33 }
0x21d6   :  { %v2462_v50 = vmul.f32 %v2461_v16, %v2461_v16 }
0x21d8   :  { %v2463_v39 = vsel %vm162_vm0, %v2462_v50, 0.0 }
0x21d9   :  { %2464 = vadd.xlane.f32.xlu1 %v2463_v39 }
0x224c   :  { %v2465_v59 = vpop.xlane.xlu1 %2464 }
0x224d   :  { %v2466_v31 = vmul.f32 %v2465_v59, %v5887_v37 }
0x224f   :  { %v2467_v8 = vadd.f32 1e-05, %v2466_v31 }
0x2251   :  { %5422 = vrsqrt.f32 %v2467_v8  ;;  %vm2474_vm4 = vweird.f32 %v2467_v8 }
0x2257   :  { %v5423_v52 = vpop.eup %5422 }
0x2258   :  { %v2469_v7 = vmul.f32 %v5423_v52, %v2467_v8  ;;  %vm2475_vm3 = vweird.f32 %v5423_v52 }
0x2259   :  { %vm2476_vm5 = vmor %vm2474_vm4, %vm2475_vm3 }
0x225a   :  { %v2470_v38 = vmul.f32 %v5423_v52, %v2469_v7 }
0x225c   :  { %v2471_v41 = vmul.f32 0.5, %v2470_v38 }
0x225e   :  { %v2472_v60 = vsub.f32 1.5, %v2471_v41 }
0x2260   :  { %v2473_v44 = vmul.f32 %v5423_v52, %v2472_v60 }
0x2262   :  { %v2477_v1 = vsel %vm2476_vm5, %v5423_v52, %v2473_v44 }
0x2263   :  { %v2478_v4 = vmul.f32 %v2477_v1, %v2461_v16 }
0x2265   :  { %v2480_v22 = vmul.f32 %v2478_v4, %v1788_v45 }
0x2267   :  { %v2482_v56 = vadd.f32 %v2480_v22, %v1790_v48 }
0x2269   :  { %5232 = vmatmul.msk.f32.vlgmr.msrb.gmra.mxu2 %vm162_vm0, %v2482_v56 }
0x22ec   :  { %v2504_v21 = vpop.f32.mrf.mxu2 }
0x22ed   :  { %v2505_v5 = vadd.f32 %v2504_v21, %v1792_v26 }
0x22ef   :  { %v2507_v63 = vmax.f32 %v2505_v5, 0.0 }
0x22f1   :  { %5233 = vmatmul.msk.f32.vlgmr.msra.gmra.mxu1 %vm434_vm15, %v2507_v63 }
0x236e   :  { %v2529_v49 = vpop.f32.mrf.mxu1 }
0x236f   :  { %v2530_v3 = vadd.f32 %v2529_v49, %v1817_v20 }
0x2371   :  { %v2532_v62 = vadd.f32 %v2530_v3, %v2482_v56  ;;  %v7257_v3 = vmov 1  }
0x2373   :  { %v2533_v45 = vsel %vm162_vm0, %v2532_v62, 0.0 }
0x2374   :  { %2534 = vadd.xlane.f32.xlu2 %v2533_v45 }
0x23e7   :  { %v2535_v48 = vpop.xlane.xlu2 %2534 }
0x23e8   :  { %v2536_v14 = vmul.f32 %v2535_v48, %v5887_v37  ;;  %v6591_v48 = vld [vmem:[#allocation2 + $0x88] sm:$0xff] }
0x23ea   :  { %v2537_v43 = vsub.f32 %v2532_v62, %v2536_v14  ;;  %v6585_v62 = vld [vmem:[#allocation2 + $0x98] sm:$0xff] }
0x23ec   :  { %v2538_v42 = vmul.f32 %v2537_v43, %v2537_v43 }
0x23ee   :  { %v2539_v23 = vsel %vm162_vm0, %v2538_v42, 0.0 }
0x23ef   :  { %2540 = vadd.xlane.f32.xlu0 %v2539_v23 }
0x2462   :  { %v2541_v26 = vpop.xlane.xlu0 %2540 }
0x2463   :  { %v2542_v33 = vmul.f32 %v2541_v26, %v5887_v37 }
0x2465   :  { %v2543_v16 = vadd.f32 1e-05, %v2542_v33 }
0x2467   :  { %5424 = vrsqrt.f32 %v2543_v16  ;;  %vm2550_vm7 = vweird.f32 %v2543_v16 }
0x246d   :  { %v5425_v50 = vpop.eup %5424 }
0x246e   :  { %v2545_v39 = vmul.f32 %v5425_v50, %v2543_v16  ;;  %vm2551_vm6 = vweird.f32 %v5425_v50 }
0x246f   :  { %vm2552_vm8 = vmor %vm2550_vm7, %vm2551_vm6 }
0x2470   :  { %v2546_v20 = vmul.f32 %v5425_v50, %v2545_v39 }
0x2472   :  { %v2547_v59 = vmul.f32 0.5, %v2546_v20 }
0x2474   :  { %v2548_v31 = vsub.f32 1.5, %v2547_v59 }
0x2476   :  { %v2549_v8 = vmul.f32 %v5425_v50, %v2548_v31 }
0x2478   :  { %v2553_v52 = vsel %vm2552_vm8, %v5425_v50, %v2549_v8 }
0x2479   :  { %v2554_v7 = vmul.f32 %v2553_v52, %v2537_v43  ;;  %v6594_v43 = vld [vmem:[#allocation2 + $0x80] sm:$0xff] }
0x247b   :  { %v2556_v38 = vmul.f32 %v2554_v7, %v1864_v13 }
0x247d   :  { %v6550_v41 = vadd.f32 %v2556_v38, %v1866_v29 }
0x247f   :  { %5235 = vmatmul.msk.f32.vlgmr.msra.gmra.mxu3 %vm162_vm0, %v6550_v41 }
0x2502   :  { %v2601_v60 = vpop.f32.mrf.mxu3 }
0x2503   :  { %v2602_v44 = vadd.f32 %v2601_v60, %v1894_v15 }
0x2505   :  { %2606 = vrot.lane.b32.xlu2 %v2602_v44, %s5706_s28  ;;  %2685 = vrot.lane.b32.xlu0 %v2602_v44, %s5708_s30  ;;  %v2604_v1 = vmul.f32 0.25, %v2602_v44 }
0x2507   :  { %2683 = vrot.lane.b32.xlu1 %v2604_v1, %s5707_s29 }
0x255f   :  { %v2607_v4 = vpop.permute.xlu2 %2606 }
0x2560   :  { %5236 = vmatpush.xpose.msk.msrb.mxu0 %vm190_vm1, %v2607_v4 }
0x2563   :  { %5237 = vmatmul.msk.f32.vlgmr.msrb.gmra.mxu0 %vm190_vm1, %v2604_v1 }
0x2577   :  { %v2686_v58 = vpop.permute.xlu0 %2685 }
0x2578   :  { %5239 = vmatpush.xpose.msk.msrb.mxu3 %vm190_vm1, %v2686_v58 }
0x2579   :  { %v2684_v13 = vpop.permute.xlu1 %2683 }
0x257b   :  { %5240 = vmatmul.msk.f32.vlgmr.msrb.gmra.mxu3 %vm190_vm1, %v2684_v13 }
0x257c   :  { %2854 = vmatpush.msra.mxu3 %v6488_v30 }
0x257e   :  { %2855 = vmatpush.msra.mxu3 %v6490_v61 }
0x2580   :  { %2856 = vmatpush.msra.mxu3 %v6493_v12 }
0x2582   :  { %2857 = vmatpush.msra.mxu3 %v6496_v11 }
0x2584   :  { %2858 = vmatpush.msra.mxu3 %v6499_v18 }
0x2586   :  { %2859 = vmatpush.msra.mxu3 %v6503_v57 }
0x2588   :  { %2860 = vmatpush.msra.mxu3 %v6506_v2  ;;  %v5245_v2 = vld [vmem:[%s7239_s0 + $0x20] sm:$0xff] }
0x258a   :  { %2861 = vmatpush.msra.mxu3 %v6509_v24 }
0x25e0   :  { %v2630_v29 = vpop.f32.mrf.mxu0 }
0x25e1   :  { %v2633_v15 = vsel %vm216_vm2, %v2630_v29, -inf }
0x25e2   :  { %2634 = vmax.xlane.f32.xlu2 %v2633_v15 }
0x25fa   :  { %2904 = vperm.xlu2 %5342, %v5245_v2  }
0x25fe   :  { %v2708_v30 = vpop.f32.mrf.mxu3 }
0x25ff   :  { %v2711_v22 = vsel %vm216_vm2, %v2708_v30, -inf }
0x2600   :  { %2712 = vmax.xlane.f32.xlu0 %v2711_v22 }
0x2602   :  { %5343 = vset.pattern.permute.xlu2 %v5704_v0  ;;  %v6588_v0 = vld [vmem:[#allocation2 + $0x90] sm:$0xff] }
0x2614   :  { %2735 = vrot.lane.b32.xlu0 %v2602_v44, %s5709_s12 }
0x2655   :  { %v2635_v61 = vpop.xlane.xlu2 %2634 }
0x2656   :  { %v2636_v12 = vsub.f32 %v2630_v29, %v2635_v61 }
0x2658   :  { %v2637_v11 = vmul.f32 1.442695, %v2636_v12 }
0x265a   :  { %5426 = vpow2.f32 %v2637_v11  ;;  %v6603_v11 = vld [vmem:[%s7241_s2] ss:$0 sm:$0xff] }
0x2660   :  { %v6574_v18 = vpop.eup %5426 }
0x2661   :  { %v2639_v57 = vsel %vm216_vm2, %v6574_v18, 0.0 }
0x2662   :  { %2640 = vadd.xlane.f32.xlu0 %v2639_v57 }
0x2673   :  { %v2713_v24 = vpop.xlane.xlu0 %2712 }
0x2674   :  { %v2714_v56 = vsub.f32 %v2708_v30, %v2713_v24 }
0x2676   :  { %v2715_v21 = vmul.f32 1.442695, %v2714_v56 }
0x2678   :  { %5428 = vpow2.f32 %v2715_v21 }
0x267e   :  { %v5429_v5 = vpop.eup %5428 }
0x267f   :  { %v2717_v63 = vsel %vm216_vm2, %v5429_v5, 0.0 }
0x2680   :  { %2718 = vadd.xlane.f32.xlu1 %v2717_v63 }
0x2686   :  { %v2736_v49 = vpop.permute.xlu0 %2735 }
0x2687   :  { %2756 = vmatpush.msra.mxu0 %v2736_v49 }
0x2689   :  { %2953 = vmatpush.msrb.mxu0 %v6585_v62 }
0x268b   :  { %2954 = vmatpush.msrb.mxu0 %v6588_v0 }
0x268d   :  { %2955 = vmatpush.msrb.mxu0 %v6591_v48 }
0x268f   :  { %2956 = vmatpush.msrb.mxu0 %v6594_v43 }
0x2699   :  { %2899 = vperm.xlu1 %5339, %v5245_v2  }
0x26a1   :  { %2657 = vrot.lane.b32.xlu1 %v2602_v44, %s5710_s5  ;;  %v2905_v44 = vpop.permute.xlu2 %2904 }
0x26a2   :  { %5344 = vset.pattern.permute.xlu1 %v7257_v3  ;;  %v2907_v58 = vmul.f32 %v2905_v44, %v5821_v10 }
0x26d5   :  { %v2641_v45 = vpop.xlane.xlu0 %2640 }
0x26d6   :  { %5430 = vrcp.f32 %v2641_v45  ;;  %v2653_v4 = vand.u32 2147483648, %v2641_v45  ;;  %vm2647_vm14 = vweird.f32 %v2641_v45  ;;  %v2651_v13 = vand.u32 2147483647, %v2641_v45 }
0x26d8   :  { %v2654_v22 = vor.u32 1.1754944e-38, %v2653_v4  ;;  %vm2652_vm4 = vcmp.eq.f32.partialorder %v2651_v13, 8.507059e+37 }
0x26dc   :  { %v5431_v42 = vpop.eup %5430 }
0x26dd   :  { %v2643_v33 = vmul.f32 %v5431_v42, %v2641_v45  ;;  %vm2648_vm13 = vweird.f32 %v5431_v42 }
0x26de   :  { %vm2649_vm3 = vmor %vm2647_vm14, %vm2648_vm13 }
0x26df   :  { %v2644_v59 = vsub.f32 1.0, %v2643_v33 }
0x26e1   :  { %v2645_v38 = vmul.f32 %v5431_v42, %v2644_v59 }
0x26e3   :  { %v2646_v1 = vadd.f32 %v5431_v42, %v2645_v38 }
0x26e5   :  { %v2650_v30 = vsel %vm2649_vm3, %v5431_v42, %v2646_v1 }
0x26e6   :  { %v2655_v12 = vsel %vm2652_vm4, %v2654_v22, %v2650_v30 }
0x26e7   :  { %v2656_v56 = vmul.f32 %v6574_v18, %v2655_v12 }
0x26f3   :  { %v2719_v14 = vpop.xlane.xlu1 %2718 }
0x26f4   :  { %5432 = vrcp.f32 %v2719_v14  ;;  %v2731_v50 = vand.u32 2147483648, %v2719_v14  ;;  %v2729_v20 = vand.u32 2147483647, %v2719_v14  ;;  %vm2725_vm10 = vweird.f32 %v2719_v14 }
0x26f6   :  { %v2732_v8 = vor.u32 1.1754944e-38, %v2731_v50  ;;  %vm2730_vm12 = vcmp.eq.f32.partialorder %v2729_v20, 8.507059e+37 }
0x26fa   :  { %v5433_v23 = vpop.eup %5432 }
0x26fb   :  { %v2721_v26 = vmul.f32 %v5433_v23, %v2719_v14  ;;  %vm2726_vm9 = vweird.f32 %v5433_v23 }
0x26fc   :  { %vm2727_vm11 = vmor %vm2725_vm10, %vm2726_vm9 }
0x26fd   :  { %v2722_v16 = vsub.f32 1.0, %v2721_v26 }
0x26ff   :  { %v2723_v39 = vmul.f32 %v5433_v23, %v2722_v16 }
0x2701   :  { %v2724_v31 = vadd.f32 %v5433_v23, %v2723_v39 }
0x2703   :  { %v2728_v52 = vsel %vm2727_vm11, %v5433_v23, %v2724_v31 }
0x2704   :  { %v2733_v7 = vsel %vm2730_vm12, %v2732_v8, %v2728_v52 }
0x2705   :  { %v2734_v60 = vmul.f32 %v5429_v5, %v2733_v7 }
0x2707   :  { %5241 = vmatmul.msk.f32.vlgmr.msra.gmra.mxu0 %vm216_vm2, %v2734_v60 }
0x270b   :  { %v2900_v29 = vpop.permute.xlu1 %2899 }
0x270c   :  { %v2902_v15 = vmul.f32 %v2900_v29, %v5819_v9 }
0x270e   :  { %v2908_v61 = vadd.f32 %v2907_v58, %v2902_v15 }
0x2710   :  { %v2909_v57 = vadd.f32 %v6603_v11, %v2908_v61 }
0x2712   :  { %v6607_v2 = vadd.f32 %v2909_v57, %v5836_v17  ;;  %v6620_v17 = vld [vmem:[%s7247_s8 + $0x20] sm:$0xff] }
0x2713   :  { %v2658_v24 = vpop.permute.xlu1 %2657  ;;  %v2937_v18 = vperm.slane %v6620_v17, 0 }
0x2714   :  { %2678 = vmatpush.msra.mxu2 %v2658_v24  ;;  %5247 = vmatmul.msk.f32.vlgmr.msrb.gmra.mxu0 %vm162_vm0, %v6607_v2 }
0x2715   :  { %5238 = vmatmul.msk.f32.vlgmr.msra.gmra.mxu2 %vm216_vm2, %v2656_v56 }
0x2716   :  { %2782 = vmatpush.msrb.mxu2 %v6417_v54 }
0x2718   :  { %2783 = vmatpush.msrb.mxu2 %v6419_v46 }
0x271a   :  { %2784 = vmatpush.msrb.mxu2 %v6422_v40 }
0x271c   :  { %2785 = vmatpush.msrb.mxu2 %v6425_v19 }
0x2784   :  { %v2758_v21 = vpop.f32.mrf.mxu0 }
0x2791   :  { %v2958_v5 = vpop.f32.mrf.mxu0 }
0x2792   :  { %v2959_v63 = vadd.f32 %v2958_v5, %v2937_v18 }
0x2794   :  { %3042 = vrot.lane.b32.xlu2 %v2959_v63, %s5708_s30  ;;  %v2961_v54 = vmul.f32 0.25, %v2959_v63 }
0x2796   :  { %3040 = vrot.lane.b32.xlu1 %v2961_v54, %s5707_s29 }
0x2798   :  { %v2680_v40 = vpop.f32.mrf.mxu2 }
0x279c   :  { %2762 = vrot.lane.b32.xlu2 %v2758_v21, %s5711_s13 }
0x279e   :  { %2963 = vrot.lane.b32.xlu1 %v2959_v63, %s5706_s28 }
0x27ee   :  { %v3043_v46 = vpop.permute.xlu2 %3042 }
0x27ef   :  { %5251 = vmatpush.xpose.msk.msra.mxu0 %vm190_vm1, %v3043_v46 }
0x27f6   :  { %v2763_v19 = vpop.permute.xlu2 %2762 }
0x27f7   :  { %v2765_v49 = vsel %vm190_vm1, %v2680_v40, %v2763_v19 }
0x27f8   :  { %5242 = vmatmul.msk.f32.vlgmr.msrb.gmra.mxu2 %vm162_vm0, %v2765_v49 }
0x2808   :  { %v3041_v3 = vpop.permute.xlu1 %3040 }
0x2809   :  { %5252 = vmatmul.msk.f32.vlgmr.msra.gmra.mxu0 %vm190_vm1, %v3041_v3 }
0x2810   :  { %v2964_v45 = vpop.permute.xlu1 %2963 }
0x2811   :  { %5248 = vmatpush.xpose.msk.msra.mxu2 %vm190_vm1, %v2964_v45 }
0x2814   :  { %5249 = vmatmul.msk.f32.vlgmr.msra.gmra.mxu2 %vm190_vm1, %v2961_v54 }
0x287b   :  { %v2787_v14 = vpop.f32.mrf.mxu2 }
0x287c   :  { %v2788_v42 = vadd.f32 %v2787_v14, %v2080_v28 }
0x287e   :  { %v2790_v23 = vadd.f32 %v2788_v42, %v6550_v41 }
0x2880   :  { %v2791_v26 = vsel %vm162_vm0, %v2790_v23, 0.0 }
0x2881   :  { %2792 = vadd.xlane.f32.xlu1 %v2791_v26 }
0x2886   :  { %v3065_v33 = vpop.f32.mrf.mxu0 }
0x2887   :  { %v3068_v16 = vsel %vm216_vm2, %v3065_v33, -inf }
0x2888   :  { %3069 = vmax.xlane.f32.xlu2 %v3068_v16 }
0x2897   :  { %v2987_v50 = vpop.f32.mrf.mxu2 }
0x2898   :  { %v2990_v39 = vsel %vm216_vm2, %v2987_v50, -inf }
0x2899   :  { %2991 = vmax.xlane.f32.xlu0 %v2990_v39 }
0x289a   :  { %3014 = vrot.lane.b32.xlu1 %v2959_v63, %s5710_s5 }
0x28f4   :  { %v2793_v20 = vpop.xlane.xlu1 %2792 }
0x28f5   :  { %v2794_v59 = vmul.f32 %v2793_v20, %v5887_v37 }
0x28f7   :  { %v2795_v31 = vsub.f32 %v2790_v23, %v2794_v59 }
0x28f9   :  { %v2796_v28 = vmul.f32 %v2795_v31, %v2795_v31 }
0x28fb   :  { %v3070_v8 = vpop.xlane.xlu2 %3069  ;;  %v2797_v41 = vsel %vm162_vm0, %v2796_v28, 0.0 }
0x28fc   :  { %v3071_v52 = vsub.f32 %v3065_v33, %v3070_v8  ;;  %2798 = vadd.xlane.f32.xlu2 %v2797_v41 }
0x28fe   :  { %v3072_v7 = vmul.f32 1.442695, %v3071_v52 }
0x2900   :  { %5434 = vpow2.f32 %v3072_v7 }
0x2906   :  { %v5435_v38 = vpop.eup %5434 }
0x2907   :  { %v3074_v60 = vsel %vm216_vm2, %v5435_v38, 0.0 }
0x2908   :  { %3075 = vadd.xlane.f32.xlu0 %v3074_v60 }
0x290c   :  { %v3015_v44 = vpop.permute.xlu1 %3014  ;;  %v2992_v1 = vpop.xlane.xlu0 %2991 }
0x290d   :  { %3035 = vmatpush.msra.mxu1 %v3015_v44  ;;  %v2993_v4 = vsub.f32 %v2987_v50, %v2992_v1 }
0x290f   :  { %v2994_v58 = vmul.f32 1.442695, %v2993_v4 }
0x2911   :  { %5436 = vpow2.f32 %v2994_v58 }
0x2917   :  { %v5437_v13 = vpop.eup %5436 }
0x2918   :  { %v2996_v29 = vsel %vm216_vm2, %v5437_v13, 0.0 }
0x291c   :  { %3092 = vrot.lane.b32.xlu0 %v2959_v63, %s5709_s12 }
0x2946   :  { %2997 = vadd.xlane.f32.xlu0 %v2996_v29  ;;  %v6662_v29 = vld [vmem:[#allocation4 + $0x98] sm:$0xff] }
0x296f   :  { %v2799_v15 = vpop.xlane.xlu2 %2798 }
0x2970   :  { %v2800_v30 = vmul.f32 %v2799_v15, %v5887_v37  ;;  %v6664_v15 = vld [vmem:[#allocation4 + $0x90] sm:$0xff] }
0x2972   :  { %v2801_v22 = vadd.f32 1e-05, %v2800_v30  ;;  %v6667_v30 = vld [vmem:[#allocation4 + $0x88] sm:$0xff] }
0x2974   :  { %5438 = vrsqrt.f32 %v2801_v22  ;;  %vm2808_vm6 = vweird.f32 %v2801_v22 }
0x297a   :  { %v5439_v61 = vpop.eup %5438 }
0x297b   :  { %v2803_v12 = vmul.f32 %v5439_v61, %v2801_v22  ;;  %v3076_v57 = vpop.xlane.xlu0 %3075  ;;  %vm2809_vm5 = vweird.f32 %v5439_v61 }
0x297c   :  { %5440 = vrcp.f32 %v3076_v57  ;;  %vm2810_vm7 = vmor %vm2808_vm6, %vm2809_vm5  ;;  %v3088_v49 = vand.u32 2147483648, %v3076_v57  ;;  %v3086_v45 = vand.u32 2147483647, %v3076_v57  ;;  %vm3082_vm9 = vweird.f32 %v3076_v57 }
0x297d   :  { %v2804_v24 = vmul.f32 %v5439_v61, %v2803_v12 }
0x297e   :  { %v3089_v23 = vor.u32 1.1754944e-38, %v3088_v49  ;;  %vm3087_vm11 = vcmp.eq.f32.partialorder %v3086_v45, 8.507059e+37  ;;  %v6691_v49 = vld [vmem:[#allocation6 + $0x80] sm:$0xff]  ;;  %v6697_v45 = vld [vmem:[#allocation7 + $0x130] sm:$0xff] }
0x297f   :  { %v2805_v56 = vmul.f32 0.5, %v2804_v24 }
0x2981   :  { %v2806_v21 = vsub.f32 1.5, %v2805_v56 }
0x2982   :  { %v5441_v5 = vpop.eup %5440 }
0x2983   :  { %v2807_v63 = vmul.f32 %v5439_v61, %v2806_v21  ;;  %v3078_v54 = vmul.f32 %v5441_v5, %v3076_v57  ;;  %vm3083_vm8 = vweird.f32 %v5441_v5 }
0x2984   :  { %vm3084_vm10 = vmor %vm3082_vm9, %vm3083_vm8 }
0x2985   :  { %v2811_v46 = vsel %vm2810_vm7, %v5439_v61, %v2807_v63  ;;  %v3079_v40 = vsub.f32 1.0, %v3078_v54  ;;  %v3123_v61 = vperm.slane %v6620_v17, 1 }
0x2986   :  { %v2812_v19 = vmul.f32 %v2811_v46, %v2795_v31 }
0x2987   :  { %v3080_v3 = vmul.f32 %v5441_v5, %v3079_v40  ;;  %v6683_v40 = vld [vmem:[#allocation6 + $0x98] sm:$0xff] }
0x2988   :  { %v2814_v14 = vmul.f32 %v2812_v19, %v2127_v35  ;;  %3190 = vmatpush.msrb.mxu3 %v6683_v40  ;;  %v6686_v19 = vld [vmem:[#allocation6 + $0x90] sm:$0xff] }
0x2989   :  { %v3081_v42 = vadd.f32 %v5441_v5, %v3080_v3  ;;  %v6695_v3 = vld [vmem:[#allocation7 + $0x138] sm:$0xff] }
0x298a   :  { %v6652_v26 = vadd.f32 %v2814_v14, %v2129_v55  ;;  %3191 = vmatpush.msrb.mxu3 %v6686_v19  ;;  %3211 = vmatpush.msrb.mxu0 %v6695_v3  ;;  %v6700_v14 = vld [vmem:[#allocation7 + $0x128] sm:$0xff] }
0x298b   :  { %v3085_v33 = vsel %vm3084_vm10, %v5441_v5, %v3081_v42 }
0x298c   :  { %v3090_v16 = vsel %vm3087_vm11, %v3089_v23, %v3085_v33  ;;  %5243 = vmatmul.msk.f32.vlgmr.msrb.gmra.mxu1 %vm162_vm0, %v6652_v26  ;;  %3212 = vmatpush.msrb.mxu0 %v6697_v45  ;;  %v6704_v33 = vld [vmem:[#allocation7 + $0x120] sm:$0xff] }
0x298d   :  { %v3091_v50 = vmul.f32 %v5435_v38, %v3090_v16  ;;  %3139 = vmatpush.msrb.mxu1 %v6662_v29 }
0x298e   :  { %v3093_v39 = vpop.permute.xlu0 %3092  ;;  %3213 = vmatpush.msrb.mxu0 %v6700_v14 }
0x298f   :  { %3113 = vmatpush.msrb.mxu2 %v3093_v39  ;;  %3140 = vmatpush.msrb.mxu1 %v6664_v15 }
0x2990   :  { %5253 = vmatmul.msk.f32.vlgmr.msrb.gmra.mxu2 %vm216_vm2, %v3091_v50  ;;  %v6707_v50 = vld [vmem:[#allocation7 + $0x118] sm:$0xff]  ;;  %3214 = vmatpush.msrb.mxu0 %v6704_v33 }
0x2991   :  { %3141 = vmatpush.msrb.mxu1 %v6667_v30 }
0x2992   :  { %3215 = vmatpush.msrb.mxu0 %v6707_v50 }
0x2993   :  { %3142 = vmatpush.msrb.mxu1 %v6671_v27 }
0x29b9   :  { %v2998_v35 = vpop.xlane.xlu0 %2997 }
0x29ba   :  { %5442 = vrcp.f32 %v2998_v35  ;;  %v3010_v28 = vand.u32 2147483648, %v2998_v35  ;;  %v3008_v55 = vand.u32 2147483647, %v2998_v35  ;;  %vm3004_vm13 = vweird.f32 %v2998_v35 }
0x29bc   :  { %v3011_v52 = vor.u32 1.1754944e-38, %v3010_v28  ;;  %vm3009_vm3 = vcmp.eq.f32.partialorder %v3008_v55, 8.507059e+37 }
0x29c0   :  { %v5443_v20 = vpop.eup %5442 }
0x29c1   :  { %v3000_v59 = vmul.f32 %v5443_v20, %v2998_v35  ;;  %vm3005_vm12 = vweird.f32 %v5443_v20 }
0x29c2   :  { %vm3006_vm14 = vmor %vm3004_vm13, %vm3005_vm12 }
0x29c3   :  { %v3001_v31 = vsub.f32 1.0, %v3000_v59 }
0x29c5   :  { %v3002_v8 = vmul.f32 %v5443_v20, %v3001_v31 }
0x29c7   :  { %v3003_v41 = vadd.f32 %v5443_v20, %v3002_v8  ;;  %v3170_v8 = vperm.slane %v6620_v17, 2 }
0x29c9   :  { %v3007_v7 = vsel %vm3006_vm14, %v5443_v20, %v3003_v41 }
0x29ca   :  { %v3012_v38 = vsel %vm3009_vm3, %v3011_v52, %v3007_v7  ;;  %v3172_v52 = vperm.slane %v6620_v17, 3 }
0x29cb   :  { %v3013_v60 = vmul.f32 %v5437_v13, %v3012_v38 }
0x29cd   :  { %5250 = vmatmul.msk.f32.vlgmr.msra.gmra.mxu1 %vm216_vm2, %v3013_v60  ;;  %v6718_v60 = vld [vmem:[#allocation7 + $0x110] sm:$0xff] }
0x29ce   :  { %3216 = vmatpush.msrb.mxu0 %v6718_v60 }
0x2a09   :  { %v2838_v44 = vpop.f32.mrf.mxu1 }
0x2a0a   :  { %v2839_v1 = vadd.f32 %v2838_v44, %v2131_v32  ;;  %v6721_v44 = vld [vmem:[#allocation7 + $0x108] sm:$0xff] }
0x2a0b   :  { %3217 = vmatpush.msrb.mxu0 %v6721_v44 }
0x2a0c   :  { %v2841_v4 = vmax.f32 %v2839_v1, 0.0  ;;  %v6724_v1 = vld [vmem:[#allocation7 + $0x100] sm:$0xff] }
0x2a0d   :  { %3218 = vmatpush.msrb.mxu0 %v6724_v1 }
0x2a0e   :  { %5244 = vmatmul.msk.f32.vlgmr.msra.gmra.mxu3 %vm434_vm15, %v2841_v4 }
0x2a13   :  { %v3115_v58 = vpop.f32.mrf.mxu2 }
0x2a14   :  { %3119 = vrot.lane.b32.xlu2 %v3115_v58, %s5711_s13  ;;  %v7256_v58 = vperm.slane %v6620_v17, 4 }
0x2a4a   :  { %v3037_v32 = vpop.f32.mrf.mxu1 }
0x2a6e   :  { %v3120_v13 = vpop.permute.xlu2 %3119 }
0x2a6f   :  { %v3122_v22 = vsel %vm190_vm1, %v3037_v32, %v3120_v13 }
0x2a70   :  { %5254 = vmatmul.msk.f32.vlgmr.msrb.gmra.mxu1 %vm162_vm0, %v3122_v22 }
0x2a91   :  { %v6727_v4 = vpop.f32.mrf.mxu3 }
0x2aed   :  { %v3144_v12 = vpop.f32.mrf.mxu1 }
0x2aee   :  { %v3145_v57 = vadd.f32 %v3144_v12, %v3123_v61  ;;  %v7255_v12 = vperm.slane %v6620_v17, 5 }
0x2af0   :  { %v3147_v24 = vadd.f32 %v3145_v57, %v6607_v2  ;;  %v6689_v2 = vld [vmem:[#allocation6 + $0x88] sm:$0xff] }
0x2af1   :  { %3192 = vmatpush.msrb.mxu3 %v6689_v2 }
0x2af2   :  { %v3148_v56 = vsel %vm162_vm0, %v3147_v24, 0.0 }
0x2af3   :  { %3149 = vadd.xlane.f32.xlu1 %v3148_v56  ;;  %3193 = vmatpush.msrb.mxu3 %v6691_v49 }
0x2b66   :  { %v3150_v21 = vpop.xlane.xlu1 %3149 }
0x2b67   :  { %v3151_v5 = vmul.f32 %v3150_v21, %v5887_v37 }
0x2b69   :  { %v3152_v63 = vsub.f32 %v3147_v24, %v3151_v5 }
0x2b6b   :  { %v3153_v54 = vmul.f32 %v3152_v63, %v3152_v63 }
0x2b6d   :  { %v3154_v46 = vsel %vm162_vm0, %v3153_v54, 0.0 }
0x2b6e   :  { %3155 = vadd.xlane.f32.xlu2 %v3154_v46 }
0x2be1   :  { %v3156_v42 = vpop.xlane.xlu2 %3155 }
0x2be2   :  { %v3157_v23 = vmul.f32 %v3156_v42, %v5887_v37 }
0x2be4   :  { %v3158_v16 = vadd.f32 1e-05, %v3157_v23  ;;  %v6739_v23 = vld [vmem:[#allocation2 + $0xb8] sm:$0xff] }
0x2be5   :  { %3292 = vmatpush.msra.mxu2 %v6739_v23 }
0x2be6   :  { %5444 = vrsqrt.f32 %v3158_v16  ;;  %vm3165_vm5 = vweird.f32 %v3158_v16 }
0x2bec   :  { %v5445_v39 = vpop.eup %5444 }
0x2bed   :  { %v3160_v35 = vmul.f32 %v5445_v39, %v3158_v16  ;;  %vm3166_vm4 = vweird.f32 %v5445_v39  ;;  %v6742_v16 = vld [vmem:[#allocation2 + $0xb0] sm:$0xff] }
0x2bee   :  { %vm3167_vm6 = vmor %vm3165_vm5, %vm3166_vm4  ;;  %3293 = vmatpush.msra.mxu2 %v6742_v16 }
0x2bef   :  { %v3161_v20 = vmul.f32 %v5445_v39, %v3160_v35  ;;  %v6747_v35 = vld [vmem:[#allocation2 + $0xa0] sm:$0xff] }
0x2bf1   :  { %v3162_v59 = vmul.f32 0.5, %v3161_v20 }
0x2bf3   :  { %v3163_v31 = vsub.f32 1.5, %v3162_v59 }
0x2bf5   :  { %v3164_v28 = vmul.f32 %v5445_v39, %v3163_v31 }
0x2bf7   :  { %v3168_v55 = vsel %vm3167_vm6, %v5445_v39, %v3164_v28  ;;  %v6745_v39 = vld [vmem:[#allocation2 + $0xa8] sm:$0xff] }
0x2bf8   :  { %v3169_v41 = vmul.f32 %v3168_v55, %v3152_v63  ;;  %3294 = vmatpush.msra.mxu2 %v6745_v39 }
0x2bfa   :  { %v3171_v7 = vmul.f32 %v3170_v8, %v3169_v41  ;;  %3295 = vmatpush.msra.mxu2 %v6747_v35 }
0x2bfc   :  { %v3173_v38 = vadd.f32 %v3172_v52, %v3171_v7 }
0x2bfe   :  { %5255 = vmatmul.msk.f32.vlgmr.msrb.gmra.mxu3 %vm162_vm0, %v3173_v38 }
0x2c81   :  { %v3195_v32 = vpop.f32.mrf.mxu3 }
0x2c82   :  { %v3196_v13 = vadd.f32 %v3195_v32, %v7256_v58 }
0x2c84   :  { %v3198_v22 = vmax.f32 %v3196_v13, 0.0  ;;  %v7254_v13 = vperm.slane %v6620_v17, 6 }
0x2c86   :  { %5256 = vmatmul.msk.f32.vlgmr.msrb.gmra.mxu0 %vm434_vm15, %v3198_v22 }
0x2d03   :  { %v3220_v57 = vpop.f32.mrf.mxu0 }
0x2d04   :  { %v3221_v24 = vadd.f32 %v3220_v57, %v7255_v12 }
0x2d06   :  { %v3223_v56 = vadd.f32 %v3221_v24, %v3173_v38  ;;  %v7253_v24 = vperm.slane %v6620_v17, 7 }
0x2d08   :  { %v3224_v21 = vsel %vm162_vm0, %v3223_v56, 0.0 }
0x2d09   :  { %3225 = vadd.xlane.f32.xlu0 %v3224_v21 }
0x2d7c   :  { %v3226_v5 = vpop.xlane.xlu0 %3225 }
0x2d7d   :  { %v3227_v63 = vmul.f32 %v3226_v5, %v5887_v37  ;;  %v6765_v5 = vld [vmem:[%s7247_s8 + $0x28] sm:$0xff] }
0x2d7f   :  { %v3228_v54 = vsub.f32 %v3223_v56, %v3227_v63  ;;  %v7252_v63 = vperm.slane %v6765_v5, 0 }
0x2d81   :  { %v3229_v46 = vmul.f32 %v3228_v54, %v3228_v54 }
0x2d83   :  { %v3230_v42 = vsel %vm162_vm0, %v3229_v46, 0.0 }
0x2d84   :  { %3231 = vadd.xlane.f32.xlu0 %v3230_v42 }
0x2df7   :  { %v3232_v20 = vpop.xlane.xlu0 %3231 }
0x2df8   :  { %v3233_v59 = vmul.f32 %v3232_v20, %v5887_v37 }
0x2dfa   :  { %v3234_v31 = vadd.f32 1e-05, %v3233_v59 }
0x2dfc   :  { %5446 = vrsqrt.f32 %v3234_v31  ;;  %vm3241_vm8 = vweird.f32 %v3234_v31 }
0x2e02   :  { %v5447_v28 = vpop.eup %5446 }
0x2e03   :  { %v3236_v55 = vmul.f32 %v5447_v28, %v3234_v31  ;;  %vm3242_vm7 = vweird.f32 %v5447_v28 }
0x2e04   :  { %vm3243_vm9 = vmor %vm3241_vm8, %vm3242_vm7 }
0x2e05   :  { %v3237_v41 = vmul.f32 %v5447_v28, %v3236_v55 }
0x2e07   :  { %v3238_v7 = vmul.f32 0.5, %v3237_v41 }
0x2e09   :  { %v3239_v38 = vsub.f32 1.5, %v3238_v7 }
0x2e0b   :  { %v3240_v32 = vmul.f32 %v5447_v28, %v3239_v38  ;;  %v5268_v38 = vld [vmem:[%s7239_s0 + $0x28] sm:$0xff] }
0x2e0d   :  { %v3244_v22 = vsel %vm3243_vm9, %v5447_v28, %v3240_v32 }
0x2e0e   :  { %v3245_v57 = vmul.f32 %v3244_v22, %v3228_v54 }
0x2e10   :  { %v3247_v56 = vmul.f32 %v7254_v13, %v3245_v57 }
0x2e12   :  { %v6758_v21 = vadd.f32 %v7253_v24, %v3247_v56 }
0x2e14   :  { %5258 = vmatmul.msk.f32.vlgmr.msra.gmra.mxu2 %vm162_vm0, %v6758_v21 }
0x2e97   :  { %v3297_v54 = vpop.f32.mrf.mxu2 }
0x2e98   :  { %v3298_v46 = vadd.f32 %v3297_v54, %v7252_v63 }
0x2e9a   :  { %3302 = vrot.lane.b32.xlu1 %v3298_v46, %s5706_s28  ;;  %3381 = vrot.lane.b32.xlu0 %v3298_v46, %s5708_s30  ;;  %v3300_v42 = vmul.f32 0.25, %v3298_v46 }
0x2e9c   :  { %3379 = vrot.lane.b32.xlu2 %v3300_v42, %s5707_s29 }
0x2ef6   :  { %v3380_v31 = vpop.permute.xlu2 %3379 }
0x2f0c   :  { %v3303_v20 = vpop.permute.xlu1 %3302  ;;  %v3382_v59 = vpop.permute.xlu0 %3381 }
0x2f0d   :  { %5259 = vmatpush.xpose.msk.msra.mxu1 %vm190_vm1, %v3303_v20  ;;  %5262 = vmatpush.xpose.msk.msrb.mxu2 %vm190_vm1, %v3382_v59 }
0x2f10   :  { %5260 = vmatmul.msk.f32.vlgmr.msra.gmra.mxu1 %vm190_vm1, %v3300_v42  ;;  %5263 = vmatmul.msk.f32.vlgmr.msrb.gmra.mxu2 %vm190_vm1, %v3380_v31 }
0x2f8d   :  { %v3326_v28 = vpop.f32.mrf.mxu1 }
0x2f8e   :  { %v3329_v55 = vsel %vm216_vm2, %v3326_v28, -inf }
0x2f8f   :  { %3330 = vmax.xlane.f32.xlu1 %v3329_v55 }
0x2f93   :  { %v3404_v41 = vpop.f32.mrf.mxu2 }
0x2f94   :  { %v3407_v7 = vsel %vm216_vm2, %v3404_v41, -inf }
0x2f95   :  { %3408 = vmax.xlane.f32.xlu0 %v3407_v7 }
0x2fa8   :  { %3600 = vperm.xlu1 %5344, %v5268_v38  }
0x2fa9   :  { %3431 = vrot.lane.b32.xlu0 %v3298_v46, %s5709_s12 }
0x3002   :  { %v3331_v32 = vpop.xlane.xlu1 %3330 }
0x3003   :  { %v3332_v22 = vsub.f32 %v3326_v28, %v3331_v32 }
0x3005   :  { %v3333_v57 = vmul.f32 1.442695, %v3332_v22 }
0x3007   :  { %5448 = vpow2.f32 %v3333_v57 }
0x3008   :  { %v3409_v56 = vpop.xlane.xlu0 %3408 }
0x3009   :  { %v3410_v54 = vsub.f32 %v3404_v41, %v3409_v56 }
0x300b   :  { %v3411_v42 = vmul.f32 1.442695, %v3410_v54 }
0x300d   :  { %v5449_v20 = vpop.eup %5448  ;;  %5450 = vpow2.f32 %v3411_v42 }
0x300e   :  { %v3335_v59 = vsel %vm216_vm2, %v5449_v20, 0.0 }
0x300f   :  { %3336 = vadd.xlane.f32.xlu0 %v3335_v59 }
0x3013   :  { %v5451_v31 = vpop.eup %5450 }
0x3014   :  { %v3413_v55 = vsel %vm216_vm2, %v5451_v31, 0.0 }
0x3015   :  { %3414 = vadd.xlane.f32.xlu2 %v3413_v55 }
0x301b   :  { %v3432_v7 = vpop.permute.xlu0 %3431 }
0x301c   :  { %3452 = vmatpush.msrb.mxu1 %v3432_v7 }
0x301e   :  { %3644 = vmatpush.msra.mxu1 %v6585_v62 }
0x3020   :  { %3645 = vmatpush.msra.mxu1 %v6588_v0 }
0x3022   :  { %3646 = vmatpush.msra.mxu1 %v6591_v48 }
0x3024   :  { %3647 = vmatpush.msra.mxu1 %v6594_v43  ;;  %v3601_v43 = vpop.permute.xlu1 %3600 }
0x3025   :  { %v3603_v63 = vmul.f32 %v3601_v43, %v5821_v10 }
0x302d   :  { %3595 = vperm.xlu2 %5343, %v5268_v38  }
0x3035   :  { %3353 = vrot.lane.b32.xlu2 %v3298_v46, %s5710_s5 }
0x3082   :  { %v3337_v28 = vpop.xlane.xlu0 %3336 }
0x3083   :  { %5452 = vrcp.f32 %v3337_v28  ;;  %v3347_v62 = vand.u32 2147483647, %v3337_v28  ;;  %v3349_v42 = vand.u32 2147483648, %v3337_v28  ;;  %vm3343_vm11 = vweird.f32 %v3337_v28 }
0x3085   :  { %vm3348_vm13 = vcmp.eq.f32.partialorder %v3347_v62, 8.507059e+37  ;;  %v3350_v55 = vor.u32 1.1754944e-38, %v3349_v42 }
0x3088   :  { %v3415_v41 = vpop.xlane.xlu2 %3414 }
0x3089   :  { %v5453_v32 = vpop.eup %5452  ;;  %5454 = vrcp.f32 %v3415_v41  ;;  %v3427_v7 = vand.u32 2147483648, %v3415_v41  ;;  %vm3421_vm3 = vweird.f32 %v3415_v41 }
0x308a   :  { %v3339_v22 = vmul.f32 %v5453_v32, %v3337_v28  ;;  %vm3344_vm10 = vweird.f32 %v5453_v32 }
0x308b   :  { %vm3345_vm12 = vmor %vm3343_vm11, %vm3344_vm10  ;;  %v3428_v28 = vor.u32 1.1754944e-38, %v3427_v7  ;;  %v3261_v7 = vld [vmem:[#allocation6 + $0xa0] sm:$0xff] }
0x308c   :  { %v3340_v57 = vsub.f32 1.0, %v3339_v22  ;;  %v3425_v22 = vand.u32 2147483647, %v3415_v41 }
0x308e   :  { %v3341_v56 = vmul.f32 %v5453_v32, %v3340_v57  ;;  %vm3426_vm5 = vcmp.eq.f32.partialorder %v3425_v22, 8.507059e+37 }
0x308f   :  { %v5455_v54 = vpop.eup %5454 }
0x3090   :  { %v3342_v0 = vadd.f32 %v5453_v32, %v3341_v56  ;;  %v3417_v48 = vmul.f32 %v5455_v54, %v3415_v41  ;;  %v3596_v59 = vpop.permute.xlu2 %3595  ;;  %vm3422_vm14 = vweird.f32 %v5455_v54 }
0x3091   :  { %v3598_v57 = vmul.f32 %v3596_v59, %v5819_v9  ;;  %vm3423_vm4 = vmor %vm3421_vm3, %vm3422_vm14 }
0x3092   :  { %v3346_v38 = vsel %vm3345_vm12, %v5453_v32, %v3342_v0  ;;  %v3418_v46 = vsub.f32 1.0, %v3417_v48 }
0x3093   :  { %v3351_v13 = vsel %vm3348_vm13, %v3350_v55, %v3346_v38  ;;  %v3604_v0 = vadd.f32 %v3603_v63, %v3598_v57  ;;  %v6819_v63 = vld [vmem:[#allocation4 + $0xa0] sm:$0xff]  ;;  %v3264_v38 = vld [vmem:[#allocation6 + $0xb8] sm:$0xff]  ;;  %v3262_v55 = vld [vmem:[#allocation6 + $0xa8] sm:$0xff] }
0x3094   :  { %v3419_v24 = vmul.f32 %v5455_v54, %v3418_v46  ;;  %v3352_v32 = vmul.f32 %v5449_v20, %v3351_v13  ;;  %3529 = vmatpush.msra.mxu0 %v3264_v38  ;;  %v3263_v46 = vld [vmem:[#allocation6 + $0xb0] sm:$0xff] }
0x3095   :  { %v3605_v42 = vadd.f32 %v6603_v11, %v3604_v0  ;;  %v6813_v11 = vld [vmem:[#allocation4 + $0xb0] sm:$0xff] }
0x3096   :  { %v3420_v12 = vadd.f32 %v5455_v54, %v3419_v24  ;;  %3530 = vmatpush.msra.mxu0 %v3263_v46 }
0x3097   :  { %v6796_v9 = vadd.f32 %v3605_v42, %v6004_v36  ;;  %v6811_v36 = vld [vmem:[#allocation4 + $0xb8] sm:$0xff] }
0x3098   :  { %v3424_v56 = vsel %vm3423_vm4, %v5455_v54, %v3420_v12  ;;  %v3354_v58 = vpop.permute.xlu2 %3353  ;;  %3531 = vmatpush.msra.mxu0 %v3262_v55 }
0x3099   :  { %v3429_v62 = vsel %vm3426_vm5, %v3428_v28, %v3424_v56  ;;  %3374 = vmatpush.msra.mxu3 %v3354_v58 }
0x309a   :  { %5261 = vmatmul.msk.f32.vlgmr.msra.gmra.mxu3 %vm216_vm2, %v3352_v32  ;;  %v3430_v10 = vmul.f32 %v5451_v31, %v3429_v62  ;;  %3532 = vmatpush.msra.mxu0 %v3261_v7 }
0x309b   :  { %3478 = vmatpush.msrb.mxu3 %v6811_v36 }
0x309c   :  { %5264 = vmatmul.msk.f32.vlgmr.msrb.gmra.mxu1 %vm216_vm2, %v3430_v10 }
0x309d   :  { %3479 = vmatpush.msrb.mxu3 %v6813_v11 }
0x30a4   :  { %5270 = vmatmul.msk.f32.vlgmr.msra.gmra.mxu1 %vm162_vm0, %v6796_v9 }
0x3119   :  { %v3454_v12 = vpop.f32.mrf.mxu1 }
0x311d   :  { %v3376_v54 = vpop.f32.mrf.mxu3 }
0x3121   :  { %v3649_v24 = vpop.f32.mrf.mxu1 }
0x3122   :  { %v6802_v13 = vadd.f32 %v3649_v24, %v2937_v18  ;;  %v6816_v18 = vld [vmem:[#allocation4 + $0xa8] sm:$0xff] }
0x3123   :  { %3480 = vmatpush.msrb.mxu3 %v6816_v18 }
0x3124   :  { %3733 = vrot.lane.b32.xlu1 %v6802_v13, %s5708_s30  ;;  %v3652_v58 = vmul.f32 0.25, %v6802_v13 }
0x3125   :  { %3481 = vmatpush.msrb.mxu3 %v6819_v63 }
0x3126   :  { %3731 = vrot.lane.b32.xlu2 %v3652_v58, %s5707_s29 }
0x312c   :  { %3458 = vrot.lane.b32.xlu1 %v3454_v12, %s5711_s13 }
0x312e   :  { %3654 = vrot.lane.b32.xlu2 %v6802_v13, %s5706_s28 }
0x3180   :  { %v3732_v20 = vpop.permute.xlu2 %3731 }
0x3188   :  { %v3655_v31 = vpop.permute.xlu2 %3654 }
0x3189   :  { %5271 = vmatpush.xpose.msk.msra.mxu3 %vm190_vm1, %v3655_v31 }
0x3196   :  { %v3734_v41 = vpop.permute.xlu1 %3733 }
0x3197   :  { %5274 = vmatpush.xpose.msk.msrb.mxu1 %vm190_vm1, %v3734_v41 }
0x319a   :  { %5275 = vmatmul.msk.f32.vlgmr.msrb.gmra.mxu1 %vm190_vm1, %v3732_v20 }
0x319b   :  { %3902 = vmatpush.msra.mxu1 %v6695_v3 }
0x319d   :  { %3903 = vmatpush.msra.mxu1 %v6697_v45 }
0x319e   :  { %v3459_v48 = vpop.permute.xlu1 %3458 }
0x319f   :  { %3904 = vmatpush.msra.mxu1 %v6700_v14  ;;  %v3461_v59 = vsel %vm190_vm1, %v3376_v54, %v3459_v48  ;;  %v3462_v14 = vperm.slane %v6765_v5, 1 }
0x31a0   :  { %5265 = vmatmul.msk.f32.vlgmr.msrb.gmra.mxu3 %vm162_vm0, %v3461_v59 }
0x31a1   :  { %3905 = vmatpush.msra.mxu1 %v6704_v33 }
0x31a3   :  { %3906 = vmatpush.msra.mxu1 %v6707_v50 }
0x31a5   :  { %3907 = vmatpush.msra.mxu1 %v6718_v60 }
0x31a7   :  { %3908 = vmatpush.msra.mxu1 %v6721_v44 }
0x31a8   :  { %5272 = vmatmul.msk.f32.vlgmr.msra.gmra.mxu3 %vm190_vm1, %v3652_v58 }
0x31a9   :  { %3909 = vmatpush.msra.mxu1 %v6724_v1 }
0x31ab   :  { %4215 = vmatpush.msrb.mxu1 %v3264_v38 }
0x31ad   :  { %4216 = vmatpush.msrb.mxu1 %v3263_v46 }
0x31af   :  { %4217 = vmatpush.msrb.mxu1 %v3262_v55 }
0x31b1   :  { %4218 = vmatpush.msrb.mxu1 %v3261_v7 }
0x3217   :  { %v3756_v3 = vpop.f32.mrf.mxu1 }
0x3218   :  { %v3759_v45 = vsel %vm216_vm2, %v3756_v3, -inf }
0x3219   :  { %3760 = vmax.xlane.f32.xlu1 %v3759_v45 }
0x3223   :  { %v3483_v43 = vpop.f32.mrf.mxu3 }
0x3224   :  { %v3484_v33 = vadd.f32 %v3483_v43, %v3462_v14 }
0x3226   :  { %v3486_v50 = vadd.f32 %v3484_v33, %v6758_v21 }
0x3228   :  { %v3487_v60 = vsel %vm162_vm0, %v3486_v50, 0.0 }
0x3229   :  { %3488 = vadd.xlane.f32.xlu0 %v3487_v60 }
0x322b   :  { %v3678_v44 = vpop.f32.mrf.mxu3 }
0x322c   :  { %v3681_v1 = vsel %vm216_vm2, %v3678_v44, -inf }
0x322d   :  { %3682 = vmax.xlane.f32.xlu2 %v3681_v1 }
0x3245   :  { %3705 = vrot.lane.b32.xlu2 %v6802_v13, %s5710_s5 }
0x328c   :  { %v3761_v21 = vpop.xlane.xlu1 %3760 }
0x328d   :  { %v3762_v22 = vsub.f32 %v3756_v3, %v3761_v21 }
0x328f   :  { %v3763_v57 = vmul.f32 1.442695, %v3762_v22 }
0x3291   :  { %5456 = vpow2.f32 %v3763_v57 }
0x3297   :  { %v5457_v28 = vpop.eup %5456 }
0x3298   :  { %v3765_v56 = vsel %vm216_vm2, %v5457_v28, 0.0 }
0x3299   :  { %3766 = vadd.xlane.f32.xlu0 %v3765_v56 }
0x329c   :  { %v3489_v24 = vpop.xlane.xlu0 %3488 }
0x329d   :  { %v3490_v58 = vmul.f32 %v3489_v24, %v5887_v37  ;;  %v3511_v24 = vperm.slane %v6765_v5, 3 }
0x329f   :  { %v3491_v20 = vsub.f32 %v3486_v50, %v3490_v58 }
0x32a0   :  { %v3683_v32 = vpop.xlane.xlu2 %3682 }
0x32a1   :  { %v3684_v0 = vsub.f32 %v3678_v44, %v3683_v32  ;;  %v3492_v31 = vmul.f32 %v3491_v20, %v3491_v20 }
0x32a3   :  { %v3685_v62 = vmul.f32 1.442695, %v3684_v0  ;;  %v3493_v41 = vsel %vm162_vm0, %v3492_v31, 0.0 }
0x32a5   :  { %5458 = vpow2.f32 %v3685_v62 }
0x32a8   :  { %v3706_v10 = vpop.permute.xlu2 %3705 }
0x32a9   :  { %3726 = vmatpush.msrb.mxu0 %v3706_v10 }
0x32ab   :  { %v6847_v42 = vpop.eup %5458 }
0x32ac   :  { %v3687_v12 = vsel %vm216_vm2, %v6847_v42, 0.0 }
0x32ad   :  { %3783 = vrot.lane.b32.xlu0 %v6802_v13, %s5709_s12  ;;  %3688 = vadd.xlane.f32.xlu1 %v3687_v12 }
0x32d7   :  { %3494 = vadd.xlane.f32.xlu0 %v3493_v41 }
0x330c   :  { %v3767_v54 = vpop.xlane.xlu0 %3766 }
0x330d   :  { %5460 = vrcp.f32 %v3767_v54  ;;  %v3779_v45 = vand.u32 2147483648, %v3767_v54  ;;  %v3777_v33 = vand.u32 2147483647, %v3767_v54  ;;  %vm3773_vm7 = vweird.f32 %v3767_v54 }
0x330f   :  { %v3780_v13 = vor.u32 1.1754944e-38, %v3779_v45  ;;  %vm3778_vm9 = vcmp.eq.f32.partialorder %v3777_v33, 8.507059e+37  ;;  %v6879_v33 = vld [vmem:[#allocation7 + $0x170] sm:$0xff] }
0x3313   :  { %v5461_v48 = vpop.eup %5460 }
0x3314   :  { %v3769_v59 = vmul.f32 %v5461_v48, %v3767_v54  ;;  %vm3774_vm6 = vweird.f32 %v5461_v48 }
0x3315   :  { %vm3775_vm8 = vmor %vm3773_vm7, %vm3774_vm6 }
0x3316   :  { %v3770_v3 = vsub.f32 1.0, %v3769_v59 }
0x3318   :  { %v3771_v43 = vmul.f32 %v5461_v48, %v3770_v3 }
0x331a   :  { %v3772_v60 = vadd.f32 %v5461_v48, %v3771_v43  ;;  %v6877_v43 = vld [vmem:[#allocation7 + $0x178] sm:$0xff] }
0x331b   :  { %3550 = vmatpush.msra.mxu2 %v6877_v43 }
0x331c   :  { %v3776_v44 = vsel %vm3775_vm8, %v5461_v48, %v3772_v60  ;;  %v6882_v60 = vld [vmem:[#allocation7 + $0x168] sm:$0xff] }
0x331d   :  { %v3781_v50 = vsel %vm3778_vm9, %v3780_v13, %v3776_v44  ;;  %3551 = vmatpush.msra.mxu2 %v6879_v33  ;;  %v6899_v13 = vld [vmem:[#allocation7 + $0x140] sm:$0xff]  ;;  %v3513_v44 = vperm.slane %v6765_v5, 4 }
0x331e   :  { %v3782_v1 = vmul.f32 %v5457_v28, %v3781_v50 }
0x331f   :  { %v3784_v38 = vpop.permute.xlu0 %3783  ;;  %3552 = vmatpush.msra.mxu2 %v6882_v60 }
0x3320   :  { %3804 = vmatpush.msrb.mxu3 %v3784_v38  ;;  %v3689_v55 = vpop.xlane.xlu1 %3688 }
0x3321   :  { %5276 = vmatmul.msk.f32.vlgmr.msrb.gmra.mxu3 %vm216_vm2, %v3782_v1  ;;  %5462 = vrcp.f32 %v3689_v55  ;;  %v3701_v41 = vand.u32 2147483648, %v3689_v55  ;;  %vm3695_vm14 = vweird.f32 %v3689_v55  ;;  %v3699_v54 = vand.u32 2147483647, %v3689_v55 }
0x3322   :  { %3978 = vmatpush.msra.mxu3 %v6739_v23 }
0x3323   :  { %vm3700_vm4 = vcmp.eq.f32.partialorder %v3699_v54, 8.507059e+37 }
0x3324   :  { %3979 = vmatpush.msra.mxu3 %v6742_v16 }
0x3326   :  { %3980 = vmatpush.msra.mxu3 %v6745_v39 }
0x3327   :  { %v5463_v22 = vpop.eup %5462 }
0x3328   :  { %3981 = vmatpush.msra.mxu3 %v6747_v35  ;;  %v3691_v56 = vmul.f32 %v5463_v22, %v3689_v55  ;;  %v3509_v35 = vperm.slane %v6765_v5, 2  ;;  %vm3696_vm13 = vweird.f32 %v5463_v22 }
0x3329   :  { %vm3697_vm3 = vmor %vm3695_vm14, %vm3696_vm13 }
0x332a   :  { %v3692_v23 = vsub.f32 1.0, %v3691_v56 }
0x332c   :  { %v3693_v39 = vmul.f32 %v5463_v22, %v3692_v23 }
0x332e   :  { %v3694_v58 = vadd.f32 %v5463_v22, %v3693_v39 }
0x3330   :  { %v3698_v59 = vsel %vm3697_vm3, %v5463_v22, %v3694_v58 }
0x334a   :  { %v3495_v46 = vpop.xlane.xlu0 %3494 }
0x334b   :  { %v3496_v7 = vmul.f32 %v3495_v46, %v5887_v37 }
0x334d   :  { %v3497_v21 = vadd.f32 1e-05, %v3496_v7 }
0x334f   :  { %5464 = vrsqrt.f32 %v3497_v21  ;;  %vm3504_vm11 = vweird.f32 %v3497_v21 }
0x3355   :  { %v5465_v57 = vpop.eup %5464 }
0x3356   :  { %v3499_v28 = vmul.f32 %v5465_v57, %v3497_v21  ;;  %vm3505_vm10 = vweird.f32 %v5465_v57 }
0x3357   :  { %vm3506_vm12 = vmor %vm3504_vm11, %vm3505_vm10 }
0x3358   :  { %v3500_v32 = vmul.f32 %v5465_v57, %v3499_v28 }
0x335a   :  { %v3501_v0 = vmul.f32 0.5, %v3500_v32 }
0x335c   :  { %v3502_v62 = vsub.f32 1.5, %v3501_v0 }
0x335e   :  { %v3503_v16 = vmul.f32 %v5465_v57, %v3502_v62 }
0x3360   :  { %v3507_v10 = vsel %vm3506_vm12, %v5465_v57, %v3503_v16 }
0x3361   :  { %v3508_v12 = vmul.f32 %v3507_v10, %v3491_v20  ;;  %v3702_v20 = vor.u32 1.1754944e-38, %v3701_v41 }
0x3363   :  { %v3510_v31 = vmul.f32 %v3509_v35, %v3508_v12  ;;  %v3703_v3 = vsel %vm3700_vm4, %v3702_v20, %v3698_v59  ;;  %v7258_v20 = vperm.slane %v6620_v17, 4 }
0x3364   :  { %v3704_v45 = vmul.f32 %v6847_v42, %v3703_v3  ;;  %v6896_v42 = vld [vmem:[#allocation7 + $0x148] sm:$0xff] }
0x3365   :  { %v6867_v48 = vadd.f32 %v3511_v24, %v3510_v31 }
0x3367   :  { %5266 = vmatmul.msk.f32.vlgmr.msra.gmra.mxu0 %vm162_vm0, %v6867_v48 }
0x3368   :  { %3830 = vmatpush.msra.mxu0 %v6662_v29  ;;  %v6885_v29 = vld [vmem:[#allocation7 + $0x160] sm:$0xff] }
0x3369   :  { %3553 = vmatpush.msra.mxu2 %v6885_v29 }
0x336a   :  { %3831 = vmatpush.msra.mxu0 %v6664_v15  ;;  %v6888_v15 = vld [vmem:[#allocation7 + $0x158] sm:$0xff] }
0x336b   :  { %3554 = vmatpush.msra.mxu2 %v6888_v15 }
0x336c   :  { %3832 = vmatpush.msra.mxu0 %v6667_v30 }
0x336e   :  { %3833 = vmatpush.msra.mxu0 %v6671_v27  ;;  %v6893_v27 = vld [vmem:[#allocation7 + $0x150] sm:$0xff] }
0x336f   :  { %5273 = vmatmul.msk.f32.vlgmr.msrb.gmra.mxu0 %vm216_vm2, %v3704_v45  ;;  %3555 = vmatpush.msra.mxu2 %v6893_v27 }
0x3371   :  { %3556 = vmatpush.msra.mxu2 %v6896_v42 }
0x3373   :  { %3557 = vmatpush.msra.mxu2 %v6899_v13 }
0x3375   :  { %3881 = vmatpush.msrb.mxu2 %v6683_v40 }
0x3377   :  { %3882 = vmatpush.msrb.mxu2 %v6686_v19 }
0x3379   :  { %3883 = vmatpush.msrb.mxu2 %v6689_v2 }
0x337b   :  { %3884 = vmatpush.msrb.mxu2 %v6691_v49 }
0x33a4   :  { %v3806_v30 = vpop.f32.mrf.mxu3 }
0x33a5   :  { %3810 = vrot.lane.b32.xlu1 %v3806_v30, %s5711_s13 }
0x33e4   :  { %v3534_v50 = vpop.f32.mrf.mxu0 }
0x33e5   :  { %v3535_v1 = vadd.f32 %v3534_v50, %v3513_v44  ;;  %v7259_v50 = vperm.slane %v6620_v17, 5 }
0x33e7   :  { %v3537_v38 = vmax.f32 %v3535_v1, 0.0 }
0x33e9   :  { %5267 = vmatmul.msk.f32.vlgmr.msra.gmra.mxu2 %vm434_vm15, %v3537_v38 }
0x33ec   :  { %v3728_v46 = vpop.f32.mrf.mxu0 }
0x3417   :  { %v3811_v55 = vpop.permute.xlu1 %3810 }
0x3418   :  { %v3813_v7 = vsel %vm190_vm1, %v3728_v46, %v3811_v55 }
0x3419   :  { %5277 = vmatmul.msk.f32.vlgmr.msra.gmra.mxu0 %vm162_vm0, %v3813_v7 }
0x346c   :  { %v6924_v54 = vpop.f32.mrf.mxu2 }
0x3496   :  { %v3835_v40 = vpop.f32.mrf.mxu0 }
0x3497   :  { %v3836_v19 = vadd.f32 %v3835_v40, %v3123_v61 }
0x3499   :  { %v3838_v2 = vadd.f32 %v3836_v19, %v6796_v9 }
0x349b   :  { %v3839_v49 = vsel %vm162_vm0, %v3838_v2, 0.0 }
0x349c   :  { %3840 = vadd.xlane.f32.xlu2 %v3839_v49 }
0x350f   :  { %v3841_v21 = vpop.xlane.xlu2 %3840 }
0x3510   :  { %v3842_v22 = vmul.f32 %v3841_v21, %v5887_v37 }
0x3512   :  { %v3843_v57 = vsub.f32 %v3838_v2, %v3842_v22 }
0x3514   :  { %v3844_v28 = vmul.f32 %v3843_v57, %v3843_v57 }
0x3516   :  { %v3845_v56 = vsel %vm162_vm0, %v3844_v28, 0.0 }
0x3517   :  { %3846 = vadd.xlane.f32.xlu1 %v3845_v56 }
0x358a   :  { %v3847_v32 = vpop.xlane.xlu1 %3846 }
0x358b   :  { %v3848_v0 = vmul.f32 %v3847_v32, %v5887_v37 }
0x358d   :  { %v3849_v23 = vadd.f32 1e-05, %v3848_v0 }
0x358f   :  { %5466 = vrsqrt.f32 %v3849_v23  ;;  %vm3856_vm6 = vweird.f32 %v3849_v23 }
0x3595   :  { %v5467_v62 = vpop.eup %5466 }
0x3596   :  { %v3851_v61 = vmul.f32 %v5467_v62, %v3849_v23  ;;  %vm3857_vm5 = vweird.f32 %v5467_v62 }
0x3597   :  { %vm3858_vm7 = vmor %vm3856_vm6, %vm3857_vm5 }
0x3598   :  { %v3852_v16 = vmul.f32 %v5467_v62, %v3851_v61 }
0x359a   :  { %v3853_v9 = vmul.f32 0.5, %v3852_v16  ;;  %v7261_v16 = vperm.slane %v6620_v17, 7 }
0x359c   :  { %v3854_v39 = vsub.f32 1.5, %v3853_v9 }
0x359e   :  { %v3855_v10 = vmul.f32 %v5467_v62, %v3854_v39 }
0x35a0   :  { %v3859_v12 = vsel %vm3858_vm7, %v5467_v62, %v3855_v10  ;;  %v7260_v62 = vperm.slane %v6620_v17, 6  ;;  %v7262_v10 = vperm.slane %v6765_v5, 0 }
0x35a1   :  { %v3860_v58 = vmul.f32 %v3859_v12, %v3843_v57 }
0x35a3   :  { %v3862_v31 = vmul.f32 %v3860_v58, %v3170_v8 }
0x35a5   :  { %v3864_v41 = vadd.f32 %v3862_v31, %v3172_v52 }
0x35a7   :  { %5278 = vmatmul.msk.f32.vlgmr.msrb.gmra.mxu2 %vm162_vm0, %v3864_v41 }
0x362a   :  { %v3886_v59 = vpop.f32.mrf.mxu2 }
0x362b   :  { %v3887_v3 = vadd.f32 %v3886_v59, %v7258_v20 }
0x362d   :  { %v3889_v45 = vmax.f32 %v3887_v3, 0.0 }
0x362f   :  { %5279 = vmatmul.msk.f32.vlgmr.msra.gmra.mxu1 %vm434_vm15, %v3889_v45 }
0x36ac   :  { %v3911_v30 = vpop.f32.mrf.mxu1 }
0x36ad   :  { %v3912_v1 = vadd.f32 %v3911_v30, %v7259_v50 }
0x36af   :  { %v3914_v38 = vadd.f32 %v3912_v1, %v3864_v41 }
0x36b1   :  { %v3915_v8 = vsel %vm162_vm0, %v3914_v38, 0.0 }
0x36b2   :  { %3916 = vadd.xlane.f32.xlu0 %v3915_v8 }
0x3725   :  { %v3917_v52 = vpop.xlane.xlu0 %3916 }
0x3726   :  { %v3918_v46 = vmul.f32 %v3917_v52, %v5887_v37 }
0x3728   :  { %v3919_v55 = vsub.f32 %v3914_v38, %v3918_v46 }
0x372a   :  { %v3920_v7 = vmul.f32 %v3919_v55, %v3919_v55 }
0x372c   :  { %v3921_v40 = vsel %vm162_vm0, %v3920_v7, 0.0 }
0x372d   :  { %3922 = vadd.xlane.f32.xlu0 %v3921_v40 }
0x37a0   :  { %v3923_v19 = vpop.xlane.xlu0 %3922 }
0x37a1   :  { %v3924_v2 = vmul.f32 %v3923_v19, %v5887_v37 }
0x37a3   :  { %v3925_v49 = vadd.f32 1e-05, %v3924_v2 }
0x37a5   :  { %5468 = vrsqrt.f32 %v3925_v49  ;;  %vm3932_vm9 = vweird.f32 %v3925_v49 }
0x37ab   :  { %v5469_v21 = vpop.eup %5468 }
0x37ac   :  { %v3927_v22 = vmul.f32 %v5469_v21, %v3925_v49  ;;  %vm3933_vm8 = vweird.f32 %v5469_v21 }
0x37ad   :  { %vm3934_vm10 = vmor %vm3932_vm9, %vm3933_vm8 }
0x37ae   :  { %v3928_v57 = vmul.f32 %v5469_v21, %v3927_v22 }
0x37b0   :  { %v3929_v28 = vmul.f32 0.5, %v3928_v57 }
0x37b2   :  { %v3930_v56 = vsub.f32 1.5, %v3929_v28 }
0x37b4   :  { %v3931_v32 = vmul.f32 %v5469_v21, %v3930_v56 }
0x37b6   :  { %v3935_v0 = vsel %vm3934_vm10, %v5469_v21, %v3931_v32 }
0x37b7   :  { %v3936_v23 = vmul.f32 %v3935_v0, %v3919_v55 }
0x37b9   :  { %v3938_v61 = vmul.f32 %v3936_v23, %v7260_v62 }
0x37bb   :  { %v6939_v9 = vadd.f32 %v3938_v61, %v7261_v16 }
0x37bd   :  { %5281 = vmatmul.msk.f32.vlgmr.msra.gmra.mxu3 %vm162_vm0, %v6939_v9 }
0x3840   :  { %v3983_v39 = vpop.f32.mrf.mxu3 }
0x3841   :  { %v3984_v12 = vadd.f32 %v3983_v39, %v7262_v10  ;;  %v3538_v10 = vperm.slane %v6765_v5, 5 }
0x3843   :  { %3988 = vrot.lane.b32.xlu1 %v3984_v12, %s5706_s28  ;;  %4067 = vrot.lane.b32.xlu0 %v3984_v12, %s5708_s30  ;;  %v3986_v58 = vmul.f32 0.25, %v3984_v12 }
0x3845   :  { %4065 = vrot.lane.b32.xlu2 %v3986_v58, %s5707_s29 }
0x389f   :  { %v4066_v17 = vpop.permute.xlu2 %4065 }
0x38b5   :  { %v3989_v31 = vpop.permute.xlu1 %3988  ;;  %v4068_v41 = vpop.permute.xlu0 %4067 }
0x38b6   :  { %5282 = vmatpush.xpose.msk.msrb.mxu0 %vm190_vm1, %v3989_v31  ;;  %5285 = vmatpush.xpose.msk.msrb.mxu3 %vm190_vm1, %v4068_v41 }
0x38b9   :  { %5283 = vmatmul.msk.f32.vlgmr.msrb.gmra.mxu0 %vm190_vm1, %v3986_v58  ;;  %5286 = vmatmul.msk.f32.vlgmr.msrb.gmra.mxu3 %vm190_vm1, %v4066_v17 }
0x38ba   :  { %4236 = vmatpush.msra.mxu3 %v6877_v43 }
0x38bc   :  { %4237 = vmatpush.msra.mxu3 %v6879_v33 }
0x38be   :  { %4238 = vmatpush.msra.mxu3 %v6882_v60 }
0x38c0   :  { %4239 = vmatpush.msra.mxu3 %v6885_v29 }
0x38c2   :  { %4240 = vmatpush.msra.mxu3 %v6888_v15 }
0x38c4   :  { %4241 = vmatpush.msra.mxu3 %v6893_v27 }
0x38c6   :  { %4242 = vmatpush.msra.mxu3 %v6896_v42 }
0x38c8   :  { %4243 = vmatpush.msra.mxu3 %v6899_v13 }
0x3936   :  { %v4012_v43 = vpop.f32.mrf.mxu0 }
0x3937   :  { %v4015_v59 = vsel %vm216_vm2, %v4012_v43, -inf }
0x3938   :  { %4016 = vmax.xlane.f32.xlu2 %v4015_v59 }
0x393c   :  { %v4090_v20 = vpop.f32.mrf.mxu3 }
0x393d   :  { %v4093_v3 = vsel %vm216_vm2, %v4090_v20, -inf }
0x393e   :  { %4094 = vmax.xlane.f32.xlu0 %v4093_v3 }
0x3952   :  { %4117 = vrot.lane.b32.xlu0 %v3984_v12, %s5709_s12 }
0x395a   :  { %4039 = vrot.lane.b32.xlu0 %v3984_v12, %s5710_s5  ;;  %v3560_v12 = vadd.f32 %v6924_v54, %v3538_v10 }
0x395c   :  { %v3562_v58 = vadd.f32 %v3560_v12, %v6867_v48 }
0x395e   :  { %v3563_v31 = vsel %vm162_vm0, %v3562_v58, 0.0 }
0x39ab   :  { %v4017_v33 = vpop.xlane.xlu2 %4016 }
0x39ac   :  { %v4018_v60 = vsub.f32 %v4012_v43, %v4017_v33 }
0x39ae   :  { %v4019_v29 = vmul.f32 1.442695, %v4018_v60 }
0x39b0   :  { %5470 = vpow2.f32 %v4019_v29 }
0x39b1   :  { %v4095_v15 = vpop.xlane.xlu0 %4094 }
0x39b2   :  { %v4096_v27 = vsub.f32 %v4090_v20, %v4095_v15  ;;  %v6984_v20 = vld [vmem:[%s7247_s8 + $0x18] sm:$0xff] }
0x39b3   :  { %v2156_v3 = vperm.slane %v6984_v20, 5 }
0x39b4   :  { %v4097_v42 = vmul.f32 1.442695, %v4096_v27 }
0x39b5   :  { %v2178_v33 = vadd.f32 %v6535_v6, %v2156_v3  ;;  %v2864_v15 = vadd.f32 %v6727_v4, %v2156_v3 }
0x39b6   :  { %v5471_v13 = vpop.eup %5470  ;;  %5472 = vpow2.f32 %v4097_v42 }
0x39b7   :  { %v4021_v45 = vsel %vm216_vm2, %v5471_v13, 0.0  ;;  %v2180_v29 = vadd.f32 %v2178_v33, %v6478_v51  ;;  %v2866_v42 = vadd.f32 %v2864_v15, %v6652_v26 }
0x39b8   :  { %4022 = vadd.xlane.f32.xlu2 %v4021_v45 }
0x39b9   :  { %v2181_v27 = vsel %vm162_vm0, %v2180_v29, 0.0 }
0x39bc   :  { %v5473_v30 = vpop.eup %5472 }
0x39bd   :  { %v4099_v50 = vsel %vm216_vm2, %v5473_v30, 0.0 }
0x39be   :  { %4100 = vadd.xlane.f32.xlu1 %v4099_v50 }
0x39c4   :  { %v4118_v1 = vpop.permute.xlu0 %4117 }
0x39c5   :  { %4138 = vmatpush.msra.mxu0 %v4118_v1 }
0x39cc   :  { %v4040_v38 = vpop.permute.xlu0 %4039 }
0x39cd   :  { %4060 = vmatpush.msra.mxu2 %v4040_v38 }
0x39cf   :  { %4164 = vmatpush.msrb.mxu2 %v6811_v36 }
0x39d1   :  { %4165 = vmatpush.msrb.mxu2 %v6813_v11 }
0x39d3   :  { %4166 = vmatpush.msrb.mxu2 %v6816_v18 }
0x39d5   :  { %4167 = vmatpush.msrb.mxu2 %v6819_v63 }
0x3a2b   :  { %v4023_v8 = vpop.xlane.xlu2 %4022 }
0x3a2c   :  { %5474 = vrcp.f32 %v4023_v8  ;;  %v4035_v40 = vand.u32 2147483648, %v4023_v8  ;;  %v4033_v2 = vand.u32 2147483647, %v4023_v8  ;;  %vm4029_vm12 = vweird.f32 %v4023_v8 }
0x3a2e   :  { %v4036_v11 = vor.u32 1.1754944e-38, %v4035_v40  ;;  %vm4034_vm14 = vcmp.eq.f32.partialorder %v4033_v2, 8.507059e+37 }
0x3a31   :  { %v4101_v52 = vpop.xlane.xlu1 %4100 }
0x3a32   :  { %v5475_v46 = vpop.eup %5474  ;;  %5476 = vrcp.f32 %v4101_v52  ;;  %v4113_v57 = vand.u32 2147483648, %v4101_v52  ;;  %v4111_v56 = vand.u32 2147483647, %v4101_v52  ;;  %vm4107_vm4 = vweird.f32 %v4101_v52 }
0x3a33   :  { %v4025_v55 = vmul.f32 %v5475_v46, %v4023_v8  ;;  %vm4030_vm11 = vweird.f32 %v5475_v46 }
0x3a34   :  { %vm4031_vm13 = vmor %vm4029_vm12, %vm4030_vm11  ;;  %v4114_v23 = vor.u32 1.1754944e-38, %v4113_v57  ;;  %vm4112_vm6 = vcmp.eq.f32.partialorder %v4111_v56, 8.507059e+37 }
0x3a35   :  { %v4026_v7 = vsub.f32 1.0, %v4025_v55 }
0x3a37   :  { %v4027_v19 = vmul.f32 %v5475_v46, %v4026_v7 }
0x3a38   :  { %v5477_v49 = vpop.eup %5476 }
0x3a39   :  { %v4028_v21 = vadd.f32 %v5475_v46, %v4027_v19  ;;  %v4103_v36 = vmul.f32 %v5477_v49, %v4101_v52  ;;  %vm4108_vm3 = vweird.f32 %v5477_v49 }
0x3a3a   :  { %vm4109_vm5 = vmor %vm4107_vm4, %vm4108_vm3 }
0x3a3b   :  { %v4032_v18 = vsel %vm4031_vm13, %v5475_v46, %v4028_v21  ;;  %v4104_v63 = vsub.f32 1.0, %v4103_v36 }
0x3a3c   :  { %v4037_v22 = vsel %vm4034_vm14, %v4036_v11, %v4032_v18 }
0x3a3d   :  { %v4105_v28 = vmul.f32 %v5477_v49, %v4104_v63  ;;  %v4038_v32 = vmul.f32 %v5471_v13, %v4037_v22  ;;  %v2867_v13 = vsel %vm162_vm0, %v2866_v42, 0.0 }
0x3a3f   :  { %v4106_v0 = vadd.f32 %v5477_v49, %v4105_v28  ;;  %5284 = vmatmul.msk.f32.vlgmr.msra.gmra.mxu2 %vm216_vm2, %v4038_v32 }
0x3a41   :  { %v4110_v62 = vsel %vm4109_vm5, %v5477_v49, %v4106_v0 }
0x3a42   :  { %v4115_v61 = vsel %vm4112_vm6, %v4114_v23, %v4110_v62  ;;  %v7023_v62 = vld [vmem:[%s7247_s8 + $0x8] sm:$0xff] }
0x3a43   :  { %v4116_v16 = vmul.f32 %v5473_v30, %v4115_v61 }
0x3a45   :  { %5287 = vmatmul.msk.f32.vlgmr.msra.gmra.mxu0 %vm216_vm2, %v4116_v16 }
0x3ac2   :  { %v4140_v39 = vpop.f32.mrf.mxu0  ;;  %v4062_v41 = vpop.f32.mrf.mxu2 }
0x3ac3   :  { %4144 = vrot.lane.b32.xlu2 %v4140_v39, %s5711_s13  ;;  %s5713_s13 = smov 32  }
0x3aec   :  { %3564 = vadd.xlane.f32.xlu2 %v3563_v31 }
0x3b1d   :  { %v4145_v17 = vpop.permute.xlu2 %4144 }
0x3b1e   :  { %v4147_v43 = vsel %vm190_vm1, %v4062_v41, %v4145_v17 }
0x3b1f   :  { %5288 = vmatmul.msk.f32.vlgmr.msrb.gmra.mxu2 %vm162_vm0, %v4147_v43 }
0x3b5f   :  { %v3565_v50 = vpop.xlane.xlu2 %3564 }
0x3b60   :  { %v3566_v1 = vmul.f32 %v3565_v50, %v5887_v37 }
0x3b62   :  { %v7005_v8 = vsub.f32 %v3562_v58, %v3566_v1 }
0x3b64   :  { %v3568_v46 = vmul.f32 %v7005_v8, %v7005_v8 }
0x3b66   :  { %v3569_v55 = vsel %vm162_vm0, %v3568_v46, 0.0 }
0x3ba2   :  { %v4169_v59 = vpop.f32.mrf.mxu2 }
0x3ba3   :  { %v4170_v48 = vadd.f32 %v4169_v59, %v3462_v14 }
0x3ba5   :  { %v4172_v54 = vadd.f32 %v4170_v48, %v6939_v9 }
0x3ba7   :  { %v4173_v60 = vsel %vm162_vm0, %v4172_v54, 0.0 }
0x3ba8   :  { %4174 = vadd.xlane.f32.xlu1 %v4173_v60 }
0x3bb0   :  { %2182 = vadd.xlane.f32.xlu1 %v2181_v27 }
0x3bb8   :  { %2868 = vadd.xlane.f32.xlu1 %v2867_v13 }
0x3c1b   :  { %v4175_v14 = vpop.xlane.xlu1 %4174 }
0x3c1c   :  { %v4176_v9 = vmul.f32 %v4175_v14, %v5887_v37 }
0x3c1e   :  { %v4177_v45 = vsub.f32 %v4172_v54, %v4176_v9 }
0x3c20   :  { %v4178_v6 = vmul.f32 %v4177_v45, %v4177_v45 }
0x3c22   :  { %v4179_v30 = vsel %vm162_vm0, %v4178_v6, 0.0 }
0x3c23   :  { %4180 = vadd.xlane.f32.xlu0 %v4179_v30  ;;  %v2183_v51 = vpop.xlane.xlu1 %2182 }
0x3c24   :  { %v2184_v4 = vmul.f32 %v2183_v51, %v5887_v37 }
0x3c26   :  { %v7001_v38 = vsub.f32 %v2180_v29, %v2184_v4 }
0x3c28   :  { %v2186_v26 = vmul.f32 %v7001_v38, %v7001_v38 }
0x3c2a   :  { %v2187_v52 = vsel %vm162_vm0, %v2186_v26, 0.0 }
0x3c2b   :  { %2188 = vadd.xlane.f32.xlu0 %v2187_v52  ;;  %v2869_v31 = vpop.xlane.xlu1 %2868 }
0x3c2c   :  { %v2870_v17 = vmul.f32 %v2869_v31, %v5887_v37 }
0x3c2e   :  { %v2871_v5 = vsub.f32 %v2866_v42, %v2870_v17 }
0x3c33   :  { %3570 = vadd.xlane.f32.xlu0 %v3569_v55 }
0x3c96   :  { %v4181_v7 = vpop.xlane.xlu0 %4180 }
0x3c97   :  { %v4182_v40 = vmul.f32 %v4181_v7, %v5887_v37 }
0x3c99   :  { %v4183_v19 = vadd.f32 1e-05, %v4182_v40 }
0x3c9b   :  { %5478 = vrsqrt.f32 %v4183_v19  ;;  %vm4190_vm7 = vweird.f32 %v4183_v19 }
0x3c9e   :  { %v2189_v59 = vpop.xlane.xlu0 %2188 }
0x3ca1   :  { %v5479_v2 = vpop.eup %5478 }
0x3ca2   :  { %v4185_v49 = vmul.f32 %v5479_v2, %v4183_v19  ;;  %vm4191_vm2 = vweird.f32 %v5479_v2 }
0x3ca3   :  { %vm4192_vm8 = vmor %vm4190_vm7, %vm4191_vm2 }
0x3ca4   :  { %v4186_v21 = vmul.f32 %v5479_v2, %v4185_v49 }
0x3ca6   :  { %v4187_v36 = vmul.f32 0.5, %v4186_v21  ;;  %v2203_v21 = vperm.slane %v6984_v20, 6 }
0x3ca8   :  { %v4188_v11 = vsub.f32 1.5, %v4187_v36 }
0x3caa   :  { %v4189_v18 = vmul.f32 %v5479_v2, %v4188_v11 }
0x3cac   :  { %v4193_v63 = vsel %vm4192_vm8, %v5479_v2, %v4189_v18 }
0x3cad   :  { %v4194_v22 = vmul.f32 %v4193_v63, %v4177_v45 }
0x3caf   :  { %v4196_v57 = vmul.f32 %v4194_v22, %v3509_v35  ;;  %v773_v35 = vperm.slane %v7023_v62, 5  ;;  %v2205_v22 = vperm.slane %v6984_v20, 7 }
0x3cb1   :  { %v4198_v28 = vadd.f32 %v4196_v57, %v3511_v24  ;;  %v795_v16 = vadd.f32 %v6142_v25, %v773_v35  ;;  %v1482_v12 = vadd.f32 %v6333_v53, %v773_v35  ;;  %v2872_v25 = vmul.f32 %v2871_v5, %v2871_v5 }
0x3cb2   :  { %v2190_v53 = vmul.f32 %v2189_v59, %v5887_v37 }
0x3cb3   :  { %5289 = vmatmul.msk.f32.vlgmr.msrb.gmra.mxu1 %vm162_vm0, %v4198_v28  ;;  %v1484_v41 = vadd.f32 %v1482_v12, %v6258_v47  ;;  %v2873_v43 = vsel %vm162_vm0, %v2872_v25, 0.0 }
0x3cb4   :  { %v2191_v54 = vadd.f32 1e-05, %v2190_v53 }
0x3cb6   :  { %5480 = vrsqrt.f32 %v2191_v54  ;;  %vm2198_vm10 = vweird.f32 %v2191_v54 }
0x3cbc   :  { %v5481_v42 = vpop.eup %5480 }
0x3cbd   :  { %v2193_v45 = vmul.f32 %v5481_v42, %v2191_v54  ;;  %vm2199_vm9 = vweird.f32 %v5481_v42 }
0x3cbe   :  { %vm2200_vm11 = vmor %vm2198_vm10, %vm2199_vm9 }
0x3cbf   :  { %v2194_v50 = vmul.f32 %v5481_v42, %v2193_v45  ;;  %v4300_v45 = vld [vmem:[#allocation9 + $0x58] sm:$0xff] }
0x3cc0   :  { %4310 = vmatpush.msrb.mxu0 %v4300_v45  ;;  %v4445_v45 = vld [vmem:[#allocation9 + $0xc8] sm:$0xff] }
0x3cc1   :  { %v2195_v26 = vmul.f32 0.5, %v2194_v50 }
0x3cc3   :  { %v2196_v46 = vsub.f32 1.5, %v2195_v26 }
0x3cc5   :  { %v2197_v55 = vmul.f32 %v5481_v42, %v2196_v46 }
0x3cc7   :  { %v2201_v19 = vsel %vm2200_vm11, %v5481_v42, %v2197_v55  ;;  %v5570_v42 = vld [vmem:[%s7247_s8 + $0x28] sm:$0xff] }
0x3cc8   :  { %v2202_v36 = vmul.f32 %v2201_v19, %v7001_v38  ;;  %v3571_v38 = vpop.xlane.xlu0 %3570  ;;  %v3587_v55 = vperm.slane %v5570_v42, 7  ;;  %v4296_v19 = vld [vmem:[#allocation9 + $0x38] sm:$0xff] }
0x3cca   :  { %v2204_v63 = vmul.f32 %v2203_v21, %v2202_v36  ;;  %v4295_v36 = vld [vmem:[#allocation9 + $0x30] sm:$0xff] }
0x3d30   :  { %v4220_v56 = vpop.f32.mrf.mxu1 }
0x3d31   :  { %v4221_v32 = vadd.f32 %v4220_v56, %v3513_v44  ;;  %v797_v44 = vadd.f32 %v795_v16, %v6094_v34 }
0x3d33   :  { %v4223_v0 = vmax.f32 %v4221_v32, 0.0  ;;  %v798_v58 = vsel %vm162_vm0, %v797_v44, 0.0  ;;  %v2206_v32 = vadd.f32 %v2205_v22, %v2204_v63 }
0x3d35   :  { %5290 = vmatmul.msk.f32.vlgmr.msra.gmra.mxu3 %vm434_vm15, %v4223_v0 }
0x3db8   :  { %v4245_v23 = vpop.f32.mrf.mxu3 }
0x3db9   :  { %v4246_v24 = vadd.f32 %v4245_v23, %v3538_v10  ;;  %v1485_v10 = vsel %vm162_vm0, %v1484_v41, 0.0  ;;  %v2207_v23 = vmul.f32 0.5, %v2206_v32 }
0x3dbb   :  { %v4248_v61 = vadd.f32 %v4246_v24, %v4198_v28 }
0x3dbd   :  { %v4249_v39 = vsel %vm162_vm0, %v4248_v61, 0.0 }
0x3dbe   :  { %4250 = vadd.xlane.f32.xlu1 %v4249_v39 }
0x3dc6   :  { %799 = vadd.xlane.f32.xlu1 %v798_v58 }
0x3dce   :  { %1486 = vadd.xlane.f32.xlu1 %v1485_v10 }
0x3dd6   :  { %2874 = vadd.xlane.f32.xlu1 %v2873_v43  ;;  %v4385_v43 = vld [vmem:[#allocation9 + $0x98] sm:$0xff] }
0x3dd7   :  { %4402 = vmatpush.msra.mxu1 %v4385_v43 }
0x3e31   :  { %v4251_v34 = vpop.xlane.xlu1 %4250 }
0x3e32   :  { %v4252_v3 = vmul.f32 %v4251_v34, %v5887_v37 }
0x3e34   :  { %v7039_v48 = vsub.f32 %v4248_v61, %v4252_v3  ;;  %v3572_v61 = vmul.f32 %v3571_v38, %v5887_v37  ;;  %v4384_v3 = vld [vmem:[#allocation9 + $0x90] sm:$0xff] }
0x3e35   :  { %4403 = vmatpush.msra.mxu1 %v4384_v3  ;;  %v4331_v3 = vld [vmem:[#allocation9 + $0x70] sm:$0xff] }
0x3e36   :  { %v4254_v47 = vmul.f32 %v7039_v48, %v7039_v48  ;;  %v3573_v16 = vadd.f32 1e-05, %v3572_v61 }
0x3e38   :  { %v4255_v33 = vsel %vm162_vm0, %v4254_v47, 0.0  ;;  %vm3580_vm4 = vweird.f32 %v3573_v16 }
0x3e39   :  { %4256 = vadd.xlane.f32.xlu1 %v4255_v33  ;;  %v800_v60 = vpop.xlane.xlu1 %799  ;;  %v4383_v33 = vld [vmem:[#allocation9 + $0x88] sm:$0xff] }
0x3e3a   :  { %v801_v29 = vmul.f32 %v800_v60, %v5887_v37  ;;  %4404 = vmatpush.msra.mxu1 %v4383_v33  ;;  %v4330_v33 = vld [vmem:[#allocation9 + $0x68] sm:$0xff] }
0x3e3c   :  { %v7045_v15 = vsub.f32 %v797_v44, %v801_v29 }
0x3e3e   :  { %v803_v27 = vmul.f32 %v7045_v15, %v7045_v15 }
0x3e40   :  { %v804_v13 = vsel %vm162_vm0, %v803_v27, 0.0  ;;  %v4382_v27 = vld [vmem:[#allocation9 + $0x80] sm:$0xff] }
0x3e41   :  { %v1487_v14 = vpop.xlane.xlu1 %1486  ;;  %805 = vadd.xlane.f32.xlu0 %v804_v13  ;;  %v3585_v13 = vperm.slane %v5570_v42, 6  ;;  %4405 = vmatpush.msra.mxu1 %v4382_v27  ;;  %v4450_v27 = vld [vmem:[#allocation9 + $0xf0] sm:$0xff]  ;;  %v4449_v42 = vld [vmem:[#allocation9 + $0xe8] sm:$0xff] }
0x3e42   :  { %v1488_v9 = vmul.f32 %v1487_v14, %v5887_v37 }
0x3e44   :  { %v7051_v6 = vsub.f32 %v1484_v41, %v1488_v9 }
0x3e46   :  { %v1490_v30 = vmul.f32 %v7051_v6, %v7051_v6 }
0x3e48   :  { %v1491_v51 = vsel %vm162_vm0, %v1490_v30, 0.0  ;;  %v4299_v30 = vld [vmem:[#allocation9 + $0x50] sm:$0xff] }
0x3e49   :  { %1492 = vadd.xlane.f32.xlu1 %v1491_v51  ;;  %v2875_v4 = vpop.xlane.xlu1 %2874  ;;  %4311 = vmatpush.msrb.mxu0 %v4299_v30  ;;  %v4444_v30 = vld [vmem:[#allocation9 + $0xc0] sm:$0xff] }
0x3e4a   :  { %v2876_v1 = vmul.f32 %v2875_v4, %v5887_v37 }
0x3e4c   :  { %v2877_v52 = vadd.f32 1e-05, %v2876_v1  ;;  %v4298_v1 = vld [vmem:[#allocation9 + $0x48] sm:$0xff] }
0x3e4d   :  { %4312 = vmatpush.msrb.mxu0 %v4298_v1  ;;  %v4440_v1 = vld [vmem:[#allocation9 + $0xa0] sm:$0xff] }
0x3e4e   :  { %5482 = vrsqrt.f32 %v2877_v52  ;;  %vm2884_vm13 = vweird.f32 %v2877_v52 }
0x3e4f   :  { %5484 = vrsqrt.f32 %v3573_v16 }
0x3e54   :  { %v5483_v7 = vpop.eup %5482 }
0x3e55   :  { %v2879_v40 = vmul.f32 %v5483_v7, %v2877_v52  ;;  %vm2885_vm12 = vweird.f32 %v5483_v7  ;;  %v5485_v39 = vpop.eup %5484 }
0x3e56   :  { %vm2886_vm14 = vmor %vm2884_vm13, %vm2885_vm12  ;;  %v3575_v44 = vmul.f32 %v5485_v39, %v3573_v16  ;;  %vm3581_vm3 = vweird.f32 %v5485_v39  ;;  %v820_v16 = vperm.slane %v7023_v62, 6 }
0x3e57   :  { %v2880_v2 = vmul.f32 %v5483_v7, %v2879_v40  ;;  %vm3582_vm5 = vmor %vm3580_vm4, %vm3581_vm3 }
0x3e58   :  { %v3576_v12 = vmul.f32 %v5485_v39, %v3575_v44 }
0x3e59   :  { %v2881_v49 = vmul.f32 0.5, %v2880_v2 }
0x3e5a   :  { %v3577_v31 = vmul.f32 0.5, %v3576_v12  ;;  %v4290_v12 = vld [vmem:[#allocation9 + $0x8] sm:$0xff] }
0x3e5b   :  { %v2882_v11 = vsub.f32 1.5, %v2881_v49 }
0x3e5c   :  { %v3578_v17 = vsub.f32 1.5, %v3577_v31  ;;  %v822_v31 = vperm.slane %v7023_v62, 7 }
0x3e5d   :  { %v2883_v18 = vmul.f32 %v5483_v7, %v2882_v11 }
0x3e5e   :  { %v3579_v25 = vmul.f32 %v5485_v39, %v3578_v17 }
0x3e5f   :  { %v2887_v57 = vsel %vm2886_vm14, %v5483_v7, %v2883_v18  ;;  %vm4302_vm14 = vcmask 785408  }
0x3e60   :  { %v2888_v28 = vmul.f32 %v2887_v57, %v2871_v5  ;;  %v3583_v54 = vsel %vm3582_vm5, %v5485_v39, %v3579_v25  ;;  %v4291_v39 = vld [vmem:[#allocation9 + $0x10] sm:$0xff] }
0x3e61   :  { %v3584_v14 = vmul.f32 %v3583_v54, %v7005_v8  ;;  %v4297_v8 = vld [vmem:[#allocation9 + $0x40] sm:$0xff] }
0x3e62   :  { %v2890_v56 = vmul.f32 %v2888_v28, %v2203_v21  ;;  %4313 = vmatpush.msrb.mxu0 %v4297_v8 }
0x3e63   :  { %v3586_v46 = vmul.f32 %v3585_v13, %v3584_v14  ;;  %v4447_v14 = vld [vmem:[#allocation9 + $0xd8] sm:$0xff] }
0x3e64   :  { %v2892_v0 = vadd.f32 %v2890_v56, %v2205_v22  ;;  %4314 = vmatpush.msrb.mxu0 %v4296_v19  ;;  %v4294_v22 = vld [vmem:[#allocation9 + $0x28] sm:$0xff]  ;;  %v4501_v19 = vld [vmem:[#allocation9 + $0x118] sm:$0xff] }
0x3e65   :  { %v3588_v21 = vadd.f32 %v3587_v55, %v3586_v46 }
0x3e66   :  { %v2893_v35 = vmul.f32 0.5, %v2892_v0  ;;  %4315 = vmatpush.msrb.mxu0 %v4295_v36  ;;  %v4474_v36 = vld [vmem:[#allocation9 + $0x100] sm:$0xff] }
0x3e67   :  { %v3589_v56 = vmul.f32 0.5, %v3588_v21  ;;  %v4475_v21 = vld [vmem:[#allocation9 + $0x108] sm:$0xff] }
0x3e68   :  { %v2894_v24 = vadd.f32 %v2893_v35, %v2207_v23  ;;  %4316 = vmatpush.msrb.mxu0 %v4294_v22  ;;  %4494 = vmatpush.msrb.mxu1 %v4475_v21 }
0x3e6a   :  { %4278 = vrot.lane.b32.xlu2 %v2894_v24, %s5713_s13  ;;  %v4292_v24 = vld [vmem:[#allocation9 + $0x18] sm:$0xff]  ;;  %4495 = vmatpush.msrb.mxu1 %v4474_v36 }
0x3eac   :  { %v4257_v20 = vpop.xlane.xlu1 %4256 }
0x3ead   :  { %v4258_v58 = vmul.f32 %v4257_v20, %v5887_v37 }
0x3eaf   :  { %v4259_v41 = vadd.f32 1e-05, %v4258_v58 }
0x3eb1   :  { %5486 = vrsqrt.f32 %v4259_v41  ;;  %vm4266_vm2 = vweird.f32 %v4259_v41 }
0x3eb4   :  { %v806_v5 = vpop.xlane.xlu0 %805 }
0x3eb5   :  { %v807_v10 = vmul.f32 %v806_v5, %v5887_v37 }
0x3eb7   :  { %v5487_v59 = vpop.eup %5486  ;;  %v808_v34 = vadd.f32 1e-05, %v807_v10 }
0x3eb8   :  { %v4261_v53 = vmul.f32 %v5487_v59, %v4259_v41  ;;  %vm4267_vm6 = vweird.f32 %v5487_v59 }
0x3eb9   :  { %5488 = vrsqrt.f32 %v808_v34  ;;  %vm4268_vm7 = vmor %vm4266_vm2, %vm4267_vm6  ;;  %vm815_vm9 = vweird.f32 %v808_v34 }
0x3eba   :  { %v4262_v47 = vmul.f32 %v5487_v59, %v4261_v53  ;;  %v4332_v53 = vld [vmem:[#allocation9 + $0x78] sm:$0xff] }
0x3ebb   :  { %4349 = vmatpush.msra.mxu2 %v4332_v53 }
0x3ebc   :  { %v4263_v60 = vmul.f32 0.5, %v4262_v47  ;;  %v1493_v29 = vpop.xlane.xlu1 %1492 }
0x3ebd   :  { %v1494_v9 = vmul.f32 %v1493_v29, %v5887_v37  ;;  %4350 = vmatpush.msra.mxu2 %v4331_v3  ;;  %v4451_v29 = vld [vmem:[#allocation9 + $0xf8] sm:$0xff] }
0x3ebe   :  { %v4264_v50 = vsub.f32 1.5, %v4263_v60  ;;  %v4329_v60 = vld [vmem:[#allocation9 + $0x60] sm:$0xff] }
0x3ebf   :  { %v5489_v51 = vpop.eup %5488  ;;  %v1495_v4 = vadd.f32 1e-05, %v1494_v9  ;;  %4351 = vmatpush.msra.mxu2 %v4330_v33  ;;  %v4446_v9 = vld [vmem:[#allocation9 + $0xd0] sm:$0xff] }
0x3ec0   :  { %v4265_v26 = vmul.f32 %v5487_v59, %v4264_v50  ;;  %v810_v52 = vmul.f32 %v5489_v51, %v808_v34  ;;  %vm816_vm8 = vweird.f32 %v5489_v51  ;;  %v4289_v34 = vld [vmem:[#allocation9] sm:$0xff]  ;;  %v4443_v50 = vld [vmem:[#allocation9 + $0xb8] sm:$0xff] }
0x3ec1   :  { %5490 = vrsqrt.f32 %v1495_v4  ;;  %vm817_vm10 = vmor %vm815_vm9, %vm816_vm8  ;;  %vm1502_vm12 = vweird.f32 %v1495_v4  ;;  %4352 = vmatpush.msra.mxu2 %v4329_v60 }
0x3ec2   :  { %v4269_v7 = vsel %vm4268_vm7, %v5487_v59, %v4265_v26  ;;  %v811_v37 = vmul.f32 %v5489_v51, %v810_v52  ;;  %v7082_v26 = vld [vmem:[%s7249_s10] sm:$0xff] }
0x3ec3   :  { %v4270_v40 = vmul.f32 %v4269_v7, %v7039_v48  ;;  %v4293_v48 = vld [vmem:[#allocation9 + $0x20] sm:$0xff]  ;;  %4457 = vmatpush.msrb.mxu2 %v4451_v29  ;;  %v4301_v52 = vperm.slane %v7082_v26, 0 }
0x3ec4   :  { %v812_v2 = vmul.f32 0.5, %v811_v37  ;;  %4317 = vmatpush.msrb.mxu0 %v4293_v48  ;;  %v4279_v54 = vpop.permute.xlu2 %4278  ;;  %v4503_v37 = vld [vmem:[#allocation9 + $0x128] sm:$0xff] }
0x3ec5   :  { %v4272_v49 = vmul.f32 %v4270_v40, %v3585_v13  ;;  %4458 = vmatpush.msrb.mxu2 %v4450_v27  ;;  %v4448_v13 = vld [vmem:[#allocation9 + $0xe0] sm:$0xff]  ;;  %4519 = vmatpush.msrb.mxu3 %v4503_v37 }
0x3ec6   :  { %v813_v11 = vsub.f32 1.5, %v812_v2  ;;  %4318 = vmatpush.msrb.mxu0 %v4292_v24  ;;  %v4502_v40 = vld [vmem:[#allocation9 + $0x120] sm:$0xff]  ;;  %v4500_v2 = vld [vmem:[#allocation9 + $0x110] sm:$0xff] }
0x3ec7   :  { %v5491_v18 = vpop.eup %5490  ;;  %v4274_v63 = vadd.f32 %v4272_v49, %v3587_v55  ;;  %4459 = vmatpush.msrb.mxu2 %v4449_v42  ;;  %4520 = vmatpush.msrb.mxu3 %v4502_v40  ;;  %v5714_v49 = vmov 0.0  }
0x3ec8   :  { %v814_v57 = vmul.f32 %v5489_v51, %v813_v11  ;;  %v1497_v28 = vmul.f32 %v5491_v18, %v1495_v4  ;;  %vm1503_vm11 = vweird.f32 %v5491_v18  ;;  %4319 = vmatpush.msrb.mxu0 %v4291_v39  ;;  %v4441_v4 = vld [vmem:[#allocation9 + $0xa8] sm:$0xff]  ;;  %5135 = vst [vmem:[%s7250_s11] sm:$0xff] %v5714_v49 }
0x3ec9   :  { %v4275_v32 = vmul.f32 0.5, %v4274_v63  ;;  %vm1504_vm13 = vmor %vm1502_vm12, %vm1503_vm11  ;;  %4460 = vmatpush.msrb.mxu2 %v4448_v13  ;;  %4521 = vmatpush.msrb.mxu3 %v4501_v19 }
0x3eca   :  { %v818_v0 = vsel %vm817_vm10, %v5489_v51, %v814_v57  ;;  %v1498_v23 = vmul.f32 %v5491_v18, %v1497_v28  ;;  %4320 = vmatpush.msrb.mxu0 %v4290_v12  ;;  %v4442_v51 = vld [vmem:[#allocation9 + $0xb0] sm:$0xff] }
0x3ecb   :  { %v4276_v35 = vadd.f32 %v4275_v32, %v3589_v56  ;;  %v819_v61 = vmul.f32 %v818_v0, %v7045_v15  ;;  %4461 = vmatpush.msrb.mxu2 %v4447_v14  ;;  %4522 = vmatpush.msrb.mxu3 %v4500_v2  ;;  %v4476_v56 = vperm.slane %v7082_v26, 6 }
0x3ecc   :  { %v1499_v38 = vmul.f32 0.5, %v1498_v23  ;;  %4321 = vmatpush.msrb.mxu0 %v4289_v34  ;;  %4523 = vmatmul.f32.vlgmr.msrb.gmra.mxu3 %v5714_v49 }
0x3ecd   :  { %4282 = vrot.lane.b32.xlu0 %v4276_v35, %s5710_s5  ;;  %v821_v58 = vmul.f32 %v820_v16, %v819_v61  ;;  %4462 = vmatpush.msrb.mxu2 %v4446_v9 }
0x3ece   :  { %v1500_v44 = vsub.f32 1.5, %v1499_v38  ;;  %4744 = vmatpush.msra.mxu0 %v4503_v37  ;;  %4671 = vmatpush.msra.mxu3 %v4503_v37 }
0x3ecf   :  { %v823_v17 = vadd.f32 %v822_v31, %v821_v58  ;;  %4463 = vmatpush.msrb.mxu2 %v4445_v45 }
0x3ed0   :  { %v1501_v20 = vmul.f32 %v5491_v18, %v1500_v44  ;;  %4745 = vmatpush.msra.mxu0 %v4502_v40  ;;  %4672 = vmatpush.msra.mxu3 %v4502_v40 }
0x3ed1   :  { %v824_v25 = vmul.f32 0.5, %v823_v17  ;;  %4464 = vmatpush.msrb.mxu2 %v4444_v30 }
0x3ed2   :  { %v1505_v41 = vsel %vm1504_vm13, %v5491_v18, %v1501_v20  ;;  %4746 = vmatpush.msra.mxu0 %v4501_v19  ;;  %4673 = vmatpush.msra.mxu3 %v4501_v19  ;;  %v4452_v18 = vperm.slane %v7082_v26, 5 }
0x3ed3   :  { %v1506_v15 = vmul.f32 %v1505_v41, %v7051_v6  ;;  %4465 = vmatpush.msrb.mxu2 %v4443_v50 }
0x3ed4   :  { %4747 = vmatpush.msra.mxu0 %v4500_v2  ;;  %4674 = vmatpush.msra.mxu3 %v4500_v2 }
0x3ed5   :  { %v1508_v5 = vmul.f32 %v1506_v15, %v820_v16  ;;  %4466 = vmatpush.msrb.mxu2 %v4442_v51 }
0x3ed6   :  { %4890 = vmatpush.msrb.mxu3 %v4503_v37 }
0x3ed7   :  { %v1510_v10 = vadd.f32 %v1508_v5, %v822_v31  ;;  %4467 = vmatpush.msrb.mxu2 %v4441_v4 }
0x3ed8   :  { %4891 = vmatpush.msrb.mxu3 %v4502_v40 }
0x3ed9   :  { %v1511_v43 = vmul.f32 0.5, %v1510_v10  ;;  %4468 = vmatpush.msrb.mxu2 %v4440_v1 }
0x3eda   :  { %4892 = vmatpush.msrb.mxu3 %v4501_v19 }
0x3edb   :  { %v1512_v59 = vadd.f32 %v1511_v43, %v824_v25 }
0x3edc   :  { %4893 = vmatpush.msrb.mxu3 %v4500_v2 }
0x3edd   :  { %5293 = vmatmul.msk.f32.vlgmr.msra.gmra.mxu1 %vm162_vm0, %v1512_v59  ;;  %v4285_v62 = vsel %vm162_vm0, %v1512_v59, %v4279_v54 }
0x3ede   :  { %4598 = vmatpush.msra.mxu1 %v4503_v37 }
0x3ee0   :  { %4599 = vmatpush.msra.mxu1 %v4502_v40 }
0x3ee2   :  { %4600 = vmatpush.msra.mxu1 %v4501_v19 }
0x3ee4   :  { %4601 = vmatpush.msra.mxu1 %v4500_v2 }
0x3f3f   :  { %v4283_v47 = vpop.permute.xlu0 %4282 }
0x3f40   :  { %v4286_v6 = vsel %vm434_vm15, %v4285_v62, %v4283_v47 }
0x3f41   :  { %5291 = vmatmul.msk.f32.vlgmr.msrb.gmra.mxu0 %vm4302_vm14, %v4286_v6 }
0x3f42   :  { %4963 = vmatpush.msrb.mxu0 %v4503_v37 }
0x3f44   :  { %4964 = vmatpush.msrb.mxu0 %v4502_v40 }
0x3f46   :  { %4965 = vmatpush.msrb.mxu0 %v4501_v19 }
0x3f48   :  { %4966 = vmatpush.msrb.mxu0 %v4500_v2 }
0x3f4f   :  { %v4524_v48 = vpop.f32.mrf.mxu3 }
0x3f5a   :  { %v7094_v28 = vpop.f32.mrf.mxu1 }
0x3fbe   :  { %v4323_v46 = vpop.f32.mrf.mxu0 }
0x3fbf   :  { %v4324_v55 = vadd.f32 %v4323_v46, %v4301_v52 }
0x3fc1   :  { %vm4326_vm15 = vcmp.ge.f32.partialorder %v4324_v55, 0.0  ;;  %v4327_v8 = vmul.f32 0.01, %v4324_v55 }
0x3fc3   :  { %v4328_v7 = vsel %vm4326_vm15, %v4324_v55, %v4327_v8 }
0x3fc4   :  { %5292 = vmatmul.msk.f32.vlgmr.msra.gmra.mxu2 %vm162_vm0, %v4328_v7 }
0x3fc5   :  { %5036 = vmatpush.msra.mxu2 %v4503_v37 }
0x3fc7   :  { %5037 = vmatpush.msra.mxu2 %v4502_v40 }
0x3fc9   :  { %5038 = vmatpush.msra.mxu2 %v4501_v19 }
0x3fcb   :  { %5039 = vmatpush.msra.mxu2 %v4500_v2 }
0x3fcc   :  { %5295 = vmatmul.msk.f32.vlgmr.msrb.gmra.mxu2 %vm4302_vm14, %v4286_v6 }
0x4047   :  { %v7090_v11 = vpop.f32.mrf.mxu2 }
0x404f   :  { %v4470_v63 = vpop.f32.mrf.mxu2 }
0x4050   :  { %v4471_v22 = vadd.f32 %v4470_v63, %v4452_v18 }
0x4052   :  { %v4473_v57 = vmax.f32 %v4471_v22, 0.0 }
0x4054   :  { %5296 = vmatmul.msk.f32.vlgmr.msrb.gmra.mxu1 %vm190_vm1, %v4473_v57 }
0x4055   :  { %4817 = vmatpush.msrb.mxu1 %v4503_v37 }
0x4057   :  { %4818 = vmatpush.msrb.mxu1 %v4502_v40 }
0x4059   :  { %4819 = vmatpush.msrb.mxu1 %v4501_v19 }
0x405b   :  { %4820 = vmatpush.msrb.mxu1 %v4500_v2 }
0x40d1   :  { %v4497_v32 = vpop.f32.mrf.mxu1 }
0x40d2   :  { %v7097_v0 = vadd.f32 %v4497_v32, %v4476_v56 }
0x40d4   :  { %v4527_v23 = vadd.f32 %v4524_v48, %v7097_v0 }
0x40d6   :  { %5492 = vtanh.f32 %v4527_v23  ;;  %v5297_v24 = vmul.f32 -1.442695, %v4527_v23 }
0x40d8   :  { %5494 = vpow2.f32 %v5297_v24 }
0x40dc   :  { %v5493_v35 = vpop.eup %5492 }
0x40dd   :  { %4550 = vrot.lane.b32.xlu1 %v5493_v35, %s5710_s5 }
0x40de   :  { %v5495_v38 = vpop.eup %5494 }
0x40df   :  { %v4531_v61 = vadd.f32 1.0, %v5495_v38 }
0x40e1   :  { %5496 = vrcp.f32 %v4531_v61  ;;  %v4543_v58 = vand.u32 2147483648, %v4531_v61  ;;  %vm4537_vm3 = vweird.f32 %v4531_v61  ;;  %v4541_v31 = vand.u32 2147483647, %v4531_v61 }
0x40e3   :  { %v4544_v15 = vor.u32 1.1754944e-38, %v4543_v58  ;;  %vm4542_vm5 = vcmp.eq.f32.partialorder %v4541_v31, 8.507059e+37 }
0x40e7   :  { %v5497_v16 = vpop.eup %5496 }
0x40e8   :  { %v4533_v39 = vmul.f32 %v5497_v16, %v4531_v61  ;;  %vm4538_vm1 = vweird.f32 %v5497_v16 }
0x40e9   :  { %vm4539_vm4 = vmor %vm4537_vm3, %vm4538_vm1 }
0x40ea   :  { %v4534_v44 = vsub.f32 1.0, %v4533_v39 }
0x40ec   :  { %v4535_v12 = vmul.f32 %v5497_v16, %v4534_v44 }
0x40ee   :  { %v4536_v20 = vadd.f32 %v5497_v16, %v4535_v12 }
0x40f0   :  { %v4540_v41 = vsel %vm4539_vm4, %v5497_v16, %v4536_v20 }
0x40f1   :  { %v4545_v5 = vsel %vm4542_vm5, %v4544_v15, %v4540_v41 }
0x40f2   :  { %v4548_v25 = vmul.f32 0.0, %v4545_v5 }
0x414f   :  { %v4551_v17 = vpop.permute.xlu1 %4550 }
0x4150   :  { %v4553_v10 = vmul.f32 %v4551_v17, %v4545_v5 }
0x4152   :  { %4555 = vrot.lane.b32.xlu2 %v4553_v10, %s5713_s13 }
0x41ac   :  { %v4556_v43 = vpop.permute.xlu2 %4555 }
0x41ad   :  { %v4558_v59 = vadd.f32 %v4556_v43, %v4548_v25 }
0x41af   :  { %5498 = vtanh.f32 %v4558_v59 }
0x41b5   :  { %v5499_v34 = vpop.eup %5498 }
0x41b6   :  { %4561 = vrot.lane.b32.xlu0 %v5499_v34, %s5710_s5 }
0x4228   :  { %v4562_v53 = vpop.permute.xlu0 %4561 }
0x4229   :  { %v7103_v3 = vmul.f32 %v4562_v53, %v4545_v5 }
0x422b   :  { %4582 = vrot.lane.b32.xlu2 %v7103_v3, %s5713_s13 }
0x4285   :  { %v4583_v54 = vpop.permute.xlu2 %4582 }
0x4286   :  { %5298 = vmatmul.msk.f32.vlgmr.msra.gmra.mxu1 %vm162_vm0, %v4583_v54 }
0x4303   :  { %v4603_v62 = vpop.f32.mrf.mxu1 }
0x4304   :  { %v4606_v47 = vadd.f32 %v4603_v62, %v7097_v0 }
0x4306   :  { %5500 = vtanh.f32 %v4606_v47  ;;  %v5299_v6 = vmul.f32 -1.442695, %v4606_v47 }
0x4308   :  { %5502 = vpow2.f32 %v5299_v6 }
0x430c   :  { %v5501_v33 = vpop.eup %5500 }
0x430d   :  { %4629 = vrot.lane.b32.xlu1 %v5501_v33, %s5710_s5 }
0x430e   :  { %v5503_v60 = vpop.eup %5502 }
0x430f   :  { %v4610_v29 = vadd.f32 1.0, %v5503_v60 }
0x4311   :  { %5504 = vrcp.f32 %v4610_v29  ;;  %v4622_v45 = vand.u32 2147483648, %v4610_v29  ;;  %vm4616_vm2 = vweird.f32 %v4610_v29  ;;  %v4620_v30 = vand.u32 2147483647, %v4610_v29 }
0x4313   :  { %v4623_v51 = vor.u32 1.1754944e-38, %v4622_v45  ;;  %vm4621_vm8 = vcmp.eq.f32.partialorder %v4620_v30, 8.507059e+37 }
0x4317   :  { %v5505_v27 = vpop.eup %5504 }
0x4318   :  { %v4612_v42 = vmul.f32 %v5505_v27, %v4610_v29  ;;  %vm4617_vm6 = vweird.f32 %v5505_v27 }
0x4319   :  { %vm4618_vm7 = vmor %vm4616_vm2, %vm4617_vm6 }
0x431a   :  { %v4613_v13 = vsub.f32 1.0, %v4612_v42 }
0x431c   :  { %v4614_v14 = vmul.f32 %v5505_v27, %v4613_v13 }
0x431e   :  { %v4615_v9 = vadd.f32 %v5505_v27, %v4614_v14 }
0x4320   :  { %v4619_v50 = vsel %vm4618_vm7, %v5505_v27, %v4615_v9 }
0x4321   :  { %v4624_v1 = vsel %vm4621_vm8, %v4623_v51, %v4619_v50 }
0x4322   :  { %v4627_v46 = vmul.f32 %v4624_v1, %v4558_v59 }
0x437f   :  { %v4630_v4 = vpop.permute.xlu1 %4629 }
0x4380   :  { %v4632_v52 = vmul.f32 %v4630_v4, %v4624_v1 }
0x4382   :  { %4634 = vrot.lane.b32.xlu0 %v4632_v52, %s5713_s13 }
0x43f4   :  { %v4635_v55 = vpop.permute.xlu0 %4634 }
0x43f5   :  { %v4637_v8 = vadd.f32 %v4635_v55, %v4627_v46 }
0x43f7   :  { %5506 = vtanh.f32 %v4637_v8 }
0x43fd   :  { %v5507_v7 = vpop.eup %5506 }
0x43fe   :  { %4640 = vrot.lane.b32.xlu2 %v5507_v7, %s5710_s5 }
0x4458   :  { %v4641_v37 = vpop.permute.xlu2 %4640 }
0x4459   :  { %v7112_v40 = vmul.f32 %v4641_v37, %v4624_v1 }
0x445b   :  { %4655 = vrot.lane.b32.xlu1 %v7112_v40, %s5713_s13 }
0x44cd   :  { %v4656_v19 = vpop.permute.xlu1 %4655 }
0x44ce   :  { %5300 = vmatmul.msk.f32.vlgmr.msra.gmra.mxu3 %vm162_vm0, %v4656_v19 }
0x4551   :  { %v4676_v2 = vpop.f32.mrf.mxu3 }
0x4552   :  { %v4679_v49 = vadd.f32 %v4676_v2, %v7097_v0 }
0x4554   :  { %5508 = vtanh.f32 %v4679_v49  ;;  %v5301_v36 = vmul.f32 -1.442695, %v4679_v49 }
0x4556   :  { %5510 = vpow2.f32 %v5301_v36 }
0x455a   :  { %v5509_v21 = vpop.eup %5508 }
0x455b   :  { %4702 = vrot.lane.b32.xlu0 %v5509_v21, %s5710_s5 }
0x455c   :  { %v5511_v18 = vpop.eup %5510 }
0x455d   :  { %v4683_v63 = vadd.f32 1.0, %v5511_v18 }
0x455f   :  { %5512 = vrcp.f32 %v4683_v63  ;;  %v4695_v23 = vand.u32 2147483648, %v4683_v63  ;;  %vm4689_vm10 = vweird.f32 %v4683_v63  ;;  %v4693_v35 = vand.u32 2147483647, %v4683_v63 }
0x4561   :  { %v4696_v38 = vor.u32 1.1754944e-38, %v4695_v23  ;;  %vm4694_vm12 = vcmp.eq.f32.partialorder %v4693_v35, 8.507059e+37 }
0x4565   :  { %v5513_v22 = vpop.eup %5512 }
0x4566   :  { %v4685_v57 = vmul.f32 %v5513_v22, %v4683_v63  ;;  %vm4690_vm9 = vweird.f32 %v5513_v22 }
0x4567   :  { %vm4691_vm11 = vmor %vm4689_vm10, %vm4690_vm9 }
0x4568   :  { %v4686_v56 = vsub.f32 1.0, %v4685_v57 }
0x456a   :  { %v4687_v32 = vmul.f32 %v5513_v22, %v4686_v56 }
0x456c   :  { %v4688_v48 = vadd.f32 %v5513_v22, %v4687_v32 }
0x456e   :  { %v4692_v24 = vsel %vm4691_vm11, %v5513_v22, %v4688_v48 }
0x456f   :  { %v4697_v16 = vsel %vm4694_vm12, %v4696_v38, %v4692_v24 }
0x4570   :  { %v4700_v44 = vmul.f32 %v4697_v16, %v4637_v8 }
0x45cd   :  { %v4703_v61 = vpop.permute.xlu0 %4702 }
0x45ce   :  { %v4705_v39 = vmul.f32 %v4703_v61, %v4697_v16 }
0x45d0   :  { %4707 = vrot.lane.b32.xlu2 %v4705_v39, %s5713_s13 }
0x462a   :  { %v4708_v12 = vpop.permute.xlu2 %4707 }
0x462b   :  { %v4710_v20 = vadd.f32 %v4708_v12, %v4700_v44 }
0x462d   :  { %5514 = vtanh.f32 %v4710_v20 }
0x4633   :  { %v5515_v58 = vpop.eup %5514 }
0x4634   :  { %4713 = vrot.lane.b32.xlu1 %v5515_v58, %s5710_s5 }
0x46a6   :  { %v4714_v31 = vpop.permute.xlu1 %4713 }
0x46a7   :  { %v7121_v41 = vmul.f32 %v4714_v31, %v4697_v16 }
0x46a9   :  { %4728 = vrot.lane.b32.xlu0 %v7121_v41, %s5713_s13 }
0x471b   :  { %v4729_v15 = vpop.permute.xlu0 %4728 }
0x471c   :  { %5302 = vmatmul.msk.f32.vlgmr.msra.gmra.mxu0 %vm162_vm0, %v4729_v15 }
0x4799   :  { %v4749_v17 = vpop.f32.mrf.mxu0 }
0x479a   :  { %v4752_v5 = vadd.f32 %v4749_v17, %v7097_v0 }
0x479c   :  { %5516 = vtanh.f32 %v4752_v5  ;;  %v5303_v25 = vmul.f32 -1.442695, %v4752_v5 }
0x479e   :  { %5518 = vpow2.f32 %v5303_v25 }
0x47a2   :  { %v5517_v10 = vpop.eup %5516 }
0x47a3   :  { %4775 = vrot.lane.b32.xlu2 %v5517_v10, %s5710_s5 }
0x47a4   :  { %v5519_v43 = vpop.eup %5518 }
0x47a5   :  { %v4756_v59 = vadd.f32 1.0, %v5519_v43 }
0x47a7   :  { %5520 = vrcp.f32 %v4756_v59  ;;  %v4768_v33 = vand.u32 2147483648, %v4756_v59  ;;  %vm4762_vm14 = vweird.f32 %v4756_v59  ;;  %v4766_v6 = vand.u32 2147483647, %v4756_v59 }
0x47a9   :  { %v4769_v29 = vor.u32 1.1754944e-38, %v4768_v33  ;;  %vm4767_vm1 = vcmp.eq.f32.partialorder %v4766_v6, 8.507059e+37 }
0x47ad   :  { %v5521_v34 = vpop.eup %5520 }
0x47ae   :  { %v4758_v53 = vmul.f32 %v5521_v34, %v4756_v59  ;;  %vm4763_vm13 = vweird.f32 %v5521_v34 }
0x47af   :  { %vm4764_vm15 = vmor %vm4762_vm14, %vm4763_vm13  ;;  %vm4357_vm14 = vcmask 31744  }
0x47b0   :  { %v4759_v54 = vsub.f32 1.0, %v4758_v53 }
0x47b2   :  { %v4760_v62 = vmul.f32 %v5521_v34, %v4759_v54 }
0x47b4   :  { %v4761_v47 = vadd.f32 %v5521_v34, %v4760_v62 }
0x47b6   :  { %v4765_v60 = vsel %vm4764_vm15, %v5521_v34, %v4761_v47 }
0x47b7   :  { %v4770_v42 = vsel %vm4767_vm1, %v4769_v29, %v4765_v60 }
0x47b8   :  { %v4773_v14 = vmul.f32 %v4770_v42, %v4710_v20 }
0x47fd   :  { %v4776_v27 = vpop.permute.xlu2 %4775 }
0x47fe   :  { %v4778_v13 = vmul.f32 %v4776_v27, %v4770_v42 }
0x4800   :  { %4780 = vrot.lane.b32.xlu1 %v4778_v13, %s5713_s13 }
0x4872   :  { %v4781_v9 = vpop.permute.xlu1 %4780 }
0x4873   :  { %v4783_v45 = vadd.f32 %v4781_v9, %v4773_v14 }
0x4875   :  { %5522 = vtanh.f32 %v4783_v45 }
0x487b   :  { %v5523_v30 = vpop.eup %5522 }
0x487c   :  { %4786 = vrot.lane.b32.xlu0 %v5523_v30, %s5710_s5 }
0x48ee   :  { %v4787_v50 = vpop.permute.xlu0 %4786 }
0x48ef   :  { %v7130_v51 = vmul.f32 %v4787_v50, %v4770_v42 }
0x48f1   :  { %4801 = vrot.lane.b32.xlu2 %v7130_v51, %s5713_s13 }
0x494b   :  { %v4802_v4 = vpop.permute.xlu2 %4801 }
0x494c   :  { %5304 = vmatmul.msk.f32.vlgmr.msrb.gmra.mxu1 %vm162_vm0, %v4802_v4 }
0x49c9   :  { %v4822_v1 = vpop.f32.mrf.mxu1 }
0x49ca   :  { %v4825_v52 = vadd.f32 %v4822_v1, %v7097_v0 }
0x49cc   :  { %5524 = vtanh.f32 %v4825_v52  ;;  %v5305_v55 = vmul.f32 -1.442695, %v4825_v52 }
0x49ce   :  { %5526 = vpow2.f32 %v5305_v55 }
0x49d2   :  { %v5525_v46 = vpop.eup %5524 }
0x49d3   :  { %4848 = vrot.lane.b32.xlu1 %v5525_v46, %s5710_s5 }
0x49d4   :  { %v5527_v8 = vpop.eup %5526 }
0x49d5   :  { %v4829_v7 = vadd.f32 1.0, %v5527_v8 }
0x49d7   :  { %5528 = vrcp.f32 %v4829_v7  ;;  %v4841_v36 = vand.u32 2147483648, %v4829_v7  ;;  %vm4835_vm4 = vweird.f32 %v4829_v7  ;;  %v4839_v18 = vand.u32 2147483647, %v4829_v7 }
0x49d9   :  { %v4842_v22 = vor.u32 1.1754944e-38, %v4841_v36  ;;  %vm4840_vm6 = vcmp.eq.f32.partialorder %v4839_v18, 8.507059e+37  ;;  %v4333_v18 = vperm.slane %v7082_v26, 1 }
0x49dd   :  { %v5529_v37 = vpop.eup %5528 }
0x49de   :  { %v4831_v19 = vmul.f32 %v5529_v37, %v4829_v7  ;;  %vm4836_vm3 = vweird.f32 %v5529_v37 }
0x49df   :  { %vm4837_vm5 = vmor %vm4835_vm4, %vm4836_vm3 }
0x49e0   :  { %v4832_v2 = vsub.f32 1.0, %v4831_v19 }
0x49e2   :  { %v4833_v49 = vmul.f32 %v5529_v37, %v4832_v2 }
0x49e4   :  { %v4834_v21 = vadd.f32 %v5529_v37, %v4833_v49 }
0x49e6   :  { %v4838_v63 = vsel %vm4837_vm5, %v5529_v37, %v4834_v21 }
0x49e7   :  { %v4843_v56 = vsel %vm4840_vm6, %v4842_v22, %v4838_v63  ;;  %v4355_v63 = vadd.f32 %v7090_v11, %v4333_v18 }
0x49e8   :  { %v4846_v48 = vmul.f32 %v4843_v56, %v4783_v45 }
0x49e9   :  { %v4358_v22 = vsel %vm4357_vm14, %v4355_v63, -inf }
0x4a45   :  { %v4849_v57 = vpop.permute.xlu1 %4848 }
0x4a46   :  { %v4851_v32 = vmul.f32 %v4849_v57, %v4843_v56  ;;  %v4566_v57 = vperm.slane %v7082_v26, 7 }
0x4a48   :  { %4853 = vrot.lane.b32.xlu0 %v4851_v32, %s5713_s13 }
0x4aba   :  { %v4854_v23 = vpop.permute.xlu0 %4853 }
0x4abb   :  { %v4856_v35 = vadd.f32 %v4854_v23, %v4846_v48 }
0x4abd   :  { %5530 = vtanh.f32 %v4856_v35 }
0x4ac3   :  { %v5531_v24 = vpop.eup %5530 }
0x4ac4   :  { %4859 = vrot.lane.b32.xlu2 %v5531_v24, %s5710_s5 }
0x4b1e   :  { %v4860_v38 = vpop.permute.xlu2 %4859 }
0x4b1f   :  { %v7139_v61 = vmul.f32 %v4860_v38, %v4843_v56 }
0x4b21   :  { %4874 = vrot.lane.b32.xlu1 %v7139_v61, %s5713_s13 }
0x4b93   :  { %v4875_v16 = vpop.permute.xlu1 %4874 }
0x4b94   :  { %5306 = vmatmul.msk.f32.vlgmr.msrb.gmra.mxu3 %vm162_vm0, %v4875_v16 }
0x4c17   :  { %v4895_v39 = vpop.f32.mrf.mxu3 }
0x4c18   :  { %v4898_v44 = vadd.f32 %v4895_v39, %v7097_v0 }
0x4c1a   :  { %5532 = vtanh.f32 %v4898_v44  ;;  %v5307_v20 = vmul.f32 -1.442695, %v4898_v44  ;;  %v4565_v44 = vmax.f32 %v7103_v3, 0.0  ;;  %v4386_v3 = vperm.slane %v7082_v26, 2 }
0x4c1c   :  { %5534 = vpow2.f32 %v5307_v20  ;;  %v4644_v20 = vmax.f32 %v7112_v40, 0.0  ;;  %v4413_v40 = vperm.slane %v7082_v26, 3 }
0x4c20   :  { %v5533_v12 = vpop.eup %5532 }
0x4c21   :  { %4921 = vrot.lane.b32.xlu0 %v5533_v12, %s5710_s5 }
0x4c22   :  { %v5535_v58 = vpop.eup %5534 }
0x4c23   :  { %v4902_v31 = vadd.f32 1.0, %v5535_v58 }
0x4c25   :  { %5536 = vrcp.f32 %v4902_v31  ;;  %v4914_v43 = vand.u32 2147483648, %v4902_v31  ;;  %vm4908_vm7 = vweird.f32 %v4902_v31  ;;  %v4912_v59 = vand.u32 2147483647, %v4902_v31 }
0x4c27   :  { %v4915_v53 = vor.u32 1.1754944e-38, %v4914_v43  ;;  %vm4913_vm9 = vcmp.eq.f32.partialorder %v4912_v59, 8.507059e+37 }
0x4c2b   :  { %v5537_v15 = vpop.eup %5536 }
0x4c2c   :  { %v4904_v17 = vmul.f32 %v5537_v15, %v4902_v31  ;;  %vm4909_vm2 = vweird.f32 %v5537_v15  ;;  %v4717_v31 = vmax.f32 %v7121_v41, 0.0 }
0x4c2d   :  { %vm4910_vm8 = vmor %vm4908_vm7, %vm4909_vm2 }
0x4c2e   :  { %v4905_v5 = vsub.f32 1.0, %v4904_v17 }
0x4c30   :  { %v4906_v10 = vmul.f32 %v5537_v15, %v4905_v5 }
0x4c32   :  { %v4907_v25 = vadd.f32 %v5537_v15, %v4906_v10  ;;  %v4408_v10 = vadd.f32 %v7094_v28, %v4386_v3 }
0x4c34   :  { %v4911_v34 = vsel %vm4910_vm8, %v5537_v15, %v4907_v25  ;;  %v4411_v25 = vmul.f32 0.01, %v4408_v10  ;;  %vm4410_vm15 = vcmp.ge.f32.partialorder %v4408_v10, 0.0 }
0x4c35   :  { %v4916_v62 = vsel %vm4913_vm9, %v4915_v53, %v4911_v34 }
0x4c36   :  { %v4919_v33 = vmul.f32 %v4916_v62, %v4856_v35  ;;  %v4412_v43 = vsel %vm4410_vm15, %v4408_v10, %v4411_v25  ;;  %vm5122_vm15 = vcmask 15360  }
0x4c37   :  { %v4414_v59 = vmul.f32 %v4413_v40, %v4412_v43 }
0x4c39   :  { %v4415_v41 = vsel %vm162_vm0, %v4414_v59, 0.0 }
0x4c93   :  { %v4922_v54 = vpop.permute.xlu0 %4921 }
0x4c94   :  { %v4924_v47 = vmul.f32 %v4922_v54, %v4916_v62 }
0x4c96   :  { %4926 = vrot.lane.b32.xlu2 %v4924_v47, %s5713_s13 }
0x4cf0   :  { %v4927_v6 = vpop.permute.xlu2 %4926 }
0x4cf1   :  { %v4929_v60 = vadd.f32 %v4927_v6, %v4919_v33 }
0x4cf3   :  { %5538 = vtanh.f32 %v4929_v60 }
0x4cf9   :  { %v5539_v29 = vpop.eup %5538 }
0x4cfa   :  { %4932 = vrot.lane.b32.xlu1 %v5539_v29, %s5710_s5 }
0x4d6c   :  { %v4933_v27 = vpop.permute.xlu1 %4932 }
0x4d6d   :  { %v7148_v42 = vmul.f32 %v4933_v27, %v4916_v62 }
0x4d6f   :  { %4947 = vrot.lane.b32.xlu0 %v7148_v42, %s5713_s13 }
0x4de1   :  { %v4948_v13 = vpop.permute.xlu0 %4947 }
0x4de2   :  { %5308 = vmatmul.msk.f32.vlgmr.msrb.gmra.mxu0 %vm162_vm0, %v4948_v13 }
0x4e5f   :  { %v4968_v14 = vpop.f32.mrf.mxu0 }
0x4e60   :  { %v4971_v9 = vadd.f32 %v4968_v14, %v7097_v0 }
0x4e62   :  { %5540 = vtanh.f32 %v4971_v9  ;;  %v5309_v30 = vmul.f32 -1.442695, %v4971_v9 }
0x4e64   :  { %5542 = vpow2.f32 %v5309_v30 }
0x4e68   :  { %v5541_v45 = vpop.eup %5540 }
0x4e69   :  { %4994 = vrot.lane.b32.xlu2 %v5541_v45, %s5710_s5 }
0x4e6a   :  { %v5543_v50 = vpop.eup %5542 }
0x4e6b   :  { %v4975_v4 = vadd.f32 1.0, %v5543_v50 }
0x4e6d   :  { %5544 = vrcp.f32 %v4975_v4  ;;  %v4987_v7 = vand.u32 2147483648, %v4975_v4  ;;  %vm4981_vm11 = vweird.f32 %v4975_v4  ;;  %v4985_v37 = vand.u32 2147483647, %v4975_v4 }
0x4e6f   :  { %v4988_v2 = vor.u32 1.1754944e-38, %v4987_v7  ;;  %vm4986_vm13 = vcmp.eq.f32.partialorder %v4985_v37, 8.507059e+37 }
0x4e73   :  { %v5545_v1 = vpop.eup %5544 }
0x4e74   :  { %v4977_v52 = vmul.f32 %v5545_v1, %v4975_v4  ;;  %vm4982_vm10 = vweird.f32 %v5545_v1 }
0x4e75   :  { %vm4983_vm12 = vmor %vm4981_vm11, %vm4982_vm10 }
0x4e76   :  { %v4978_v46 = vsub.f32 1.0, %v4977_v52  ;;  %v4863_v52 = vmax.f32 %v7139_v61, 0.0 }
0x4e78   :  { %v4979_v55 = vmul.f32 %v5545_v1, %v4978_v46 }
0x4e7a   :  { %v4980_v8 = vadd.f32 %v5545_v1, %v4979_v55  ;;  %v4936_v55 = vmax.f32 %v7148_v42, 0.0 }
0x4e7c   :  { %v4984_v19 = vsel %vm4983_vm12, %v5545_v1, %v4980_v8 }
0x4e7d   :  { %v4989_v21 = vsel %vm4986_vm13, %v4988_v2, %v4984_v19  ;;  %vm5120_vm13 = vcmask 7168  }
0x4e7e   :  { %v4992_v56 = vmul.f32 %v4989_v21, %v4929_v60 }
0x4ec3   :  { %v4995_v49 = vpop.permute.xlu2 %4994 }
0x4ec4   :  { %v4997_v36 = vmul.f32 %v4995_v49, %v4989_v21 }
0x4ec6   :  { %4999 = vrot.lane.b32.xlu1 %v4997_v36, %s5713_s13 }
0x4ef0   :  { %4359 = vmax.xlane.f32.xlu1 %v4358_v22 }
0x4f09   :  { %4568 = vrot.lane.b32.xlu1 %v4566_v57, %s5706_s28 }
0x4f38   :  { %v5000_v32 = vpop.permute.xlu1 %4999 }
0x4f39   :  { %v7161_v48 = vadd.f32 %v5000_v32, %v4992_v56 }
0x4f3b   :  { %5546 = vtanh.f32 %v7161_v48 }
0x4f41   :  { %v5547_v23 = vpop.eup %5546 }
0x4f42   :  { %5005 = vrot.lane.b32.xlu0 %v5547_v23, %s5710_s5 }
0x4f63   :  { %v4360_v35 = vpop.xlane.xlu1 %4359 }
0x4f64   :  { %v4361_v24 = vsub.f32 %v4355_v63, %v4360_v35 }
0x4f66   :  { %v4362_v11 = vmul.f32 1.442695, %v4361_v24 }
0x4f68   :  { %5548 = vpow2.f32 %v4362_v11 }
0x4f6e   :  { %v5549_v38 = vpop.eup %5548 }
0x4f6f   :  { %v4364_v16 = vsel %vm4357_vm14, %v5549_v38, 0.0 }
0x4f70   :  { %4365 = vadd.xlane.f32.xlu0 %v4364_v16 }
0x4f7b   :  { %v7166_v39 = vpop.permute.xlu1 %4568 }
0x4f7c   :  { %v4571_v12 = vmul.f32 %v7166_v39, %v4565_v44  ;;  %v4645_v58 = vmul.f32 %v4644_v20, %v7166_v39  ;;  %v4718_v15 = vmul.f32 %v4717_v31, %v7166_v39  ;;  %v4864_v46 = vmul.f32 %v4863_v52, %v7166_v39 }
0x4f7d   :  { %v4937_v8 = vmul.f32 %v4936_v55, %v7166_v39 }
0x4f84   :  { %4573 = vrot.lane.b32.xlu0 %v4571_v12, %s5713_s13 }
0x4f8c   :  { %4647 = vrot.lane.b32.xlu0 %v4645_v58, %s5713_s13  ;;  %v4790_v58 = vmax.f32 %v7130_v51, 0.0 }
0x4f8e   :  { %v4791_v31 = vmul.f32 %v4790_v58, %v7166_v39 }
0x4f94   :  { %4720 = vrot.lane.b32.xlu0 %v4718_v15, %s5713_s13 }
0x4fb4   :  { %v5006_v17 = vpop.permute.xlu0 %5005 }
0x4fb5   :  { %v5008_v5 = vmul.f32 %v5006_v17, %v4989_v21 }
0x4fb7   :  { %5020 = vrot.lane.b32.xlu2 %v5008_v5, %s5713_s13  ;;  %v5009_v7 = vmax.f32 %v5008_v5, 0.0 }
0x4fb9   :  { %v5010_v37 = vmul.f32 %v5009_v7, %v7166_v39 }
0x4fe0   :  { %4416 = vadd.xlane.f32.xlu2 %v4415_v41 }
0x4fe3   :  { %v4366_v34 = vpop.xlane.xlu0 %4365 }
0x4fe4   :  { %5550 = vrcp.f32 %v4366_v34  ;;  %v4378_v47 = vand.u32 2147483648, %v4366_v34  ;;  %v4376_v6 = vand.u32 2147483647, %v4366_v34  ;;  %vm4372_vm3 = vweird.f32 %v4366_v34 }
0x4fe6   :  { %v4379_v28 = vor.u32 1.1754944e-38, %v4378_v47  ;;  %vm4377_vm5 = vcmp.eq.f32.partialorder %v4376_v6, 8.507059e+37 }
0x4fea   :  { %v5551_v53 = vpop.eup %5550 }
0x4feb   :  { %v4368_v54 = vmul.f32 %v5551_v53, %v4366_v34  ;;  %vm4373_vm1 = vweird.f32 %v5551_v53 }
0x4fec   :  { %vm4374_vm4 = vmor %vm4372_vm3, %vm4373_vm1  ;;  %vm5124_vm1 = vcmask 23552   ;;  %vm5127_vm3 = vcmask 39936  }
0x4fed   :  { %v4369_v62 = vsub.f32 1.0, %v4368_v54  ;;  %v4418_v54 = vperm.slane %v7082_v26, 4 }
0x4fef   :  { %v4370_v33 = vmul.f32 %v5551_v53, %v4369_v62 }
0x4ff1   :  { %v4371_v60 = vadd.f32 %v5551_v53, %v4370_v33 }
0x4ff3   :  { %v4375_v29 = vsel %vm4374_vm4, %v5551_v53, %v4371_v60  ;;  %vm5129_vm4 = vcmask 48128  }
0x4ff4   :  { %v4380_v27 = vsel %vm4377_vm5, %v4379_v28, %v4375_v29  ;;  %vm5131_vm5 = vcmask 56320  }
0x4ff5   :  { %v4381_v13 = vmul.f32 %v5549_v38, %v4380_v27 }
0x4ff6   :  { %v4574_v14 = vpop.permute.xlu0 %4573 }
0x4ff7   :  { %5136 = vst.msk [vmem:[%s7250_s11] sm:$0xff] %vm4357_vm14, %v4381_v13  ;;  %v4576_v9 = vsel %vm162_vm0, %v4574_v14, 0.0 }
0x4ff8   :  { %4577 = vadd.xlane.f32.xlu2 %v4576_v9 }
0x4ffe   :  { %v4648_v45 = vpop.permute.xlu0 %4647 }
0x4fff   :  { %v4650_v30 = vsel %vm162_vm0, %v4648_v45, 0.0 }
0x5000   :  { %4651 = vadd.xlane.f32.xlu1 %v4650_v30 }
0x5006   :  { %v4721_v50 = vpop.permute.xlu0 %4720 }
0x5007   :  { %v4723_v4 = vsel %vm162_vm0, %v4721_v50, 0.0 }
0x5008   :  { %4724 = vadd.xlane.f32.xlu0 %v4723_v4 }
0x5011   :  { %v5021_v1 = vpop.permute.xlu2 %5020 }
0x5012   :  { %5310 = vmatmul.msk.f32.vlgmr.msra.gmra.mxu2 %vm162_vm0, %v5021_v1 }
0x5019   :  { %4866 = vrot.lane.b32.xlu1 %v4864_v46, %s5713_s13 }
0x5021   :  { %4939 = vrot.lane.b32.xlu1 %v4937_v8, %s5713_s13 }
0x5029   :  { %5012 = vrot.lane.b32.xlu1 %v5010_v37, %s5713_s13 }
0x5053   :  { %v4417_v56 = vpop.xlane.xlu2 %4416 }
0x5054   :  { %v4419_v47 = vadd.f32 %v4418_v54, %v4417_v56 }
0x5056   :  { %v5294_v33 = vmul.f32 -1.442695, %v4419_v47 }
0x506b   :  { %v7201_v35 = vpop.xlane.xlu2 %4577 }
0x5073   :  { %v4652_v19 = vpop.xlane.xlu1 %4651 }
0x507b   :  { %v4725_v53 = vpop.xlane.xlu0 %4724 }
0x508b   :  { %v4867_v2 = vpop.permute.xlu1 %4866 }
0x508c   :  { %v4869_v49 = vsel %vm162_vm0, %v4867_v2, 0.0 }
0x508d   :  { %4870 = vadd.xlane.f32.xlu0 %v4869_v49 }
0x5093   :  { %v4940_v40 = vpop.permute.xlu1 %4939 }
0x5094   :  { %v4942_v43 = vsel %vm162_vm0, %v4940_v40, 0.0 }
0x5095   :  { %v5041_v61 = vpop.f32.mrf.mxu2 }
0x5096   :  { %v5044_v21 = vadd.f32 %v5041_v61, %v7097_v0 }
0x5098   :  { %5552 = vtanh.f32 %v5044_v21  ;;  %v5311_v42 = vmul.f32 -1.442695, %v5044_v21 }
0x509a   :  { %5554 = vpow2.f32 %v5311_v42 }
0x509b   :  { %v5013_v51 = vpop.permute.xlu1 %5012 }
0x509c   :  { %v5015_v59 = vsel %vm162_vm0, %v5013_v51, 0.0 }
0x509e   :  { %v5553_v36 = vpop.eup %5552 }
0x509f   :  { %5067 = vrot.lane.b32.xlu2 %v5553_v36, %s5710_s5 }
0x50a0   :  { %v5555_v18 = vpop.eup %5554 }
0x50a1   :  { %v5048_v63 = vadd.f32 1.0, %v5555_v18 }
0x50a3   :  { %5556 = vrcp.f32 %v5048_v63  ;;  %v5060_v11 = vand.u32 2147483648, %v5048_v63  ;;  %vm5054_vm2 = vweird.f32 %v5048_v63  ;;  %v5058_v0 = vand.u32 2147483647, %v5048_v63 }
0x50a5   :  { %v5061_v16 = vor.u32 1.1754944e-38, %v5060_v11  ;;  %vm5059_vm8 = vcmp.eq.f32.partialorder %v5058_v0, 8.507059e+37 }
0x50a9   :  { %v5557_v22 = vpop.eup %5556 }
0x50aa   :  { %v5050_v57 = vmul.f32 %v5557_v22, %v5048_v63  ;;  %vm5055_vm6 = vweird.f32 %v5557_v22 }
0x50ab   :  { %vm5056_vm7 = vmor %vm5054_vm2, %vm5055_vm6 }
0x50ac   :  { %v5051_v32 = vsub.f32 1.0, %v5050_v57 }
0x50ae   :  { %v5052_v23 = vmul.f32 %v5557_v22, %v5051_v32 }
0x50b0   :  { %v5053_v24 = vadd.f32 %v5557_v22, %v5052_v23 }
0x50b2   :  { %v5057_v38 = vsel %vm5056_vm7, %v5557_v22, %v5053_v24 }
0x50b3   :  { %v5062_v44 = vsel %vm5059_vm8, %v5061_v16, %v5057_v38 }
0x50b4   :  { %v5065_v15 = vmul.f32 %v5062_v44, %v7161_v48  ;;  %v4288_v48 = vld [vmem:[%s7249_s10 + $0x8] sm:$0xff]  ;;  %s5716_s10 = smov 5  }
0x50b5   :  { %v7215_v41 = vperm.slane %v4288_v48, 0 }
0x50b7   :  { %v4653_v34 = vadd.f32 %v4652_v19, %v7215_v41  ;;  %v4726_v26 = vadd.f32 %v4725_v53, %v7215_v41  ;;  %v4580_v63 = vadd.f32 %v7215_v41, %v7201_v35 }
0x50f9   :  { %v5068_v12 = vpop.permute.xlu2 %5067 }
0x50fa   :  { %v5070_v20 = vmul.f32 %v5068_v12, %v5062_v44 }
0x50fc   :  { %5072 = vrot.lane.b32.xlu2 %v5070_v20, %s5713_s13 }
0x5100   :  { %v4871_v62 = vpop.xlane.xlu0 %4870 }
0x5101   :  { %v4872_v1 = vadd.f32 %v4871_v62, %v7215_v41 }
0x5104   :  { %4793 = vrot.lane.b32.xlu2 %v4791_v31, %s5713_s13 }
0x5156   :  { %v5073_v17 = vpop.permute.xlu2 %5072 }
0x5157   :  { %v5075_v5 = vadd.f32 %v5073_v17, %v5065_v15 }
0x5159   :  { %5558 = vtanh.f32 %v5075_v5 }
0x515a   :  { %5560 = vpow2.f32 %v5294_v33 }
0x515e   :  { %v4794_v3 = vpop.permute.xlu2 %4793 }
0x515f   :  { %v5559_v10 = vpop.eup %5558  ;;  %v4796_v25 = vsel %vm162_vm0, %v4794_v3, 0.0 }
0x5160   :  { %4797 = vadd.xlane.f32.xlu2 %v4796_v25  ;;  %5078 = vrot.lane.b32.xlu0 %v5559_v10, %s5710_s5  ;;  %v5561_v13 = vpop.eup %5560  ;;  %s5717_s5 = smov 2  }
0x5161   :  { %v4423_v9 = vadd.f32 1.0, %v5561_v13 }
0x5163   :  { %5562 = vrcp.f32 %v4423_v9  ;;  %v4435_v8 = vand.u32 2147483648, %v4423_v9  ;;  %vm4429_vm10 = vweird.f32 %v4423_v9  ;;  %v4433_v37 = vand.u32 2147483647, %v4423_v9 }
0x5165   :  { %v4436_v2 = vor.u32 1.1754944e-38, %v4435_v8  ;;  %vm4434_vm12 = vcmp.eq.f32.partialorder %v4433_v37, 8.507059e+37 }
0x5168   :  { %4943 = vadd.xlane.f32.xlu2 %v4942_v43 }
0x5169   :  { %v5563_v30 = vpop.eup %5562 }
0x516a   :  { %v4425_v4 = vmul.f32 %v5563_v30, %v4423_v9  ;;  %vm4430_vm9 = vweird.f32 %v5563_v30 }
0x516b   :  { %vm4431_vm11 = vmor %vm4429_vm10, %vm4430_vm9 }
0x5170   :  { %5016 = vadd.xlane.f32.xlu2 %v5015_v59 }
0x5188   :  { %5093 = vrot.lane.b32.xlu2 %v4653_v34, %s5715_s9 }
0x51d2   :  { %v5079_v6 = vpop.permute.xlu0 %5078 }
0x51d3   :  { %v5081_v60 = vmul.f32 %v5079_v6, %v5062_v44  ;;  %v4798_v28 = vpop.xlane.xlu2 %4797 }
0x51d4   :  { %v4799_v50 = vadd.f32 %v4798_v28, %v7215_v41 }
0x51d5   :  { %v5082_v29 = vmax.f32 %v5081_v60, 0.0 }
0x51d7   :  { %v5083_v27 = vmul.f32 %v5082_v29, %v7166_v39  ;;  %v4426_v39 = vsub.f32 1.0, %v4425_v4 }
0x51d9   :  { %5085 = vrot.lane.b32.xlu0 %v5083_v27, %s5713_s13  ;;  %v4427_v52 = vmul.f32 %v5563_v30, %v4426_v39 }
0x51db   :  { %v4944_v14 = vpop.xlane.xlu2 %4943  ;;  %v4428_v55 = vadd.f32 %v5563_v30, %v4427_v52 }
0x51dc   :  { %v4945_v45 = vadd.f32 %v4944_v14, %v7215_v41 }
0x51dd   :  { %v4432_v19 = vsel %vm4431_vm11, %v5563_v30, %v4428_v55 }
0x51de   :  { %5109 = vrot.lane.b32.xlu2 %v4945_v45, %s5716_s10  ;;  %v4437_v49 = vsel %vm4434_vm12, %v4436_v2, %v4432_v19 }
0x51df   :  { %v4439_v61 = vmul.f32 50.0, %v4437_v49 }
0x51e1   :  { %5097 = vrot.lane.b32.xlu0 %v4726_v26, %s5717_s5 }
0x51e3   :  { %v5017_v46 = vpop.xlane.xlu2 %5016 }
0x51e4   :  { %v5018_v7 = vadd.f32 %v5017_v46, %v7215_v41 }
0x51e9   :  { %5101 = vrot.lane.b32.xlu0 %v4799_v50, %s5718_s22 }
0x51eb   :  { %v5094_v18 = vpop.permute.xlu2 %5093 }
0x51ec   :  { %v5121_v22 = vsel %vm5120_vm13, %v4580_v63, %v5094_v18 }
0x51f1   :  { %5105 = vrot.lane.b32.xlu0 %v4872_v1, %s5719_s23 }
0x51f9   :  { %5113 = vrot.lane.b32.xlu0 %v5018_v7, %s5720_s24 }
0x5201   :  { %5138 = vrot.lane.b32.xlu0 %v4439_v61, %s5719_s23 }
0x5238   :  { %v5110_v11 = vpop.permute.xlu2 %5109 }
0x524b   :  { %v5086_v21 = vpop.permute.xlu0 %5085 }
0x524c   :  { %v5088_v36 = vsel %vm162_vm0, %v5086_v21, 0.0  ;;  %vm5141_vm0 = vcmask 39968  }
0x524d   :  { %5089 = vadd.xlane.f32.xlu1 %v5088_v36 }
0x5253   :  { %v5098_v42 = vpop.permute.xlu0 %5097 }
0x5254   :  { %v5123_v57 = vsel %vm5122_vm15, %v5121_v22, %v5098_v42 }
0x525b   :  { %v5102_v56 = vpop.permute.xlu0 %5101 }
0x525c   :  { %v5125_v32 = vsel %vm5124_vm1, %v5123_v57, %v5102_v56 }
0x5263   :  { %v5106_v23 = vpop.permute.xlu0 %5105 }
0x5264   :  { %v5126_v24 = vsel %vm4357_vm14, %v5125_v32, %v5106_v23  ;;  %vm5147_vm14 = vcmask 105512  }
0x5265   :  { %v5128_v0 = vsel %vm5127_vm3, %v5126_v24, %v5110_v11 }
0x526b   :  { %v5114_v38 = vpop.permute.xlu0 %5113 }
0x526c   :  { %v5130_v16 = vsel %vm5129_vm4, %v5128_v0, %v5114_v38 }
0x5273   :  { %v5139_v44 = vpop.permute.xlu0 %5138 }
0x5274   :  { %5142 = vst.msk [vmem:[%s7250_s11] sm:$0xff] %vm5141_vm0, %v5139_v44 }
0x52c0   :  { %v5090_v35 = vpop.xlane.xlu1 %5089 }
0x52c1   :  { %v5091_v12 = vadd.f32 %v5090_v35, %v7215_v41 }
0x52c3   :  { %5117 = vrot.lane.b32.xlu2 %v5091_v12, %s5721_s27 }
0x531d   :  { %v5118_v20 = vpop.permute.xlu2 %5117 }
0x531e   :  { %v5132_v58 = vsel %vm5131_vm5, %v5130_v16, %v5118_v20 }
0x531f   :  { %5564 = vtanh.f32 %v5132_v58 }
0x5325   :  { %v5565_v31 = vpop.eup %5564 }
0x5326   :  { %v5134_v15 = vmul.f32 10.0, %v5565_v31 }
0x5328   :  { %5144 = vrot.lane.b32.xlu1 %v5134_v15, %s5716_s10 }
0x539a   :  { %v5145_v17 = vpop.permute.xlu1 %5144 }
0x539b   :  { %5148 = vst.msk [vmem:[%s7250_s11] sm:$0xff] %vm5147_vm14, %v5145_v17 }
0x539c   :  { %5153 = vsyncpa [#allocation3], 1 }
0x539d   :  { %5154 = vsyncpa [#allocation5], 1 }
0x539e   :  { %5155 = vsyncpa [#allocation8], 1 }

</bundles_post_ra>
